<compile_context>
chip_gen: v5e
topology: v5e:2x2
jax: 0.10.0
libtpu: 0.0.40
codegen_flags: <defaults>
</compile_context>

<pallas_src>
import functools

import jax
import jax.numpy as jnp
from jax import lax
from jax.experimental import pallas as pl
from jax.experimental.pallas import tpu as pltpu


def _mha_kernel(x_ref, wq_ref, bq_ref, wk_ref, bk_ref, wv_ref, bv_ref,
                wo_ref, bo_ref, o_ref, acc_ref, k_cache, v_cache,
                *, q_block, head_dim, heads_per_step):
    qi = pl.program_id(1)
    g = pl.program_id(2)

    @pl.when(g == 0)
    def _():
        acc_ref[...] = jnp.zeros_like(acc_ref)

    # Fill this head-group's K/V cache once per (batch, head-group); every
    # other query tile reuses it (qi axis is "arbitrary" -> in-order on core).
    @pl.when(qi == 0)
    def _():
        x_all = x_ref[0]                                           # (S, D) bf16
        k_cache[g] = (jnp.dot(x_all, wk_ref[...],
                              preferred_element_type=jnp.float32)
                      + bk_ref[...]).astype(jnp.bfloat16)          # (S, gsz)
        v_cache[g] = (jnp.dot(x_all, wv_ref[...],
                              preferred_element_type=jnp.float32)
                      + bv_ref[...]).astype(jnp.bfloat16)

    # Query tile: sliced from the resident (S, D) block (no duplicate input).
    q_start = pl.multiple_of(qi * q_block, q_block)
    xq = x_ref[0, pl.ds(q_start, q_block), :]                      # (tq, D) bf16

    # Q projection; 1/sqrt(head_dim) already folded into wq/bq in the wrapper.
    q = (jnp.dot(xq, wq_ref[...], preferred_element_type=jnp.float32)
         + bq_ref[...]).astype(jnp.bfloat16)                       # (tq, gsz)

    k = k_cache[g]                                                 # (S, gsz) bf16
    v = v_cache[g]

    o_parts = []
    for hh in range(heads_per_step):                               # static unroll
        sl = slice(hh * head_dim, (hh + 1) * head_dim)
        qh, kh, vh = q[:, sl], k[:, sl], v[:, sl]
        # scores = qh @ kh^T: contract last dims directly (no XLU transpose).
        s = lax.dot_general(qh, kh, (((1,), (1,)), ((), ())),
                            preferred_element_type=jnp.float32)    # (tq, S) f32
        s = s - jnp.max(s, axis=-1, keepdims=True)
        p = jnp.exp(s)
        inv = pl.reciprocal(jnp.sum(p, axis=-1, keepdims=True), approx=True)
        o_h = jnp.dot(p.astype(jnp.bfloat16), vh,
                      preferred_element_type=jnp.float32)          # (tq, hd) f32
        # Deferred softmax normalization: (tq, hd) multiply instead of (tq, S).
        o_parts.append((o_h * inv).astype(jnp.bfloat16))

    o_cat = (o_parts[0] if heads_per_step == 1
             else jnp.concatenate(o_parts, axis=-1))               # (tq, gsz)

    # Accumulate this head-group's share of the output projection.
    acc_ref[...] += jnp.dot(o_cat, wo_ref[...],
                            preferred_element_type=jnp.float32)    # (tq, D)

    @pl.when(g == pl.num_programs(2) - 1)
    def _():
        o_ref[0] = (acc_ref[...] + bo_ref[...]).astype(o_ref.dtype)


def _vmem_capacity_bytes():
    try:
        cap = getattr(pltpu.get_tpu_info(), "vmem_capacity_bytes", None)
        if cap:
            return int(cap)
    except Exception:
        pass
    return 128 * 1024 * 1024


def _estimate_vmem_bytes(tq, S, D, gsz, out_itemsize):
    bf, f4 = 2, 4
    blocks = 2 * S * D * bf                                  # x block (double-buffered)
    blocks += 2 * 3 * (D * gsz * bf + gsz * f4)              # wq/wk/wv tiles + biases
    blocks += 2 * (gsz * D * bf + D * f4)                    # wo tile + bo
    blocks += 2 * tq * D * out_itemsize                      # output block
    scratch = tq * D * f4 + 2 * S * D * bf                   # acc + K/V caches
    temps = 2 * tq * S * f4 + tq * S * bf                    # scores / exp + bf16 p
    temps += tq * gsz * (f4 + bf) + S * gsz * (f4 + bf)      # q / k|v projection temps
    temps += 2 * tq * D * f4                                 # misc headroom
    return blocks + scratch + temps


def multihead_attention(x, params, *, num_heads, q_block=None):
    """x: (B, S, D).  params: weights stored (in, out) [= torch W.T], biases (1, D)."""
    B, S, D = x.shape
    head_dim = D // num_heads
    assert head_dim * num_heads == D, "d_model must be divisible by num_heads"
    # Lane-dense per-head slices / weight tiles.
    assert head_dim % 128 == 0, "head_dim must be a multiple of 128 for this kernel"

    # Two heads per step when that fills the 256-wide MXU (v6e/v7x) while
    # keeping lane-aligned per-head slices; otherwise one head per step.
    heads_per_step = 2 if (num_heads % 2 == 0 and head_dim == 128) else 1
    num_groups = num_heads // heads_per_step
    gsz = heads_per_step * head_dim

    vmem_cap = _vmem_capacity_bytes()
    vmem_limit = min(int(vmem_cap * 5 // 8), 100 * 1024 * 1024)

    if q_block is None:
        cands = [c for c in (512, 256, 128) if c <= S and S % c == 0]
        q_block = cands[-1] if cands else S
        for c in cands:  # descending: biggest tile that fits the VMEM budget
            if _estimate_vmem_bytes(c, S, D, gsz, x.dtype.itemsize) <= vmem_limit:
                q_block = c
                break
    assert S % q_block == 0
    nq = S // q_block

    scale = 1.0 / (head_dim ** 0.5)
    # bf16 resident activations/weights (halves DMA + VMEM); biases stay f32.
    x_bf = x.astype(jnp.bfloat16)
    wq = (params["wq"] * scale).astype(jnp.bfloat16)   # fold 1/sqrt(hd) into Wq
    bq = (params["bq"] * scale).astype(jnp.float32)
    wk = params["wk"].astype(jnp.bfloat16)
    bk = params["bk"].astype(jnp.float32)
    wv = params["wv"].astype(jnp.bfloat16)
    bv = params["bv"].astype(jnp.float32)
    wo = params["wo"].astype(jnp.bfloat16)
    bo = params["bo"].astype(jnp.float32)

    kernel = functools.partial(_mha_kernel, q_block=q_block, head_dim=head_dim,
                               heads_per_step=heads_per_step)

    w_spec = pl.BlockSpec((D, gsz), lambda b, qi, g: (0, g))   # wq/wk/wv tiles
    b_spec = pl.BlockSpec((1, gsz), lambda b, qi, g: (0, g))   # bq/bk/bv tiles

    return pl.pallas_call(
        kernel,
        out_shape=jax.ShapeDtypeStruct((B, S, D), x.dtype),
        grid_spec=pltpu.PrefetchScalarGridSpec(
            num_scalar_prefetch=0,
            grid=(B, nq, num_groups),
            in_specs=[
                pl.BlockSpec((1, S, D), lambda b, qi, g: (b, 0, 0)),   # x (bf16)
                w_spec, b_spec,                                        # q
                w_spec, b_spec,                                        # k
                w_spec, b_spec,                                        # v
                pl.BlockSpec((gsz, D), lambda b, qi, g: (g, 0)),       # wo row tile
                pl.BlockSpec((1, D), lambda b, qi, g: (0, 0)),         # bo
            ],
            out_specs=pl.BlockSpec((1, q_block, D), lambda b, qi, g: (b, qi, 0)),
            scratch_shapes=[
                pltpu.VMEM((q_block, D), jnp.float32),                 # output-proj acc
                pltpu.VMEM((num_groups, S, gsz), jnp.bfloat16),        # K cache
                pltpu.VMEM((num_groups, S, gsz), jnp.bfloat16),        # V cache
            ],
        ),
        compiler_params=pltpu.CompilerParams(
            # qi must be "arbitrary": the qi==0 K/V-cache fill and the qi>0
            # reads have to execute in order on the same core (megacore).
            dimension_semantics=("parallel", "arbitrary", "arbitrary"),
            vmem_limit_bytes=vmem_limit),
    )(x_bf, wq, bq, wk, bk, wv, bv, wo, bo)


def _reference(x, params, *, num_heads):
    """Pure-JAX f32 reference mirroring the PyTorch forward exactly."""
    B, S, D = x.shape
    hd = D // num_heads

    def lin(x, w, b):
        return x @ w + b[0]

    q = lin(x, params["wq"], params["bq"]).reshape(B, S, num_heads, hd).transpose(0, 2, 1, 3)
    k = lin(x, params["wk"], params["bk"]).reshape(B, S, num_heads, hd).transpose(0, 2, 1, 3)
    v = lin(x, params["wv"], params["bv"]).reshape(B, S, num_heads, hd).transpose(0, 2, 1, 3)
    scores = jnp.einsum("bhqd,bhkd->bhqk", q, k) / (hd ** 0.5)
    w = jax.nn.softmax(scores, axis=-1)
    out = jnp.einsum("bhqk,bhkd->bhqd", w, v).transpose(0, 2, 1, 3).reshape(B, S, D)
    return lin(out, params["wo"], params["bo"])


if __name__ == "__main__":
    # Small deterministic setup exercising: batch, multiple query tiles
    # (K/V-cache reuse), multiple head groups (output accumulation), and the
    # two-heads-per-step MXU packing (head_dim = 128).
    B, S, D, H = 2, 256, 512, 4
    key = jax.random.PRNGKey(0)
    keys = jax.random.split(key, 9)

    # nn.Linear-like uniform init; weights stored (in, out) = torch W.T.
    bound = 1.0 / (D ** 0.5)

    def u(k, shape):
        return jax.random.uniform(k, shape, jnp.float32, -bound, bound)

    params = {
        "wq": u(keys[0], (D, D)), "bq": u(keys[1], (1, D)),
        "wk": u(keys[2], (D, D)), "bk": u(keys[3], (1, D)),
        "wv": u(keys[4], (D, D)), "bv": u(keys[5], (1, D)),
        "wo": u(keys[6], (D, D)), "bo": u(keys[7], (1, D)),
    }

    x = jax.random.normal(keys[8], (B, S, D), jnp.float32)

    # q_block=128 forces nq=2 so the qi>0 K/V-cache-reuse path runs.
    out = multihead_attention(x, params, num_heads=H, q_block=128)
    out = jax.block_until_ready(out)

    ref = _reference(x, params, num_heads=H)
    assert out.shape == (B, S, D)
    max_err = float(jnp.max(jnp.abs(out - ref)))
    # bf16 MXU operands + approx reciprocal => looser tolerance than pure f32.
    assert jnp.allclose(out, ref, atol=2e-2, rtol=2e-2), (
        f"mismatch vs reference (max|err|={max_err})")

    print("KERNEL_OK")
</pallas_src>

<mosaic_0001>
module attributes {stable_mosaic.version = 11 : i64} {
  func.func @_mha_kernel(%arg0: i32, %arg1: i32, %arg2: i32, %arg3: memref<1x256x512xbf16, #tpu.memory_space<vmem>>, %arg4: memref<512x256xbf16, #tpu.memory_space<vmem>>, %arg5: memref<1x256xf32, #tpu.memory_space<vmem>>, %arg6: memref<512x256xbf16, #tpu.memory_space<vmem>>, %arg7: memref<1x256xf32, #tpu.memory_space<vmem>>, %arg8: memref<512x256xbf16, #tpu.memory_space<vmem>>, %arg9: memref<1x256xf32, #tpu.memory_space<vmem>>, %arg10: memref<256x512xbf16, #tpu.memory_space<vmem>>, %arg11: memref<1x512xf32, #tpu.memory_space<vmem>>, %arg12: memref<1x128x512xf32, #tpu.memory_space<vmem>>, %arg13: memref<128x512xf32, #tpu.memory_space<vmem>>, %arg14: memref<2x256x256xbf16, #tpu.memory_space<vmem>>, %arg15: memref<2x256x256xbf16, #tpu.memory_space<vmem>>) attributes {dimension_semantics = [#tpu.dimension_semantics<parallel>, #tpu.dimension_semantics<arbitrary>, #tpu.dimension_semantics<arbitrary>], iteration_bounds = array<i64: 2, 2, 2>, scalar_prefetch = 0 : i64, scratch_operands = 3 : i64, tpu.core_type = #tpu.core_type<tc>, window_params = [{transform_indices = @transform_0, window_bounds = array<i64: 1, 256, 512>}, {transform_indices = @transform_1, window_bounds = array<i64: 512, 256>}, {transform_indices = @transform_2, window_bounds = array<i64: 1, 256>}, {transform_indices = @transform_3, window_bounds = array<i64: 512, 256>}, {transform_indices = @transform_4, window_bounds = array<i64: 1, 256>}, {transform_indices = @transform_5, window_bounds = array<i64: 512, 256>}, {transform_indices = @transform_6, window_bounds = array<i64: 1, 256>}, {transform_indices = @transform_7, window_bounds = array<i64: 256, 512>}, {pipeline_mode = #tpu.pipeline_mode<synchronous>, transform_indices = @transform_8, window_bounds = array<i64: 1, 512>}, {transform_indices = @transform_9, window_bounds = array<i64: 1, 128, 512>}]} {
    %c0_i32 = arith.constant 0 : i32
    %0 = arith.cmpi eq, %arg2, %c0_i32 : i32
    %1 = arith.extui %0 : i1 to i32
    %c0_i32_0 = arith.constant 0 : i32
    %2 = arith.cmpi ne, %1, %c0_i32_0 : i32
    scf.if %2 {
      %cst_28 = arith.constant 0.000000e+00 : f32
      %66 = vector.broadcast %cst_28 : f32 to vector<128x512xf32>
      %c0_29 = arith.constant 0 : index
      %c0_30 = arith.constant 0 : index
      %67 = vector.load %arg13[%c0_29, %c0_30] : memref<128x512xf32, #tpu.memory_space<vmem>>, vector<128x512xf32>
      tpu.vector_store %arg13[%c0_29, %c0_30], %66 {strides = array<i32>} : memref<128x512xf32, #tpu.memory_space<vmem>>, vector<128x512xf32>,
    } else {
    }
    %c0_i32_1 = arith.constant 0 : i32
    %3 = arith.cmpi eq, %arg1, %c0_i32_1 : i32
    %4 = arith.extui %3 : i1 to i32
    %c0_i32_2 = arith.constant 0 : i32
    %5 = arith.cmpi ne, %4, %c0_i32_2 : i32
    scf.if %5 {
      %c0_28 = arith.constant 0 : index
      %c0_29 = arith.constant 0 : index
      %c0_30 = arith.constant 0 : index
      %66 = vector.load %arg3[%c0_28, %c0_29, %c0_30] : memref<1x256x512xbf16, #tpu.memory_space<vmem>>, vector<1x256x512xbf16>
      %67 = vector.shape_cast %66 : vector<1x256x512xbf16> to vector<256x512xbf16>
      %c0_31 = arith.constant 0 : index
      %c0_32 = arith.constant 0 : index
      %68 = vector.load %arg6[%c0_31, %c0_32] : memref<512x256xbf16, #tpu.memory_space<vmem>>, vector<512x256xbf16>
      %cst_33 = arith.constant dense<0.000000e+00> : vector<256x256xf32>
      %69 = tpu.matmul %67, %68, %cst_33 {dimension_numbers = #tpu.dot_dimension_numbers<[1], [0], [0], [1], [0, 0, 1, 1], [], []>} : vector<256x512xbf16>, vector<512x256xbf16>, vector<256x256xf32> -> vector<256x256xf32>
      %c0_34 = arith.constant 0 : index
      %c0_35 = arith.constant 0 : index
      %70 = vector.load %arg7[%c0_34, %c0_35] : memref<1x256xf32, #tpu.memory_space<vmem>>, vector<1x256xf32>
      %71 = vector.broadcast %70 : vector<1x256xf32> to vector<256x256xf32>
      %72 = arith.addf %69, %71 : vector<256x256xf32>
      %73 = arith.truncf %72 : vector<256x256xf32> to vector<256x256xbf16>
      %74 = arith.index_cast %arg2 : i32 to index
      %c0_36 = arith.constant 0 : index
      %c0_37 = arith.constant 0 : index
      %75 = vector.load %arg14[%74, %c0_36, %c0_37] : memref<2x256x256xbf16, #tpu.memory_space<vmem>>, vector<1x256x256xbf16>
      %76 = vector.shape_cast %75 : vector<1x256x256xbf16> to vector<256x256xbf16>
      %77 = vector.shape_cast %73 : vector<256x256xbf16> to vector<1x256x256xbf16>
      tpu.vector_store %arg14[%74, %c0_36, %c0_37], %77 {strides = array<i32>} : memref<2x256x256xbf16, #tpu.memory_space<vmem>>, vector<1x256x256xbf16>,
      %c0_38 = arith.constant 0 : index
      %c0_39 = arith.constant 0 : index
      %78 = vector.load %arg8[%c0_38, %c0_39] : memref<512x256xbf16, #tpu.memory_space<vmem>>, vector<512x256xbf16>
      %cst_40 = arith.constant dense<0.000000e+00> : vector<256x256xf32>
      %79 = tpu.matmul %67, %78, %cst_40 {dimension_numbers = #tpu.dot_dimension_numbers<[1], [0], [0], [1], [0, 0, 1, 1], [], []>} : vector<256x512xbf16>, vector<512x256xbf16>, vector<256x256xf32> -> vector<256x256xf32>
      %c0_41 = arith.constant 0 : index
      %c0_42 = arith.constant 0 : index
      %80 = vector.load %arg9[%c0_41, %c0_42] : memref<1x256xf32, #tpu.memory_space<vmem>>, vector<1x256xf32>
      %81 = vector.broadcast %80 : vector<1x256xf32> to vector<256x256xf32>
      %82 = arith.addf %79, %81 : vector<256x256xf32>
      %83 = arith.truncf %82 : vector<256x256xf32> to vector<256x256xbf16>
      %84 = arith.index_cast %arg2 : i32 to index
      %c0_43 = arith.constant 0 : index
      %c0_44 = arith.constant 0 : index
      %85 = vector.load %arg15[%84, %c0_43, %c0_44] : memref<2x256x256xbf16, #tpu.memory_space<vmem>>, vector<1x256x256xbf16>
      %86 = vector.shape_cast %85 : vector<1x256x256xbf16> to vector<256x256xbf16>
      %87 = vector.shape_cast %83 : vector<256x256xbf16> to vector<1x256x256xbf16>
      tpu.vector_store %arg15[%84, %c0_43, %c0_44], %87 {strides = array<i32>} : memref<2x256x256xbf16, #tpu.memory_space<vmem>>, vector<1x256x256xbf16>,
    } else {
    }
    %c128_i32 = arith.constant 128 : i32
    %6 = arith.muli %arg1, %c128_i32 : i32
    %7 = tpu.assume_multiple %6, 128 : i32
    %c0 = arith.constant 0 : index
    %8 = arith.index_cast %7 : i32 to index
    %c0_3 = arith.constant 0 : index
    %9 = vector.load %arg3[%c0, %8, %c0_3] : memref<1x256x512xbf16, #tpu.memory_space<vmem>>, vector<1x128x512xbf16>
    %10 = vector.shape_cast %9 : vector<1x128x512xbf16> to vector<128x512xbf16>
    %c0_4 = arith.constant 0 : index
    %c0_5 = arith.constant 0 : index
    %11 = vector.load %arg4[%c0_4, %c0_5] : memref<512x256xbf16, #tpu.memory_space<vmem>>, vector<512x256xbf16>
    %cst = arith.constant dense<0.000000e+00> : vector<128x256xf32>
    %12 = tpu.matmul %10, %11, %cst {dimension_numbers = #tpu.dot_dimension_numbers<[1], [0], [0], [1], [0, 0, 1, 1], [], []>} : vector<128x512xbf16>, vector<512x256xbf16>, vector<128x256xf32> -> vector<128x256xf32>
    %c0_6 = arith.constant 0 : index
    %c0_7 = arith.constant 0 : index
    %13 = vector.load %arg5[%c0_6, %c0_7] : memref<1x256xf32, #tpu.memory_space<vmem>>, vector<1x256xf32>
    %14 = vector.broadcast %13 : vector<1x256xf32> to vector<128x256xf32>
    %15 = arith.addf %12, %14 : vector<128x256xf32>
    %16 = arith.truncf %15 : vector<128x256xf32> to vector<128x256xbf16>
    %17 = arith.index_cast %arg2 : i32 to index
    %c0_8 = arith.constant 0 : index
    %c0_9 = arith.constant 0 : index
    %18 = vector.load %arg14[%17, %c0_8, %c0_9] : memref<2x256x256xbf16, #tpu.memory_space<vmem>>, vector<1x256x256xbf16>
    %19 = vector.shape_cast %18 : vector<1x256x256xbf16> to vector<256x256xbf16>
    %20 = arith.index_cast %arg2 : i32 to index
    %c0_10 = arith.constant 0 : index
    %c0_11 = arith.constant 0 : index
    %21 = vector.load %arg15[%20, %c0_10, %c0_11] : memref<2x256x256xbf16, #tpu.memory_space<vmem>>, vector<1x256x256xbf16>
    %22 = vector.shape_cast %21 : vector<1x256x256xbf16> to vector<256x256xbf16>
    %23 = vector.extract_strided_slice %16 {offsets = [0, 0], sizes = [128, 128], strides = [1, 1]} : vector<128x256xbf16> to vector<128x128xbf16>
    %24 = vector.extract_strided_slice %19 {offsets = [0, 0], sizes = [256, 128], strides = [1, 1]} : vector<256x256xbf16> to vector<256x128xbf16>
    %25 = vector.extract_strided_slice %22 {offsets = [0, 0], sizes = [256, 128], strides = [1, 1]} : vector<256x256xbf16> to vector<256x128xbf16>
    %cst_12 = arith.constant dense<0.000000e+00> : vector<128x256xf32>
    %26 = tpu.matmul %23, %24, %cst_12 {dimension_numbers = #tpu.dot_dimension_numbers<[1], [1], [0], [0], [0, 0, 1, 0], [], []>} : vector<128x128xbf16>, vector<256x128xbf16>, vector<128x256xf32> -> vector<128x256xf32>
    %cst_13 = arith.constant dense<0xFF800000> : vector<128xf32>
    %27 = vector.multi_reduction <maximumf>, %26, %cst_13 [1] : vector<128x256xf32> to vector<128xf32>
    %28 = vector.shape_cast %27 : vector<128xf32> to vector<128x1xf32>
    %29 = vector.broadcast %28 : vector<128x1xf32> to vector<128x256xf32>
    %30 = arith.subf %26, %29 : vector<128x256xf32>
    %31 = math.exp %30 : vector<128x256xf32>
    %cst_14 = arith.constant dense<0.000000e+00> : vector<128xf32>
    %32 = vector.multi_reduction <add>, %31, %cst_14 [1] : vector<128x256xf32> to vector<128xf32>
    %33 = vector.shape_cast %32 : vector<128xf32> to vector<128x1xf32>
    %34 = tpu.reciprocal %33 {approx = true} : vector<128x1xf32> -> vector<128x1xf32>
    %35 = arith.truncf %31 : vector<128x256xf32> to vector<128x256xbf16>
    %cst_15 = arith.constant dense<0.000000e+00> : vector<128x128xf32>
    %36 = tpu.matmul %35, %25, %cst_15 {dimension_numbers = #tpu.dot_dimension_numbers<[1], [0], [0], [1], [0, 0, 1, 1], [], []>} : vector<128x256xbf16>, vector<256x128xbf16>, vector<128x128xf32> -> vector<128x128xf32>
    %37 = vector.broadcast %34 : vector<128x1xf32> to vector<128x128xf32>
    %38 = arith.mulf %36, %37 : vector<128x128xf32>
    %39 = arith.truncf %38 : vector<128x128xf32> to vector<128x128xbf16>
    %40 = vector.extract_strided_slice %16 {offsets = [0, 128], sizes = [128, 128], strides = [1, 1]} : vector<128x256xbf16> to vector<128x128xbf16>
    %41 = vector.extract_strided_slice %19 {offsets = [0, 128], sizes = [256, 128], strides = [1, 1]} : vector<256x256xbf16> to vector<256x128xbf16>
    %42 = vector.extract_strided_slice %22 {offsets = [0, 128], sizes = [256, 128], strides = [1, 1]} : vector<256x256xbf16> to vector<256x128xbf16>
    %cst_16 = arith.constant dense<0.000000e+00> : vector<128x256xf32>
    %43 = tpu.matmul %40, %41, %cst_16 {dimension_numbers = #tpu.dot_dimension_numbers<[1], [1], [0], [0], [0, 0, 1, 0], [], []>} : vector<128x128xbf16>, vector<256x128xbf16>, vector<128x256xf32> -> vector<128x256xf32>
    %cst_17 = arith.constant dense<0xFF800000> : vector<128xf32>
    %44 = vector.multi_reduction <maximumf>, %43, %cst_17 [1] : vector<128x256xf32> to vector<128xf32>
    %45 = vector.shape_cast %44 : vector<128xf32> to vector<128x1xf32>
    %46 = vector.broadcast %45 : vector<128x1xf32> to vector<128x256xf32>
    %47 = arith.subf %43, %46 : vector<128x256xf32>
    %48 = math.exp %47 : vector<128x256xf32>
    %cst_18 = arith.constant dense<0.000000e+00> : vector<128xf32>
    %49 = vector.multi_reduction <add>, %48, %cst_18 [1] : vector<128x256xf32> to vector<128xf32>
    %50 = vector.shape_cast %49 : vector<128xf32> to vector<128x1xf32>
    %51 = tpu.reciprocal %50 {approx = true} : vector<128x1xf32> -> vector<128x1xf32>
    %52 = arith.truncf %48 : vector<128x256xf32> to vector<128x256xbf16>
    %cst_19 = arith.constant dense<0.000000e+00> : vector<128x128xf32>
    %53 = tpu.matmul %52, %42, %cst_19 {dimension_numbers = #tpu.dot_dimension_numbers<[1], [0], [0], [1], [0, 0, 1, 1], [], []>} : vector<128x256xbf16>, vector<256x128xbf16>, vector<128x128xf32> -> vector<128x128xf32>
    %54 = vector.broadcast %51 : vector<128x1xf32> to vector<128x128xf32>
    %55 = arith.mulf %53, %54 : vector<128x128xf32>
    %56 = arith.truncf %55 : vector<128x128xf32> to vector<128x128xbf16>
    %57 = tpu.concatenate %39, %56 in 1 : vector<128x128xbf16>, vector<128x128xbf16> -> vector<128x256xbf16>
    %c0_20 = arith.constant 0 : index
    %c0_21 = arith.constant 0 : index
    %58 = vector.load %arg13[%c0_20, %c0_21] : memref<128x512xf32, #tpu.memory_space<vmem>>, vector<128x512xf32>
    %c0_22 = arith.constant 0 : index
    %c0_23 = arith.constant 0 : index
    %59 = vector.load %arg10[%c0_22, %c0_23] : memref<256x512xbf16, #tpu.memory_space<vmem>>, vector<256x512xbf16>
    %cst_24 = arith.constant dense<0.000000e+00> : vector<128x512xf32>
    %60 = tpu.matmul %57, %59, %cst_24 {dimension_numbers = #tpu.dot_dimension_numbers<[1], [0], [0], [1], [0, 0, 1, 1], [], []>} : vector<128x256xbf16>, vector<256x512xbf16>, vector<128x512xf32> -> vector<128x512xf32>
    %61 = arith.addf %58, %60 : vector<128x512xf32>
    %c0_25 = arith.constant 0 : index
    %c0_26 = arith.constant 0 : index
    %62 = vector.load %arg13[%c0_25, %c0_26] : memref<128x512xf32, #tpu.memory_space<vmem>>, vector<128x512xf32>
    tpu.vector_store %arg13[%c0_25, %c0_26], %61 {strides = array<i32>} : memref<128x512xf32, #tpu.memory_space<vmem>>, vector<128x512xf32>,
    %c1_i32 = arith.constant 1 : i32
    %63 = arith.cmpi eq, %arg2, %c1_i32 : i32
    %64 = arith.extui %63 : i1 to i32
    %c0_i32_27 = arith.constant 0 : i32
    %65 = arith.cmpi ne, %64, %c0_i32_27 : i32
    scf.if %65 {
      %c0_28 = arith.constant 0 : index
      %c0_29 = arith.constant 0 : index
      %66 = vector.load %arg13[%c0_28, %c0_29] : memref<128x512xf32, #tpu.memory_space<vmem>>, vector<128x512xf32>
      %c0_30 = arith.constant 0 : index
      %c0_31 = arith.constant 0 : index
      %67 = vector.load %arg11[%c0_30, %c0_31] : memref<1x512xf32, #tpu.memory_space<vmem>>, vector<1x512xf32>
      %68 = vector.broadcast %67 : vector<1x512xf32> to vector<128x512xf32>
      %69 = arith.addf %66, %68 : vector<128x512xf32>
      %c0_32 = arith.constant 0 : index
      %c0_33 = arith.constant 0 : index
      %c0_34 = arith.constant 0 : index
      %70 = vector.load %arg12[%c0_32, %c0_33, %c0_34] : memref<1x128x512xf32, #tpu.memory_space<vmem>>, vector<1x128x512xf32>
      %71 = vector.shape_cast %70 : vector<1x128x512xf32> to vector<128x512xf32>
      %72 = vector.shape_cast %69 : vector<128x512xf32> to vector<1x128x512xf32>
      tpu.vector_store %arg12[%c0_32, %c0_33, %c0_34], %72 {strides = array<i32>} : memref<1x128x512xf32, #tpu.memory_space<vmem>>, vector<1x128x512xf32>,
    } else {
    }
    return
  }
  func.func @transform_0(%arg0: i32, %arg1: i32, %arg2: i32) -> (i32, i32, i32) {
    %c0_i32 = arith.constant 0 : i32
    %c0_i32_0 = arith.constant 0 : i32
    %c0_i32_1 = arith.constant 0 : i32
    return %arg0, %c0_i32, %c0_i32_0 : i32, i32, i32
  }
  func.func @transform_1(%arg0: i32, %arg1: i32, %arg2: i32) -> (i32, i32) {
    %c0_i32 = arith.constant 0 : i32
    %c0_i32_0 = arith.constant 0 : i32
    return %c0_i32, %arg2 : i32, i32
  }
  func.func @transform_2(%arg0: i32, %arg1: i32, %arg2: i32) -> (i32, i32) {
    %c0_i32 = arith.constant 0 : i32
    %c0_i32_0 = arith.constant 0 : i32
    return %c0_i32, %arg2 : i32, i32
  }
  func.func @transform_3(%arg0: i32, %arg1: i32, %arg2: i32) -> (i32, i32) {
    %c0_i32 = arith.constant 0 : i32
    %c0_i32_0 = arith.constant 0 : i32
    return %c0_i32, %arg2 : i32, i32
  }
  func.func @transform_4(%arg0: i32, %arg1: i32, %arg2: i32) -> (i32, i32) {
    %c0_i32 = arith.constant 0 : i32
    %c0_i32_0 = arith.constant 0 : i32
    return %c0_i32, %arg2 : i32, i32
  }
  func.func @transform_5(%arg0: i32, %arg1: i32, %arg2: i32) -> (i32, i32) {
    %c0_i32 = arith.constant 0 : i32
    %c0_i32_0 = arith.constant 0 : i32
    return %c0_i32, %arg2 : i32, i32
  }
  func.func @transform_6(%arg0: i32, %arg1: i32, %arg2: i32) -> (i32, i32) {
    %c0_i32 = arith.constant 0 : i32
    %c0_i32_0 = arith.constant 0 : i32
    return %c0_i32, %arg2 : i32, i32
  }
  func.func @transform_7(%arg0: i32, %arg1: i32, %arg2: i32) -> (i32, i32) {
    %c0_i32 = arith.constant 0 : i32
    %c0_i32_0 = arith.constant 0 : i32
    return %arg2, %c0_i32 : i32, i32
  }
  func.func @transform_8(%arg0: i32, %arg1: i32, %arg2: i32) -> (i32, i32) {
    %c0_i32 = arith.constant 0 : i32
    %c0_i32_0 = arith.constant 0 : i32
    %c0_i32_1 = arith.constant 0 : i32
    return %c0_i32, %c0_i32_0 : i32, i32
  }
  func.func @transform_9(%arg0: i32, %arg1: i32, %arg2: i32) -> (i32, i32, i32) {
    %c0_i32 = arith.constant 0 : i32
    %c0_i32_0 = arith.constant 0 : i32
    return %arg0, %arg1, %c0_i32 : i32, i32, i32
  }
}

</mosaic_0001>

<bundles_post_ra>
// kernel: tpu_custom_call.1
= control target key start
LH: loop header
LB: loop body
LE: loop exit
PB: predicated region body
PF: predicated region fallthrough
CT: control target
= control target key end

     0   :  { %s13406_s0 = inlined_call_operand.hbm [shape: bf16[2,256,512], index: 0, kind: input, shape index: {}]   ;;  %s13407_s1 = inlined_call_operand.hbm [shape: bf16[512,512], index: 1, kind: input, shape index: {}]   ;;  %s13408_s2 = inlined_call_operand.hbm [shape: f32[1,512], index: 2, kind: input, shape index: {}]   ;;  %s13409_s3 = inlined_call_operand.hbm [shape: bf16[512,512], index: 3, kind: input, shape index: {}]   ;;  %s13410_s4 = inlined_call_operand.hbm [shape: f32[1,512], index: 4, kind: input, shape index: {}]   ;;  %s13411_s5 = inlined_call_operand.hbm [shape: bf16[512,512], index: 5, kind: input, shape index: {}]   ;;  %s13412_s6 = inlined_call_operand.vmem [shape: f32[1,512], index: 6, kind: input, shape index: {}]   ;;  %s13413_s7 = inlined_call_operand.hbm [shape: bf16[512,512], index: 7, kind: input, shape index: {}]   ;;  %s13414_s8 = inlined_call_operand.hbm [shape: f32[1,512], index: 8, kind: input, shape index: {}]   ;;  %s13415_s9 = inlined_call_operand.hbm [shape: f32[2,256,512], index: 9, kind: output, shape index: {}]  }
   0x1   :  { %13522 = sst [smem:[#allocation100_spill]] %s13406_s0 }
   0x2   :  { %13523 = sst [smem:[#allocation101_spill]] %s13407_s1 }
   0x3   :  { %13524 = sst [smem:[#allocation102_spill]] %s13408_s2 }
   0x4   :  { %13525 = sst [smem:[#allocation103_spill]] %s13409_s3 }
   0x5   :  { %13526 = sst [smem:[#allocation104_spill]] %s13410_s4 }
   0x6   :  { %13527 = sst [smem:[#allocation105_spill]] %s13411_s5 }
   0x7   :  { %13528 = sst [smem:[#allocation106_spill]] %s13412_s6 }
   0x8   :  { %13529 = sst [smem:[#allocation107_spill]] %s13413_s7 }
   0x9   :  { %13530 = sst [smem:[#allocation108_spill]] %s13414_s8 }
   0xa   :  { %13531 = sst [smem:[#allocation109_spill]] %s13415_s9 }
   0xb   :  { %14 = vsyncpa [#allocation6], 0 }
   0xc   :  { %16 = vsyncpa [#allocation6 + $0x1], 0 }
   0xd   :  { %17 = vsyncpa [#allocation9], 0 }
   0xe   :  { %19 = vsyncpa [#allocation9 + $0x1], 0 }
   0xf   :  { %20 = vsyncpa [#allocation12], 0 }
  0x10   :  { %22 = vsyncpa [#allocation12 + $0x1], 0 }
  0x11   :  { %23 = vsyncpa [#allocation15], 0 }
  0x12   :  { %25 = vsyncpa [#allocation15 + $0x1], 0 }
  0x13   :  { %26 = vsyncpa [#allocation18], 0 }
  0x14   :  { %27 = vsyncpa [#allocation7], 0 }
  0x15   :  { %29 = vsyncpa [#allocation7 + $0x1], 0  ;;  %s10363_s30 = smov 0   ;;  %s10365_s10 = smov 0  }
  0x16   :  { %s10367_s11 = smov 0   ;;  %s10369_s12 = smov 0  }
  0x17   :  { %s10371_s13 = smov 0   ;;  %s10373_s14 = smov 0  }
  0x18   :  { %s10375_s15 = smov 0   ;;  %s10377_s16 = smov 0  }
  0x19   :  { %s10379_s17 = smov 0   ;;  %s10381_s18 = smov 0  }
  0x1a   :  { %s10383_s19 = smov 0   ;;  %s10385_s20 = smov 0  }
  0x1b   :  { %s10387_s21 = smov 0   ;;  %s10389_s22 = smov 0  }
  0x1c   :  { %s10391_s23 = smov 0   ;;  %s10393_s24 = smov 0  }
  0x1d LB: > { %13532 = sst [smem:[#allocation26_spill]] %s10243_s30  ;;  %s47_s25 = sadd.s32 1, %s10291_s21  ;;  %s10303_s24 = sphi %s10393_s24, %s35_s24   ;;  %s10299_s23 = sphi %s10391_s23, %s13778_s23   ;;  %s10295_s22 = sphi %s10389_s22, %s13783_s22   ;;  %s10291_s21 = sphi %s10387_s21, %s13776_s21   ;;  %s10287_s20 = sphi %s10385_s20, %s13775_s20   ;;  %s10283_s19 = sphi %s10383_s19, %s13774_s19   ;;  %s10279_s18 = sphi %s10381_s18, %s13773_s18   ;;  %s10275_s17 = sphi %s10379_s17, %s13772_s17   ;;  %s10271_s16 = sphi %s10377_s16, %s13782_s16   ;;  %s10267_s15 = sphi %s10375_s15, %s13781_s15   ;;  %s10263_s14 = sphi %s10373_s14, %s13770_s14   ;;  %s10259_s13 = sphi %s10371_s13, %s13780_s13   ;;  %s10255_s12 = sphi %s10369_s12, %s13779_s12   ;;  %s10251_s11 = sphi %s10367_s11, %s13768_s11   ;;  %s10247_s10 = sphi %s10365_s10, %s13767_s10   ;;  %s10243_s30 = sphi %s10363_s30, %s13766_s30  }
  0x1e   : > { %13533 = sst [smem:[#allocation27_spill]] %s10247_s10  ;;  %p13427_p0 = scmp.eq.s32.totalorder %s10303_s24, 0 }
  0x1f   : > { %13534 = sst [smem:[#allocation28_spill]] %s10251_s11  ;;  %p10445_p1 = scmp.ge.s32.totalorder %s47_s25, 2 }
  0x20   : > { %13535 = sst [smem:[#allocation29_spill]] %s10263_s14  ;;  %s87_s27 = sadd.s32 1, %s10263_s14 }
  0x21   : > { %13536 = sst [smem:[#allocation30_spill]] %s10275_s17  ;;  %p94_p2 = scmp.ne.s32.totalorder %s10263_s14, %s10259_s13 }
  0x22   : > { %13537 = sst [smem:[#allocation31_spill]] %s10279_s18  ;;  %s13785_s25 = smov (%p10445_p1, %s47_s25), 0 }
  0x23   : > { %13538 = sst [smem:[#allocation32_spill]] %s10283_s19  ;;  %p10458_p3 = por %p94_p2, %p13427_p0 }
  0x24   : > { %13539 = sst [smem:[#allocation33_spill]] %s10287_s20  ;;  %p13426_p4 = scmp.lt.s32.totalorder %s10303_s24, 8 }
  0x25   : > { %13540 = sst [smem:[#allocation34_spill]] %s10291_s21  ;;  %s84_s29 = ssub.s32 %s10291_s21, %s13785_s25 }
  0x26   : > { %13541 = sst [smem:[#allocation35_spill]] %s10295_s22  ;;  %p85_p5 = scmp.eq.s32.totalorder %s84_s29, 0 }
  0x27   : > { %13542 = sst [smem:[#allocation36_spill]] %s10299_s23  ;;  %s10466_s9 = sand.u32 1, %s10303_s24  }
  0x28   : > { %13543 = sst [smem:[#allocation37_spill]] %s10303_s24  ;;  %s13421_s20 = sand.u32 1, %s10263_s14  }
  0x29   : > { %13545 = sst [smem:[#allocation38_spill]] %s13785_s25  ;;  %s10474_s6 = sshll.u32 %s13421_s20, 9 }
  0x2a   : > { %s10470_s19 = scalar_select %p85_p5, %s10263_s14, %s87_s27  }
  0x2b   : > { %s9075_s18 = sshll.u32 %s10291_s21, 3  ;;  %s13548_s1 = sld [smem:[#allocation101_spill]] }
  0x2c   : > { %13547 = sst [smem:[#allocation39_spill]] %s10470_s19  ;;  %s367_s25 = scalar_lea.vmem [#allocation8], %s10474_s6 }
  0x2d   : > { %s375_s29 = sshll.u32 %s367_s25, 4  ;;  %p10485_p6 = pnand %p13426_p4, %p10458_p3  ;;  %s376_s29 = int_to_ptr.vmem [resolvable:$true] %s375_s29 }
  0x2e   : > { %s13425_s20 = scalar_lea.sflag [#allocation9], %s10466_s9  ;;  %s13430_s19 = smov 256  }
  0x2f   : > { %s10306_s4 = smov 128   ;;  %s10307_s7 = smov 8  }
  0x30   : > { %s13550_s3 = sld [smem:[#allocation103_spill]]  ;;  %s13429_s8 = scalar_lea.sflag [#allocation12], %s10466_s9 }
  0x31   : > { %s372_s2 = scalar_lea.hbm %s13548_s1, %s9075_s18  ;;  %s408_s1 = scalar_lea.vmem [#allocation11], %s10474_s6 }
  0x32   : > { %s373_s0 = sshll.u32 %s372_s2, 4  ;;  %s416_s21 = sshll.u32 %s408_s1, 4  ;;  %s374_s0 = int_to_ptr.hbm [resolvable:$true] %s373_s0  ;;  %s417_s21 = int_to_ptr.vmem [resolvable:$true] %s416_s21 }
  0x33   : > { %9532 = dma.hbm_to_vmem [thread:$0]  (!%p10485_p6), %s374_s0, 8192, %s376_s29, %s13425_s20, %s13430_s19, %s10306_s4, %s10307_s7  }
  0x34   : > { %s13551_s5 = sld [smem:[#allocation105_spill]]  ;;  %s449_s25 = scalar_lea.vmem [#allocation14], %s10474_s6 }
  0x35   : > { %s13428_s20 = scalar_lea.sflag [#allocation15], %s10466_s9  ;;  %p74_p7 = scmp.ne.s32.totalorder %s10271_s16, %s10267_s15 }
  0x36   : > { %s413_s28 = scalar_lea.hbm %s13550_s3, %s9075_s18  ;;  %p100_p9 = scmp.ne.s32.totalorder %s10259_s13, %s10255_s12 }
  0x37   : > { %s414_s14 = sshll.u32 %s413_s28, 4  ;;  %s457_s28 = sshll.u32 %s449_s25, 4  ;;  %s415_s14 = int_to_ptr.hbm [resolvable:$true] %s414_s14  ;;  %s458_s28 = int_to_ptr.vmem [resolvable:$true] %s457_s28 }
  0x38   : > { %9538 = dma.hbm_to_vmem [thread:$0]  (!%p10485_p6), %s415_s14, 8192, %s417_s21, %s13429_s8, %s13430_s19, %s10306_s4, %s10307_s7  }
  0x39   : > { %s10516_s14 = sadd.s32 4294967295, %s10303_s24   ;;  %p302_p11 = scmp.ne.s32.totalorder %s10251_s11, %s10247_s10 }
  0x3a   : > { %s454_s2 = scalar_lea.hbm %s13551_s5, %s9075_s18  ;;  %s7356_s18 = sadd.s32 4294967294, %s10303_s24  }
  0x3b   : > { %s455_s1 = sshll.u32 %s454_s2, 4  ;;  %p75_p8 = scmp.eq.s32.totalorder %s10516_s14, 0  ;;  %s456_s1 = int_to_ptr.hbm [resolvable:$true] %s455_s1 }
  0x3c   : > { %9544 = dma.hbm_to_vmem [thread:$0]  (!%p10485_p6), %s456_s1, 8192, %s458_s28, %s13428_s20, %s13430_s19, %s10306_s4, %s10307_s7  }
  0x3d   : > { %p10527_p10 = por %p75_p8, %p74_p7  ;;  %p10535_p12 = por %p100_p9, %p75_p8 }
  0x3e   : > { %p303_p13 = scmp.eq.s32.totalorder %s10516_s14, 7  ;;  %p308_p2 = scmp.ne.s32.totalorder %s10247_s10, %s10243_s30 }
  0x3f   : > { %s13553_s4 = scalar_select %p10535_p12, 1, 0 }
  0x40   : > { %p309_p3 = scmp.eq.s32.totalorder %s7356_s18, 7  ;;  %p10542_p5 = por %p303_p13, %p302_p11 }
  0x41   : > { %13554 = sst [smem:[#allocation40_spill]] %s13553_s4  ;;  %p7357_p7 = scmp.ge.s32.totalorder %s10303_s24, 1 }
  0x42   : > { %s13555_s12 = scalar_select %p10542_p5, 1, 0 }
  0x43   : > { %p10547_p4 = por %p309_p3, %p308_p2  ;;  %p316_p9 = scmp.lt.s32.totalorder %s10303_s24, 9 }
  0x44   : > { %13556 = sst [smem:[#allocation41_spill]] %s13555_s12  ;;  %s10308_s28 = smov [#allocation17]  }
  0x45   : > { %s13557_s15 = scalar_select %p10547_p4, 1, 0 }
  0x46   : > { %s13559_s2 = sld [smem:[#allocation108_spill]]  ;;  %p10555_p0 = pnand %p7357_p7, %p316_p9 }
  0x47   : > { %13558 = sst [smem:[#allocation42_spill]] %s13557_s15  ;;  %s330_s18 = sshll.u32 %s10308_s28, 4  ;;  %s331_s18 = int_to_ptr.vmem [resolvable:$true] %s330_s18 }
  0x48   : > { %p9522_p11 = pneg %p10555_p0  ;;  %s50_s7 = sadd.s32 1, %s10295_s22 }
  0x49   : > { %s54_s29 = sadd.s32 1, %s10299_s23  ;;  %s13787_s7 = smov (!%p10445_p1, %s50_s7), %s10295_s22 }
  0x4a   : > { %p9523_p13 = pnand %p9522_p11, %p75_p8  ;;  %p68_p2 = scmp.ne.s32.totalorder %s10275_s17, %s10271_s16 }
  0x4b   : > { %p52_p3 = scmp.ge.s32.totalorder %s13787_s7, 2  ;;  %s341_s20 = sand.u32 1, %s10275_s17  }
  0x4c   : > { %s328_s1 = sshll.u32 %s13559_s2, 4  ;;  %s61_s2 = sadd.s32 1, %s10275_s17  ;;  %s329_s1 = int_to_ptr.hbm [resolvable:$true] %s328_s1 }
  0x4d   : > { %9525 = dma.hbm_to_vmem [thread:$0]  (!%p9523_p13), %s329_s1, 64, %s331_s18, [#allocation18]  }
  0x4e   : > { %p13561_p7 = scmp.eq.s32.totalorder %s10303_s24, 0  ;;  %s13789_s7 = smov (%p52_p3, %s13787_s7), 0 }
  0x4f   : > { %13563 = sst [smem:[#allocation43_spill]] %s13789_s7  ;;  %s13791_s29 = smov (!%p52_p3, %s54_s29), %s10299_s23 }
  0x50   : > { %p10574_p9 = por %p13561_p7, %p68_p2  ;;  %s288_s1 = ssub.s32 %s10295_s22, %s13789_s7 }
  0x51   : > { %s7360_s26 = sshll.u32 %s341_s20, 9  ;;  %p56_p1 = scmp.ge.s32.totalorder %s13791_s29, 2 }
  0x52   : > { %s13564_s28 = sld [smem:[#allocation29_spill]]  ;;  %s9074_s18 = sshll.u32 %s10299_s23, 9 }
  0x53   : > { %s13565_s19 = sld [smem:[#allocation34_spill]]  ;;  %s345_s21 = scalar_lea.vmem [#allocation5], %s7360_s26 }
  0x54   : > { %s353_s3 = sshll.u32 %s345_s21, 4  ;;  %s13793_s29 = smov (%p56_p1, %s13791_s29), 0  ;;  %s354_s3 = int_to_ptr.vmem [resolvable:$true] %s353_s3 }
  0x55   : > { %13566 = sst [smem:[#allocation44_spill]] %s13793_s29  ;;  %s58_s7 = ssub.s32 %s10299_s23, %s13793_s29 }
  0x56   : > { %s13567_s30 = sld [smem:[#allocation100_spill]]  ;;  %p59_p11 = scmp.eq.s32.totalorder %s58_s7, 0 }
  0x57   : > { %s289_s10 = sor.u32 %s288_s1, %s58_s7  ;;  %s13569_s26 = sadd.s32 1, %s10251_s11 }
  0x58   : > { %p290_p13 = scmp.eq.s32.totalorder %s289_s10, 0  ;;  %p13571_p2 = scmp.lt.s32.totalorder %s10303_s24, 8 }
  0x59   : > { %s10592_s4 = scalar_select %p59_p11, %s10275_s17, %s61_s2  }
  0x5a   : > { %s10597_s21 = scalar_select %p290_p13, %s10251_s11, %s13569_s26  }
  0x5b   : > { %13568 = sst [smem:[#allocation45_spill]] %s10592_s4  ;;  %p9527_p3 = pnand %p13571_p2, %p10574_p9 }
  0x5c   : > { %s350_s12 = scalar_lea.hbm %s13567_s30, %s9074_s18  ;;  %13570 = sst [smem:[#allocation46_spill]] %s10597_s21 }
  0x5d   : > { %s351_s22 = sshll.u32 %s350_s12, 4  ;;  %s13572_s5 = sand.u32 1, %s13564_s28   ;;  %s352_s22 = int_to_ptr.hbm [resolvable:$true] %s351_s22 }
  0x5e   : > { %s7366_s15 = sshll.u32 %s13572_s5, 1  ;;  %s7367_s30 = sshll.u32 %s13565_s19, 1 }
  0x5f   : > { %s342_s18 = scalar_lea.sflag [#allocation6], %s341_s20  ;;  %s10309_s12 = smov 16  }
  0x60   : > { %s13573_s7 = smov 256   ;;  %s13574_s1 = sld [smem:[#allocation102_spill]] }
  0x61   : > { %9529 = dma.hbm_to_vmem [thread:$0]  (!%p9527_p3), %s352_s22, 8192, %s354_s3, %s342_s18, %s13573_s7, %s13573_s7, %s10309_s12  }
  0x62   : > { %s389_s29 = scalar_lea.vmem [#allocation10], %s7366_s15  ;;  %s13575_s28 = scalar_lea.sflag [#allocation9], %s10466_s9 }
  0x63   : > { %s397_s8 = sshll.u32 %s389_s29, 4  ;;  %s13576_s4 = sld [smem:[#allocation104_spill]]  ;;  %s398_s8 = int_to_ptr.vmem [resolvable:$true] %s397_s8 }
  0x64   : > { %s430_s3 = scalar_lea.vmem [#allocation13], %s7366_s15  ;;  %s13577_s10 = scalar_lea.sflag [#allocation12], %s10466_s9 }
  0x65   : > { %s438_s22 = sshll.u32 %s430_s3, 4  ;;  %s9079_s29 = sshll.u32 %s13565_s19, 9  ;;  %s439_s22 = int_to_ptr.vmem [resolvable:$true] %s438_s22 }
  0x66   : > { %s393_s26 = scalar_lea.hbm %s13574_s1, %s7367_s30  ;;  %s479_s2 = scalar_lea.vmem [#allocation16], %s10474_s6 }
  0x67   : > { %s395_s23 = sshll.u32 %s393_s26, 4  ;;  %s488_s1 = sshll.u32 %s479_s2, 4  ;;  %s396_s23 = int_to_ptr.hbm [resolvable:$true] %s395_s23  ;;  %s489_s1 = int_to_ptr.vmem [resolvable:$true] %s488_s1 }
  0x68   : > { %9535 = dma.hbm_to_vmem [thread:$0]  (!%p10485_p6), %s396_s23, 32, %s398_s8, %s13575_s28  }
  0x69   : > { %s434_s17 = scalar_lea.hbm %s13576_s4, %s7367_s30  ;;  %s13578_s11 = sld [smem:[#allocation107_spill]] }
  0x6a   : > { %s436_s18 = sshll.u32 %s434_s17, 4  ;;  %s13579_s4 = scalar_lea.sflag [#allocation15], %s10466_s9  ;;  %s437_s18 = int_to_ptr.hbm [resolvable:$true] %s436_s18 }
  0x6b   : > { %9541 = dma.hbm_to_vmem [thread:$0]  (!%p10485_p6), %s437_s18, 32, %s439_s22, %s13577_s10  }
  0x6c   : > { %s502_s17 = sand.u32 (!%p10555_p0), 1, %s10271_s16  }
  0x6d   : > { %500 = sbr.rel (%p10555_p0) target bundleno = 2750 (0xabe), region = 56  ;;  %s7381_s6 = sshll.u32 (!%p10555_p0), %s502_s17, 9 }
  0x6e   : > { %s503_s19 = scalar_lea.sflag (!%p10555_p0), [#allocation6], %s502_s17  ;;  %s10636_s15 = scalar_lea.vmem (!%p10555_p0), [#allocation5], %s7381_s6 }
  0x6f   : > { %s485_s24 = scalar_lea.hbm %s13578_s11, %s9079_s29 }
  0x70   : > { %s486_s23 = sshll.u32 %s485_s24, 4  ;;  %s487_s23 = int_to_ptr.hbm [resolvable:$true] %s486_s23 }
  0x71   : > { %9547 = dma.hbm_to_vmem [thread:$0]  (!%p10485_p6), %s487_s23, 8192, %s489_s1, %s13579_s4, %s13573_s7, %s13573_s7, %s10309_s12  }
  0x72   : > { %10218 = dma.done.wait (%p10527_p10), %s503_s19, 8192  }
  0x73   : > { %10220 = vsyncadd (%p10527_p10), %s503_s19, 4294959104  ;;  %s512_s9 = sand.u32 1, %s10516_s14   ;;  %s514_s24 = sand.u32 1, %s10259_s13  }
  0x74   : > { %s7382_s27 = sshll.u32 %s514_s24, 9  ;;  %s513_s25 = scalar_lea.sflag [#allocation9], %s512_s9 }
  0x75   : > { %s10644_s21 = scalar_lea.vmem [#allocation8], %s7382_s27 }
  0x76   : > { %10222 = dma.done.wait (%p10535_p12), %s513_s25, 8224  }
  0x77   : > { %10224 = vsyncadd (%p10535_p12), %s513_s25, 4294959072  ;;  %s10650_s30 = sshll.u32 %s514_s24, 1  ;;  %s533_s12 = scalar_lea.sflag [#allocation12], %s512_s9 }
  0x78   : > { %s526_s0 = scalar_lea.vmem [#allocation10], %s10650_s30  ;;  %s10653_s7 = scalar_lea.vmem [#allocation11], %s7382_s27 }
  0x79   : > { %10226 = dma.done.wait (%p10535_p12), %s533_s12, 8224  }
  0x7a   : > { %10228 = vsyncadd (%p10535_p12), %s533_s12, 4294959072  ;;  %s546_s8 = scalar_lea.vmem [#allocation13], %s10650_s30  ;;  %s553_s28 = scalar_lea.sflag [#allocation15], %s512_s9 }
  0x7b   : > { %s10660_s20 = scalar_lea.vmem [#allocation14], %s7382_s27 }
  0x7c   : > { %10230 = dma.done.wait (%p10535_p12), %s553_s28, 16384  }
  0x7d   : > { %10232 = vsyncadd (%p10535_p12), %s553_s28, 4294950912  ;;  %s10666_s5 = scalar_lea.vmem [#allocation16], %s7382_s27 }
  0x7e   : > { %10234 = dma.done.wait (%p75_p8), [#allocation18], 64  }
  0x7f   : > { %10236 = vsyncadd (%p75_p8), [#allocation18], 4294967232  ;;  %s13581_s3 = sld [smem:[#allocation27_spill]] }
  0x80   : > { %s13582_s22 = sld [smem:[#allocation31_spill]] }
  0x81   : > { %s13583_s26 = sld [smem:[#allocation106_spill]] }
  0x85   : > { %s638_s18 = sand.u32 1, %s13581_s3  }
  0x86   : > { %s7390_s10 = sshll.u32 %s13582_s22, 1  ;;  %s7389_s29 = sshll.u32 %s638_s18, 9 }
  0x87   : > { %p647_p0 = scmp.lt.s32.totalorder %s7390_s10, 3  ;;  %s10682_s4 = scalar_lea.vmem [#allocation19], %s7389_s29 }
  0x88   : > { %p7391_p6 = scmp.ne.s32.totalorder %s13582_s22, 0 }
  0x89   : > { %s13795_s10 = smov (!%p647_p0, %s7390_s10), 3 }
  0x8a   : > { %s649_s23 = scalar_lea.vmem %s13583_s26, %s13795_s10  ;;  %656 = sbr.rel (%p7391_p6) target bundleno = 208 (0xd0), region = 92 }
  0x8f   : > { %v10310_v0 = vmov 0.0  }
  0x90   : > { %657 = vst [vmem:[#allocation2 + $0xb0] sm:$0xff] %v10310_v0 }
  0x91   : > { %658 = vst [vmem:[#allocation2 + $0x1b0] sm:$0xff] %v10310_v0 }
  0x92   : > { %659 = vst [vmem:[#allocation2 + $0xd8] sm:$0xff] %v10310_v0 }
  0x93   : > { %660 = vst [vmem:[#allocation2 + $0x18] sm:$0xff] %v10310_v0 }
  0x94   : > { %661 = vst [vmem:[#allocation2 + $0x50] sm:$0xff] %v10310_v0 }
  0x95   : > { %662 = vst [vmem:[#allocation2 + $0x168] sm:$0xff] %v10310_v0 }
  0x96   : > { %663 = vst [vmem:[#allocation2 + $0x130] sm:$0xff] %v10310_v0 }
  0x97   : > { %664 = vst [vmem:[#allocation2 + $0x48] sm:$0xff] %v10310_v0 }
  0x98   : > { %665 = vst [vmem:[#allocation2 + $0x180] sm:$0xff] %v10310_v0 }
  0x99   : > { %666 = vst [vmem:[#allocation2 + $0x110] sm:$0xff] %v10310_v0 }
  0x9a   : > { %667 = vst [vmem:[#allocation2 + $0x118] sm:$0xff] %v10310_v0 }
  0x9b   : > { %668 = vst [vmem:[#allocation2 + $0x98] sm:$0xff] %v10310_v0 }
  0x9c   : > { %669 = vst [vmem:[#allocation2 + $0x120] sm:$0xff] %v10310_v0 }
  0x9d   : > { %670 = vst [vmem:[#allocation2 + $0x150] sm:$0xff] %v10310_v0 }
  0x9e   : > { %671 = vst [vmem:[#allocation2 + $0x108] sm:$0xff] %v10310_v0 }
  0x9f   : > { %672 = vst [vmem:[#allocation2 + $0x60] sm:$0xff] %v10310_v0 }
  0xa0   : > { %673 = vst [vmem:[#allocation2 + $0xe0] sm:$0xff] %v10310_v0 }
  0xa1   : > { %674 = vst [vmem:[#allocation2 + $0x188] sm:$0xff] %v10310_v0 }
  0xa2   : > { %675 = vst [vmem:[#allocation2 + $0x138] sm:$0xff] %v10310_v0 }
  0xa3   : > { %676 = vst [vmem:[#allocation2 + $0x140] sm:$0xff] %v10310_v0 }
  0xa4   : > { %677 = vst [vmem:[#allocation2 + $0x80] sm:$0xff] %v10310_v0 }
  0xa5   : > { %678 = vst [vmem:[#allocation2 + $0x1a8] sm:$0xff] %v10310_v0 }
  0xa6   : > { %679 = vst [vmem:[#allocation2 + $0x1b8] sm:$0xff] %v10310_v0 }
  0xa7   : > { %680 = vst [vmem:[#allocation2 + $0x28] sm:$0xff] %v10310_v0 }
  0xa8   : > { %681 = vst [vmem:[#allocation2 + $0x1e8] sm:$0xff] %v10310_v0 }
  0xa9   : > { %682 = vst [vmem:[#allocation2 + $0xf8] sm:$0xff] %v10310_v0 }
  0xaa   : > { %683 = vst [vmem:[#allocation2 + $0x160] sm:$0xff] %v10310_v0 }
  0xab   : > { %684 = vst [vmem:[#allocation2 + $0x30] sm:$0xff] %v10310_v0 }
  0xac   : > { %685 = vst [vmem:[#allocation2 + $0x1e0] sm:$0xff] %v10310_v0 }
  0xad   : > { %686 = vst [vmem:[#allocation2] sm:$0xff] %v10310_v0 }
  0xae   : > { %687 = vst [vmem:[#allocation2 + $0xf0] sm:$0xff] %v10310_v0 }
  0xaf   : > { %688 = vst [vmem:[#allocation2 + $0x8] sm:$0xff] %v10310_v0 }
  0xb0   : > { %689 = vst [vmem:[#allocation2 + $0x148] sm:$0xff] %v10310_v0 }
  0xb1   : > { %690 = vst [vmem:[#allocation2 + $0x1d0] sm:$0xff] %v10310_v0 }
  0xb2   : > { %691 = vst [vmem:[#allocation2 + $0x100] sm:$0xff] %v10310_v0 }
  0xb3   : > { %692 = vst [vmem:[#allocation2 + $0xc8] sm:$0xff] %v10310_v0 }
  0xb4   : > { %693 = vst [vmem:[#allocation2 + $0x40] sm:$0xff] %v10310_v0 }
  0xb5   : > { %694 = vst [vmem:[#allocation2 + $0x1f8] sm:$0xff] %v10310_v0 }
  0xb6   : > { %695 = vst [vmem:[#allocation2 + $0x20] sm:$0xff] %v10310_v0 }
  0xb7   : > { %696 = vst [vmem:[#allocation2 + $0x128] sm:$0xff] %v10310_v0 }
  0xb8   : > { %697 = vst [vmem:[#allocation2 + $0x1a0] sm:$0xff] %v10310_v0 }
  0xb9   : > { %698 = vst [vmem:[#allocation2 + $0x1f0] sm:$0xff] %v10310_v0 }
  0xba   : > { %699 = vst [vmem:[#allocation2 + $0xe8] sm:$0xff] %v10310_v0 }
  0xbb   : > { %700 = vst [vmem:[#allocation2 + $0x78] sm:$0xff] %v10310_v0 }
  0xbc   : > { %701 = vst [vmem:[#allocation2 + $0x70] sm:$0xff] %v10310_v0 }
  0xbd   : > { %702 = vst [vmem:[#allocation2 + $0x90] sm:$0xff] %v10310_v0 }
  0xbe   : > { %703 = vst [vmem:[#allocation2 + $0x1d8] sm:$0xff] %v10310_v0 }
  0xbf   : > { %704 = vst [vmem:[#allocation2 + $0xd0] sm:$0xff] %v10310_v0 }
  0xc0   : > { %705 = vst [vmem:[#allocation2 + $0xb8] sm:$0xff] %v10310_v0 }
  0xc1   : > { %706 = vst [vmem:[#allocation2 + $0x88] sm:$0xff] %v10310_v0 }
  0xc2   : > { %707 = vst [vmem:[#allocation2 + $0xa8] sm:$0xff] %v10310_v0 }
  0xc3   : > { %708 = vst [vmem:[#allocation2 + $0x1c8] sm:$0xff] %v10310_v0 }
  0xc4   : > { %709 = vst [vmem:[#allocation2 + $0x170] sm:$0xff] %v10310_v0 }
  0xc5   : > { %710 = vst [vmem:[#allocation2 + $0x178] sm:$0xff] %v10310_v0 }
  0xc6   : > { %711 = vst [vmem:[#allocation2 + $0x68] sm:$0xff] %v10310_v0 }
  0xc7   : > { %712 = vst [vmem:[#allocation2 + $0x190] sm:$0xff] %v10310_v0 }
  0xc8   : > { %713 = vst [vmem:[#allocation2 + $0x198] sm:$0xff] %v10310_v0 }
  0xc9   : > { %714 = vst [vmem:[#allocation2 + $0x38] sm:$0xff] %v10310_v0 }
  0xca   : > { %715 = vst [vmem:[#allocation2 + $0xc0] sm:$0xff] %v10310_v0 }
  0xcb   : > { %716 = vst [vmem:[#allocation2 + $0x1c0] sm:$0xff] %v10310_v0 }
  0xcc   : > { %717 = vst [vmem:[#allocation2 + $0x158] sm:$0xff] %v10310_v0 }
  0xcd   : > { %718 = vst [vmem:[#allocation2 + $0x10] sm:$0xff] %v10310_v0 }
  0xce   : > { %719 = vst [vmem:[#allocation2 + $0x58] sm:$0xff] %v10310_v0 }
  0xcf   : > { %720 = vst [vmem:[#allocation2 + $0xa0] sm:$0xff] %v10310_v0 }
  0xd0 PF: > { %s13584_s14 = sld [smem:[#allocation32_spill]] }
  0xd6   : > { %p7392_p8 = scmp.ne.s32.totalorder %s13584_s14, 0 }
  0xd8   : > { %724 = sbr.rel (%p7392_p8) target bundleno = 1412 (0x584), region = 96 }
  0xdd   : > { %v7707_v1 = vld [vmem:[%s10653_s7 + $0x70] sm:$0xf]  ;;  %v9159_v2 = vld [vmem:[%s10653_s7 + $0x74] sm:$0xf0]  ;;  %v7699_v12 = vld [vmem:[%s10653_s7 + $0x60] sm:$0xf] }
  0xde   : > { %v7771_v3 = vld [vmem:[%s10653_s7 + $0xf0] sm:$0xf]  ;;  %v7708_v4 = vor.u32 %v9159_v2, %v7707_v1  ;;  %v9175_v5 = vld [vmem:[%s10653_s7 + $0xf4] sm:$0xf0]  ;;  %v9157_v14 = vld [vmem:[%s10653_s7 + $0x64] sm:$0xf0] }
  0xdf   : > { %v7835_v6 = vld [vmem:[%s10653_s7 + $0x170] sm:$0xf]  ;;  %v9191_v7 = vld [vmem:[%s10653_s7 + $0x174] sm:$0xf0]  ;;  %v7772_v8 = vor.u32 %v9175_v5, %v7771_v3  ;;  %v7763_v15 = vld [vmem:[%s10653_s7 + $0xe0] sm:$0xf]  ;;  %v7700_v17 = vor.u32 %v9157_v14, %v7699_v12 }
  0xe0   : > { %v7836_v9 = vor.u32 %v9191_v7, %v7835_v6  ;;  %v7899_v10 = vld [vmem:[%s10653_s7 + $0x1f0] sm:$0xf]  ;;  %v9207_v11 = vld [vmem:[%s10653_s7 + $0x1f4] sm:$0xf0]  ;;  %1499 = vmatpush.bf16.msra.mxu0 %v7708_v4  ;;  %v9173_v16 = vld [vmem:[%s10653_s7 + $0xe4] sm:$0xf0] }
  0xe1   : > { %v7900_v13 = vor.u32 %v9207_v11, %v7899_v10  ;;  %1588 = vmatpush.bf16.msra.mxu1 %v7772_v8  ;;  %v7764_v18 = vor.u32 %v9173_v16, %v7763_v15  ;;  %v7827_v19 = vld [vmem:[%s10653_s7 + $0x160] sm:$0xf]  ;;  %v9189_v20 = vld [vmem:[%s10653_s7 + $0x164] sm:$0xf0]  ;;  %v7691_v24 = vld [vmem:[%s10653_s7 + $0x50] sm:$0xf] }
  0xe2   : > { %1677 = vmatpush.bf16.msra.mxu2 %v7836_v9  ;;  %v7891_v21 = vld [vmem:[%s10653_s7 + $0x1e0] sm:$0xf]  ;;  %v7828_v22 = vor.u32 %v9189_v20, %v7827_v19  ;;  %v9205_v23 = vld [vmem:[%s10653_s7 + $0x1e4] sm:$0xf0]  ;;  %v9155_v25 = vld [vmem:[%s10653_s7 + $0x54] sm:$0xf0] }
  0xe3   : > { %1766 = vmatpush.bf16.msra.mxu3 %v7900_v13  ;;  %v7892_v26 = vor.u32 %v9205_v23, %v7891_v21  ;;  %v7755_v27 = vld [vmem:[%s10653_s7 + $0xd0] sm:$0xf]  ;;  %v9171_v28 = vld [vmem:[%s10653_s7 + $0xd4] sm:$0xf0]  ;;  %v7692_v30 = vor.u32 %v9155_v25, %v7691_v24  ;;  %v7683_v36 = vld [vmem:[%s10653_s7 + $0x40] sm:$0xf] }
  0xe4   : > { %v7819_v29 = vld [vmem:[%s10653_s7 + $0x150] sm:$0xf]  ;;  %1500 = vmatpush.bf16.msra.mxu0 %v7700_v17  ;;  %v9187_v31 = vld [vmem:[%s10653_s7 + $0x154] sm:$0xf0]  ;;  %v7756_v34 = vor.u32 %v9171_v28, %v7755_v27  ;;  %v9153_v37 = vld [vmem:[%s10653_s7 + $0x44] sm:$0xf0] }
  0xe5   : > { %v7883_v32 = vld [vmem:[%s10653_s7 + $0x1d0] sm:$0xf]  ;;  %v9203_v33 = vld [vmem:[%s10653_s7 + $0x1d4] sm:$0xf0]  ;;  %1589 = vmatpush.bf16.msra.mxu1 %v7764_v18  ;;  %v7820_v35 = vor.u32 %v9187_v31, %v7819_v29  ;;  %v7747_v38 = vld [vmem:[%s10653_s7 + $0xc0] sm:$0xf]  ;;  %v7684_v45 = vor.u32 %v9153_v37, %v7683_v36 }
  0xe6   : > { %1678 = vmatpush.bf16.msra.mxu2 %v7828_v22  ;;  %v7884_v39 = vor.u32 %v9203_v33, %v7883_v32  ;;  %v9169_v40 = vld [vmem:[%s10653_s7 + $0xc4] sm:$0xf0]  ;;  %v7811_v41 = vld [vmem:[%s10653_s7 + $0x140] sm:$0xf]  ;;  %v7675_v48 = vld [vmem:[%s10653_s7 + $0x30] sm:$0xf] }
  0xe7   : > { %1767 = vmatpush.bf16.msra.mxu3 %v7892_v26  ;;  %v9185_v42 = vld [vmem:[%s10653_s7 + $0x144] sm:$0xf0]  ;;  %v7875_v43 = vld [vmem:[%s10653_s7 + $0x1c0] sm:$0xf]  ;;  %v7748_v46 = vor.u32 %v9169_v40, %v7747_v38  ;;  %v9151_v49 = vld [vmem:[%s10653_s7 + $0x34] sm:$0xf0] }
  0xe8   : > { %v9201_v44 = vld [vmem:[%s10653_s7 + $0x1c4] sm:$0xf0]  ;;  %1501 = vmatpush.bf16.msra.mxu0 %v7692_v30  ;;  %v7812_v47 = vor.u32 %v9185_v42, %v7811_v41  ;;  %v7739_v50 = vld [vmem:[%s10653_s7 + $0xb0] sm:$0xf]  ;;  %v9167_v52 = vld [vmem:[%s10653_s7 + $0xb4] sm:$0xf0]  ;;  %v7676_v57 = vor.u32 %v9151_v49, %v7675_v48 }
  0xe9   : > { %1590 = vmatpush.bf16.msra.mxu1 %v7756_v34  ;;  %v7876_v51 = vor.u32 %v9201_v44, %v7875_v43  ;;  %v7803_v53 = vld [vmem:[%s10653_s7 + $0x130] sm:$0xf]  ;;  %v9183_v54 = vld [vmem:[%s10653_s7 + $0x134] sm:$0xf0]  ;;  %v7740_v58 = vor.u32 %v9167_v52, %v7739_v50  ;;  %v7667_v60 = vld [vmem:[%s10653_s7 + $0x20] sm:$0xf] }
  0xea   : > { %1679 = vmatpush.bf16.msra.mxu2 %v7820_v35  ;;  %v7867_v55 = vld [vmem:[%s10653_s7 + $0x1b0] sm:$0xf]  ;;  %v9199_v56 = vld [vmem:[%s10653_s7 + $0x1b4] sm:$0xf0]  ;;  %v7804_v59 = vor.u32 %v9183_v54, %v7803_v53  ;;  %v9149_v61 = vld [vmem:[%s10653_s7 + $0x24] sm:$0xf0] }
  0xeb   : > { %1768 = vmatpush.bf16.msra.mxu3 %v7884_v39  ;;  %v7731_v62 = vld [vmem:[%s10653_s7 + $0xa0] sm:$0xf]  ;;  %v7868_v63 = vor.u32 %v9199_v56, %v7867_v55  ;;  %v9165_v0 = vld [vmem:[%s10653_s7 + $0xa4] sm:$0xf0]  ;;  %v7668_v5 = vor.u32 %v9149_v61, %v7667_v60  ;;  %v7659_v8 = vld [vmem:[%s10653_s7 + $0x10] sm:$0xf] }
  0xec   : > { %1502 = vmatpush.bf16.msra.mxu0 %v7684_v45  ;;  %v7795_v1 = vld [vmem:[%s10653_s7 + $0x120] sm:$0xf]  ;;  %v9181_v2 = vld [vmem:[%s10653_s7 + $0x124] sm:$0xf0]  ;;  %v7732_v6 = vor.u32 %v9165_v0, %v7731_v62  ;;  %v9147_v9 = vld [vmem:[%s10653_s7 + $0x14] sm:$0xf0] }
  0xed   : > { %1591 = vmatpush.bf16.msra.mxu1 %v7748_v46  ;;  %v7859_v3 = vld [vmem:[%s10653_s7 + $0x1a0] sm:$0xf]  ;;  %v9197_v4 = vld [vmem:[%s10653_s7 + $0x1a4] sm:$0xf0]  ;;  %v7796_v7 = vor.u32 %v9181_v2, %v7795_v1  ;;  %v7723_v10 = vld [vmem:[%s10653_s7 + $0x90] sm:$0xf]  ;;  %v7660_v18 = vor.u32 %v9147_v9, %v7659_v8 }
  0xee   : > { %1680 = vmatpush.bf16.msra.mxu2 %v7812_v47  ;;  %v7860_v11 = vor.u32 %v9197_v4, %v7859_v3  ;;  %v9163_v12 = vld [vmem:[%s10653_s7 + $0x94] sm:$0xf0]  ;;  %v7787_v13 = vld [vmem:[%s10653_s7 + $0x110] sm:$0xf]  ;;  %v7651_v17 = vld [vmem:[%s10653_s7] sm:$0xf] }
  0xef   : > { %1769 = vmatpush.bf16.msra.mxu3 %v7876_v51  ;;  %v9179_v14 = vld [vmem:[%s10653_s7 + $0x114] sm:$0xf0]  ;;  %v7851_v15 = vld [vmem:[%s10653_s7 + $0x190] sm:$0xf]  ;;  %v9145_v19 = vld [vmem:[%s10653_s7 + $0x4] sm:$0xf0]  ;;  %v7724_v22 = vor.u32 %v9163_v12, %v7723_v10 }
  0xf0   : > { %1503 = vmatpush.bf16.msra.mxu0 %v7676_v57  ;;  %v9195_v16 = vld [vmem:[%s10653_s7 + $0x194] sm:$0xf0]  ;;  %v7715_v20 = vld [vmem:[%s10653_s7 + $0x80] sm:$0xf]  ;;  %v9161_v21 = vld [vmem:[%s10653_s7 + $0x84] sm:$0xf0]  ;;  %v7788_v23 = vor.u32 %v9179_v14, %v7787_v13  ;;  %v7652_v34 = vor.u32 %v9145_v19, %v7651_v17 }
  0xf1   : > { %1592 = vmatpush.bf16.msra.mxu1 %v7740_v58  ;;  %v7779_v24 = vld [vmem:[%s10653_s7 + $0x100] sm:$0xf]  ;;  %v9177_v25 = vld [vmem:[%s10653_s7 + $0x104] sm:$0xf0]  ;;  %v7852_v27 = vor.u32 %v9195_v16, %v7851_v15  ;;  %v7395_v29 = vld [vmem:[%s10636_s15] sm:$0xf]  ;;  %v7716_v38 = vor.u32 %v9161_v21, %v7715_v20 }
  0xf2   : > { %1681 = vmatpush.bf16.msra.mxu2 %v7804_v59  ;;  %v7843_v26 = vld [vmem:[%s10653_s7 + $0x180] sm:$0xf]  ;;  %v9193_v28 = vld [vmem:[%s10653_s7 + $0x184] sm:$0xf0]  ;;  %v9082_v30 = vld [vmem:[%s10636_s15 + $0xc] sm:$0xf0]  ;;  %v7780_v39 = vor.u32 %v9177_v25, %v7779_v24 }
  0xf3   : > { %1770 = vmatpush.bf16.msra.mxu3 %v7868_v63  ;;  %v9080_v31 = vld [vmem:[%s10636_s15 + $0x4] sm:$0xf]  ;;  %v9190_v32 = vld [vmem:[%s10653_s7 + $0x174] sm:$0xf]  ;;  %v7837_v33 = vld [vmem:[%s10653_s7 + $0x178] sm:$0xf0]  ;;  %v7844_v43 = vor.u32 %v9193_v28, %v7843_v26  ;;  %v10828_v48 = vor.u32 %v9082_v30, %v7395_v29 }
  0xf4   : > { %1504 = vmatpush.bf16.msra.mxu0 %v7668_v5  ;;  %v7397_v35 = vld [vmem:[%s10636_s15 + $0x10] sm:$0xf0]  ;;  %v9206_v36 = vld [vmem:[%s10653_s7 + $0x1f4] sm:$0xf]  ;;  %v7901_v37 = vld [vmem:[%s10653_s7 + $0x1f8] sm:$0xf0]  ;;  %v7840_v45 = vor.u32 %v9190_v32, %v7837_v33 }
  0xf5   : > { %1593 = vmatpush.bf16.msra.mxu1 %v7732_v6  ;;  %v7403_v40 = vld [vmem:[%s10636_s15 + $0x8] sm:$0xf]  ;;  %v9083_v41 = vld [vmem:[%s10636_s15 + $0x14] sm:$0xf0]  ;;  %v9081_v42 = vld [vmem:[%s10636_s15 + $0xc] sm:$0xf]  ;;  %v7904_v49 = vor.u32 %v9206_v36, %v7901_v37  ;;  %v10832_v52 = vor.u32 %v9080_v31, %v7397_v35 }
  0xf6   : > { %1682 = vmatpush.bf16.msra.mxu2 %v7796_v7  ;;  %v7405_v44 = vld [vmem:[%s10636_s15 + $0x18] sm:$0xf0]  ;;  %v9158_v46 = vld [vmem:[%s10653_s7 + $0x74] sm:$0xf]  ;;  %v7709_v47 = vld [vmem:[%s10653_s7 + $0x78] sm:$0xf0]  ;;  %v10834_v53 = vor.u32 %v9083_v41, %v7403_v40 }
  0xf7   : > { %1771 = vmatpush.bf16.msra.mxu3 %v7860_v11  ;;  %13585 = vst [vmem:[#allocation47_spill] sm:$0xff] %v10828_v48  ;;  %v9174_v50 = vld [vmem:[%s10653_s7 + $0xf4] sm:$0xf]  ;;  %v7773_v51 = vld [vmem:[%s10653_s7 + $0xf8] sm:$0xf0]  ;;  %v10836_v54 = vor.u32 %v9081_v42, %v7405_v44  ;;  %v7712_v55 = vor.u32 %v9158_v46, %v7709_v47  ;;  %s13638_s17 = sld [smem:[#allocation31_spill]] }
  0xf8   : > { %1505 = vmatpush.bf16.msra.mxu0 %v7660_v18  ;;  %13586 = vst [vmem:[#allocation48_spill] sm:$0xff] %v10832_v52  ;;  %v7776_v56 = vor.u32 %v9174_v50, %v7773_v51  ;;  %v9188_v57 = vld [vmem:[%s10653_s7 + $0x164] sm:$0xf]  ;;  %v7829_v58 = vld [vmem:[%s10653_s7 + $0x168] sm:$0xf0] }
  0xf9   : > { %1594 = vmatpush.bf16.msra.mxu1 %v7724_v22  ;;  %13587 = vst [vmem:[#allocation49_spill] sm:$0xff] %v10834_v53  ;;  %v9156_v59 = vld [vmem:[%s10653_s7 + $0x64] sm:$0xf]  ;;  %v7832_v60 = vor.u32 %v9188_v57, %v7829_v58  ;;  %v7701_v61 = vld [vmem:[%s10653_s7 + $0x68] sm:$0xf0] }
  0xfa   : > { %1683 = vmatpush.bf16.msra.mxu2 %v7788_v23  ;;  %13588 = vst [vmem:[#allocation50_spill] sm:$0xff] %v10836_v54  ;;  %v9204_v62 = vld [vmem:[%s10653_s7 + $0x1e4] sm:$0xf]  ;;  %v7893_v63 = vld [vmem:[%s10653_s7 + $0x1e8] sm:$0xf0]  ;;  %v7704_v0 = vor.u32 %v9156_v59, %v7701_v61 }
  0xfb   : > { %1772 = vmatpush.bf16.msra.mxu3 %v7852_v27  ;;  %v7896_v1 = vor.u32 %v9204_v62, %v7893_v63  ;;  %v9172_v2 = vld [vmem:[%s10653_s7 + $0xe4] sm:$0xf]  ;;  %v7765_v3 = vld [vmem:[%s10653_s7 + $0xe8] sm:$0xf0]  ;;  %v7411_v5 = vld [vmem:[%s10636_s15 + $0x20] sm:$0xf] }
  0xfc   : > { %1506 = vmatpush.bf16.msra.mxu0 %v7652_v34  ;;  %v7768_v4 = vor.u32 %v9172_v2, %v7765_v3  ;;  %v9086_v6 = vld [vmem:[%s10636_s15 + $0x2c] sm:$0xf0]  ;;  %v9084_v7 = vld [vmem:[%s10636_s15 + $0x24] sm:$0xf]  ;;  %v7413_v8 = vld [vmem:[%s10636_s15 + $0x30] sm:$0xf0] }
  0xfd   : > { %1595 = vmatpush.bf16.msra.mxu1 %v7716_v38  ;;  %v7419_v9 = vld [vmem:[%s10636_s15 + $0x28] sm:$0xf]  ;;  %v9087_v10 = vld [vmem:[%s10636_s15 + $0x34] sm:$0xf0]  ;;  %v9085_v11 = vld [vmem:[%s10636_s15 + $0x2c] sm:$0xf]  ;;  %v10858_v13 = vor.u32 %v9086_v6, %v7411_v5  ;;  %v10860_v14 = vor.u32 %v9084_v7, %v7413_v8 }
  0xfe   : > { %1684 = vmatpush.bf16.msra.mxu2 %v7780_v39  ;;  %v7421_v12 = vld [vmem:[%s10636_s15 + $0x38] sm:$0xf0]  ;;  %v10862_v15 = vor.u32 %v9087_v10, %v7419_v9  ;;  %v7427_v17 = vld [vmem:[%s10636_s15 + $0x40] sm:$0xf]  ;;  %v9090_v18 = vld [vmem:[%s10636_s15 + $0x4c] sm:$0xf0] }
  0xff   : > { %1773 = vmatpush.bf16.msra.mxu3 %v7844_v43  ;;  %1507 = vmatmul.bf16.vlgmr.msra.gmra.mxu0 %v10828_v48  ;;  %v10864_v16 = vor.u32 %v9085_v11, %v7421_v12  ;;  %v9088_v19 = vld [vmem:[%s10636_s15 + $0x44] sm:$0xf]  ;;  %v7429_v20 = vld [vmem:[%s10636_s15 + $0x50] sm:$0xf0]  ;;  %v7435_v21 = vld [vmem:[%s10636_s15 + $0x48] sm:$0xf]  ;;  %v10878_v25 = vor.u32 %v9090_v18, %v7427_v17 }
 0x100   : > { %1596 = vmatmul.bf16.vlgmr.msra.gmra.mxu1 %v10832_v52  ;;  %1855 = vmatpush.bf16.msrb.mxu0 %v7712_v55  ;;  %v9091_v22 = vld [vmem:[%s10636_s15 + $0x54] sm:$0xf0]  ;;  %v9089_v23 = vld [vmem:[%s10636_s15 + $0x4c] sm:$0xf]  ;;  %v7437_v24 = vld [vmem:[%s10636_s15 + $0x58] sm:$0xf0]  ;;  %v10880_v26 = vor.u32 %v9088_v19, %v7429_v20 }
 0x101   : > { %1685 = vmatmul.bf16.vlgmr.msra.gmra.mxu2 %v10834_v53  ;;  %1944 = vmatpush.bf16.msrb.mxu1 %v7776_v56  ;;  %v10882_v27 = vor.u32 %v9091_v22, %v7435_v21  ;;  %v10884_v28 = vor.u32 %v9089_v23, %v7437_v24  ;;  %v9186_v29 = vld [vmem:[%s10653_s7 + $0x154] sm:$0xf]  ;;  %v7821_v30 = vld [vmem:[%s10653_s7 + $0x158] sm:$0xf0]  ;;  %v9094_v42 = vld [vmem:[%s10636_s15 + $0x6c] sm:$0xf0] }
 0x102   : > { %2033 = vmatpush.bf16.msrb.mxu2 %v7840_v45  ;;  %1774 = vmatmul.bf16.vlgmr.msra.gmra.mxu3 %v10836_v54  ;;  %13589 = vst [vmem:[#allocation51_spill] sm:$0xff] %v10880_v26  ;;  %v9154_v31 = vld [vmem:[%s10653_s7 + $0x54] sm:$0xf]  ;;  %v7824_v32 = vor.u32 %v9186_v29, %v7821_v30  ;;  %v7693_v33 = vld [vmem:[%s10653_s7 + $0x58] sm:$0xf0]  ;;  %s9208_s6 = sshll.u32 %s13638_s17, 8 }
 0x103   : > { %2122 = vmatpush.bf16.msrb.mxu3 %v7904_v49  ;;  %13590 = vst [vmem:[#allocation52_spill] sm:$0xff] %v10882_v27  ;;  %v9202_v34 = vld [vmem:[%s10653_s7 + $0x1d4] sm:$0xf]  ;;  %v7885_v35 = vld [vmem:[%s10653_s7 + $0x1d8] sm:$0xf0]  ;;  %v7696_v36 = vor.u32 %v9154_v31, %v7693_v33  ;;  %s11390_s19 = scalar_lea.vmem [#allocation3], %s9208_s6 }
 0x104   : > { %1856 = vmatpush.bf16.msrb.mxu0 %v7704_v0  ;;  %13591 = vst [vmem:[#allocation53_spill] sm:$0xff] %v10884_v28  ;;  %v7888_v37 = vor.u32 %v9202_v34, %v7885_v35  ;;  %v9170_v38 = vld [vmem:[%s10653_s7 + $0xd4] sm:$0xf]  ;;  %v7757_v39 = vld [vmem:[%s10653_s7 + $0xd8] sm:$0xf0]  ;;  %s11809_s27 = scalar_lea.vmem [#allocation4], %s9208_s6 }
 0x105   : > { %1945 = vmatpush.bf16.msrb.mxu1 %v7768_v4  ;;  %v7760_v40 = vor.u32 %v9170_v38, %v7757_v39  ;;  %v7443_v41 = vld [vmem:[%s10636_s15 + $0x60] sm:$0xf]  ;;  %v9092_v43 = vld [vmem:[%s10636_s15 + $0x64] sm:$0xf]  ;;  %v7445_v44 = vld [vmem:[%s10636_s15 + $0x70] sm:$0xf0] }
 0x106   : > { %2034 = vmatpush.bf16.msrb.mxu2 %v7832_v60  ;;  %v7451_v45 = vld [vmem:[%s10636_s15 + $0x68] sm:$0xf]  ;;  %v9095_v46 = vld [vmem:[%s10636_s15 + $0x74] sm:$0xf0]  ;;  %v9093_v47 = vld [vmem:[%s10636_s15 + $0x6c] sm:$0xf]  ;;  %v10906_v50 = vor.u32 %v9094_v42, %v7443_v41  ;;  %v10908_v51 = vor.u32 %v9092_v43, %v7445_v44 }
 0x107   : > { %2123 = vmatpush.bf16.msrb.mxu3 %v7896_v1  ;;  %v7453_v49 = vld [vmem:[%s10636_s15 + $0x78] sm:$0xf0]  ;;  %v10910_v55 = vor.u32 %v9095_v46, %v7451_v45  ;;  %v7459_v57 = vld [vmem:[%s10636_s15 + $0x80] sm:$0xf]  ;;  %v9098_v58 = vld [vmem:[%s10636_s15 + $0x8c] sm:$0xf0] }
 0x108   : > { %1857 = vmatpush.bf16.msrb.mxu0 %v7696_v36  ;;  %v10912_v56 = vor.u32 %v9093_v47, %v7453_v49  ;;  %v9096_v59 = vld [vmem:[%s10636_s15 + $0x84] sm:$0xf]  ;;  %v7461_v60 = vld [vmem:[%s10636_s15 + $0x90] sm:$0xf0]  ;;  %v7467_v61 = vld [vmem:[%s10636_s15 + $0x88] sm:$0xf]  ;;  %v10926_v1 = vor.u32 %v9098_v58, %v7459_v57 }
 0x109   : > { %1946 = vmatpush.bf16.msrb.mxu1 %v7760_v40  ;;  %v9099_v62 = vld [vmem:[%s10636_s15 + $0x94] sm:$0xf0]  ;;  %v9097_v63 = vld [vmem:[%s10636_s15 + $0x8c] sm:$0xf]  ;;  %v7469_v0 = vld [vmem:[%s10636_s15 + $0x98] sm:$0xf0]  ;;  %v10928_v2 = vor.u32 %v9096_v59, %v7461_v60 }
 0x10a   : > { %2035 = vmatpush.bf16.msrb.mxu2 %v7824_v32  ;;  %v10930_v3 = vor.u32 %v9099_v62, %v7467_v61  ;;  %v10932_v4 = vor.u32 %v9097_v63, %v7469_v0  ;;  %v9184_v5 = vld [vmem:[%s10653_s7 + $0x144] sm:$0xf]  ;;  %v7813_v6 = vld [vmem:[%s10653_s7 + $0x148] sm:$0xf0]  ;;  %v7475_v21 = vld [vmem:[%s10636_s15 + $0xa0] sm:$0xf] }
 0x10b   : > { %2124 = vmatpush.bf16.msrb.mxu3 %v7888_v37  ;;  %13592 = vst [vmem:[#allocation54_spill] sm:$0xff] %v10928_v2  ;;  %v9152_v7 = vld [vmem:[%s10653_s7 + $0x44] sm:$0xf]  ;;  %v7816_v8 = vor.u32 %v9184_v5, %v7813_v6  ;;  %v7685_v9 = vld [vmem:[%s10653_s7 + $0x48] sm:$0xf0] }
 0x10c   : > { %13593 = vst [vmem:[#allocation55_spill] sm:$0xff] %v10930_v3  ;;  %v9200_v10 = vld [vmem:[%s10653_s7 + $0x1c4] sm:$0xf]  ;;  %v7877_v11 = vld [vmem:[%s10653_s7 + $0x1c8] sm:$0xf0]  ;;  %v7688_v12 = vor.u32 %v9152_v7, %v7685_v9 }
 0x10d   : > { %13594 = vst [vmem:[#allocation56_spill] sm:$0xff] %v10932_v4  ;;  %v7880_v17 = vor.u32 %v9200_v10, %v7877_v11  ;;  %v9168_v18 = vld [vmem:[%s10653_s7 + $0xc4] sm:$0xf]  ;;  %v7749_v19 = vld [vmem:[%s10653_s7 + $0xc8] sm:$0xf0] }
 0x10e   : > { %2036 = vmatpush.bf16.msrb.mxu2 %v7816_v8  ;;  %v7752_v20 = vor.u32 %v9168_v18, %v7749_v19  ;;  %1858 = vmatpush.bf16.msrb.mxu0 %v7688_v12  ;;  %v9102_v22 = vld [vmem:[%s10636_s15 + $0xac] sm:$0xf0]  ;;  %v9100_v23 = vld [vmem:[%s10636_s15 + $0xa4] sm:$0xf]  ;;  %v7477_v24 = vld [vmem:[%s10636_s15 + $0xb0] sm:$0xf0] }
 0x10f   : > { %1512 = vmatmul.bf16.gmra.mxu0 %v10858_v13  ;;  %2125 = vmatpush.bf16.msrb.mxu3 %v7880_v17  ;;  %v7483_v29 = vld [vmem:[%s10636_s15 + $0xa8] sm:$0xf]  ;;  %v9103_v30 = vld [vmem:[%s10636_s15 + $0xb4] sm:$0xf0]  ;;  %v9101_v31 = vld [vmem:[%s10636_s15 + $0xac] sm:$0xf]  ;;  %v10954_v33 = vor.u32 %v9102_v22, %v7475_v21  ;;  %v10956_v34 = vor.u32 %v9100_v23, %v7477_v24 }
 0x110   : > { %1601 = vmatmul.bf16.gmra.mxu1 %v10860_v14  ;;  %v7485_v32 = vld [vmem:[%s10636_s15 + $0xb8] sm:$0xf0]  ;;  %v10958_v35 = vor.u32 %v9103_v30, %v7483_v29  ;;  %v7491_v37 = vld [vmem:[%s10636_s15 + $0xc0] sm:$0xf]  ;;  %v9106_v38 = vld [vmem:[%s10636_s15 + $0xcc] sm:$0xf0] }
 0x111   : > { %1690 = vmatmul.bf16.gmra.mxu2 %v10862_v15  ;;  %1947 = vmatpush.bf16.msrb.mxu1 %v7752_v20  ;;  %v10960_v36 = vor.u32 %v9101_v31, %v7485_v32  ;;  %v9104_v39 = vld [vmem:[%s10636_s15 + $0xc4] sm:$0xf]  ;;  %v7493_v40 = vld [vmem:[%s10636_s15 + $0xd0] sm:$0xf0]  ;;  %v7499_v41 = vld [vmem:[%s10636_s15 + $0xc8] sm:$0xf]  ;;  %v10974_v45 = vor.u32 %v9106_v38, %v7491_v37 }
 0x112   : > { %1779 = vmatmul.bf16.gmra.mxu3 %v10864_v16  ;;  %v9107_v42 = vld [vmem:[%s10636_s15 + $0xd4] sm:$0xf0]  ;;  %v9105_v43 = vld [vmem:[%s10636_s15 + $0xcc] sm:$0xf]  ;;  %v7501_v44 = vld [vmem:[%s10636_s15 + $0xd8] sm:$0xf0]  ;;  %v10976_v46 = vor.u32 %v9104_v39, %v7493_v40 }
 0x113   : > { %13595 = vst [vmem:[#allocation57_spill] sm:$0xff] %v10974_v45  ;;  %v10978_v47 = vor.u32 %v9107_v42, %v7499_v41  ;;  %v10980_v49 = vor.u32 %v9105_v43, %v7501_v44  ;;  %v9182_v57 = vld [vmem:[%s10653_s7 + $0x134] sm:$0xf]  ;;  %v7805_v58 = vld [vmem:[%s10653_s7 + $0x138] sm:$0xf0] }
 0x114   : > { %13596 = vst [vmem:[#allocation58_spill] sm:$0xff] %v10976_v46  ;;  %v9150_v59 = vld [vmem:[%s10653_s7 + $0x34] sm:$0xf]  ;;  %v7808_v60 = vor.u32 %v9182_v57, %v7805_v58  ;;  %v7677_v61 = vld [vmem:[%s10653_s7 + $0x38] sm:$0xf0] }
 0x115   : > { %13597 = vst [vmem:[#allocation59_spill] sm:$0xff] %v10978_v47  ;;  %v9198_v62 = vld [vmem:[%s10653_s7 + $0x1b4] sm:$0xf]  ;;  %v7869_v63 = vld [vmem:[%s10653_s7 + $0x1b8] sm:$0xf0]  ;;  %v7680_v0 = vor.u32 %v9150_v59, %v7677_v61 }
 0x116   : > { %13598 = vst [vmem:[#allocation60_spill] sm:$0xff] %v10980_v49  ;;  %v7872_v5 = vor.u32 %v9198_v62, %v7869_v63  ;;  %2037 = vmatpush.bf16.msrb.mxu2 %v7808_v60  ;;  %v9166_v6 = vld [vmem:[%s10653_s7 + $0xb4] sm:$0xf]  ;;  %v7741_v7 = vld [vmem:[%s10653_s7 + $0xb8] sm:$0xf0] }
 0x117   : > { %1859 = vmatpush.bf16.msrb.mxu0 %v7680_v0  ;;  %v7744_v8 = vor.u32 %v9166_v6, %v7741_v7  ;;  %v7507_v9 = vld [vmem:[%s10636_s15 + $0xe0] sm:$0xf]  ;;  %v9110_v10 = vld [vmem:[%s10636_s15 + $0xec] sm:$0xf0]  ;;  %v9108_v11 = vld [vmem:[%s10636_s15 + $0xe4] sm:$0xf] }
 0x118   : > { %2126 = vmatpush.bf16.msrb.mxu3 %v7872_v5  ;;  %v7509_v12 = vld [vmem:[%s10636_s15 + $0xf0] sm:$0xf0]  ;;  %v7515_v17 = vld [vmem:[%s10636_s15 + $0xe8] sm:$0xf]  ;;  %v9111_v18 = vld [vmem:[%s10636_s15 + $0xf4] sm:$0xf0]  ;;  %v11002_v21 = vor.u32 %v9110_v10, %v7507_v9 }
 0x119   : > { %1948 = vmatpush.bf16.msrb.mxu1 %v7744_v8  ;;  %v9109_v19 = vld [vmem:[%s10636_s15 + $0xec] sm:$0xf]  ;;  %v7517_v20 = vld [vmem:[%s10636_s15 + $0xf8] sm:$0xf0]  ;;  %v11004_v22 = vor.u32 %v9108_v11, %v7509_v12  ;;  %v11006_v23 = vor.u32 %v9111_v18, %v7515_v17  ;;  %v853_v29 = vld [vmem:[%s546_s8] sm:$0x3] }
 0x11a   : > { %v11008_v24 = vor.u32 %v9109_v19, %v7517_v20  ;;  %v11016_v30 = vperm.slane %v853_v29, 0  ;;  %v7523_v31 = vld [vmem:[%s10636_s15 + $0x100] sm:$0xf]  ;;  %v9114_v32 = vld [vmem:[%s10636_s15 + $0x10c] sm:$0xf0] }
 0x11b   : > { %v9112_v37 = vld [vmem:[%s10636_s15 + $0x104] sm:$0xf]  ;;  %v7525_v38 = vld [vmem:[%s10636_s15 + $0x110] sm:$0xf0]  ;;  %v7531_v39 = vld [vmem:[%s10636_s15 + $0x108] sm:$0xf]  ;;  %v11026_v43 = vor.u32 %v9114_v32, %v7523_v31 }
 0x11c   : > { %v9115_v40 = vld [vmem:[%s10636_s15 + $0x114] sm:$0xf0]  ;;  %v9113_v41 = vld [vmem:[%s10636_s15 + $0x10c] sm:$0xf]  ;;  %v7533_v42 = vld [vmem:[%s10636_s15 + $0x118] sm:$0xf0]  ;;  %v11028_v57 = vor.u32 %v9112_v37, %v7525_v38 }
 0x11d   : > { %v11030_v58 = vor.u32 %v9115_v40, %v7531_v39  ;;  %v11033_v61 = vor.u32 %v9113_v41, %v7533_v42  ;;  %v9180_v63 = vld [vmem:[%s10653_s7 + $0x124] sm:$0xf]  ;;  %v7797_v0 = vld [vmem:[%s10653_s7 + $0x128] sm:$0xf0]  ;;  %v7539_v40 = vld [vmem:[%s10636_s15 + $0x120] sm:$0xf] }
 0x11e   : > { %v9148_v5 = vld [vmem:[%s10653_s7 + $0x24] sm:$0xf]  ;;  %v7800_v6 = vor.u32 %v9180_v63, %v7797_v0  ;;  %v7669_v7 = vld [vmem:[%s10653_s7 + $0x28] sm:$0xf0]  ;;  %v9116_v42 = vld [vmem:[%s10636_s15 + $0x124] sm:$0xf] }
 0x11f   : > { %1517 = vmatmul.bf16.gmra.mxu0 %v10878_v25  ;;  %v9196_v8 = vld [vmem:[%s10653_s7 + $0x1a4] sm:$0xf]  ;;  %v7861_v9 = vld [vmem:[%s10653_s7 + $0x1a8] sm:$0xf0]  ;;  %v7672_v11 = vor.u32 %v9148_v5, %v7669_v7  ;;  %v7549_v63 = vld [vmem:[%s10636_s15 + $0x138] sm:$0xf0] }
 0x120   : > { %1606 = vmatmul.bf16.gmra.mxu1 %v10880_v26  ;;  %v7864_v12 = vor.u32 %v9196_v8, %v7861_v9  ;;  %2038 = vmatpush.bf16.msrb.mxu2 %v7800_v6  ;;  %v9164_v32 = vld [vmem:[%s10653_s7 + $0xa4] sm:$0xf]  ;;  %v7733_v37 = vld [vmem:[%s10653_s7 + $0xa8] sm:$0xf0] }
 0x121   : > { %1695 = vmatmul.bf16.gmra.mxu2 %v10882_v27  ;;  %1860 = vmatpush.bf16.msrb.mxu0 %v7672_v11  ;;  %v7736_v39 = vor.u32 %v9164_v32, %v7733_v37  ;;  %v9118_v41 = vld [vmem:[%s10636_s15 + $0x12c] sm:$0xf0] }
 0x122   : > { %1784 = vmatmul.bf16.gmra.mxu3 %v10884_v28  ;;  %v11058_v5 = vor.u32 %v9118_v41, %v7539_v40 }
 0x123   : > { %2127 = vmatpush.bf16.msrb.mxu3 %v7864_v12  ;;  %1949 = vmatpush.bf16.msrb.mxu1 %v7736_v39 }
 0x12f   : > { %1522 = vmatmul.bf16.gmra.mxu0 %v10906_v50 }
 0x130   : > { %1611 = vmatmul.bf16.gmra.mxu1 %v10908_v51 }
 0x131   : > { %1700 = vmatmul.bf16.gmra.mxu2 %v10910_v55 }
 0x132   : > { %1789 = vmatmul.bf16.gmra.mxu3 %v10912_v56 }
 0x13f   : > { %1527 = vmatmul.bf16.gmra.mxu0 %v10926_v1 }
 0x140   : > { %1616 = vmatmul.bf16.gmra.mxu1 %v10928_v2 }
 0x141   : > { %1705 = vmatmul.bf16.gmra.mxu2 %v10930_v3 }
 0x142   : > { %1794 = vmatmul.bf16.gmra.mxu3 %v10932_v4 }
 0x14f   : > { %1532 = vmatmul.bf16.gmra.mxu0 %v10954_v33 }
 0x150   : > { %1621 = vmatmul.bf16.gmra.mxu1 %v10956_v34 }
 0x151   : > { %1710 = vmatmul.bf16.gmra.mxu2 %v10958_v35 }
 0x152   : > { %1799 = vmatmul.bf16.gmra.mxu3 %v10960_v36 }
 0x15f   : > { %1537 = vmatmul.bf16.gmra.mxu0 %v10974_v45 }
 0x160   : > { %1626 = vmatmul.bf16.gmra.mxu1 %v10976_v46 }
 0x161   : > { %1715 = vmatmul.bf16.gmra.mxu2 %v10978_v47 }
 0x162   : > { %1804 = vmatmul.bf16.gmra.mxu3 %v10980_v49 }
 0x16f   : > { %1542 = vmatmul.bf16.gmra.mxu0 %v11002_v21 }
 0x170   : > { %1631 = vmatmul.bf16.gmra.mxu1 %v11004_v22 }
 0x171   : > { %1720 = vmatmul.bf16.gmra.mxu2 %v11006_v23 }
 0x172   : > { %1809 = vmatmul.bf16.gmra.mxu3 %v11008_v24 }
 0x17c   : > { %v1508_v44 = vpop.f32.mrf.mxu0 }
 0x17d   : > { %v1509_v59 = vadd.f32 %v1508_v44, %v11016_v30  ;;  %v1597_v60 = vpop.f32.mrf.mxu1  ;;  %v7541_v44 = vld [vmem:[%s10636_s15 + $0x130] sm:$0xf0] }
 0x17e   : > { %v11060_v9 = vor.u32 %v9116_v42, %v7541_v44  ;;  %v7555_v42 = vld [vmem:[%s10636_s15 + $0x140] sm:$0xf]  ;;  %v9122_v44 = vld [vmem:[%s10636_s15 + $0x14c] sm:$0xf0] }
 0x17f   : > { %v1598_v62 = vadd.f32 %v1597_v60, %v1509_v59  ;;  %1547 = vmatmul.bf16.gmra.mxu0 %v11026_v43  ;;  %v7547_v59 = vld [vmem:[%s10636_s15 + $0x128] sm:$0xf]  ;;  %v9119_v60 = vld [vmem:[%s10636_s15 + $0x134] sm:$0xf0] }
 0x180   : > { %1636 = vmatmul.bf16.gmra.mxu1 %v11028_v57 }
 0x181   : > { %1725 = vmatmul.bf16.gmra.mxu2 %v11030_v58 }
 0x182   : > { %1814 = vmatmul.bf16.gmra.mxu3 %v11033_v61 }
 0x184   : > { %v1686_v10 = vpop.f32.mrf.mxu2  ;;  %v1510_v19 = vpop.f32.mrf.mxu0 }
 0x185   : > { %v1687_v17 = vadd.f32 %v1686_v10, %v1598_v62  ;;  %v1775_v18 = vpop.f32.mrf.mxu3  ;;  %v1511_v20 = vadd.f32 %v1510_v19, %v11016_v30  ;;  %v1599_v29 = vpop.f32.mrf.mxu1  ;;  %v9117_v62 = vld [vmem:[%s10636_s15 + $0x12c] sm:$0xf]  ;;  %v11062_v10 = vor.u32 %v9119_v60, %v7547_v59  ;;  %v9120_v59 = vld [vmem:[%s10636_s15 + $0x144] sm:$0xf]  ;;  %v7557_v60 = vld [vmem:[%s10636_s15 + $0x150] sm:$0xf0] }
 0x187   : > { %v11046_v31 = vadd.f32 %v1775_v18, %v1687_v17  ;;  %v1600_v38 = vadd.f32 %v1599_v29, %v1511_v20  ;;  %v11065_v17 = vor.u32 %v9117_v62, %v7549_v63  ;;  %v7563_v62 = vld [vmem:[%s10636_s15 + $0x148] sm:$0xf]  ;;  %v9123_v63 = vld [vmem:[%s10636_s15 + $0x154] sm:$0xf0] }
 0x189   : > { %13599 = vst [vmem:[#allocation61_spill] sm:$0xff] %v11065_v17 }
 0x18c   : > { %v1688_v0 = vpop.f32.mrf.mxu2  ;;  %v1513_v8 = vpop.f32.mrf.mxu0 }
 0x18d   : > { %v1689_v6 = vadd.f32 %v1688_v0, %v1600_v38  ;;  %v1777_v7 = vpop.f32.mrf.mxu3  ;;  %v1514_v11 = vadd.f32 %v1513_v8, %v11016_v30  ;;  %v1602_v12 = vpop.f32.mrf.mxu1  ;;  %v9121_v0 = vld [vmem:[%s10636_s15 + $0x14c] sm:$0xf]  ;;  %v11084_v8 = vor.u32 %v9122_v44, %v7555_v42  ;;  %v7789_v44 = vld [vmem:[%s10653_s7 + $0x118] sm:$0xf0] }
 0x18f   : > { %v11067_v18 = vadd.f32 %v1777_v7, %v1689_v6  ;;  %v1603_v19 = vadd.f32 %v1602_v12, %v1514_v11  ;;  %1552 = vmatmul.bf16.gmra.mxu0 %v11058_v5  ;;  %v7565_v6 = vld [vmem:[%s10636_s15 + $0x158] sm:$0xf0]  ;;  %13601 = vst [vmem:[#allocation63_spill] sm:$0xff] %v11084_v8 }
 0x190   : > { %1641 = vmatmul.bf16.gmra.mxu1 %v11060_v9 }
 0x191   : > { %1730 = vmatmul.bf16.gmra.mxu2 %v11062_v10 }
 0x192   : > { %1819 = vmatmul.bf16.gmra.mxu3 %v11065_v17 }
 0x194   : > { %v1691_v20 = vpop.f32.mrf.mxu2  ;;  %v1515_v37 = vpop.f32.mrf.mxu0 }
 0x195   : > { %v1692_v29 = vadd.f32 %v1691_v20, %v1603_v19  ;;  %v1780_v32 = vpop.f32.mrf.mxu3  ;;  %v1516_v38 = vadd.f32 %v1515_v37, %v11016_v30  ;;  %v1604_v39 = vpop.f32.mrf.mxu1  ;;  %v11086_v20 = vor.u32 %v9120_v59, %v7557_v60  ;;  %v9146_v59 = vld [vmem:[%s10653_s7 + $0x14] sm:$0xf] }
 0x197   : > { %v11074_v40 = vadd.f32 %v1780_v32, %v1692_v29  ;;  %v1605_v41 = vadd.f32 %v1604_v39, %v1516_v38  ;;  %13602 = vst [vmem:[#allocation64_spill] sm:$0xff] %v11086_v20  ;;  %v11088_v29 = vor.u32 %v9123_v63, %v7563_v62  ;;  %v11091_v38 = vor.u32 %v9121_v0, %v7565_v6  ;;  %v7661_v62 = vld [vmem:[%s10653_s7 + $0x18] sm:$0xf0]  ;;  %v9194_v63 = vld [vmem:[%s10653_s7 + $0x194] sm:$0xf] }
 0x198   : > { %v7853_v0 = vld [vmem:[%s10653_s7 + $0x198] sm:$0xf0] }
 0x199   : > { %13600 = vst [vmem:[#allocation62_spill] sm:$0xff] %v11074_v40 }
 0x19a   : > { %13603 = vst [vmem:[#allocation65_spill] sm:$0xff] %v11088_v29 }
 0x19b   : > { %13604 = vst [vmem:[#allocation66_spill] sm:$0xff] %v11091_v38 }
 0x19c   : > { %v1693_v7 = vpop.f32.mrf.mxu2  ;;  %v1518_v19 = vpop.f32.mrf.mxu0 }
 0x19d   : > { %v1694_v11 = vadd.f32 %v1693_v7, %v1605_v41  ;;  %v1782_v12 = vpop.f32.mrf.mxu3  ;;  %v1519_v32 = vadd.f32 %v1518_v19, %v11016_v30  ;;  %v1607_v37 = vpop.f32.mrf.mxu1  ;;  %v9178_v41 = vld [vmem:[%s10653_s7 + $0x114] sm:$0xf]  ;;  %v7664_v7 = vor.u32 %v9146_v59, %v7661_v62  ;;  %v7725_v62 = vld [vmem:[%s10653_s7 + $0x98] sm:$0xf0] }
 0x19e   : > { %v7792_v60 = vor.u32 %v9178_v41, %v7789_v44  ;;  %v9162_v59 = vld [vmem:[%s10653_s7 + $0x94] sm:$0xf] }
 0x19f   : > { %v11093_v39 = vadd.f32 %v1782_v12, %v1694_v11  ;;  %v1608_v42 = vadd.f32 %v1607_v37, %v1519_v32  ;;  %1557 = vmatmul.bf16.gmra.mxu0 %v11084_v8  ;;  %v7856_v11 = vor.u32 %v9194_v63, %v7853_v0  ;;  %v7728_v0 = vor.u32 %v9162_v59, %v7725_v62 }
 0x1a0   : > { %1646 = vmatmul.bf16.gmra.mxu1 %v11086_v20  ;;  %2039 = vmatpush.bf16.msrb.mxu2 %v7792_v60  ;;  %v7579_v20 = vld [vmem:[%s10636_s15 + $0x168] sm:$0xf]  ;;  %v9125_v60 = vld [vmem:[%s10636_s15 + $0x16c] sm:$0xf] }
 0x1a1   : > { %13605 = vst [vmem:[#allocation67_spill] sm:$0xff] %v11093_v39  ;;  %1735 = vmatmul.bf16.gmra.mxu2 %v11088_v29  ;;  %1861 = vmatpush.bf16.msrb.mxu0 %v7664_v7  ;;  %v7573_v29 = vld [vmem:[%s10636_s15 + $0x170] sm:$0xf0]  ;;  %v9127_v39 = vld [vmem:[%s10636_s15 + $0x174] sm:$0xf0] }
 0x1a2   : > { %1824 = vmatmul.bf16.gmra.mxu3 %v11091_v38  ;;  %v9124_v38 = vld [vmem:[%s10636_s15 + $0x164] sm:$0xf]  ;;  %1950 = vmatpush.bf16.msrb.mxu1 %v7728_v0 }
 0x1a3   : > { %2128 = vmatpush.bf16.msrb.mxu3 %v7856_v11 }
 0x1a4   : > { %v1696_v6 = vpop.f32.mrf.mxu2  ;;  %v1520_v32 = vpop.f32.mrf.mxu0 }
 0x1a5   : > { %v1697_v12 = vadd.f32 %v1696_v6, %v1608_v42  ;;  %v1785_v19 = vpop.f32.mrf.mxu3  ;;  %v1521_v37 = vadd.f32 %v1520_v32, %v11016_v30  ;;  %v1609_v41 = vpop.f32.mrf.mxu1  ;;  %v7571_v42 = vld [vmem:[%s10636_s15 + $0x160] sm:$0xf]  ;;  %v9126_v6 = vld [vmem:[%s10636_s15 + $0x16c] sm:$0xf0]  ;;  %v7581_v32 = vld [vmem:[%s10636_s15 + $0x178] sm:$0xf0] }
 0x1a6   : > { %v11118_v40 = vor.u32 %v9126_v6, %v7571_v42  ;;  %v11125_v59 = vor.u32 %v9125_v60, %v7581_v32  ;;  %v7587_v60 = vld [vmem:[%s10636_s15 + $0x180] sm:$0xf]  ;;  %v9130_v32 = vld [vmem:[%s10636_s15 + $0x18c] sm:$0xf0] }
 0x1a7   : > { %v11106_v44 = vadd.f32 %v1785_v19, %v1697_v12  ;;  %v1610_v63 = vadd.f32 %v1609_v41, %v1521_v37  ;;  %v11120_v19 = vor.u32 %v9124_v38, %v7573_v29 }
 0x1a8   : > { %13607 = vst [vmem:[#allocation69_spill] sm:$0xff] %v11118_v40 }
 0x1a9   : > { %13606 = vst [vmem:[#allocation68_spill] sm:$0xff] %v11106_v44  ;;  %v11122_v44 = vor.u32 %v9127_v39, %v7579_v20 }
 0x1aa   : > { %13608 = vst [vmem:[#allocation70_spill] sm:$0xff] %v11120_v19 }
 0x1ab   : > { %13609 = vst [vmem:[#allocation71_spill] sm:$0xff] %v11122_v44 }
 0x1ac   : > { %v1698_v8 = vpop.f32.mrf.mxu2  ;;  %v1523_v12 = vpop.f32.mrf.mxu0  ;;  %13610 = vst [vmem:[#allocation72_spill] sm:$0xff] %v11125_v59 }
 0x1ad   : > { %v1699_v7 = vadd.f32 %v1698_v8, %v1610_v63  ;;  %v1787_v11 = vpop.f32.mrf.mxu3  ;;  %v1524_v37 = vadd.f32 %v1523_v12, %v11016_v30  ;;  %v1612_v41 = vpop.f32.mrf.mxu1  ;;  %v7595_v12 = vld [vmem:[%s10636_s15 + $0x188] sm:$0xf] }
 0x1af   : > { %v11127_v62 = vadd.f32 %v1787_v11, %v1699_v7  ;;  %v1613_v0 = vadd.f32 %v1612_v41, %v1524_v37  ;;  %1562 = vmatmul.bf16.gmra.mxu0 %v11118_v40  ;;  %v9128_v7 = vld [vmem:[%s10636_s15 + $0x184] sm:$0xf]  ;;  %v7589_v11 = vld [vmem:[%s10636_s15 + $0x190] sm:$0xf0]  ;;  %v9131_v37 = vld [vmem:[%s10636_s15 + $0x194] sm:$0xf0] }
 0x1b0   : > { %1651 = vmatmul.bf16.gmra.mxu1 %v11120_v19  ;;  %v9129_v41 = vld [vmem:[%s10636_s15 + $0x18c] sm:$0xf]  ;;  %v11144_v19 = vor.u32 %v9130_v32, %v7587_v60  ;;  %v9144_v32 = vld [vmem:[%s10653_s7 + $0x4] sm:$0xf] }
 0x1b1   : > { %13611 = vst [vmem:[#allocation73_spill] sm:$0xff] %v11127_v62  ;;  %1740 = vmatmul.bf16.gmra.mxu2 %v11122_v44  ;;  %v7597_v44 = vld [vmem:[%s10636_s15 + $0x198] sm:$0xf0] }
 0x1b2   : > { %1829 = vmatmul.bf16.gmra.mxu3 %v11125_v59  ;;  %13613 = vst [vmem:[#allocation75_spill] sm:$0xff] %v11144_v19 }
 0x1b4   : > { %v1701_v8 = vpop.f32.mrf.mxu2  ;;  %v1525_v38 = vpop.f32.mrf.mxu0 }
 0x1b5   : > { %v1702_v20 = vadd.f32 %v1701_v8, %v1613_v0  ;;  %v1790_v29 = vpop.f32.mrf.mxu3  ;;  %v1526_v39 = vadd.f32 %v1525_v38, %v11016_v30  ;;  %v1614_v63 = vpop.f32.mrf.mxu1 }
 0x1b7   : > { %v11134_v42 = vadd.f32 %v1790_v29, %v1702_v20  ;;  %v1615_v6 = vadd.f32 %v1614_v63, %v1526_v39  ;;  %v11146_v20 = vor.u32 %v9128_v7, %v7589_v11  ;;  %v11148_v29 = vor.u32 %v9131_v37, %v7595_v12  ;;  %v7653_v11 = vld [vmem:[%s10653_s7 + $0x8] sm:$0xf0] }
 0x1b8   : > { %v7845_v12 = vld [vmem:[%s10653_s7 + $0x188] sm:$0xf0] }
 0x1b9   : > { %13612 = vst [vmem:[#allocation74_spill] sm:$0xff] %v11134_v42  ;;  %v11151_v42 = vor.u32 %v9129_v41, %v7597_v44  ;;  %v9192_v44 = vld [vmem:[%s10653_s7 + $0x184] sm:$0xf]  ;;  %v7656_v41 = vor.u32 %v9144_v32, %v7653_v11  ;;  %v7717_v11 = vld [vmem:[%s10653_s7 + $0x88] sm:$0xf0] }
 0x1ba   : > { %13614 = vst [vmem:[#allocation76_spill] sm:$0xff] %v11146_v20  ;;  %v9160_v32 = vld [vmem:[%s10653_s7 + $0x84] sm:$0xf] }
 0x1bb   : > { %13615 = vst [vmem:[#allocation77_spill] sm:$0xff] %v11148_v29  ;;  %1862 = vmatpush.bf16.msrb.mxu0 %v7656_v41 }
 0x1bc   : > { %v1703_v59 = vpop.f32.mrf.mxu2  ;;  %v1528_v38 = vpop.f32.mrf.mxu0  ;;  %13616 = vst [vmem:[#allocation78_spill] sm:$0xff] %v11151_v42 }
 0x1bd   : > { %v1704_v0 = vadd.f32 %v1703_v59, %v1615_v6  ;;  %v1792_v8 = vpop.f32.mrf.mxu3  ;;  %v1529_v39 = vadd.f32 %v1528_v38, %v11016_v30  ;;  %v1617_v63 = vpop.f32.mrf.mxu1  ;;  %v9176_v59 = vld [vmem:[%s10653_s7 + $0x104] sm:$0xf]  ;;  %v7781_v6 = vld [vmem:[%s10653_s7 + $0x108] sm:$0xf0] }
 0x1be   : > { %v7784_v7 = vor.u32 %v9176_v59, %v7781_v6 }
 0x1bf   : > { %v11153_v62 = vadd.f32 %v1792_v8, %v1704_v0  ;;  %v1618_v60 = vadd.f32 %v1617_v63, %v1529_v39  ;;  %1567 = vmatmul.bf16.gmra.mxu0 %v11144_v19  ;;  %v7848_v0 = vor.u32 %v9192_v44, %v7845_v12  ;;  %v7720_v12 = vor.u32 %v9160_v32, %v7717_v11 }
 0x1c0   : > { %1656 = vmatmul.bf16.gmra.mxu1 %v11146_v20  ;;  %2040 = vmatpush.bf16.msrb.mxu2 %v7784_v7  ;;  %v7611_v20 = vld [vmem:[%s10636_s15 + $0x1a8] sm:$0xf]  ;;  %v9133_v7 = vld [vmem:[%s10636_s15 + $0x1ac] sm:$0xf] }
 0x1c1   : > { %13617 = vst [vmem:[#allocation79_spill] sm:$0xff] %v11153_v62  ;;  %1745 = vmatmul.bf16.gmra.mxu2 %v11148_v29  ;;  %2129 = vmatpush.bf16.msrb.mxu3 %v7848_v0  ;;  %v7605_v29 = vld [vmem:[%s10636_s15 + $0x1b0] sm:$0xf0]  ;;  %v9135_v62 = vld [vmem:[%s10636_s15 + $0x1b4] sm:$0xf0] }
 0x1c2   : > { %1834 = vmatmul.bf16.gmra.mxu3 %v11151_v42  ;;  %v9132_v42 = vld [vmem:[%s10636_s15 + $0x1a4] sm:$0xf]  ;;  %1951 = vmatpush.bf16.msrb.mxu1 %v7720_v12 }
 0x1c4   : > { %v1706_v37 = vpop.f32.mrf.mxu2  ;;  %v1530_v39 = vpop.f32.mrf.mxu0 }
 0x1c5   : > { %v1707_v8 = vadd.f32 %v1706_v37, %v1618_v60  ;;  %v1795_v38 = vpop.f32.mrf.mxu3  ;;  %v1531_v63 = vadd.f32 %v1530_v39, %v11016_v30  ;;  %v1619_v59 = vpop.f32.mrf.mxu1  ;;  %v7603_v60 = vld [vmem:[%s10636_s15 + $0x1a0] sm:$0xf]  ;;  %v9134_v37 = vld [vmem:[%s10636_s15 + $0x1ac] sm:$0xf0]  ;;  %v7613_v39 = vld [vmem:[%s10636_s15 + $0x1b8] sm:$0xf0] }
 0x1c6   : > { %v11178_v40 = vor.u32 %v9134_v37, %v7603_v60  ;;  %v11185_v32 = vor.u32 %v9133_v7, %v7613_v39  ;;  %v7619_v7 = vld [vmem:[%s10636_s15 + $0x1c0] sm:$0xf]  ;;  %v9138_v39 = vld [vmem:[%s10636_s15 + $0x1cc] sm:$0xf0] }
 0x1c7   : > { %v11166_v6 = vadd.f32 %v1795_v38, %v1707_v8  ;;  %v1620_v44 = vadd.f32 %v1619_v59, %v1531_v63  ;;  %v11180_v38 = vor.u32 %v9132_v42, %v7605_v29 }
 0x1c8   : > { %13619 = vst [vmem:[#allocation81_spill] sm:$0xff] %v11178_v40 }
 0x1c9   : > { %13618 = vst [vmem:[#allocation80_spill] sm:$0xff] %v11166_v6  ;;  %v11182_v6 = vor.u32 %v9135_v62, %v7611_v20 }
 0x1ca   : > { %13620 = vst [vmem:[#allocation82_spill] sm:$0xff] %v11180_v38 }
 0x1cb   : > { %13621 = vst [vmem:[#allocation83_spill] sm:$0xff] %v11182_v6 }
 0x1cc   : > { %v1708_v19 = vpop.f32.mrf.mxu2  ;;  %v1533_v8 = vpop.f32.mrf.mxu0  ;;  %13622 = vst [vmem:[#allocation84_spill] sm:$0xff] %v11185_v32 }
 0x1cd   : > { %v1709_v41 = vadd.f32 %v1708_v19, %v1620_v44  ;;  %v1797_v0 = vpop.f32.mrf.mxu3  ;;  %v1534_v63 = vadd.f32 %v1533_v8, %v11016_v30  ;;  %v1622_v59 = vpop.f32.mrf.mxu1  ;;  %v7627_v8 = vld [vmem:[%s10636_s15 + $0x1c8] sm:$0xf] }
 0x1cf   : > { %v11187_v11 = vadd.f32 %v1797_v0, %v1709_v41  ;;  %v1623_v12 = vadd.f32 %v1622_v59, %v1534_v63  ;;  %1572 = vmatmul.bf16.gmra.mxu0 %v11178_v40  ;;  %v9136_v41 = vld [vmem:[%s10636_s15 + $0x1c4] sm:$0xf]  ;;  %v7621_v0 = vld [vmem:[%s10636_s15 + $0x1d0] sm:$0xf0]  ;;  %v9139_v63 = vld [vmem:[%s10636_s15 + $0x1d4] sm:$0xf0] }
 0x1d0   : > { %1661 = vmatmul.bf16.gmra.mxu1 %v11180_v38  ;;  %v9137_v59 = vld [vmem:[%s10636_s15 + $0x1cc] sm:$0xf]  ;;  %v11204_v38 = vor.u32 %v9138_v39, %v7619_v7  ;;  %v7965_v39 = vld [vmem:[%s10660_s20 + $0x70] sm:$0xf] }
 0x1d1   : > { %13623 = vst [vmem:[#allocation85_spill] sm:$0xff] %v11187_v11  ;;  %1750 = vmatmul.bf16.gmra.mxu2 %v11182_v6  ;;  %v7629_v6 = vld [vmem:[%s10636_s15 + $0x1d8] sm:$0xf0] }
 0x1d2   : > { %1839 = vmatmul.bf16.gmra.mxu3 %v11185_v32  ;;  %13625 = vst [vmem:[#allocation87_spill] sm:$0xff] %v11204_v38 }
 0x1d4   : > { %v1711_v19 = vpop.f32.mrf.mxu2  ;;  %v1535_v20 = vpop.f32.mrf.mxu0 }
 0x1d5   : > { %v1712_v62 = vadd.f32 %v1711_v19, %v1623_v12  ;;  %v1800_v42 = vpop.f32.mrf.mxu3  ;;  %v1536_v29 = vadd.f32 %v1535_v20, %v11016_v30  ;;  %v1624_v44 = vpop.f32.mrf.mxu1 }
 0x1d7   : > { %v11194_v60 = vadd.f32 %v1800_v42, %v1712_v62  ;;  %v1625_v37 = vadd.f32 %v1624_v44, %v1536_v29  ;;  %v11206_v62 = vor.u32 %v9136_v41, %v7621_v0  ;;  %v11208_v42 = vor.u32 %v9139_v63, %v7627_v8  ;;  %v9224_v0 = vld [vmem:[%s10660_s20 + $0x74] sm:$0xf0] }
 0x1d8   : > { %v9272_v8 = vld [vmem:[%s10660_s20 + $0x1f4] sm:$0xf0] }
 0x1d9   : > { %13624 = vst [vmem:[#allocation86_spill] sm:$0xff] %v11194_v60  ;;  %v11211_v60 = vor.u32 %v9137_v59, %v7629_v6  ;;  %v8157_v6 = vld [vmem:[%s10660_s20 + $0x1f0] sm:$0xf]  ;;  %v7966_v59 = vor.u32 %v9224_v0, %v7965_v39  ;;  %v9240_v0 = vld [vmem:[%s10660_s20 + $0xf4] sm:$0xf0] }
 0x1da   : > { %13626 = vst [vmem:[#allocation88_spill] sm:$0xff] %v11206_v62  ;;  %v8029_v39 = vld [vmem:[%s10660_s20 + $0xf0] sm:$0xf] }
 0x1db   : > { %13627 = vst [vmem:[#allocation89_spill] sm:$0xff] %v11208_v42  ;;  %2668 = vmatpush.bf16.msra.mxu0 %v7966_v59 }
 0x1dc   : > { %v1713_v32 = vpop.f32.mrf.mxu2  ;;  %v1538_v20 = vpop.f32.mrf.mxu0  ;;  %13628 = vst [vmem:[#allocation90_spill] sm:$0xff] %v11211_v60 }
 0x1dd   : > { %v1714_v12 = vadd.f32 %v1713_v32, %v1625_v37  ;;  %v1802_v19 = vpop.f32.mrf.mxu3  ;;  %v1539_v29 = vadd.f32 %v1538_v20, %v11016_v30  ;;  %v1627_v44 = vpop.f32.mrf.mxu1  ;;  %v8093_v32 = vld [vmem:[%s10660_s20 + $0x170] sm:$0xf]  ;;  %v9256_v37 = vld [vmem:[%s10660_s20 + $0x174] sm:$0xf0] }
 0x1de   : > { %v8094_v41 = vor.u32 %v9256_v37, %v8093_v32 }
 0x1df   : > { %v11213_v11 = vadd.f32 %v1802_v19, %v1714_v12  ;;  %v1628_v7 = vadd.f32 %v1627_v44, %v1539_v29  ;;  %1577 = vmatmul.bf16.gmra.mxu0 %v11204_v38  ;;  %v8158_v12 = vor.u32 %v9272_v8, %v8157_v6  ;;  %v8030_v8 = vor.u32 %v9240_v0, %v8029_v39 }
 0x1e0   : > { %1666 = vmatmul.bf16.gmra.mxu1 %v11206_v62  ;;  %2846 = vmatpush.bf16.msra.mxu2 %v8094_v41  ;;  %v7643_v62 = vld [vmem:[%s10636_s15 + $0x1e8] sm:$0xf]  ;;  %v9141_v41 = vld [vmem:[%s10636_s15 + $0x1ec] sm:$0xf] }
 0x1e1   : > { %13629 = vst [vmem:[#allocation91_spill] sm:$0xff] %v11213_v11  ;;  %1755 = vmatmul.bf16.gmra.mxu2 %v11208_v42  ;;  %2935 = vmatpush.bf16.msra.mxu3 %v8158_v12  ;;  %v7637_v42 = vld [vmem:[%s10636_s15 + $0x1f0] sm:$0xf0]  ;;  %v9143_v11 = vld [vmem:[%s10636_s15 + $0x1f4] sm:$0xf0] }
 0x1e2   : > { %1844 = vmatmul.bf16.gmra.mxu3 %v11211_v60  ;;  %v9140_v60 = vld [vmem:[%s10636_s15 + $0x1e4] sm:$0xf]  ;;  %2757 = vmatpush.bf16.msra.mxu1 %v8030_v8 }
 0x1e4   : > { %v1716_v63 = vpop.f32.mrf.mxu2  ;;  %v1540_v29 = vpop.f32.mrf.mxu0 }
 0x1e5   : > { %v1717_v19 = vadd.f32 %v1716_v63, %v1628_v7  ;;  %v1805_v20 = vpop.f32.mrf.mxu3  ;;  %v1541_v44 = vadd.f32 %v1540_v29, %v11016_v30  ;;  %v1629_v32 = vpop.f32.mrf.mxu1  ;;  %v7635_v7 = vld [vmem:[%s10636_s15 + $0x1e0] sm:$0xf]  ;;  %v9142_v63 = vld [vmem:[%s10636_s15 + $0x1ec] sm:$0xf0]  ;;  %v7645_v29 = vld [vmem:[%s10636_s15 + $0x1f8] sm:$0xf0] }
 0x1e6   : > { %v11238_v40 = vor.u32 %v9142_v63, %v7635_v7  ;;  %v11245_v39 = vor.u32 %v9141_v41, %v7645_v29 }
 0x1e7   : > { %v11226_v37 = vadd.f32 %v1805_v20, %v1717_v19  ;;  %v1630_v6 = vadd.f32 %v1629_v32, %v1541_v44  ;;  %v11240_v20 = vor.u32 %v9140_v60, %v7637_v42 }
 0x1e8   : > { %13632 = vst [vmem:[#allocation94_spill] sm:$0xff] %v11245_v39 }
 0x1e9   : > { %13630 = vst [vmem:[#allocation92_spill] sm:$0xff] %v11226_v37  ;;  %v11242_v37 = vor.u32 %v9143_v11, %v7643_v62 }
 0x1eb   : > { %13631 = vst [vmem:[#allocation93_spill] sm:$0xff] %v11242_v37 }
 0x1ec   : > { %v1718_v38 = vpop.f32.mrf.mxu2  ;;  %v1543_v19 = vpop.f32.mrf.mxu0 }
 0x1ed   : > { %v1719_v59 = vadd.f32 %v1718_v38, %v1630_v6  ;;  %v1807_v12 = vpop.f32.mrf.mxu3  ;;  %v1544_v44 = vadd.f32 %v1543_v19, %v11016_v30  ;;  %v1632_v32 = vpop.f32.mrf.mxu1 }
 0x1ef   : > { %v11247_v0 = vadd.f32 %v1807_v12, %v1719_v59  ;;  %v1633_v8 = vadd.f32 %v1632_v32, %v1544_v44  ;;  %1582 = vmatmul.bf16.gmra.mxu0 %v11238_v40 }
 0x1f0   : > { %1671 = vmatmul.bf16.gmra.mxu1 %v11240_v20 }
 0x1f1   : > { %1760 = vmatmul.bf16.gmra.mxu2 %v11242_v37 }
 0x1f2   : > { %1849 = vmatmul.bf16.gmra.mxu3 %v11245_v39 }
 0x1f4   : > { %v1721_v38 = vpop.f32.mrf.mxu2  ;;  %v1545_v62 = vpop.f32.mrf.mxu0 }
 0x1f5   : > { %v1722_v60 = vadd.f32 %v1721_v38, %v1633_v8  ;;  %v1810_v11 = vpop.f32.mrf.mxu3  ;;  %v1546_v42 = vadd.f32 %v1545_v62, %v11016_v30  ;;  %v1634_v6 = vpop.f32.mrf.mxu1  ;;  %v8085_v38 = vld [vmem:[%s10660_s20 + $0x160] sm:$0xf] }
 0x1f7   : > { %v11254_v7 = vadd.f32 %v1810_v11, %v1722_v60  ;;  %v1635_v63 = vadd.f32 %v1634_v6, %v1546_v42  ;;  %v9254_v60 = vld [vmem:[%s10660_s20 + $0x164] sm:$0xf0]  ;;  %v7957_v11 = vld [vmem:[%s10660_s20 + $0x60] sm:$0xf] }
 0x1f8   : > { %v8086_v62 = vor.u32 %v9254_v60, %v8085_v38  ;;  %v9222_v42 = vld [vmem:[%s10660_s20 + $0x64] sm:$0xf0]  ;;  %v8149_v6 = vld [vmem:[%s10660_s20 + $0x1e0] sm:$0xf] }
 0x1f9   : > { %13633 = vst [vmem:[#allocation95_spill] sm:$0xff] %v11254_v7  ;;  %v8021_v38 = vld [vmem:[%s10660_s20 + $0xe0] sm:$0xf]  ;;  %v9238_v60 = vld [vmem:[%s10660_s20 + $0xe4] sm:$0xf0] }
 0x1fa   : > { %2847 = vmatpush.bf16.msra.mxu2 %v8086_v62 }
 0x1fc   : > { %v1723_v41 = vpop.f32.mrf.mxu2  ;;  %v1548_v12 = vpop.f32.mrf.mxu0 }
 0x1fd   : > { %v1724_v29 = vadd.f32 %v1723_v41, %v1635_v63  ;;  %v1812_v59 = vpop.f32.mrf.mxu3  ;;  %v1549_v19 = vadd.f32 %v1548_v12, %v11016_v30  ;;  %v1637_v44 = vpop.f32.mrf.mxu1  ;;  %v9270_v63 = vld [vmem:[%s10660_s20 + $0x1e4] sm:$0xf0] }
 0x1ff   : > { %v11257_v32 = vadd.f32 %v1812_v59, %v1724_v29  ;;  %v1638_v8 = vadd.f32 %v1637_v44, %v1549_v19  ;;  %1863 = vmatmul.bf16.vlgmr.msrb.gmra.mxu0 %v10828_v48  ;;  %v7958_v29 = vor.u32 %v9222_v42, %v7957_v11  ;;  %v8150_v59 = vor.u32 %v9270_v63, %v8149_v6 }
 0x200   : > { %1952 = vmatmul.bf16.vlgmr.msrb.gmra.mxu1 %v10832_v52  ;;  %v8022_v48 = vor.u32 %v9238_v60, %v8021_v38 }
 0x201   : > { %13634 = vst [vmem:[#allocation96_spill] sm:$0xff] %v11257_v32  ;;  %2041 = vmatmul.bf16.vlgmr.msrb.gmra.mxu2 %v10834_v53  ;;  %2669 = vmatpush.bf16.msra.mxu0 %v7958_v29 }
 0x202   : > { %2130 = vmatmul.bf16.vlgmr.msrb.gmra.mxu3 %v10836_v54  ;;  %2758 = vmatpush.bf16.msra.mxu1 %v8022_v48 }
 0x203   : > { %2936 = vmatpush.bf16.msra.mxu3 %v8150_v59 }
 0x204   : > { %v1726_v41 = vpop.f32.mrf.mxu2  ;;  %v1550_v44 = vpop.f32.mrf.mxu0 }
 0x205   : > { %v1727_v12 = vadd.f32 %v1726_v41, %v1638_v8  ;;  %v1815_v19 = vpop.f32.mrf.mxu3  ;;  %v1551_v53 = vadd.f32 %v1550_v44, %v11016_v30  ;;  %v1639_v52 = vpop.f32.mrf.mxu1 }
 0x207   : > { %v11270_v54 = vadd.f32 %v1815_v19, %v1727_v12  ;;  %v1640_v32 = vadd.f32 %v1639_v52, %v1551_v53 }
 0x20c   : > { %v1728_v7 = vpop.f32.mrf.mxu2  ;;  %v1553_v42 = vpop.f32.mrf.mxu0 }
 0x20d   : > { %v1729_v39 = vadd.f32 %v1728_v7, %v1640_v32  ;;  %v1817_v11 = vpop.f32.mrf.mxu3  ;;  %v1554_v8 = vadd.f32 %v1553_v42, %v11016_v30  ;;  %v1642_v6 = vpop.f32.mrf.mxu1 }
 0x20f   : > { %v11275_v62 = vadd.f32 %v1817_v11, %v1729_v39  ;;  %v1643_v63 = vadd.f32 %v1642_v6, %v1554_v8  ;;  %1868 = vmatmul.bf16.gmra.mxu0 %v10858_v13  ;;  %v8077_v8 = vld [vmem:[%s10660_s20 + $0x150] sm:$0xf]  ;;  %v9252_v6 = vld [vmem:[%s10660_s20 + $0x154] sm:$0xf0] }
 0x210   : > { %1957 = vmatmul.bf16.gmra.mxu1 %v10860_v14 }
 0x211   : > { %2046 = vmatmul.bf16.gmra.mxu2 %v10862_v15 }
 0x212   : > { %2135 = vmatmul.bf16.gmra.mxu3 %v10864_v16 }
 0x214   : > { %v1731_v52 = vpop.f32.mrf.mxu2  ;;  %v1555_v7 = vpop.f32.mrf.mxu0 }
 0x215   : > { %v1732_v48 = vadd.f32 %v1731_v52, %v1643_v63  ;;  %v1820_v53 = vpop.f32.mrf.mxu3  ;;  %v1556_v32 = vadd.f32 %v1555_v7, %v11016_v30  ;;  %v1644_v41 = vpop.f32.mrf.mxu1  ;;  %v7949_v63 = vld [vmem:[%s10660_s20 + $0x50] sm:$0xf]  ;;  %v8078_v52 = vor.u32 %v9252_v6, %v8077_v8  ;;  %v9268_v7 = vld [vmem:[%s10660_s20 + $0x1d4] sm:$0xf0] }
 0x216   : > { %v8013_v8 = vld [vmem:[%s10660_s20 + $0xd0] sm:$0xf]  ;;  %v9236_v6 = vld [vmem:[%s10660_s20 + $0xd4] sm:$0xf0] }
 0x217   : > { %v11282_v39 = vadd.f32 %v1820_v53, %v1732_v48  ;;  %v1645_v29 = vadd.f32 %v1644_v41, %v1556_v32  ;;  %v9220_v48 = vld [vmem:[%s10660_s20 + $0x54] sm:$0xf0]  ;;  %v8141_v53 = vld [vmem:[%s10660_s20 + $0x1d0] sm:$0xf]  ;;  %2848 = vmatpush.bf16.msra.mxu2 %v8078_v52 }
 0x218   : > { %v7950_v41 = vor.u32 %v9220_v48, %v7949_v63 }
 0x21a   : > { %2670 = vmatpush.bf16.msra.mxu0 %v7950_v41 }
 0x21c   : > { %v1733_v59 = vpop.f32.mrf.mxu2  ;;  %v1558_v44 = vpop.f32.mrf.mxu0 }
 0x21d   : > { %v1734_v12 = vadd.f32 %v1733_v59, %v1645_v29  ;;  %v1822_v19 = vpop.f32.mrf.mxu3  ;;  %v1559_v38 = vadd.f32 %v1558_v44, %v11016_v30  ;;  %v1647_v60 = vpop.f32.mrf.mxu1  ;;  %v8142_v29 = vor.u32 %v9268_v7, %v8141_v53 }
 0x21f   : > { %v11285_v11 = vadd.f32 %v1822_v19, %v1734_v12  ;;  %v1648_v42 = vadd.f32 %v1647_v60, %v1559_v38  ;;  %1873 = vmatmul.bf16.gmra.mxu0 %v10878_v25  ;;  %2937 = vmatpush.bf16.msra.mxu3 %v8142_v29 }
 0x220   : > { %1962 = vmatmul.bf16.gmra.mxu1 %v10880_v26 }
 0x221   : > { %13635 = vst [vmem:[#allocation97_spill] sm:$0xff] %v11285_v11  ;;  %2051 = vmatmul.bf16.gmra.mxu2 %v10882_v27  ;;  %v8014_v27 = vor.u32 %v9236_v6, %v8013_v8 }
 0x222   : > { %2140 = vmatmul.bf16.gmra.mxu3 %v10884_v28 }
 0x223   : > { %2759 = vmatpush.bf16.msra.mxu1 %v8014_v27 }
 0x224   : > { %v1736_v32 = vpop.f32.mrf.mxu2  ;;  %v1560_v19 = vpop.f32.mrf.mxu0 }
 0x225   : > { %v1737_v59 = vadd.f32 %v1736_v32, %v1648_v42  ;;  %v1825_v12 = vpop.f32.mrf.mxu3  ;;  %v1561_v44 = vadd.f32 %v1560_v19, %v11016_v30  ;;  %v1649_v38 = vpop.f32.mrf.mxu1 }
 0x227   : > { %v11298_v60 = vadd.f32 %v1825_v12, %v1737_v59  ;;  %v1650_v28 = vadd.f32 %v1649_v38, %v1561_v44 }
 0x22c   : > { %v1738_v26 = vpop.f32.mrf.mxu2  ;;  %v1563_v48 = vpop.f32.mrf.mxu0 }
 0x22d   : > { %v1739_v11 = vadd.f32 %v1738_v26, %v1650_v28  ;;  %v1827_v63 = vpop.f32.mrf.mxu3  ;;  %v1564_v42 = vadd.f32 %v1563_v48, %v11016_v30  ;;  %v1652_v53 = vpop.f32.mrf.mxu1 }
 0x22f   : > { %v11303_v52 = vadd.f32 %v1827_v63, %v1739_v11  ;;  %v1653_v7 = vadd.f32 %v1652_v53, %v1564_v42  ;;  %1878 = vmatmul.bf16.gmra.mxu0 %v10906_v50  ;;  %v8069_v42 = vld [vmem:[%s10660_s20 + $0x140] sm:$0xf]  ;;  %v9250_v53 = vld [vmem:[%s10660_s20 + $0x144] sm:$0xf0] }
 0x230   : > { %1967 = vmatmul.bf16.gmra.mxu1 %v10908_v51 }
 0x231   : > { %2056 = vmatmul.bf16.gmra.mxu2 %v10910_v55 }
 0x232   : > { %2145 = vmatmul.bf16.gmra.mxu3 %v10912_v56 }
 0x234   : > { %v1741_v32 = vpop.f32.mrf.mxu2  ;;  %v1565_v26 = vpop.f32.mrf.mxu0 }
 0x235   : > { %v1742_v27 = vadd.f32 %v1741_v32, %v1653_v7  ;;  %v1830_v41 = vpop.f32.mrf.mxu3  ;;  %v1566_v28 = vadd.f32 %v1565_v26, %v11016_v30  ;;  %v1654_v29 = vpop.f32.mrf.mxu1  ;;  %v7941_v7 = vld [vmem:[%s10660_s20 + $0x40] sm:$0xf]  ;;  %v8070_v32 = vor.u32 %v9250_v53, %v8069_v42  ;;  %v9266_v26 = vld [vmem:[%s10660_s20 + $0x1c4] sm:$0xf0] }
 0x236   : > { %v8005_v42 = vld [vmem:[%s10660_s20 + $0xc0] sm:$0xf]  ;;  %v9234_v53 = vld [vmem:[%s10660_s20 + $0xc4] sm:$0xf0] }
 0x237   : > { %v11310_v11 = vadd.f32 %v1830_v41, %v1742_v27  ;;  %v1655_v59 = vadd.f32 %v1654_v29, %v1566_v28  ;;  %v9218_v27 = vld [vmem:[%s10660_s20 + $0x44] sm:$0xf0]  ;;  %v8133_v41 = vld [vmem:[%s10660_s20 + $0x1c0] sm:$0xf]  ;;  %2849 = vmatpush.bf16.msra.mxu2 %v8070_v32 }
 0x238   : > { %v7942_v29 = vor.u32 %v9218_v27, %v7941_v7 }
 0x23a   : > { %2671 = vmatpush.bf16.msra.mxu0 %v7942_v29 }
 0x23c   : > { %v1743_v12 = vpop.f32.mrf.mxu2  ;;  %v1568_v38 = vpop.f32.mrf.mxu0 }
 0x23d   : > { %v1744_v19 = vadd.f32 %v1743_v12, %v1655_v59  ;;  %v1832_v44 = vpop.f32.mrf.mxu3  ;;  %v1569_v8 = vadd.f32 %v1568_v38, %v11016_v30  ;;  %v1657_v6 = vpop.f32.mrf.mxu1  ;;  %v8134_v59 = vor.u32 %v9266_v26, %v8133_v41 }
 0x23f   : > { %v11313_v63 = vadd.f32 %v1832_v44, %v1744_v19  ;;  %v1658_v48 = vadd.f32 %v1657_v6, %v1569_v8  ;;  %1883 = vmatmul.bf16.gmra.mxu0 %v10926_v1  ;;  %2938 = vmatpush.bf16.msra.mxu3 %v8134_v59 }
 0x240   : > { %1972 = vmatmul.bf16.gmra.mxu1 %v10928_v2 }
 0x241   : > { %13636 = vst [vmem:[#allocation98_spill] sm:$0xff] %v11313_v63  ;;  %2061 = vmatmul.bf16.gmra.mxu2 %v10930_v3  ;;  %v8006_v3 = vor.u32 %v9234_v53, %v8005_v42 }
 0x242   : > { %2150 = vmatmul.bf16.gmra.mxu3 %v10932_v4 }
 0x243   : > { %2760 = vmatpush.bf16.msra.mxu1 %v8006_v3 }
 0x244   : > { %v1746_v28 = vpop.f32.mrf.mxu2  ;;  %v1570_v44 = vpop.f32.mrf.mxu0 }
 0x245   : > { %v1747_v12 = vadd.f32 %v1746_v28, %v1658_v48  ;;  %v1835_v19 = vpop.f32.mrf.mxu3  ;;  %v1571_v38 = vadd.f32 %v1570_v44, %v11016_v30  ;;  %v1659_v8 = vpop.f32.mrf.mxu1 }
 0x247   : > { %v11326_v6 = vadd.f32 %v1835_v19, %v1747_v12  ;;  %v1660_v4 = vadd.f32 %v1659_v8, %v1571_v38 }
 0x24c   : > { %v1748_v2 = vpop.f32.mrf.mxu2  ;;  %v1573_v27 = vpop.f32.mrf.mxu0 }
 0x24d   : > { %v1749_v63 = vadd.f32 %v1748_v2, %v1660_v4  ;;  %v1837_v7 = vpop.f32.mrf.mxu3  ;;  %v1574_v48 = vadd.f32 %v1573_v27, %v11016_v30  ;;  %v1662_v41 = vpop.f32.mrf.mxu1 }
 0x24f   : > { %v11331_v32 = vadd.f32 %v1837_v7, %v1749_v63  ;;  %v1663_v26 = vadd.f32 %v1662_v41, %v1574_v48  ;;  %1888 = vmatmul.bf16.gmra.mxu0 %v10954_v33  ;;  %v8061_v48 = vld [vmem:[%s10660_s20 + $0x130] sm:$0xf]  ;;  %v9248_v41 = vld [vmem:[%s10660_s20 + $0x134] sm:$0xf0] }
 0x250   : > { %1977 = vmatmul.bf16.gmra.mxu1 %v10956_v34 }
 0x251   : > { %2066 = vmatmul.bf16.gmra.mxu2 %v10958_v35 }
 0x252   : > { %2155 = vmatmul.bf16.gmra.mxu3 %v10960_v36 }
 0x254   : > { %v1751_v28 = vpop.f32.mrf.mxu2  ;;  %v1575_v2 = vpop.f32.mrf.mxu0 }
 0x255   : > { %v1752_v3 = vadd.f32 %v1751_v28, %v1663_v26  ;;  %v1840_v29 = vpop.f32.mrf.mxu3  ;;  %v1576_v4 = vadd.f32 %v1575_v2, %v11016_v30  ;;  %v1664_v59 = vpop.f32.mrf.mxu1  ;;  %v7933_v26 = vld [vmem:[%s10660_s20 + $0x30] sm:$0xf]  ;;  %v8062_v28 = vor.u32 %v9248_v41, %v8061_v48  ;;  %v9264_v2 = vld [vmem:[%s10660_s20 + $0x1b4] sm:$0xf0] }
 0x256   : > { %v7997_v41 = vld [vmem:[%s10660_s20 + $0xb0] sm:$0xf] }
 0x257   : > { %v11338_v63 = vadd.f32 %v1840_v29, %v1752_v3  ;;  %v1665_v12 = vadd.f32 %v1664_v59, %v1576_v4  ;;  %v9216_v3 = vld [vmem:[%s10660_s20 + $0x34] sm:$0xf0]  ;;  %v8125_v29 = vld [vmem:[%s10660_s20 + $0x1b0] sm:$0xf]  ;;  %2850 = vmatpush.bf16.msra.mxu2 %v8062_v28 }
 0x258   : > { %v7934_v59 = vor.u32 %v9216_v3, %v7933_v26 }
 0x25a   : > { %2672 = vmatpush.bf16.msra.mxu0 %v7934_v59 }
 0x25c   : > { %v1753_v19 = vpop.f32.mrf.mxu2  ;;  %v1578_v8 = vpop.f32.mrf.mxu0 }
 0x25d   : > { %v1754_v44 = vadd.f32 %v1753_v19, %v1665_v12  ;;  %v1842_v38 = vpop.f32.mrf.mxu3  ;;  %v1579_v42 = vadd.f32 %v1578_v8, %v11016_v30  ;;  %v1667_v53 = vpop.f32.mrf.mxu1  ;;  %v8126_v12 = vor.u32 %v9264_v2, %v8125_v29 }
 0x25f   : > { %v11341_v7 = vadd.f32 %v1842_v38, %v1754_v44  ;;  %v1668_v27 = vadd.f32 %v1667_v53, %v1579_v42  ;;  %1893 = vmatmul.bf16.gmra.mxu0 %v10974_v45  ;;  %2939 = vmatpush.bf16.msra.mxu3 %v8126_v12 }
 0x260   : > { %1982 = vmatmul.bf16.gmra.mxu1 %v10976_v46 }
 0x261   : > { %13637 = vst [vmem:[#allocation99_spill] sm:$0xff] %v11341_v7  ;;  %2071 = vmatmul.bf16.gmra.mxu2 %v10978_v47 }
 0x262   : > { %2160 = vmatmul.bf16.gmra.mxu3 %v10980_v49  ;;  %v9232_v49 = vld [vmem:[%s10660_s20 + $0xb4] sm:$0xf0] }
 0x263   : > { %v7998_v46 = vor.u32 %v9232_v49, %v7997_v41 }
 0x264   : > { %v1756_v4 = vpop.f32.mrf.mxu2  ;;  %v1580_v38 = vpop.f32.mrf.mxu0 }
 0x265   : > { %v1757_v19 = vadd.f32 %v1756_v4, %v1668_v27  ;;  %v1845_v44 = vpop.f32.mrf.mxu3  ;;  %v1581_v8 = vadd.f32 %v1580_v38, %v11016_v30  ;;  %v1669_v42 = vpop.f32.mrf.mxu1  ;;  %2761 = vmatpush.bf16.msra.mxu1 %v7998_v46  ;;  %v9692_v46 = vld [vmem:[%s546_s8] sm:$0x3] }
 0x267   : > { %v11354_v53 = vadd.f32 %v1845_v44, %v1757_v19  ;;  %v1670_v48 = vadd.f32 %v1669_v42, %v1581_v8 }
 0x26c   : > { %v1758_v47 = vpop.f32.mrf.mxu2  ;;  %v1583_v26 = vpop.f32.mrf.mxu0 }
 0x26d   : > { %v1759_v7 = vadd.f32 %v1758_v47, %v1670_v48  ;;  %v1847_v45 = vpop.f32.mrf.mxu3  ;;  %v1584_v27 = vadd.f32 %v1583_v26, %v11016_v30  ;;  %v1672_v3 = vpop.f32.mrf.mxu1 }
 0x26f   : > { %v11359_v28 = vadd.f32 %v1847_v45, %v1759_v7  ;;  %v1673_v29 = vadd.f32 %v1672_v3, %v1584_v27  ;;  %1898 = vmatmul.bf16.gmra.mxu0 %v11002_v21  ;;  %v11370_v7 = vperm.slane %v9692_v46, 1  ;;  %v8053_v27 = vld [vmem:[%s10660_s20 + $0x120] sm:$0xf]  ;;  %v9246_v3 = vld [vmem:[%s10660_s20 + $0x124] sm:$0xf0] }
 0x270   : > { %1987 = vmatmul.bf16.gmra.mxu1 %v11004_v22 }
 0x271   : > { %2076 = vmatmul.bf16.gmra.mxu2 %v11006_v23 }
 0x272   : > { %2165 = vmatmul.bf16.gmra.mxu3 %v11008_v24 }
 0x274   : > { %v1761_v49 = vpop.f32.mrf.mxu2  ;;  %v1585_v4 = vpop.f32.mrf.mxu0 }
 0x275   : > { %v1762_v47 = vadd.f32 %v1761_v49, %v1673_v29  ;;  %v1850_v2 = vpop.f32.mrf.mxu3  ;;  %v1586_v59 = vadd.f32 %v1585_v4, %v11016_v30  ;;  %v1674_v12 = vpop.f32.mrf.mxu1  ;;  %v7925_v29 = vld [vmem:[%s10660_s20 + $0x20] sm:$0xf] }
 0x276   : > { %v8117_v4 = vld [vmem:[%s10660_s20 + $0x1a0] sm:$0xf] }
 0x277   : > { %v11366_v19 = vadd.f32 %v1850_v2, %v1762_v47  ;;  %v1675_v45 = vadd.f32 %v1674_v12, %v1586_v59  ;;  %v8054_v47 = vor.u32 %v9246_v3, %v8053_v27  ;;  %v9214_v2 = vld [vmem:[%s10660_s20 + $0x24] sm:$0xf0]  ;;  %v7989_v27 = vld [vmem:[%s10660_s20 + $0xa0] sm:$0xf] }
 0x278   : > { %v9262_v59 = vld [vmem:[%s10660_s20 + $0x1a4] sm:$0xf0] }
 0x279   : > { %2851 = vmatpush.bf16.msra.mxu2 %v8054_v47  ;;  %v9230_v3 = vld [vmem:[%s10660_s20 + $0xa4] sm:$0xf0] }
 0x27c   : > { %v1763_v44 = vpop.f32.mrf.mxu2  ;;  %v1864_v42 = vpop.f32.mrf.mxu0 }
 0x27d   : > { %v1764_v38 = vadd.f32 %v1763_v44, %v1675_v45  ;;  %v1852_v8 = vpop.f32.mrf.mxu3  ;;  %v1865_v30 = vadd.f32 %v1864_v42, %v11370_v7  ;;  %v1953_v48 = vpop.f32.mrf.mxu1  ;;  %v7926_v44 = vor.u32 %v9214_v2, %v7925_v29 }
 0x27f   : > { %v11373_v41 = vadd.f32 %v1852_v8, %v1764_v38  ;;  %1903 = vmatmul.bf16.gmra.mxu0 %v11026_v43  ;;  %v1954_v26 = vadd.f32 %v1953_v48, %v1865_v30  ;;  %v8118_v38 = vor.u32 %v9262_v59, %v8117_v4 }
 0x280   : > { %1992 = vmatmul.bf16.gmra.mxu1 %v11028_v57  ;;  %2673 = vmatpush.bf16.msra.mxu0 %v7926_v44 }
 0x281   : > { %2081 = vmatmul.bf16.gmra.mxu2 %v11030_v58  ;;  %2940 = vmatpush.bf16.msra.mxu3 %v8118_v38 }
 0x282   : > { %2170 = vmatmul.bf16.gmra.mxu3 %v11033_v61 }
 0x284   : > { %v2042_v49 = vpop.f32.mrf.mxu2  ;;  %v1866_v46 = vpop.f32.mrf.mxu0 }
 0x285   : > { %v2043_v12 = vadd.f32 %v2042_v49, %v1954_v26  ;;  %v2131_v45 = vpop.f32.mrf.mxu3  ;;  %v1955_v8 = vpop.f32.mrf.mxu1  ;;  %v1867_v30 = vadd.f32 %v1866_v46, %v11370_v7  ;;  %v7990_v49 = vor.u32 %v9230_v3, %v7989_v27  ;;  %v13639_v27 = vld [vmem:[#allocation62_spill] sm:$0xff] }
 0x287   : > { %v2132_v42 = vadd.f32 %v2131_v45, %v2043_v12  ;;  %v1956_v26 = vadd.f32 %v1955_v8, %v1867_v30  ;;  %2762 = vmatpush.bf16.msra.mxu1 %v7990_v49 }
 0x289   : > { %v2211_v48 = vpack.c.bf16 %v2132_v42, %v11046_v31 }
 0x28b   : > { %2246 = vst [vmem:[%s11390_s19] sm:$0xff] %v2211_v48 }
 0x28c   : > { %v2044_v29 = vpop.f32.mrf.mxu2  ;;  %v1869_v4 = vpop.f32.mrf.mxu0 }
 0x28d   : > { %v2045_v2 = vadd.f32 %v2044_v29, %v1956_v26  ;;  %v2133_v47 = vpop.f32.mrf.mxu3  ;;  %v1870_v59 = vadd.f32 %v1869_v4, %v11370_v7  ;;  %v1958_v12 = vpop.f32.mrf.mxu1 }
 0x28f   : > { %v2134_v45 = vadd.f32 %v2133_v47, %v2045_v2  ;;  %1908 = vmatmul.bf16.gmra.mxu0 %v11058_v5  ;;  %v1959_v46 = vadd.f32 %v1958_v12, %v1870_v59 }
 0x290   : > { %1997 = vmatmul.bf16.gmra.mxu1 %v11060_v9 }
 0x291   : > { %v2212_v31 = vpack.c.bf16 %v2134_v45, %v11067_v18  ;;  %2086 = vmatmul.bf16.gmra.mxu2 %v11062_v10  ;;  %v13640_v45 = vld [vmem:[#allocation63_spill] sm:$0xff] }
 0x292   : > { %2175 = vmatmul.bf16.gmra.mxu3 %v11065_v17 }
 0x293   : > { %2247 = vst [vmem:[%s11390_s19 + $0x8] sm:$0xff] %v2212_v31  ;;  %v13641_v31 = vld [vmem:[#allocation67_spill] sm:$0xff] }
 0x294   : > { %v2047_v44 = vpop.f32.mrf.mxu2  ;;  %v1871_v42 = vpop.f32.mrf.mxu0 }
 0x295   : > { %v2048_v38 = vadd.f32 %v2047_v44, %v1959_v46  ;;  %v2136_v8 = vpop.f32.mrf.mxu3  ;;  %v1960_v30 = vpop.f32.mrf.mxu1  ;;  %v1872_v26 = vadd.f32 %v1871_v42, %v11370_v7  ;;  %v13644_v42 = vld [vmem:[#allocation66_spill] sm:$0xff] }
 0x297   : > { %v2137_v48 = vadd.f32 %v2136_v8, %v2048_v38  ;;  %v1961_v18 = vadd.f32 %v1960_v30, %v1872_v26  ;;  %v13642_v38 = vld [vmem:[#allocation64_spill] sm:$0xff]  ;;  %v13643_v8 = vld [vmem:[#allocation65_spill] sm:$0xff] }
 0x298   : > { %v8045_v30 = vld [vmem:[%s10660_s20 + $0x110] sm:$0xf] }
 0x299   : > { %v2213_v3 = vpack.c.bf16 %v2137_v48, %v13639_v27  ;;  %v9244_v48 = vld [vmem:[%s10660_s20 + $0x114] sm:$0xf0] }
 0x29a   : > { %v8046_v27 = vor.u32 %v9244_v48, %v8045_v30  ;;  %v13645_v30 = vld [vmem:[#allocation68_spill] sm:$0xff] }
 0x29b   : > { %2248 = vst [vmem:[%s11390_s19 + $0x10] sm:$0xff] %v2213_v3  ;;  %v7917_v3 = vld [vmem:[%s10660_s20 + $0x10] sm:$0xf] }
 0x29c   : > { %v2049_v29 = vpop.f32.mrf.mxu2  ;;  %v1874_v47 = vpop.f32.mrf.mxu0  ;;  %2852 = vmatpush.bf16.msra.mxu2 %v8046_v27 }
 0x29d   : > { %v2050_v49 = vadd.f32 %v2049_v29, %v1961_v18  ;;  %v2138_v2 = vpop.f32.mrf.mxu3  ;;  %v1875_v4 = vadd.f32 %v1874_v47, %v11370_v7  ;;  %v1963_v59 = vpop.f32.mrf.mxu1  ;;  %v9212_v18 = vld [vmem:[%s10660_s20 + $0x14] sm:$0xf0]  ;;  %v8109_v29 = vld [vmem:[%s10660_s20 + $0x190] sm:$0xf] }
 0x29f   : > { %v2139_v12 = vadd.f32 %v2138_v2, %v2050_v49  ;;  %1913 = vmatmul.bf16.gmra.mxu0 %v13640_v45  ;;  %v1964_v44 = vadd.f32 %v1963_v59, %v1875_v4  ;;  %v7918_v4 = vor.u32 %v9212_v18, %v7917_v3  ;;  %v9260_v59 = vld [vmem:[%s10660_s20 + $0x194] sm:$0xf0] }
 0x2a0   : > { %2002 = vmatmul.bf16.gmra.mxu1 %v13642_v38  ;;  %v7981_v38 = vld [vmem:[%s10660_s20 + $0x90] sm:$0xf]  ;;  %v9228_v45 = vld [vmem:[%s10660_s20 + $0x94] sm:$0xf0] }
 0x2a1   : > { %v2214_v46 = vpack.c.bf16 %v2139_v12, %v13641_v31  ;;  %2091 = vmatmul.bf16.gmra.mxu2 %v13643_v8  ;;  %v8110_v31 = vor.u32 %v9260_v59, %v8109_v29  ;;  %2674 = vmatpush.bf16.msra.mxu0 %v7918_v4  ;;  %v13648_v59 = vld [vmem:[#allocation70_spill] sm:$0xff] }
 0x2a2   : > { %2180 = vmatmul.bf16.gmra.mxu3 %v13644_v42 }
 0x2a3   : > { %2249 = vst [vmem:[%s11390_s19 + $0x18] sm:$0xff] %v2214_v46  ;;  %2941 = vmatpush.bf16.msra.mxu3 %v8110_v31  ;;  %v13650_v31 = vld [vmem:[#allocation72_spill] sm:$0xff] }
 0x2a4   : > { %v2052_v26 = vpop.f32.mrf.mxu2  ;;  %v1876_v47 = vpop.f32.mrf.mxu0 }
 0x2a5   : > { %v2053_v49 = vadd.f32 %v2052_v26, %v1964_v44  ;;  %v2141_v2 = vpop.f32.mrf.mxu3  ;;  %v1965_v12 = vpop.f32.mrf.mxu1  ;;  %v1877_v46 = vadd.f32 %v1876_v47, %v11370_v7  ;;  %v7982_v26 = vor.u32 %v9228_v45, %v7981_v38  ;;  %v13647_v47 = vld [vmem:[#allocation73_spill] sm:$0xff] }
 0x2a7   : > { %v2142_v42 = vadd.f32 %v2141_v2, %v2053_v49  ;;  %v1966_v8 = vadd.f32 %v1965_v12, %v1877_v46  ;;  %2763 = vmatpush.bf16.msra.mxu1 %v7982_v26  ;;  %v13646_v2 = vld [vmem:[#allocation69_spill] sm:$0xff]  ;;  %v13649_v12 = vld [vmem:[#allocation71_spill] sm:$0xff] }
 0x2a9   : > { %v2215_v48 = vpack.c.bf16 %v2142_v42, %v13645_v30 }
 0x2ab   : > { %2250 = vst [vmem:[%s11390_s19 + $0x20] sm:$0xff] %v2215_v48 }
 0x2ac   : > { %v2054_v44 = vpop.f32.mrf.mxu2  ;;  %v1879_v18 = vpop.f32.mrf.mxu0 }
 0x2ad   : > { %v2055_v17 = vadd.f32 %v2054_v44, %v1966_v8  ;;  %v2143_v3 = vpop.f32.mrf.mxu3  ;;  %v1880_v27 = vadd.f32 %v1879_v18, %v11370_v7  ;;  %v1968_v29 = vpop.f32.mrf.mxu1  ;;  %v13651_v44 = vld [vmem:[#allocation74_spill] sm:$0xff] }
 0x2af   : > { %v2144_v49 = vadd.f32 %v2143_v3, %v2055_v17  ;;  %1918 = vmatmul.bf16.gmra.mxu0 %v13646_v2  ;;  %v1969_v4 = vadd.f32 %v1968_v29, %v1880_v27 }
 0x2b0   : > { %2007 = vmatmul.bf16.gmra.mxu1 %v13648_v59  ;;  %v9226_v59 = vld [vmem:[%s10660_s20 + $0x84] sm:$0xf0] }
 0x2b1   : > { %v2216_v42 = vpack.c.bf16 %v2144_v49, %v13647_v47  ;;  %2096 = vmatmul.bf16.gmra.mxu2 %v13649_v12  ;;  %v7973_v12 = vld [vmem:[%s10660_s20 + $0x80] sm:$0xf] }
 0x2b2   : > { %2185 = vmatmul.bf16.gmra.mxu3 %v13650_v31 }
 0x2b3   : > { %2251 = vst [vmem:[%s11390_s19 + $0x28] sm:$0xff] %v2216_v42 }
 0x2b4   : > { %v2057_v45 = vpop.f32.mrf.mxu2  ;;  %v1881_v46 = vpop.f32.mrf.mxu0 }
 0x2b5   : > { %v2058_v38 = vadd.f32 %v2057_v45, %v1969_v4  ;;  %v2146_v8 = vpop.f32.mrf.mxu3  ;;  %v1970_v30 = vpop.f32.mrf.mxu1  ;;  %v1882_v17 = vadd.f32 %v1881_v46, %v11370_v7  ;;  %v13652_v45 = vld [vmem:[#allocation75_spill] sm:$0xff] }
 0x2b7   : > { %v2147_v48 = vadd.f32 %v2146_v8, %v2058_v38  ;;  %v1971_v3 = vadd.f32 %v1970_v30, %v1882_v17  ;;  %v13653_v38 = vld [vmem:[#allocation79_spill] sm:$0xff]  ;;  %v13655_v30 = vld [vmem:[#allocation77_spill] sm:$0xff]  ;;  %v13656_v17 = vld [vmem:[#allocation78_spill] sm:$0xff] }
 0x2b9   : > { %v2217_v26 = vpack.c.bf16 %v2147_v48, %v13651_v44  ;;  %v13654_v48 = vld [vmem:[#allocation76_spill] sm:$0xff]  ;;  %v8037_v44 = vld [vmem:[%s10660_s20 + $0x100] sm:$0xf] }
 0x2bb   : > { %2252 = vst [vmem:[%s11390_s19 + $0x30] sm:$0xff] %v2217_v26  ;;  %v9242_v26 = vld [vmem:[%s10660_s20 + $0x104] sm:$0xf0] }
 0x2bc   : > { %v2059_v18 = vpop.f32.mrf.mxu2  ;;  %v1884_v49 = vpop.f32.mrf.mxu0 }
 0x2bd   : > { %v2060_v27 = vadd.f32 %v2059_v18, %v1971_v3  ;;  %v2148_v29 = vpop.f32.mrf.mxu3  ;;  %v1885_v47 = vadd.f32 %v1884_v49, %v11370_v7  ;;  %v1973_v42 = vpop.f32.mrf.mxu1  ;;  %v8038_v18 = vor.u32 %v9242_v26, %v8037_v44  ;;  %v7909_v49 = vld [vmem:[%s10660_s20] sm:$0xf]  ;;  %v13657_v44 = vld [vmem:[#allocation80_spill] sm:$0xff] }
 0x2bf   : > { %v2149_v4 = vadd.f32 %v2148_v29, %v2060_v27  ;;  %1923 = vmatmul.bf16.gmra.mxu0 %v13652_v45  ;;  %v1974_v46 = vadd.f32 %v1973_v42, %v1885_v47  ;;  %v9210_v27 = vld [vmem:[%s10660_s20 + $0x4] sm:$0xf0]  ;;  %v8101_v29 = vld [vmem:[%s10660_s20 + $0x180] sm:$0xf]  ;;  %2853 = vmatpush.bf16.msra.mxu2 %v8038_v18 }
 0x2c0   : > { %2012 = vmatmul.bf16.gmra.mxu1 %v13654_v48 }
 0x2c1   : > { %v2218_v8 = vpack.c.bf16 %v2149_v4, %v13653_v38  ;;  %2101 = vmatmul.bf16.gmra.mxu2 %v13655_v30  ;;  %v7910_v4 = vor.u32 %v9210_v27, %v7909_v49  ;;  %v9258_v38 = vld [vmem:[%s10660_s20 + $0x184] sm:$0xf0] }
 0x2c2   : > { %2190 = vmatmul.bf16.gmra.mxu3 %v13656_v17  ;;  %v8102_v30 = vor.u32 %v9258_v38, %v8101_v29  ;;  %v13662_v38 = vld [vmem:[#allocation84_spill] sm:$0xff] }
 0x2c3   : > { %2253 = vst [vmem:[%s11390_s19 + $0x38] sm:$0xff] %v2218_v8  ;;  %2675 = vmatpush.bf16.msra.mxu0 %v7910_v4  ;;  %v13661_v4 = vld [vmem:[#allocation83_spill] sm:$0xff] }
 0x2c4   : > { %v2062_v3 = vpop.f32.mrf.mxu2  ;;  %v1886_v42 = vpop.f32.mrf.mxu0  ;;  %2942 = vmatpush.bf16.msra.mxu3 %v8102_v30  ;;  %v13659_v30 = vld [vmem:[#allocation85_spill] sm:$0xff] }
 0x2c5   : > { %v2063_v45 = vadd.f32 %v2062_v3, %v1974_v46  ;;  %v2151_v47 = vpop.f32.mrf.mxu3  ;;  %v1975_v48 = vpop.f32.mrf.mxu1  ;;  %v1887_v8 = vadd.f32 %v1886_v42, %v11370_v7  ;;  %v7974_v3 = vor.u32 %v9226_v59, %v7973_v12 }
 0x2c7   : > { %v2152_v17 = vadd.f32 %v2151_v47, %v2063_v45  ;;  %v1976_v31 = vadd.f32 %v1975_v48, %v1887_v8  ;;  %2764 = vmatpush.bf16.msra.mxu1 %v7974_v3  ;;  %v13658_v47 = vld [vmem:[#allocation81_spill] sm:$0xff]  ;;  %v13660_v48 = vld [vmem:[#allocation82_spill] sm:$0xff] }
 0x2c9   : > { %v2219_v26 = vpack.c.bf16 %v2152_v17, %v13657_v44 }
 0x2cb   : > { %2254 = vst [vmem:[%s11390_s19 + $0x40] sm:$0xff] %v2219_v26 }
 0x2cc   : > { %v2064_v46 = vpop.f32.mrf.mxu2  ;;  %v1889_v27 = vpop.f32.mrf.mxu0 }
 0x2cd   : > { %v2065_v2 = vadd.f32 %v2064_v46, %v1976_v31  ;;  %v2153_v49 = vpop.f32.mrf.mxu3  ;;  %v1890_v18 = vadd.f32 %v1889_v27, %v11370_v7  ;;  %v1978_v29 = vpop.f32.mrf.mxu1  ;;  %v13663_v46 = vld [vmem:[#allocation86_spill] sm:$0xff] }
 0x2cf   : > { %v2154_v45 = vadd.f32 %v2153_v49, %v2065_v2  ;;  %1928 = vmatmul.bf16.gmra.mxu0 %v13658_v47  ;;  %v1979_v42 = vadd.f32 %v1978_v29, %v1890_v18 }
 0x2d0   : > { %2017 = vmatmul.bf16.gmra.mxu1 %v13660_v48  ;;  %v8031_v48 = vld [vmem:[%s10660_s20 + $0xf8] sm:$0xf0] }
 0x2d1   : > { %v2220_v17 = vpack.c.bf16 %v2154_v45, %v13659_v30  ;;  %2106 = vmatmul.bf16.gmra.mxu2 %v13661_v4  ;;  %v9239_v4 = vld [vmem:[%s10660_s20 + $0xf4] sm:$0xf] }
 0x2d2   : > { %2195 = vmatmul.bf16.gmra.mxu3 %v13662_v38 }
 0x2d3   : > { %2255 = vst [vmem:[%s11390_s19 + $0x48] sm:$0xff] %v2220_v17 }
 0x2d4   : > { %v2067_v59 = vpop.f32.mrf.mxu2  ;;  %v1891_v8 = vpop.f32.mrf.mxu0 }
 0x2d5   : > { %v2068_v12 = vadd.f32 %v2067_v59, %v1979_v42  ;;  %v2156_v31 = vpop.f32.mrf.mxu3  ;;  %v1980_v44 = vpop.f32.mrf.mxu1  ;;  %v1892_v2 = vadd.f32 %v1891_v8, %v11370_v7  ;;  %v13664_v59 = vld [vmem:[#allocation87_spill] sm:$0xff] }
 0x2d7   : > { %v2157_v26 = vadd.f32 %v2156_v31, %v2068_v12  ;;  %v1981_v49 = vadd.f32 %v1980_v44, %v1892_v2  ;;  %v13665_v12 = vld [vmem:[#allocation91_spill] sm:$0xff]  ;;  %v13667_v44 = vld [vmem:[#allocation89_spill] sm:$0xff]  ;;  %v13668_v2 = vld [vmem:[#allocation90_spill] sm:$0xff] }
 0x2d9   : > { %v2221_v3 = vpack.c.bf16 %v2157_v26, %v13663_v46  ;;  %v13666_v26 = vld [vmem:[#allocation88_spill] sm:$0xff]  ;;  %v9255_v46 = vld [vmem:[%s10660_s20 + $0x174] sm:$0xf] }
 0x2db   : > { %2256 = vst [vmem:[%s11390_s19 + $0x50] sm:$0xff] %v2221_v3  ;;  %v8095_v3 = vld [vmem:[%s10660_s20 + $0x178] sm:$0xf0] }
 0x2dc   : > { %v2069_v27 = vpop.f32.mrf.mxu2  ;;  %v1894_v45 = vpop.f32.mrf.mxu0 }
 0x2dd   : > { %v2070_v18 = vadd.f32 %v2069_v27, %v1981_v49  ;;  %v2158_v29 = vpop.f32.mrf.mxu3  ;;  %v1895_v30 = vadd.f32 %v1894_v45, %v11370_v7  ;;  %v1983_v17 = vpop.f32.mrf.mxu1  ;;  %v8098_v27 = vor.u32 %v9255_v46, %v8095_v3  ;;  %v9223_v45 = vld [vmem:[%s10660_s20 + $0x74] sm:$0xf]  ;;  %v13669_v46 = vld [vmem:[#allocation92_spill] sm:$0xff] }
 0x2df   : > { %v2159_v42 = vadd.f32 %v2158_v29, %v2070_v18  ;;  %1933 = vmatmul.bf16.gmra.mxu0 %v13664_v59  ;;  %v1984_v8 = vadd.f32 %v1983_v17, %v1895_v30  ;;  %v7967_v18 = vld [vmem:[%s10660_s20 + $0x78] sm:$0xf0]  ;;  %v9271_v29 = vld [vmem:[%s10660_s20 + $0x1f4] sm:$0xf]  ;;  %3202 = vmatpush.bf16.msrb.mxu2 %v8098_v27 }
 0x2e0   : > { %2022 = vmatmul.bf16.gmra.mxu1 %v13666_v26 }
 0x2e1   : > { %v2222_v31 = vpack.c.bf16 %v2159_v42, %v13665_v12  ;;  %2111 = vmatmul.bf16.gmra.mxu2 %v13667_v44  ;;  %v7970_v42 = vor.u32 %v9223_v45, %v7967_v18  ;;  %v8159_v12 = vld [vmem:[%s10660_s20 + $0x1f8] sm:$0xf0] }
 0x2e2   : > { %2200 = vmatmul.bf16.gmra.mxu3 %v13668_v2  ;;  %v8162_v44 = vor.u32 %v9271_v29, %v8159_v12  ;;  %v13671_v12 = vld [vmem:[#allocation95_spill] sm:$0xff] }
 0x2e3   : > { %2257 = vst [vmem:[%s11390_s19 + $0x58] sm:$0xff] %v2222_v31  ;;  %3024 = vmatpush.bf16.msrb.mxu0 %v7970_v42 }
 0x2e4   : > { %v2072_v49 = vpop.f32.mrf.mxu2  ;;  %v1896_v17 = vpop.f32.mrf.mxu0  ;;  %3291 = vmatpush.bf16.msrb.mxu3 %v8162_v44 }
 0x2e5   : > { %v2073_v59 = vadd.f32 %v2072_v49, %v1984_v8  ;;  %v2161_v30 = vpop.f32.mrf.mxu3  ;;  %v1985_v26 = vpop.f32.mrf.mxu1  ;;  %v1897_v31 = vadd.f32 %v1896_v17, %v11370_v7  ;;  %v8034_v49 = vor.u32 %v9239_v4, %v8031_v48 }
 0x2e7   : > { %v2162_v2 = vadd.f32 %v2161_v30, %v2073_v59  ;;  %v1986_v38 = vadd.f32 %v1985_v26, %v1897_v31  ;;  %3113 = vmatpush.bf16.msrb.mxu1 %v8034_v49  ;;  %v13670_v26 = vld [vmem:[#allocation94_spill] sm:$0xff] }
 0x2e9   : > { %v2223_v3 = vpack.c.bf16 %v2162_v2, %v13669_v46 }
 0x2eb   : > { %2258 = vst [vmem:[%s11390_s19 + $0x60] sm:$0xff] %v2223_v3 }
 0x2ec   : > { %v2074_v8 = vpop.f32.mrf.mxu2  ;;  %v1899_v18 = vpop.f32.mrf.mxu0 }
 0x2ed   : > { %v2075_v47 = vadd.f32 %v2074_v8, %v1986_v38  ;;  %v2163_v45 = vpop.f32.mrf.mxu3  ;;  %v1900_v27 = vadd.f32 %v1899_v18, %v11370_v7  ;;  %v1988_v29 = vpop.f32.mrf.mxu1 }
 0x2ef   : > { %v2164_v59 = vadd.f32 %v2163_v45, %v2075_v47  ;;  %1938 = vmatmul.bf16.gmra.mxu0 %v11238_v40  ;;  %v1989_v2 = vadd.f32 %v1988_v29, %v1900_v27  ;;  %v13672_v29 = vld [vmem:[#allocation47_spill] sm:$0xff] }
 0x2f0   : > { %2027 = vmatmul.bf16.gmra.mxu1 %v11240_v20 }
 0x2f1   : > { %v2224_v44 = vpack.c.bf16 %v2164_v59, %v11247_v0  ;;  %2116 = vmatmul.bf16.gmra.mxu2 %v11242_v37  ;;  %v13673_v59 = vld [vmem:[#allocation96_spill] sm:$0xff] }
 0x2f2   : > { %2205 = vmatmul.bf16.gmra.mxu3 %v13670_v26 }
 0x2f3   : > { %2259 = vst [vmem:[%s11390_s19 + $0x68] sm:$0xff] %v2224_v44 }
 0x2f4   : > { %v2077_v48 = vpop.f32.mrf.mxu2  ;;  %v1901_v30 = vpop.f32.mrf.mxu0 }
 0x2f5   : > { %v2078_v4 = vadd.f32 %v2077_v48, %v1989_v2  ;;  %v2166_v38 = vpop.f32.mrf.mxu3  ;;  %v1990_v17 = vpop.f32.mrf.mxu1  ;;  %v1902_v47 = vadd.f32 %v1901_v30, %v11370_v7  ;;  %v13674_v48 = vld [vmem:[#allocation48_spill] sm:$0xff]  ;;  %v9253_v30 = vld [vmem:[%s10660_s20 + $0x164] sm:$0xf] }
 0x2f7   : > { %v2167_v42 = vadd.f32 %v2166_v38, %v2078_v4  ;;  %v1991_v0 = vadd.f32 %v1990_v17, %v1902_v47  ;;  %v13675_v4 = vld [vmem:[#allocation49_spill] sm:$0xff]  ;;  %v13676_v38 = vld [vmem:[#allocation50_spill] sm:$0xff]  ;;  %v8087_v17 = vld [vmem:[%s10660_s20 + $0x168] sm:$0xf0] }
 0x2f8   : > { %v8090_v47 = vor.u32 %v9253_v30, %v8087_v17 }
 0x2f9   : > { %v2225_v31 = vpack.c.bf16 %v2167_v42, %v13671_v12  ;;  %v9221_v12 = vld [vmem:[%s10660_s20 + $0x64] sm:$0xf] }
 0x2fa   : > { %3203 = vmatpush.bf16.msrb.mxu2 %v8090_v47 }
 0x2fb   : > { %2260 = vst [vmem:[%s11390_s19 + $0x70] sm:$0xff] %v2225_v31  ;;  %v7959_v31 = vld [vmem:[%s10660_s20 + $0x68] sm:$0xf0] }
 0x2fc   : > { %v2079_v46 = vpop.f32.mrf.mxu2  ;;  %v1904_v49 = vpop.f32.mrf.mxu0 }
 0x2fd   : > { %v2080_v3 = vadd.f32 %v2079_v46, %v1991_v0  ;;  %v2168_v8 = vpop.f32.mrf.mxu3  ;;  %v1905_v45 = vadd.f32 %v1904_v49, %v11370_v7  ;;  %v1993_v18 = vpop.f32.mrf.mxu1  ;;  %v9269_v0 = vld [vmem:[%s10660_s20 + $0x1e4] sm:$0xf]  ;;  %v7962_v49 = vor.u32 %v9221_v12, %v7959_v31 }
 0x2ff   : > { %v2169_v27 = vadd.f32 %v2168_v8, %v2080_v3  ;;  %2676 = vmatmul.bf16.vlgmr.msra.gmra.mxu0 %v13672_v29  ;;  %v1994_v2 = vadd.f32 %v1993_v18, %v1905_v45  ;;  %v8151_v45 = vld [vmem:[%s10660_s20 + $0x1e8] sm:$0xf0] }
 0x300   : > { %2765 = vmatmul.bf16.vlgmr.msra.gmra.mxu1 %v13674_v48  ;;  %3025 = vmatpush.bf16.msrb.mxu0 %v7962_v49 }
 0x301   : > { %v2226_v44 = vpack.c.bf16 %v2169_v27, %v13673_v59  ;;  %2854 = vmatmul.bf16.vlgmr.msra.gmra.mxu2 %v13675_v4  ;;  %v8154_v27 = vor.u32 %v9269_v0, %v8151_v45  ;;  %v8023_v4 = vld [vmem:[%s10660_s20 + $0xe8] sm:$0xf0] }
 0x302   : > { %2943 = vmatmul.bf16.vlgmr.msra.gmra.mxu3 %v13676_v38  ;;  %v9237_v38 = vld [vmem:[%s10660_s20 + $0xe4] sm:$0xf] }
 0x303   : > { %2261 = vst [vmem:[%s11390_s19 + $0x78] sm:$0xff] %v2226_v44  ;;  %3292 = vmatpush.bf16.msrb.mxu3 %v8154_v27 }
 0x304   : > { %v2082_v42 = vpop.f32.mrf.mxu2  ;;  %v1906_v8 = vpop.f32.mrf.mxu0 }
 0x305   : > { %v2083_v46 = vadd.f32 %v2082_v42, %v1994_v2  ;;  %v2171_v3 = vpop.f32.mrf.mxu3  ;;  %v1995_v18 = vpop.f32.mrf.mxu1  ;;  %v1907_v44 = vadd.f32 %v1906_v8, %v11370_v7  ;;  %v8026_v42 = vor.u32 %v9237_v38, %v8023_v4 }
 0x307   : > { %v2172_v59 = vadd.f32 %v2171_v3, %v2083_v46  ;;  %v1996_v17 = vadd.f32 %v1995_v18, %v1907_v44  ;;  %3114 = vmatpush.bf16.msrb.mxu1 %v8026_v42 }
 0x309   : > { %v2227_v30 = vpack.c.bf16 %v2172_v59, %v11270_v54 }
 0x30b   : > { %2262 = vst [vmem:[%s11390_s19 + $0x80] sm:$0xff] %v2227_v30 }
 0x30c   : > { %v2084_v2 = vpop.f32.mrf.mxu2  ;;  %v1909_v31 = vpop.f32.mrf.mxu0 }
 0x30d   : > { %v2085_v48 = vadd.f32 %v2084_v2, %v1996_v17  ;;  %v2173_v12 = vpop.f32.mrf.mxu3  ;;  %v1910_v47 = vadd.f32 %v1909_v31, %v11370_v7  ;;  %v1998_v0 = vpop.f32.mrf.mxu1  ;;  %v13677_v31 = vld [vmem:[#allocation97_spill] sm:$0xff] }
 0x30f   : > { %v2174_v46 = vadd.f32 %v2173_v12, %v2085_v48  ;;  %2681 = vmatmul.bf16.gmra.mxu0 %v10858_v13  ;;  %v1999_v3 = vadd.f32 %v1998_v0, %v1910_v47  ;;  %v13678_v0 = vld [vmem:[#allocation51_spill] sm:$0xff] }
 0x310   : > { %2770 = vmatmul.bf16.gmra.mxu1 %v10860_v14 }
 0x311   : > { %v2228_v54 = vpack.c.bf16 %v2174_v46, %v11275_v62  ;;  %2859 = vmatmul.bf16.gmra.mxu2 %v10862_v15  ;;  %v13679_v46 = vld [vmem:[#allocation52_spill] sm:$0xff] }
 0x312   : > { %2948 = vmatmul.bf16.gmra.mxu3 %v10864_v16 }
 0x313   : > { %2263 = vst [vmem:[%s11390_s19 + $0x88] sm:$0xff] %v2228_v54  ;;  %v13680_v54 = vld [vmem:[#allocation53_spill] sm:$0xff] }
 0x314   : > { %v2087_v4 = vpop.f32.mrf.mxu2  ;;  %v1911_v49 = vpop.f32.mrf.mxu0 }
 0x315   : > { %v2088_v38 = vadd.f32 %v2087_v4, %v1999_v3  ;;  %v2176_v8 = vpop.f32.mrf.mxu3  ;;  %v2000_v45 = vpop.f32.mrf.mxu1  ;;  %v1912_v48 = vadd.f32 %v1911_v49, %v11370_v7  ;;  %v9251_v3 = vld [vmem:[%s10660_s20 + $0x154] sm:$0xf]  ;;  %v8079_v4 = vld [vmem:[%s10660_s20 + $0x158] sm:$0xf0] }
 0x316   : > { %v9219_v49 = vld [vmem:[%s10660_s20 + $0x54] sm:$0xf] }
 0x317   : > { %v2177_v18 = vadd.f32 %v2176_v8, %v2088_v38  ;;  %v2001_v62 = vadd.f32 %v2000_v45, %v1912_v48  ;;  %v8082_v8 = vor.u32 %v9251_v3, %v8079_v4  ;;  %v7951_v45 = vld [vmem:[%s10660_s20 + $0x58] sm:$0xf0] }
 0x318   : > { %v8015_v3 = vld [vmem:[%s10660_s20 + $0xd8] sm:$0xf0] }
 0x319   : > { %v2229_v27 = vpack.c.bf16 %v2177_v18, %v11282_v39  ;;  %v9267_v18 = vld [vmem:[%s10660_s20 + $0x1d4] sm:$0xf]  ;;  %3204 = vmatpush.bf16.msrb.mxu2 %v8082_v8 }
 0x31b   : > { %2264 = vst [vmem:[%s11390_s19 + $0x90] sm:$0xff] %v2229_v27 }
 0x31c   : > { %v2089_v59 = vpop.f32.mrf.mxu2  ;;  %v1914_v17 = vpop.f32.mrf.mxu0 }
 0x31d   : > { %v2090_v44 = vadd.f32 %v2089_v59, %v2001_v62  ;;  %v2178_v30 = vpop.f32.mrf.mxu3  ;;  %v1915_v2 = vadd.f32 %v1914_v17, %v11370_v7  ;;  %v2003_v42 = vpop.f32.mrf.mxu1  ;;  %v7954_v59 = vor.u32 %v9219_v49, %v7951_v45 }
 0x31f   : > { %v2179_v12 = vadd.f32 %v2178_v30, %v2090_v44  ;;  %2686 = vmatmul.bf16.gmra.mxu0 %v10878_v25  ;;  %v2004_v47 = vadd.f32 %v2003_v42, %v1915_v2  ;;  %v8143_v44 = vld [vmem:[%s10660_s20 + $0x1d8] sm:$0xf0] }
 0x320   : > { %2775 = vmatmul.bf16.gmra.mxu1 %v13678_v0  ;;  %v8146_v17 = vor.u32 %v9267_v18, %v8143_v44  ;;  %3026 = vmatpush.bf16.msrb.mxu0 %v7954_v59 }
 0x321   : > { %v2230_v39 = vpack.c.bf16 %v2179_v12, %v13677_v31  ;;  %2864 = vmatmul.bf16.gmra.mxu2 %v13679_v46 }
 0x322   : > { %2953 = vmatmul.bf16.gmra.mxu3 %v13680_v54 }
 0x323   : > { %2265 = vst [vmem:[%s11390_s19 + $0x98] sm:$0xff] %v2230_v39  ;;  %3293 = vmatpush.bf16.msrb.mxu3 %v8146_v17  ;;  %v9235_v39 = vld [vmem:[%s10660_s20 + $0xd4] sm:$0xf] }
 0x324   : > { %v2092_v38 = vpop.f32.mrf.mxu2  ;;  %v1916_v62 = vpop.f32.mrf.mxu0  ;;  %v8018_v4 = vor.u32 %v9235_v39, %v8015_v3 }
 0x325   : > { %v2093_v48 = vadd.f32 %v2092_v38, %v2004_v47  ;;  %v2181_v27 = vpop.f32.mrf.mxu3  ;;  %v2005_v30 = vpop.f32.mrf.mxu1  ;;  %v1917_v42 = vadd.f32 %v1916_v62, %v11370_v7 }
 0x326   : > { %3115 = vmatpush.bf16.msrb.mxu1 %v8018_v4 }
 0x327   : > { %v2182_v2 = vadd.f32 %v2181_v27, %v2093_v48  ;;  %v2006_v31 = vadd.f32 %v2005_v30, %v1917_v42 }
 0x329   : > { %v2231_v12 = vpack.c.bf16 %v2182_v2, %v11298_v60 }
 0x32b   : > { %2266 = vst [vmem:[%s11390_s19 + $0xa0] sm:$0xff] %v2231_v12 }
 0x32c   : > { %v2094_v47 = vpop.f32.mrf.mxu2  ;;  %v1919_v45 = vpop.f32.mrf.mxu0 }
 0x32d   : > { %v2095_v38 = vadd.f32 %v2094_v47, %v2006_v31  ;;  %v2183_v49 = vpop.f32.mrf.mxu3  ;;  %v1920_v8 = vadd.f32 %v1919_v45, %v11370_v7  ;;  %v2008_v18 = vpop.f32.mrf.mxu1  ;;  %v13681_v45 = vld [vmem:[#allocation98_spill] sm:$0xff] }
 0x32f   : > { %v2184_v48 = vadd.f32 %v2183_v49, %v2095_v38  ;;  %2691 = vmatmul.bf16.gmra.mxu0 %v10906_v50  ;;  %v2009_v27 = vadd.f32 %v2008_v18, %v1920_v8  ;;  %v13682_v18 = vld [vmem:[#allocation54_spill] sm:$0xff] }
 0x330   : > { %2780 = vmatmul.bf16.gmra.mxu1 %v10908_v51 }
 0x331   : > { %v2232_v60 = vpack.c.bf16 %v2184_v48, %v11303_v52  ;;  %2869 = vmatmul.bf16.gmra.mxu2 %v10910_v55  ;;  %v13683_v48 = vld [vmem:[#allocation55_spill] sm:$0xff] }
 0x332   : > { %2958 = vmatmul.bf16.gmra.mxu3 %v10912_v56 }
 0x333   : > { %2267 = vst [vmem:[%s11390_s19 + $0xa8] sm:$0xff] %v2232_v60  ;;  %v13684_v60 = vld [vmem:[#allocation56_spill] sm:$0xff] }
 0x334   : > { %v2097_v62 = vpop.f32.mrf.mxu2  ;;  %v1921_v30 = vpop.f32.mrf.mxu0 }
 0x335   : > { %v2098_v59 = vadd.f32 %v2097_v62, %v2009_v27  ;;  %v2186_v44 = vpop.f32.mrf.mxu3  ;;  %v2010_v17 = vpop.f32.mrf.mxu1  ;;  %v1922_v42 = vadd.f32 %v1921_v30, %v11370_v7  ;;  %v9249_v27 = vld [vmem:[%s10660_s20 + $0x144] sm:$0xf]  ;;  %v8071_v62 = vld [vmem:[%s10660_s20 + $0x148] sm:$0xf0] }
 0x336   : > { %v9217_v30 = vld [vmem:[%s10660_s20 + $0x44] sm:$0xf] }
 0x337   : > { %v2187_v2 = vadd.f32 %v2186_v44, %v2098_v59  ;;  %v2011_v52 = vadd.f32 %v2010_v17, %v1922_v42  ;;  %v8074_v44 = vor.u32 %v9249_v27, %v8071_v62  ;;  %v7943_v17 = vld [vmem:[%s10660_s20 + $0x48] sm:$0xf0] }
 0x338   : > { %v8007_v27 = vld [vmem:[%s10660_s20 + $0xc8] sm:$0xf0] }
 0x339   : > { %v2233_v12 = vpack.c.bf16 %v2187_v2, %v11310_v11  ;;  %v9265_v2 = vld [vmem:[%s10660_s20 + $0x1c4] sm:$0xf]  ;;  %3205 = vmatpush.bf16.msrb.mxu2 %v8074_v44 }
 0x33b   : > { %2268 = vst [vmem:[%s11390_s19 + $0xb0] sm:$0xff] %v2233_v12 }
 0x33c   : > { %v2099_v31 = vpop.f32.mrf.mxu2  ;;  %v1924_v47 = vpop.f32.mrf.mxu0 }
 0x33d   : > { %v2100_v39 = vadd.f32 %v2099_v31, %v2011_v52  ;;  %v2188_v3 = vpop.f32.mrf.mxu3  ;;  %v1925_v4 = vadd.f32 %v1924_v47, %v11370_v7  ;;  %v2013_v38 = vpop.f32.mrf.mxu1  ;;  %v7946_v31 = vor.u32 %v9217_v30, %v7943_v17 }
 0x33f   : > { %v2189_v49 = vadd.f32 %v2188_v3, %v2100_v39  ;;  %2696 = vmatmul.bf16.gmra.mxu0 %v10926_v1  ;;  %v2014_v8 = vadd.f32 %v2013_v38, %v1925_v4  ;;  %v8135_v39 = vld [vmem:[%s10660_s20 + $0x1c8] sm:$0xf0] }
 0x340   : > { %2785 = vmatmul.bf16.gmra.mxu1 %v13682_v18  ;;  %v8138_v47 = vor.u32 %v9265_v2, %v8135_v39  ;;  %3027 = vmatpush.bf16.msrb.mxu0 %v7946_v31 }
 0x341   : > { %v2234_v11 = vpack.c.bf16 %v2189_v49, %v13681_v45  ;;  %2874 = vmatmul.bf16.gmra.mxu2 %v13683_v48 }
 0x342   : > { %2963 = vmatmul.bf16.gmra.mxu3 %v13684_v60 }
 0x343   : > { %2269 = vst [vmem:[%s11390_s19 + $0xb8] sm:$0xff] %v2234_v11  ;;  %3294 = vmatpush.bf16.msrb.mxu3 %v8138_v47  ;;  %v9233_v11 = vld [vmem:[%s10660_s20 + $0xc4] sm:$0xf] }
 0x344   : > { %v2102_v59 = vpop.f32.mrf.mxu2  ;;  %v1926_v52 = vpop.f32.mrf.mxu0  ;;  %v8010_v62 = vor.u32 %v9233_v11, %v8007_v27 }
 0x345   : > { %v2103_v42 = vadd.f32 %v2102_v59, %v2014_v8  ;;  %v2191_v12 = vpop.f32.mrf.mxu3  ;;  %v2015_v3 = vpop.f32.mrf.mxu1  ;;  %v1927_v38 = vadd.f32 %v1926_v52, %v11370_v7 }
 0x346   : > { %3116 = vmatpush.bf16.msrb.mxu1 %v8010_v62 }
 0x347   : > { %v2192_v4 = vadd.f32 %v2191_v12, %v2103_v42  ;;  %v2016_v45 = vadd.f32 %v2015_v3, %v1927_v38 }
 0x349   : > { %v2235_v49 = vpack.c.bf16 %v2192_v4, %v11326_v6 }
 0x34b   : > { %2270 = vst [vmem:[%s11390_s19 + $0xc0] sm:$0xff] %v2235_v49 }
 0x34c   : > { %v2104_v8 = vpop.f32.mrf.mxu2  ;;  %v1929_v17 = vpop.f32.mrf.mxu0 }
 0x34d   : > { %v2105_v59 = vadd.f32 %v2104_v8, %v2016_v45  ;;  %v2193_v30 = vpop.f32.mrf.mxu3  ;;  %v1930_v44 = vadd.f32 %v1929_v17, %v11370_v7  ;;  %v2018_v2 = vpop.f32.mrf.mxu1  ;;  %v13685_v17 = vld [vmem:[#allocation57_spill] sm:$0xff] }
 0x34f   : > { %v2194_v42 = vadd.f32 %v2193_v30, %v2105_v59  ;;  %2701 = vmatmul.bf16.gmra.mxu0 %v10954_v33  ;;  %v2019_v12 = vadd.f32 %v2018_v2, %v1930_v44  ;;  %v13686_v44 = vld [vmem:[#allocation99_spill] sm:$0xff] }
 0x350   : > { %2790 = vmatmul.bf16.gmra.mxu1 %v10956_v34 }
 0x351   : > { %v2236_v6 = vpack.c.bf16 %v2194_v42, %v11331_v32  ;;  %2879 = vmatmul.bf16.gmra.mxu2 %v10958_v35  ;;  %v13687_v42 = vld [vmem:[#allocation58_spill] sm:$0xff] }
 0x352   : > { %2968 = vmatmul.bf16.gmra.mxu3 %v10960_v36 }
 0x353   : > { %2271 = vst [vmem:[%s11390_s19 + $0xc8] sm:$0xff] %v2236_v6  ;;  %v13688_v6 = vld [vmem:[#allocation59_spill] sm:$0xff] }
 0x354   : > { %v2107_v52 = vpop.f32.mrf.mxu2  ;;  %v1931_v3 = vpop.f32.mrf.mxu0 }
 0x355   : > { %v2108_v31 = vadd.f32 %v2107_v52, %v2019_v12  ;;  %v2196_v39 = vpop.f32.mrf.mxu3  ;;  %v2020_v47 = vpop.f32.mrf.mxu1  ;;  %v1932_v38 = vadd.f32 %v1931_v3, %v11370_v7  ;;  %v13689_v12 = vld [vmem:[#allocation60_spill] sm:$0xff]  ;;  %v9247_v52 = vld [vmem:[%s10660_s20 + $0x134] sm:$0xf] }
 0x357   : > { %v2197_v4 = vadd.f32 %v2196_v39, %v2108_v31  ;;  %v2021_v32 = vadd.f32 %v2020_v47, %v1932_v38  ;;  %v8063_v31 = vld [vmem:[%s10660_s20 + $0x138] sm:$0xf0]  ;;  %v9215_v47 = vld [vmem:[%s10660_s20 + $0x34] sm:$0xf] }
 0x358   : > { %v8066_v3 = vor.u32 %v9247_v52, %v8063_v31  ;;  %v9263_v38 = vld [vmem:[%s10660_s20 + $0x1b4] sm:$0xf] }
 0x359   : > { %v2237_v49 = vpack.c.bf16 %v2197_v4, %v11338_v63  ;;  %v7935_v4 = vld [vmem:[%s10660_s20 + $0x38] sm:$0xf0] }
 0x35a   : > { %3206 = vmatpush.bf16.msrb.mxu2 %v8066_v3 }
 0x35b   : > { %2272 = vst [vmem:[%s11390_s19 + $0xd0] sm:$0xff] %v2237_v49 }
 0x35c   : > { %v2109_v45 = vpop.f32.mrf.mxu2  ;;  %v1934_v8 = vpop.f32.mrf.mxu0 }
 0x35d   : > { %v2110_v11 = vadd.f32 %v2109_v45, %v2021_v32  ;;  %v2198_v27 = vpop.f32.mrf.mxu3  ;;  %v1935_v62 = vadd.f32 %v1934_v8, %v11370_v7  ;;  %v2023_v59 = vpop.f32.mrf.mxu1 }
 0x35f   : > { %v2199_v30 = vadd.f32 %v2198_v27, %v2110_v11  ;;  %2706 = vmatmul.bf16.gmra.mxu0 %v13685_v17  ;;  %v2024_v2 = vadd.f32 %v2023_v59, %v1935_v62  ;;  %v7938_v11 = vor.u32 %v9215_v47, %v7935_v4  ;;  %v8127_v27 = vld [vmem:[%s10660_s20 + $0x1b8] sm:$0xf0] }
 0x360   : > { %2795 = vmatmul.bf16.gmra.mxu1 %v13687_v42  ;;  %v8130_v62 = vor.u32 %v9263_v38, %v8127_v27 }
 0x361   : > { %v2238_v63 = vpack.c.bf16 %v2199_v30, %v13686_v44  ;;  %2884 = vmatmul.bf16.gmra.mxu2 %v13688_v6  ;;  %3028 = vmatpush.bf16.msrb.mxu0 %v7938_v11  ;;  %v9231_v44 = vld [vmem:[%s10660_s20 + $0xb4] sm:$0xf] }
 0x362   : > { %2973 = vmatmul.bf16.gmra.mxu3 %v13689_v12 }
 0x363   : > { %2273 = vst [vmem:[%s11390_s19 + $0xd8] sm:$0xff] %v2238_v63  ;;  %v7999_v63 = vld [vmem:[%s10660_s20 + $0xb8] sm:$0xf0]  ;;  %3295 = vmatpush.bf16.msrb.mxu3 %v8130_v62 }
 0x364   : > { %v2112_v39 = vpop.f32.mrf.mxu2  ;;  %v1936_v45 = vpop.f32.mrf.mxu0  ;;  %v8002_v52 = vor.u32 %v9231_v44, %v7999_v63 }
 0x365   : > { %v2113_v49 = vadd.f32 %v2112_v39, %v2024_v2  ;;  %v2201_v32 = vpop.f32.mrf.mxu3  ;;  %v2025_v8 = vpop.f32.mrf.mxu1  ;;  %v1937_v30 = vadd.f32 %v1936_v45, %v11370_v7 }
 0x366   : > { %3117 = vmatpush.bf16.msrb.mxu1 %v8002_v52 }
 0x367   : > { %v2202_v59 = vadd.f32 %v2201_v32, %v2113_v49  ;;  %v2026_v2 = vadd.f32 %v2025_v8, %v1937_v30 }
 0x369   : > { %v2239_v31 = vpack.c.bf16 %v2202_v59, %v11354_v53 }
 0x36b   : > { %2274 = vst [vmem:[%s11390_s19 + $0xe0] sm:$0xff] %v2239_v31 }
 0x36c   : > { %v2114_v39 = vpop.f32.mrf.mxu2  ;;  %v1939_v12 = vpop.f32.mrf.mxu0 }
 0x36d   : > { %v2115_v47 = vadd.f32 %v2114_v39, %v2026_v2  ;;  %v2203_v4 = vpop.f32.mrf.mxu3  ;;  %v1940_v3 = vadd.f32 %v1939_v12, %v11370_v7  ;;  %v2028_v38 = vpop.f32.mrf.mxu1 }
 0x36f   : > { %v2204_v49 = vadd.f32 %v2203_v4, %v2115_v47  ;;  %2711 = vmatmul.bf16.gmra.mxu0 %v11002_v21  ;;  %v2029_v45 = vadd.f32 %v2028_v38, %v1940_v3  ;;  %v9245_v38 = vld [vmem:[%s10660_s20 + $0x124] sm:$0xf] }
 0x370   : > { %2800 = vmatmul.bf16.gmra.mxu1 %v11004_v22 }
 0x371   : > { %v2240_v32 = vpack.c.bf16 %v2204_v49, %v11359_v28  ;;  %2889 = vmatmul.bf16.gmra.mxu2 %v11006_v23  ;;  %v11604_v28 = vld [vmem:[%s649_s23] sm:$0x3]  ;;  %v8055_v49 = vld [vmem:[%s10660_s20 + $0x128] sm:$0xf0] }
 0x372   : > { %2978 = vmatmul.bf16.gmra.mxu3 %v11008_v24  ;;  %v11608_v44 = vperm.slane %v11604_v28, 0 }
 0x373   : > { %2275 = vst [vmem:[%s11390_s19 + $0xe8] sm:$0xff] %v2240_v32  ;;  %v9213_v32 = vld [vmem:[%s10660_s20 + $0x24] sm:$0xf] }
 0x374   : > { %v2117_v53 = vpop.f32.mrf.mxu2  ;;  %v1941_v12 = vpop.f32.mrf.mxu0 }
 0x375   : > { %v2118_v11 = vadd.f32 %v2117_v53, %v2029_v45  ;;  %v2206_v27 = vpop.f32.mrf.mxu3  ;;  %v2030_v8 = vpop.f32.mrf.mxu1  ;;  %v1942_v59 = vadd.f32 %v1941_v12, %v11370_v7  ;;  %v8058_v45 = vor.u32 %v9245_v38, %v8055_v49  ;;  %v7927_v53 = vld [vmem:[%s10660_s20 + $0x28] sm:$0xf0] }
 0x376   : > { %v7930_v12 = vor.u32 %v9213_v32, %v7927_v53 }
 0x377   : > { %v2207_v62 = vadd.f32 %v2206_v27, %v2118_v11  ;;  %v2031_v63 = vadd.f32 %v2030_v8, %v1942_v59  ;;  %v9261_v11 = vld [vmem:[%s10660_s20 + $0x1a4] sm:$0xf]  ;;  %v8119_v8 = vld [vmem:[%s10660_s20 + $0x1a8] sm:$0xf0]  ;;  %3207 = vmatpush.bf16.msrb.mxu2 %v8058_v45 }
 0x378   : > { %3029 = vmatpush.bf16.msrb.mxu0 %v7930_v12 }
 0x379   : > { %v2241_v30 = vpack.c.bf16 %v2207_v62, %v11366_v19 }
 0x37b   : > { %2276 = vst [vmem:[%s11390_s19 + $0xf0] sm:$0xff] %v2241_v30  ;;  %v8122_v30 = vor.u32 %v9261_v11, %v8119_v8  ;;  %v13691_v11 = vld [vmem:[#allocation61_spill] sm:$0xff] }
 0x37c   : > { %v2119_v52 = vpop.f32.mrf.mxu2  ;;  %v2677_v2 = vpop.f32.mrf.mxu0 }
 0x37d   : > { %v2120_v31 = vadd.f32 %v2119_v52, %v2031_v63  ;;  %v2208_v7 = vpop.f32.mrf.mxu3  ;;  %v2678_v39 = vadd.f32 %v2677_v2, %v11608_v44  ;;  %v2766_v47 = vpop.f32.mrf.mxu1  ;;  %3296 = vmatpush.bf16.msrb.mxu3 %v8122_v30  ;;  %v7991_v2 = vld [vmem:[%s10660_s20 + $0xa8] sm:$0xf0] }
 0x37f   : > { %v2209_v4 = vadd.f32 %v2208_v7, %v2120_v31  ;;  %v2767_v19 = vadd.f32 %v2766_v47, %v2678_v39  ;;  %2716 = vmatmul.bf16.gmra.mxu0 %v11026_v43  ;;  %v9229_v7 = vld [vmem:[%s10660_s20 + $0xa4] sm:$0xf] }
 0x380   : > { %2805 = vmatmul.bf16.gmra.mxu1 %v11028_v57  ;;  %v7994_v47 = vor.u32 %v9229_v7, %v7991_v2 }
 0x381   : > { %v2242_v3 = vpack.c.bf16 %v2209_v4, %v11373_v41  ;;  %2894 = vmatmul.bf16.gmra.mxu2 %v11030_v58 }
 0x382   : > { %2983 = vmatmul.bf16.gmra.mxu3 %v11033_v61  ;;  %3118 = vmatpush.bf16.msrb.mxu1 %v7994_v47 }
 0x383   : > { %2277 = vst [vmem:[%s11390_s19 + $0xf8] sm:$0xff] %v2242_v3 }
 0x384   : > { %v2855_v27 = vpop.f32.mrf.mxu2  ;;  %v2679_v59 = vpop.f32.mrf.mxu0 }
 0x385   : > { %v2856_v62 = vadd.f32 %v2855_v27, %v2767_v19  ;;  %v2944_v41 = vpop.f32.mrf.mxu3  ;;  %v2680_v63 = vadd.f32 %v2679_v59, %v11608_v44  ;;  %v2768_v52 = vpop.f32.mrf.mxu1 }
 0x387   : > { %v11625_v31 = vadd.f32 %v2944_v41, %v2856_v62  ;;  %v2769_v39 = vadd.f32 %v2768_v52, %v2680_v63 }
 0x38c   : > { %v2857_v4 = vpop.f32.mrf.mxu2  ;;  %v2682_v19 = vpop.f32.mrf.mxu0 }
 0x38d   : > { %v2858_v3 = vadd.f32 %v2857_v4, %v2769_v39  ;;  %v2946_v38 = vpop.f32.mrf.mxu3  ;;  %v2683_v49 = vadd.f32 %v2682_v19, %v11608_v44  ;;  %v2771_v32 = vpop.f32.mrf.mxu1  ;;  %v13694_v19 = vld [vmem:[#allocation63_spill] sm:$0xff] }
 0x38f   : > { %v11630_v45 = vadd.f32 %v2946_v38, %v2858_v3  ;;  %v2772_v53 = vadd.f32 %v2771_v32, %v2683_v49  ;;  %2721 = vmatmul.bf16.gmra.mxu0 %v11058_v5  ;;  %v13695_v49 = vld [vmem:[#allocation64_spill] sm:$0xff]  ;;  %v13696_v32 = vld [vmem:[#allocation65_spill] sm:$0xff] }
 0x390   : > { %2810 = vmatmul.bf16.gmra.mxu1 %v11060_v9 }
 0x391   : > { %2899 = vmatmul.bf16.gmra.mxu2 %v11062_v10 }
 0x392   : > { %2988 = vmatmul.bf16.gmra.mxu3 %v13691_v11 }
 0x394   : > { %v2860_v27 = vpop.f32.mrf.mxu2  ;;  %v2684_v62 = vpop.f32.mrf.mxu0 }
 0x395   : > { %v2861_v12 = vadd.f32 %v2860_v27, %v2772_v53  ;;  %v2949_v8 = vpop.f32.mrf.mxu3  ;;  %v2685_v41 = vadd.f32 %v2684_v62, %v11608_v44  ;;  %v2773_v59 = vpop.f32.mrf.mxu1  ;;  %v13697_v53 = vld [vmem:[#allocation66_spill] sm:$0xff]  ;;  %v9243_v27 = vld [vmem:[%s10660_s20 + $0x114] sm:$0xf] }
 0x397   : > { %v11637_v30 = vadd.f32 %v2949_v8, %v2861_v12  ;;  %v2774_v63 = vadd.f32 %v2773_v59, %v2685_v41  ;;  %v8047_v12 = vld [vmem:[%s10660_s20 + $0x118] sm:$0xf0]  ;;  %v9211_v8 = vld [vmem:[%s10660_s20 + $0x14] sm:$0xf] }
 0x398   : > { %v8050_v62 = vor.u32 %v9243_v27, %v8047_v12  ;;  %v7919_v41 = vld [vmem:[%s10660_s20 + $0x18] sm:$0xf0]  ;;  %v9259_v59 = vld [vmem:[%s10660_s20 + $0x194] sm:$0xf] }
 0x399   : > { %13692 = vst [vmem:[#allocation62_spill] sm:$0xff] %v11637_v30  ;;  %v9227_v27 = vld [vmem:[%s10660_s20 + $0x94] sm:$0xf]  ;;  %v7983_v12 = vld [vmem:[%s10660_s20 + $0x98] sm:$0xf0] }
 0x39a   : > { %3208 = vmatpush.bf16.msrb.mxu2 %v8050_v62 }
 0x39c   : > { %v2862_v52 = vpop.f32.mrf.mxu2  ;;  %v2687_v39 = vpop.f32.mrf.mxu0 }
 0x39d   : > { %v2863_v7 = vadd.f32 %v2862_v52, %v2774_v63  ;;  %v2951_v2 = vpop.f32.mrf.mxu3  ;;  %v2688_v47 = vadd.f32 %v2687_v39, %v11608_v44  ;;  %v2776_v4 = vpop.f32.mrf.mxu1  ;;  %v8111_v63 = vld [vmem:[%s10660_s20 + $0x198] sm:$0xf0] }
 0x39f   : > { %v11640_v3 = vadd.f32 %v2951_v2, %v2863_v7  ;;  %v2777_v38 = vadd.f32 %v2776_v4, %v2688_v47  ;;  %2726 = vmatmul.bf16.gmra.mxu0 %v13694_v19  ;;  %v7922_v7 = vor.u32 %v9211_v8, %v7919_v41  ;;  %v8114_v2 = vor.u32 %v9259_v59, %v8111_v63 }
 0x3a0   : > { %2815 = vmatmul.bf16.gmra.mxu1 %v13695_v49  ;;  %v7986_v19 = vor.u32 %v9227_v27, %v7983_v12 }
 0x3a1   : > { %13693 = vst [vmem:[#allocation67_spill] sm:$0xff] %v11640_v3  ;;  %2904 = vmatmul.bf16.gmra.mxu2 %v13696_v32  ;;  %3030 = vmatpush.bf16.msrb.mxu0 %v7922_v7  ;;  %v13701_v7 = vld [vmem:[#allocation70_spill] sm:$0xff] }
 0x3a2   : > { %2993 = vmatmul.bf16.gmra.mxu3 %v13697_v53  ;;  %3119 = vmatpush.bf16.msrb.mxu1 %v7986_v19 }
 0x3a3   : > { %3297 = vmatpush.bf16.msrb.mxu3 %v8114_v2  ;;  %v13702_v2 = vld [vmem:[#allocation71_spill] sm:$0xff] }
 0x3a4   : > { %v2865_v52 = vpop.f32.mrf.mxu2  ;;  %v2689_v4 = vpop.f32.mrf.mxu0 }
 0x3a5   : > { %v2866_v39 = vadd.f32 %v2865_v52, %v2777_v38  ;;  %v2954_v47 = vpop.f32.mrf.mxu3  ;;  %v2690_v32 = vadd.f32 %v2689_v4, %v11608_v44  ;;  %v2778_v49 = vpop.f32.mrf.mxu1  ;;  %v13700_v52 = vld [vmem:[#allocation69_spill] sm:$0xff] }
 0x3a7   : > { %v11653_v53 = vadd.f32 %v2954_v47, %v2866_v39  ;;  %v2779_v3 = vadd.f32 %v2778_v49, %v2690_v32  ;;  %v13703_v39 = vld [vmem:[#allocation72_spill] sm:$0xff] }
 0x3a9   : > { %13698 = vst [vmem:[#allocation68_spill] sm:$0xff] %v11653_v53 }
 0x3ac   : > { %v2867_v30 = vpop.f32.mrf.mxu2  ;;  %v2692_v41 = vpop.f32.mrf.mxu0 }
 0x3ad   : > { %v2868_v11 = vadd.f32 %v2867_v30, %v2779_v3  ;;  %v2956_v8 = vpop.f32.mrf.mxu3  ;;  %v2693_v38 = vadd.f32 %v2692_v41, %v11608_v44  ;;  %v2781_v59 = vpop.f32.mrf.mxu1 }
 0x3af   : > { %v11658_v62 = vadd.f32 %v2956_v8, %v2868_v11  ;;  %v2782_v63 = vadd.f32 %v2781_v59, %v2693_v38  ;;  %2731 = vmatmul.bf16.gmra.mxu0 %v13700_v52 }
 0x3b0   : > { %2820 = vmatmul.bf16.gmra.mxu1 %v13701_v7 }
 0x3b1   : > { %13699 = vst [vmem:[#allocation73_spill] sm:$0xff] %v11658_v62  ;;  %2909 = vmatmul.bf16.gmra.mxu2 %v13702_v2  ;;  %v8103_v2 = vld [vmem:[%s10660_s20 + $0x188] sm:$0xf0] }
 0x3b2   : > { %2998 = vmatmul.bf16.gmra.mxu3 %v13703_v39  ;;  %v13707_v39 = vld [vmem:[#allocation76_spill] sm:$0xff] }
 0x3b4   : > { %v2870_v49 = vpop.f32.mrf.mxu2  ;;  %v2694_v30 = vpop.f32.mrf.mxu0 }
 0x3b5   : > { %v2871_v19 = vadd.f32 %v2870_v49, %v2782_v63  ;;  %v2959_v32 = vpop.f32.mrf.mxu3  ;;  %v2695_v3 = vadd.f32 %v2694_v30, %v11608_v44  ;;  %v2783_v47 = vpop.f32.mrf.mxu1  ;;  %v13706_v30 = vld [vmem:[#allocation75_spill] sm:$0xff] }
 0x3b7   : > { %v11665_v11 = vadd.f32 %v2959_v32, %v2871_v19  ;;  %v2784_v4 = vadd.f32 %v2783_v47, %v2695_v3  ;;  %v13708_v19 = vld [vmem:[#allocation77_spill] sm:$0xff]  ;;  %v13709_v32 = vld [vmem:[#allocation78_spill] sm:$0xff]  ;;  %v9241_v3 = vld [vmem:[%s10660_s20 + $0x104] sm:$0xf] }
 0x3b8   : > { %v8039_v47 = vld [vmem:[%s10660_s20 + $0x108] sm:$0xf0] }
 0x3b9   : > { %13704 = vst [vmem:[#allocation74_spill] sm:$0xff] %v11665_v11  ;;  %v7911_v11 = vld [vmem:[%s10660_s20 + $0x8] sm:$0xf0] }
 0x3bc   : > { %v2872_v27 = vpop.f32.mrf.mxu2  ;;  %v2697_v41 = vpop.f32.mrf.mxu0 }
 0x3bd   : > { %v2873_v12 = vadd.f32 %v2872_v27, %v2784_v4  ;;  %v2961_v8 = vpop.f32.mrf.mxu3  ;;  %v2698_v38 = vadd.f32 %v2697_v41, %v11608_v44  ;;  %v2786_v59 = vpop.f32.mrf.mxu1  ;;  %v9209_v4 = vld [vmem:[%s10660_s20 + $0x4] sm:$0xf]  ;;  %v8042_v27 = vor.u32 %v9241_v3, %v8039_v47  ;;  %v7975_v47 = vld [vmem:[%s10660_s20 + $0x88] sm:$0xf0] }
 0x3be   : > { %v9257_v41 = vld [vmem:[%s10660_s20 + $0x184] sm:$0xf] }
 0x3bf   : > { %v11668_v63 = vadd.f32 %v2961_v8, %v2873_v12  ;;  %v2787_v49 = vadd.f32 %v2786_v59, %v2698_v38  ;;  %2736 = vmatmul.bf16.gmra.mxu0 %v13706_v30  ;;  %v7914_v8 = vor.u32 %v9209_v4, %v7911_v11  ;;  %v8106_v38 = vor.u32 %v9257_v41, %v8103_v2  ;;  %v9225_v3 = vld [vmem:[%s10660_s20 + $0x84] sm:$0xf]  ;;  %v13710_v41 = vld [vmem:[#allocation81_spill] sm:$0xff] }
 0x3c0   : > { %2825 = vmatmul.bf16.gmra.mxu1 %v13707_v39  ;;  %3209 = vmatpush.bf16.msrb.mxu2 %v8042_v27  ;;  %v7978_v62 = vor.u32 %v9225_v3, %v7975_v47 }
 0x3c1   : > { %13705 = vst [vmem:[#allocation79_spill] sm:$0xff] %v11668_v63  ;;  %2914 = vmatmul.bf16.gmra.mxu2 %v13708_v19  ;;  %3031 = vmatpush.bf16.msrb.mxu0 %v7914_v8  ;;  %v13713_v8 = vld [vmem:[#allocation84_spill] sm:$0xff] }
 0x3c2   : > { %3003 = vmatmul.bf16.gmra.mxu3 %v13709_v32  ;;  %3120 = vmatpush.bf16.msrb.mxu1 %v7978_v62 }
 0x3c3   : > { %3298 = vmatpush.bf16.msrb.mxu3 %v8106_v38 }
 0x3c4   : > { %v2875_v12 = vpop.f32.mrf.mxu2  ;;  %v2699_v30 = vpop.f32.mrf.mxu0 }
 0x3c5   : > { %v2876_v59 = vadd.f32 %v2875_v12, %v2787_v49  ;;  %v2964_v63 = vpop.f32.mrf.mxu3  ;;  %v2700_v19 = vadd.f32 %v2699_v30, %v11608_v44  ;;  %v2788_v39 = vpop.f32.mrf.mxu1  ;;  %v13711_v12 = vld [vmem:[#allocation82_spill] sm:$0xff] }
 0x3c7   : > { %v11681_v32 = vadd.f32 %v2964_v63, %v2876_v59  ;;  %v2789_v7 = vadd.f32 %v2788_v39, %v2700_v19  ;;  %v13712_v63 = vld [vmem:[#allocation83_spill] sm:$0xff] }
 0x3cc   : > { %v2877_v52 = vpop.f32.mrf.mxu2  ;;  %v2702_v2 = vpop.f32.mrf.mxu0 }
 0x3cd   : > { %v2878_v53 = vadd.f32 %v2877_v52, %v2789_v7  ;;  %v2966_v11 = vpop.f32.mrf.mxu3  ;;  %v2703_v49 = vadd.f32 %v2702_v2, %v11608_v44  ;;  %v2791_v4 = vpop.f32.mrf.mxu1 }
 0x3cf   : > { %v11686_v27 = vadd.f32 %v2966_v11, %v2878_v53  ;;  %v2792_v30 = vadd.f32 %v2791_v4, %v2703_v49  ;;  %2741 = vmatmul.bf16.gmra.mxu0 %v13710_v41 }
 0x3d0   : > { %2830 = vmatmul.bf16.gmra.mxu1 %v13711_v12  ;;  %v13715_v12 = vld [vmem:[#allocation87_spill] sm:$0xff] }
 0x3d1   : > { %2919 = vmatmul.bf16.gmra.mxu2 %v13712_v63 }
 0x3d2   : > { %3008 = vmatmul.bf16.gmra.mxu3 %v13713_v8 }
 0x3d4   : > { %v2880_v39 = vpop.f32.mrf.mxu2  ;;  %v2704_v52 = vpop.f32.mrf.mxu0 }
 0x3d5   : > { %v2881_v62 = vadd.f32 %v2880_v39, %v2792_v30  ;;  %v2969_v19 = vpop.f32.mrf.mxu3  ;;  %v2705_v7 = vadd.f32 %v2704_v52, %v11608_v44  ;;  %v2793_v38 = vpop.f32.mrf.mxu1  ;;  %v13716_v30 = vld [vmem:[#allocation88_spill] sm:$0xff]  ;;  %v13717_v39 = vld [vmem:[#allocation89_spill] sm:$0xff]  ;;  %v13718_v52 = vld [vmem:[#allocation90_spill] sm:$0xff] }
 0x3d7   : > { %v11693_v59 = vadd.f32 %v2969_v19, %v2881_v62  ;;  %v2794_v53 = vadd.f32 %v2793_v38, %v2705_v7 }
 0x3dc   : > { %v2882_v3 = vpop.f32.mrf.mxu2  ;;  %v2707_v2 = vpop.f32.mrf.mxu0 }
 0x3dd   : > { %v2883_v47 = vadd.f32 %v2882_v3, %v2794_v53  ;;  %v2971_v11 = vpop.f32.mrf.mxu3  ;;  %v2708_v49 = vadd.f32 %v2707_v2, %v11608_v44  ;;  %v2796_v4 = vpop.f32.mrf.mxu1 }
 0x3df   : > { %v11696_v63 = vadd.f32 %v2971_v11, %v2883_v47  ;;  %v2797_v8 = vadd.f32 %v2796_v4, %v2708_v49  ;;  %2746 = vmatmul.bf16.gmra.mxu0 %v13715_v12 }
 0x3e0   : > { %2835 = vmatmul.bf16.gmra.mxu1 %v13716_v30 }
 0x3e1   : > { %13714 = vst [vmem:[#allocation80_spill] sm:$0xff] %v11696_v63  ;;  %2924 = vmatmul.bf16.gmra.mxu2 %v13717_v39 }
 0x3e2   : > { %3013 = vmatmul.bf16.gmra.mxu3 %v13718_v52 }
 0x3e4   : > { %v2885_v62 = vpop.f32.mrf.mxu2  ;;  %v2709_v38 = vpop.f32.mrf.mxu0 }
 0x3e5   : > { %v2886_v19 = vadd.f32 %v2885_v62, %v2797_v8  ;;  %v2974_v7 = vpop.f32.mrf.mxu3  ;;  %v2710_v53 = vadd.f32 %v2709_v38, %v11608_v44  ;;  %v2798_v3 = vpop.f32.mrf.mxu1 }
 0x3e7   : > { %v11703_v2 = vadd.f32 %v2974_v7, %v2886_v19  ;;  %v2799_v47 = vadd.f32 %v2798_v3, %v2710_v53 }
 0x3ec   : > { %v2887_v11 = vpop.f32.mrf.mxu2  ;;  %v2712_v63 = vpop.f32.mrf.mxu0 }
 0x3ed   : > { %v2888_v49 = vadd.f32 %v2887_v11, %v2799_v47  ;;  %v2976_v4 = vpop.f32.mrf.mxu3  ;;  %v2713_v30 = vadd.f32 %v2712_v63, %v11608_v44  ;;  %v2801_v12 = vpop.f32.mrf.mxu1 }
 0x3ef   : > { %v11706_v39 = vadd.f32 %v2976_v4, %v2888_v49  ;;  %v2802_v52 = vadd.f32 %v2801_v12, %v2713_v30  ;;  %2751 = vmatmul.bf16.gmra.mxu0 %v11238_v40 }
 0x3f0   : > { %2840 = vmatmul.bf16.gmra.mxu1 %v11240_v20 }
 0x3f1   : > { %2929 = vmatmul.bf16.gmra.mxu2 %v11242_v37 }
 0x3f2   : > { %3018 = vmatmul.bf16.gmra.mxu3 %v13670_v26 }
 0x3f4   : > { %v2890_v8 = vpop.f32.mrf.mxu2  ;;  %v2714_v7 = vpop.f32.mrf.mxu0 }
 0x3f5   : > { %v2891_v62 = vadd.f32 %v2890_v8, %v2802_v52  ;;  %v2979_v19 = vpop.f32.mrf.mxu3  ;;  %v2715_v38 = vadd.f32 %v2714_v7, %v11608_v44  ;;  %v2803_v53 = vpop.f32.mrf.mxu1  ;;  %v13720_v52 = vld [vmem:[#allocation48_spill] sm:$0xff]  ;;  %v13721_v8 = vld [vmem:[#allocation49_spill] sm:$0xff]  ;;  %v13722_v7 = vld [vmem:[#allocation50_spill] sm:$0xff] }
 0x3f7   : > { %v11713_v63 = vadd.f32 %v2979_v19, %v2891_v62  ;;  %v2804_v3 = vadd.f32 %v2803_v53, %v2715_v38 }
 0x3fc   : > { %v2892_v47 = vpop.f32.mrf.mxu2  ;;  %v2717_v11 = vpop.f32.mrf.mxu0 }
 0x3fd   : > { %v2893_v12 = vadd.f32 %v2892_v47, %v2804_v3  ;;  %v2981_v30 = vpop.f32.mrf.mxu3  ;;  %v2718_v49 = vadd.f32 %v2717_v11, %v11608_v44  ;;  %v2806_v4 = vpop.f32.mrf.mxu1 }
 0x3ff   : > { %v11716_v37 = vadd.f32 %v2981_v30, %v2893_v12  ;;  %v2807_v26 = vadd.f32 %v2806_v4, %v2718_v49  ;;  %3032 = vmatmul.bf16.vlgmr.msrb.gmra.mxu0 %v13672_v29 }
 0x400   : > { %3121 = vmatmul.bf16.vlgmr.msrb.gmra.mxu1 %v13720_v52 }
 0x401   : > { %13719 = vst [vmem:[#allocation85_spill] sm:$0xff] %v11716_v37  ;;  %3210 = vmatmul.bf16.vlgmr.msrb.gmra.mxu2 %v13721_v8 }
 0x402   : > { %3299 = vmatmul.bf16.vlgmr.msrb.gmra.mxu3 %v13722_v7 }
 0x404   : > { %v2895_v62 = vpop.f32.mrf.mxu2  ;;  %v2719_v53 = vpop.f32.mrf.mxu0 }
 0x405   : > { %v2896_v19 = vadd.f32 %v2895_v62, %v2807_v26  ;;  %v2984_v38 = vpop.f32.mrf.mxu3  ;;  %v2720_v3 = vadd.f32 %v2719_v53, %v11608_v44  ;;  %v2808_v47 = vpop.f32.mrf.mxu1 }
 0x407   : > { %v11723_v11 = vadd.f32 %v2984_v38, %v2896_v19  ;;  %v2809_v12 = vadd.f32 %v2808_v47, %v2720_v3 }
 0x40c   : > { %v2897_v30 = vpop.f32.mrf.mxu2  ;;  %v2722_v29 = vpop.f32.mrf.mxu0 }
 0x40d   : > { %v2898_v49 = vadd.f32 %v2897_v30, %v2809_v12  ;;  %v2986_v4 = vpop.f32.mrf.mxu3  ;;  %v2723_v52 = vadd.f32 %v2722_v29, %v11608_v44  ;;  %v2811_v37 = vpop.f32.mrf.mxu1 }
 0x40f   : > { %v11726_v8 = vadd.f32 %v2986_v4, %v2898_v49  ;;  %v2812_v7 = vadd.f32 %v2811_v37, %v2723_v52  ;;  %3037 = vmatmul.bf16.gmra.mxu0 %v10858_v13 }
 0x410   : > { %3126 = vmatmul.bf16.gmra.mxu1 %v10860_v14 }
 0x411   : > { %3215 = vmatmul.bf16.gmra.mxu2 %v10862_v15 }
 0x412   : > { %3304 = vmatmul.bf16.gmra.mxu3 %v10864_v16 }
 0x414   : > { %v2900_v26 = vpop.f32.mrf.mxu2  ;;  %v2724_v38 = vpop.f32.mrf.mxu0 }
 0x415   : > { %v2901_v62 = vadd.f32 %v2900_v26, %v2812_v7  ;;  %v2989_v19 = vpop.f32.mrf.mxu3  ;;  %v2725_v53 = vadd.f32 %v2724_v38, %v11608_v44  ;;  %v2813_v3 = vpop.f32.mrf.mxu1 }
 0x417   : > { %v11733_v47 = vadd.f32 %v2989_v19, %v2901_v62  ;;  %v2814_v12 = vadd.f32 %v2813_v3, %v2725_v53 }
 0x41c   : > { %v2902_v30 = vpop.f32.mrf.mxu2  ;;  %v2727_v13 = vpop.f32.mrf.mxu0 }
 0x41d   : > { %v2903_v37 = vadd.f32 %v2902_v30, %v2814_v12  ;;  %v2991_v49 = vpop.f32.mrf.mxu3  ;;  %v2728_v14 = vadd.f32 %v2727_v13, %v11608_v44  ;;  %v2816_v4 = vpop.f32.mrf.mxu1 }
 0x41f   : > { %v11736_v15 = vadd.f32 %v2991_v49, %v2903_v37  ;;  %v2817_v16 = vadd.f32 %v2816_v4, %v2728_v14  ;;  %3042 = vmatmul.bf16.gmra.mxu0 %v10878_v25 }
 0x420   : > { %3131 = vmatmul.bf16.gmra.mxu1 %v13678_v0 }
 0x421   : > { %3220 = vmatmul.bf16.gmra.mxu2 %v13679_v46 }
 0x422   : > { %3309 = vmatmul.bf16.gmra.mxu3 %v13680_v54 }
 0x424   : > { %v2905_v29 = vpop.f32.mrf.mxu2  ;;  %v2729_v26 = vpop.f32.mrf.mxu0 }
 0x425   : > { %v2906_v52 = vadd.f32 %v2905_v29, %v2817_v16  ;;  %v2994_v7 = vpop.f32.mrf.mxu3  ;;  %v2730_v62 = vadd.f32 %v2729_v26, %v11608_v44  ;;  %v2818_v19 = vpop.f32.mrf.mxu1 }
 0x427   : > { %v11743_v38 = vadd.f32 %v2994_v7, %v2906_v52  ;;  %v2819_v53 = vadd.f32 %v2818_v19, %v2730_v62 }
 0x42c   : > { %v2907_v3 = vpop.f32.mrf.mxu2  ;;  %v2732_v25 = vpop.f32.mrf.mxu0 }
 0x42d   : > { %v2908_v12 = vadd.f32 %v2907_v3, %v2819_v53  ;;  %v2996_v30 = vpop.f32.mrf.mxu3  ;;  %v2733_v0 = vadd.f32 %v2732_v25, %v11608_v44  ;;  %v2821_v37 = vpop.f32.mrf.mxu1 }
 0x42f   : > { %v11746_v46 = vadd.f32 %v2996_v30, %v2908_v12  ;;  %v2822_v54 = vadd.f32 %v2821_v37, %v2733_v0  ;;  %3047 = vmatmul.bf16.gmra.mxu0 %v10906_v50 }
 0x430   : > { %3136 = vmatmul.bf16.gmra.mxu1 %v10908_v51 }
 0x431   : > { %3225 = vmatmul.bf16.gmra.mxu2 %v10910_v55 }
 0x432   : > { %3314 = vmatmul.bf16.gmra.mxu3 %v10912_v56 }
 0x434   : > { %v2910_v49 = vpop.f32.mrf.mxu2  ;;  %v2734_v4 = vpop.f32.mrf.mxu0 }
 0x435   : > { %v2911_v13 = vadd.f32 %v2910_v49, %v2822_v54  ;;  %v2999_v14 = vpop.f32.mrf.mxu3  ;;  %v2735_v16 = vadd.f32 %v2734_v4, %v11608_v44  ;;  %v2823_v29 = vpop.f32.mrf.mxu1 }
 0x437   : > { %v11753_v52 = vadd.f32 %v2999_v14, %v2911_v13  ;;  %v2824_v7 = vadd.f32 %v2823_v29, %v2735_v16 }
 0x43c   : > { %v2912_v26 = vpop.f32.mrf.mxu2  ;;  %v2737_v50 = vpop.f32.mrf.mxu0 }
 0x43d   : > { %v2913_v62 = vadd.f32 %v2912_v26, %v2824_v7  ;;  %v3001_v19 = vpop.f32.mrf.mxu3  ;;  %v2738_v51 = vadd.f32 %v2737_v50, %v11608_v44  ;;  %v2826_v53 = vpop.f32.mrf.mxu1 }
 0x43f   : > { %v11756_v55 = vadd.f32 %v3001_v19, %v2913_v62  ;;  %v2827_v56 = vadd.f32 %v2826_v53, %v2738_v51  ;;  %3052 = vmatmul.bf16.gmra.mxu0 %v10926_v1 }
 0x440   : > { %3141 = vmatmul.bf16.gmra.mxu1 %v13682_v18 }
 0x441   : > { %3230 = vmatmul.bf16.gmra.mxu2 %v13683_v48 }
 0x442   : > { %3319 = vmatmul.bf16.gmra.mxu3 %v13684_v60 }
 0x444   : > { %v2915_v3 = vpop.f32.mrf.mxu2  ;;  %v2739_v25 = vpop.f32.mrf.mxu0 }
 0x445   : > { %v2916_v12 = vadd.f32 %v2915_v3, %v2827_v56  ;;  %v3004_v30 = vpop.f32.mrf.mxu3  ;;  %v2740_v0 = vadd.f32 %v2739_v25, %v11608_v44  ;;  %v2828_v37 = vpop.f32.mrf.mxu1  ;;  %v13723_v25 = vld [vmem:[#allocation60_spill] sm:$0xff] }
 0x447   : > { %v11763_v54 = vadd.f32 %v3004_v30, %v2916_v12  ;;  %v2829_v49 = vadd.f32 %v2828_v37, %v2740_v0 }
 0x44c   : > { %v2917_v13 = vpop.f32.mrf.mxu2  ;;  %v2742_v1 = vpop.f32.mrf.mxu0 }
 0x44d   : > { %v2918_v14 = vadd.f32 %v2917_v13, %v2829_v49  ;;  %v3006_v4 = vpop.f32.mrf.mxu3  ;;  %v2743_v18 = vadd.f32 %v2742_v1, %v11608_v44  ;;  %v2831_v16 = vpop.f32.mrf.mxu1 }
 0x44f   : > { %v11766_v48 = vadd.f32 %v3006_v4, %v2918_v14  ;;  %v2832_v60 = vadd.f32 %v2831_v16, %v2743_v18  ;;  %3057 = vmatmul.bf16.gmra.mxu0 %v10954_v33 }
 0x450   : > { %3146 = vmatmul.bf16.gmra.mxu1 %v10956_v34 }
 0x451   : > { %3235 = vmatmul.bf16.gmra.mxu2 %v10958_v35 }
 0x452   : > { %3324 = vmatmul.bf16.gmra.mxu3 %v10960_v36 }
 0x454   : > { %v2920_v29 = vpop.f32.mrf.mxu2  ;;  %v2744_v62 = vpop.f32.mrf.mxu0 }
 0x455   : > { %v2921_v7 = vadd.f32 %v2920_v29, %v2832_v60  ;;  %v3009_v26 = vpop.f32.mrf.mxu3  ;;  %v2745_v19 = vadd.f32 %v2744_v62, %v11608_v44  ;;  %v2833_v50 = vpop.f32.mrf.mxu1 }
 0x457   : > { %v11773_v51 = vadd.f32 %v3009_v26, %v2921_v7  ;;  %v2834_v53 = vadd.f32 %v2833_v50, %v2745_v19 }
 0x45c   : > { %v2922_v56 = vpop.f32.mrf.mxu2  ;;  %v2747_v33 = vpop.f32.mrf.mxu0 }
 0x45d   : > { %v2923_v3 = vadd.f32 %v2922_v56, %v2834_v53  ;;  %v3011_v12 = vpop.f32.mrf.mxu3  ;;  %v2748_v34 = vadd.f32 %v2747_v33, %v11608_v44  ;;  %v2836_v30 = vpop.f32.mrf.mxu1 }
 0x45f   : > { %v11776_v35 = vadd.f32 %v3011_v12, %v2923_v3  ;;  %v2837_v36 = vadd.f32 %v2836_v30, %v2748_v34  ;;  %3062 = vmatmul.bf16.gmra.mxu0 %v13685_v17  ;;  %v11796_v34 = vperm.slane %v11604_v28, 1 }
 0x460   : > { %3151 = vmatmul.bf16.gmra.mxu1 %v13687_v42 }
 0x461   : > { %3240 = vmatmul.bf16.gmra.mxu2 %v13688_v6 }
 0x462   : > { %3329 = vmatmul.bf16.gmra.mxu3 %v13723_v25 }
 0x464   : > { %v2925_v0 = vpop.f32.mrf.mxu2  ;;  %v2749_v13 = vpop.f32.mrf.mxu0 }
 0x465   : > { %v2926_v37 = vadd.f32 %v2925_v0, %v2837_v36  ;;  %v3014_v49 = vpop.f32.mrf.mxu3  ;;  %v2750_v14 = vadd.f32 %v2749_v13, %v11608_v44  ;;  %v2838_v4 = vpop.f32.mrf.mxu1 }
 0x467   : > { %v11783_v1 = vadd.f32 %v3014_v49, %v2926_v37  ;;  %v2839_v18 = vadd.f32 %v2838_v4, %v2750_v14 }
 0x46c   : > { %v2927_v16 = vpop.f32.mrf.mxu2  ;;  %v2752_v17 = vpop.f32.mrf.mxu0 }
 0x46d   : > { %v2928_v60 = vadd.f32 %v2927_v16, %v2839_v18  ;;  %v3016_v29 = vpop.f32.mrf.mxu3  ;;  %v2753_v42 = vadd.f32 %v2752_v17, %v11608_v44  ;;  %v2841_v7 = vpop.f32.mrf.mxu1 }
 0x46f   : > { %v11786_v6 = vadd.f32 %v3016_v29, %v2928_v60  ;;  %v2842_v26 = vadd.f32 %v2841_v7, %v2753_v42  ;;  %3067 = vmatmul.bf16.gmra.mxu0 %v11002_v21  ;;  %v13724_v7 = vld [vmem:[#allocation61_spill] sm:$0xff] }
 0x470   : > { %3156 = vmatmul.bf16.gmra.mxu1 %v11004_v22 }
 0x471   : > { %3245 = vmatmul.bf16.gmra.mxu2 %v11006_v23 }
 0x472   : > { %3334 = vmatmul.bf16.gmra.mxu3 %v11008_v24 }
 0x474   : > { %v2930_v62 = vpop.f32.mrf.mxu2  ;;  %v2754_v53 = vpop.f32.mrf.mxu0 }
 0x475   : > { %v2931_v19 = vadd.f32 %v2930_v62, %v2842_v26  ;;  %v3019_v50 = vpop.f32.mrf.mxu3  ;;  %v2755_v56 = vadd.f32 %v2754_v53, %v11608_v44  ;;  %v2843_v3 = vpop.f32.mrf.mxu1 }
 0x477   : > { %v11793_v12 = vadd.f32 %v3019_v50, %v2931_v19  ;;  %v2844_v33 = vadd.f32 %v2843_v3, %v2755_v56 }
 0x47c   : > { %v2932_v21 = vpop.f32.mrf.mxu2  ;;  %v3033_v36 = vpop.f32.mrf.mxu0 }
 0x47d   : > { %v2933_v30 = vadd.f32 %v2932_v21, %v2844_v33  ;;  %v3021_v22 = vpop.f32.mrf.mxu3  ;;  %v3034_v23 = vadd.f32 %v3033_v36, %v11796_v34  ;;  %v3122_v24 = vpop.f32.mrf.mxu1  ;;  %v13725_v33 = vld [vmem:[#allocation62_spill] sm:$0xff] }
 0x47f   : > { %v11799_v25 = vadd.f32 %v3021_v22, %v2933_v30  ;;  %3072 = vmatmul.bf16.gmra.mxu0 %v11026_v43  ;;  %v3123_v44 = vadd.f32 %v3122_v24, %v3034_v23  ;;  %v13726_v24 = vld [vmem:[#allocation63_spill] sm:$0xff] }
 0x480   : > { %3161 = vmatmul.bf16.gmra.mxu1 %v11028_v57 }
 0x481   : > { %3250 = vmatmul.bf16.gmra.mxu2 %v11030_v58 }
 0x482   : > { %3339 = vmatmul.bf16.gmra.mxu3 %v11033_v61 }
 0x484   : > { %v3211_v28 = vpop.f32.mrf.mxu2  ;;  %v3035_v49 = vpop.f32.mrf.mxu0 }
 0x485   : > { %v3212_v0 = vadd.f32 %v3211_v28, %v3123_v44  ;;  %v3300_v37 = vpop.f32.mrf.mxu3  ;;  %v3124_v13 = vpop.f32.mrf.mxu1  ;;  %v3036_v4 = vadd.f32 %v3035_v49, %v11796_v34  ;;  %v13727_v44 = vld [vmem:[#allocation67_spill] sm:$0xff]  ;;  %v13729_v49 = vld [vmem:[#allocation65_spill] sm:$0xff] }
 0x487   : > { %v3301_v14 = vadd.f32 %v3300_v37, %v3212_v0  ;;  %v3125_v43 = vadd.f32 %v3124_v13, %v3036_v4  ;;  %v13728_v37 = vld [vmem:[#allocation64_spill] sm:$0xff]  ;;  %v13730_v13 = vld [vmem:[#allocation66_spill] sm:$0xff] }
 0x489   : > { %v3380_v18 = vpack.c.bf16 %v3301_v14, %v11625_v31 }
 0x48b   : > { %3414 = vst [vmem:[%s11809_s27] sm:$0xff] %v3380_v18 }
 0x48c   : > { %v3213_v57 = vpop.f32.mrf.mxu2  ;;  %v3038_v16 = vpop.f32.mrf.mxu0 }
 0x48d   : > { %v3214_v58 = vadd.f32 %v3213_v57, %v3125_v43  ;;  %v3302_v61 = vpop.f32.mrf.mxu3  ;;  %v3039_v60 = vadd.f32 %v3038_v16, %v11796_v34  ;;  %v3127_v29 = vpop.f32.mrf.mxu1  ;;  %v13731_v16 = vld [vmem:[#allocation68_spill] sm:$0xff] }
 0x48f   : > { %v3303_v17 = vadd.f32 %v3302_v61, %v3214_v58  ;;  %3077 = vmatmul.bf16.gmra.mxu0 %v11058_v5  ;;  %v3128_v42 = vadd.f32 %v3127_v29, %v3039_v60 }
 0x490   : > { %3166 = vmatmul.bf16.gmra.mxu1 %v11060_v9 }
 0x491   : > { %v3381_v31 = vpack.c.bf16 %v3303_v17, %v11630_v45  ;;  %3255 = vmatmul.bf16.gmra.mxu2 %v11062_v10 }
 0x492   : > { %3344 = vmatmul.bf16.gmra.mxu3 %v13724_v7 }
 0x493   : > { %3415 = vst [vmem:[%s11809_s27 + $0x8] sm:$0xff] %v3381_v31 }
 0x494   : > { %v3216_v26 = vpop.f32.mrf.mxu2  ;;  %v3040_v50 = vpop.f32.mrf.mxu0 }
 0x495   : > { %v3217_v62 = vadd.f32 %v3216_v26, %v3128_v42  ;;  %v3305_v19 = vpop.f32.mrf.mxu3  ;;  %v3129_v53 = vpop.f32.mrf.mxu1  ;;  %v3041_v3 = vadd.f32 %v3040_v50, %v11796_v34  ;;  %v13732_v50 = vld [vmem:[#allocation69_spill] sm:$0xff] }
 0x497   : > { %v3306_v56 = vadd.f32 %v3305_v19, %v3217_v62  ;;  %v3130_v45 = vadd.f32 %v3129_v53, %v3041_v3  ;;  %v13733_v53 = vld [vmem:[#allocation73_spill] sm:$0xff] }
 0x499   : > { %v3382_v5 = vpack.c.bf16 %v3306_v56, %v13725_v33  ;;  %v13734_v33 = vld [vmem:[#allocation70_spill] sm:$0xff] }
 0x49b   : > { %3416 = vst [vmem:[%s11809_s27 + $0x10] sm:$0xff] %v3382_v5  ;;  %v13735_v5 = vld [vmem:[#allocation71_spill] sm:$0xff] }
 0x49c   : > { %v3218_v21 = vpop.f32.mrf.mxu2  ;;  %v3043_v10 = vpop.f32.mrf.mxu0 }
 0x49d   : > { %v3219_v9 = vadd.f32 %v3218_v21, %v3130_v45  ;;  %v3307_v30 = vpop.f32.mrf.mxu3  ;;  %v3044_v22 = vadd.f32 %v3043_v10, %v11796_v34  ;;  %v3132_v36 = vpop.f32.mrf.mxu1  ;;  %v13736_v45 = vld [vmem:[#allocation72_spill] sm:$0xff] }
 0x49f   : > { %v3308_v23 = vadd.f32 %v3307_v30, %v3219_v9  ;;  %3082 = vmatmul.bf16.gmra.mxu0 %v13726_v24  ;;  %v3133_v0 = vadd.f32 %v3132_v36, %v3044_v22  ;;  %v13737_v24 = vld [vmem:[#allocation74_spill] sm:$0xff] }
 0x4a0   : > { %3171 = vmatmul.bf16.gmra.mxu1 %v13728_v37 }
 0x4a1   : > { %v3383_v28 = vpack.c.bf16 %v3308_v23, %v13727_v44  ;;  %3260 = vmatmul.bf16.gmra.mxu2 %v13729_v49 }
 0x4a2   : > { %3349 = vmatmul.bf16.gmra.mxu3 %v13730_v13 }
 0x4a3   : > { %3417 = vst [vmem:[%s11809_s27 + $0x18] sm:$0xff] %v3383_v28 }
 0x4a4   : > { %v3221_v14 = vpop.f32.mrf.mxu2  ;;  %v3045_v43 = vpop.f32.mrf.mxu0 }
 0x4a5   : > { %v3222_v4 = vadd.f32 %v3221_v14, %v3133_v0  ;;  %v3310_v18 = vpop.f32.mrf.mxu3  ;;  %v3134_v57 = vpop.f32.mrf.mxu1  ;;  %v3046_v61 = vadd.f32 %v3045_v43, %v11796_v34  ;;  %v13738_v43 = vld [vmem:[#allocation75_spill] sm:$0xff] }
 0x4a7   : > { %v3311_v58 = vadd.f32 %v3310_v18, %v3222_v4  ;;  %v3135_v29 = vadd.f32 %v3134_v57, %v3046_v61  ;;  %v13739_v57 = vld [vmem:[#allocation79_spill] sm:$0xff] }
 0x4a9   : > { %v3384_v60 = vpack.c.bf16 %v3311_v58, %v13731_v16  ;;  %v13740_v16 = vld [vmem:[#allocation76_spill] sm:$0xff] }
 0x4ab   : > { %3418 = vst [vmem:[%s11809_s27 + $0x20] sm:$0xff] %v3384_v60  ;;  %v13741_v60 = vld [vmem:[#allocation77_spill] sm:$0xff] }
 0x4ac   : > { %v3223_v17 = vpop.f32.mrf.mxu2  ;;  %v3048_v7 = vpop.f32.mrf.mxu0 }
 0x4ad   : > { %v3224_v31 = vadd.f32 %v3223_v17, %v3135_v29  ;;  %v3312_v42 = vpop.f32.mrf.mxu3  ;;  %v3049_v26 = vadd.f32 %v3048_v7, %v11796_v34  ;;  %v3137_v62 = vpop.f32.mrf.mxu1  ;;  %v13742_v29 = vld [vmem:[#allocation78_spill] sm:$0xff] }
 0x4af   : > { %v3313_v19 = vadd.f32 %v3312_v42, %v3224_v31  ;;  %3087 = vmatmul.bf16.gmra.mxu0 %v13732_v50  ;;  %v3138_v3 = vadd.f32 %v3137_v62, %v3049_v26 }
 0x4b0   : > { %3176 = vmatmul.bf16.gmra.mxu1 %v13734_v33 }
 0x4b1   : > { %v3385_v56 = vpack.c.bf16 %v3313_v19, %v13733_v53  ;;  %3265 = vmatmul.bf16.gmra.mxu2 %v13735_v5 }
 0x4b2   : > { %3354 = vmatmul.bf16.gmra.mxu3 %v13736_v45 }
 0x4b3   : > { %3419 = vst [vmem:[%s11809_s27 + $0x28] sm:$0xff] %v3385_v56 }
 0x4b4   : > { %v3226_v21 = vpop.f32.mrf.mxu2  ;;  %v3050_v10 = vpop.f32.mrf.mxu0 }
 0x4b5   : > { %v3227_v9 = vadd.f32 %v3226_v21, %v3138_v3  ;;  %v3315_v30 = vpop.f32.mrf.mxu3  ;;  %v3139_v22 = vpop.f32.mrf.mxu1  ;;  %v3051_v23 = vadd.f32 %v3050_v10, %v11796_v34 }
 0x4b7   : > { %v3316_v36 = vadd.f32 %v3315_v30, %v3227_v9  ;;  %v3140_v28 = vadd.f32 %v3139_v22, %v3051_v23  ;;  %v13743_v22 = vld [vmem:[#allocation82_spill] sm:$0xff] }
 0x4b9   : > { %v3386_v44 = vpack.c.bf16 %v3316_v36, %v13737_v24  ;;  %v13745_v36 = vld [vmem:[#allocation84_spill] sm:$0xff] }
 0x4bb   : > { %3420 = vst [vmem:[%s11809_s27 + $0x30] sm:$0xff] %v3386_v44 }
 0x4bc   : > { %v3228_v0 = vpop.f32.mrf.mxu2  ;;  %v3053_v13 = vpop.f32.mrf.mxu0 }
 0x4bd   : > { %v3229_v37 = vadd.f32 %v3228_v0, %v3140_v28  ;;  %v3317_v49 = vpop.f32.mrf.mxu3  ;;  %v3054_v14 = vadd.f32 %v3053_v13, %v11796_v34  ;;  %v3142_v4 = vpop.f32.mrf.mxu1 }
 0x4bf   : > { %v3318_v18 = vadd.f32 %v3317_v49, %v3229_v37  ;;  %3092 = vmatmul.bf16.gmra.mxu0 %v13738_v43  ;;  %v3143_v61 = vadd.f32 %v3142_v4, %v3054_v14 }
 0x4c0   : > { %3181 = vmatmul.bf16.gmra.mxu1 %v13740_v16  ;;  %v13747_v16 = vld [vmem:[#allocation80_spill] sm:$0xff] }
 0x4c1   : > { %v3387_v58 = vpack.c.bf16 %v3318_v18, %v13739_v57  ;;  %3270 = vmatmul.bf16.gmra.mxu2 %v13741_v60 }
 0x4c2   : > { %3359 = vmatmul.bf16.gmra.mxu3 %v13742_v29 }
 0x4c3   : > { %3421 = vst [vmem:[%s11809_s27 + $0x38] sm:$0xff] %v3387_v58 }
 0x4c4   : > { %v3231_v17 = vpop.f32.mrf.mxu2  ;;  %v3055_v7 = vpop.f32.mrf.mxu0 }
 0x4c5   : > { %v3232_v31 = vadd.f32 %v3231_v17, %v3143_v61  ;;  %v3320_v42 = vpop.f32.mrf.mxu3  ;;  %v3144_v26 = vpop.f32.mrf.mxu1  ;;  %v3056_v19 = vadd.f32 %v3055_v7, %v11796_v34  ;;  %v13746_v61 = vld [vmem:[#allocation87_spill] sm:$0xff]  ;;  %v13748_v17 = vld [vmem:[#allocation88_spill] sm:$0xff] }
 0x4c7   : > { %v3321_v62 = vadd.f32 %v3320_v42, %v3232_v31  ;;  %v3145_v53 = vadd.f32 %v3144_v26, %v3056_v19  ;;  %v13750_v31 = vld [vmem:[#allocation90_spill] sm:$0xff] }
 0x4c9   : > { %v3388_v50 = vpack.c.bf16 %v3321_v62, %v11681_v32  ;;  %v13744_v32 = vld [vmem:[#allocation83_spill] sm:$0xff] }
 0x4cb   : > { %3422 = vst [vmem:[%s11809_s27 + $0x40] sm:$0xff] %v3388_v50 }
 0x4cc   : > { %v3233_v56 = vpop.f32.mrf.mxu2  ;;  %v3058_v5 = vpop.f32.mrf.mxu0 }
 0x4cd   : > { %v3234_v3 = vadd.f32 %v3233_v56, %v3145_v53  ;;  %v3322_v33 = vpop.f32.mrf.mxu3  ;;  %v3059_v45 = vadd.f32 %v3058_v5, %v11796_v34  ;;  %v3147_v21 = vpop.f32.mrf.mxu1 }
 0x4cf   : > { %v3323_v9 = vadd.f32 %v3322_v33, %v3234_v3  ;;  %3097 = vmatmul.bf16.gmra.mxu0 %v13710_v41  ;;  %v3148_v10 = vadd.f32 %v3147_v21, %v3059_v45 }
 0x4d0   : > { %3186 = vmatmul.bf16.gmra.mxu1 %v13743_v22 }
 0x4d1   : > { %v3389_v30 = vpack.c.bf16 %v3323_v9, %v11686_v27  ;;  %3275 = vmatmul.bf16.gmra.mxu2 %v13744_v32 }
 0x4d2   : > { %3364 = vmatmul.bf16.gmra.mxu3 %v13745_v36  ;;  %v13752_v36 = vld [vmem:[#allocation94_spill] sm:$0xff] }
 0x4d3   : > { %3423 = vst [vmem:[%s11809_s27 + $0x48] sm:$0xff] %v3389_v30 }
 0x4d4   : > { %v3236_v23 = vpop.f32.mrf.mxu2  ;;  %v3060_v28 = vpop.f32.mrf.mxu0 }
 0x4d5   : > { %v3237_v24 = vadd.f32 %v3236_v23, %v3148_v10  ;;  %v3325_v44 = vpop.f32.mrf.mxu3  ;;  %v3149_v0 = vpop.f32.mrf.mxu1  ;;  %v3061_v49 = vadd.f32 %v3060_v28, %v11796_v34 }
 0x4d7   : > { %v3326_v37 = vadd.f32 %v3325_v44, %v3237_v24  ;;  %v3150_v27 = vadd.f32 %v3149_v0, %v3061_v49 }
 0x4d9   : > { %v3390_v41 = vpack.c.bf16 %v3326_v37, %v11693_v59  ;;  %v13749_v59 = vld [vmem:[#allocation89_spill] sm:$0xff] }
 0x4db   : > { %3424 = vst [vmem:[%s11809_s27 + $0x50] sm:$0xff] %v3390_v41 }
 0x4dc   : > { %v3238_v13 = vpop.f32.mrf.mxu2  ;;  %v3063_v18 = vpop.f32.mrf.mxu0 }
 0x4dd   : > { %v3239_v14 = vadd.f32 %v3238_v13, %v3150_v27  ;;  %v3327_v4 = vpop.f32.mrf.mxu3  ;;  %v3064_v43 = vadd.f32 %v3063_v18, %v11796_v34  ;;  %v3152_v57 = vpop.f32.mrf.mxu1 }
 0x4df   : > { %v3328_v58 = vadd.f32 %v3327_v4, %v3239_v14  ;;  %3102 = vmatmul.bf16.gmra.mxu0 %v13746_v61  ;;  %v3153_v29 = vadd.f32 %v3152_v57, %v3064_v43  ;;  %v13753_v43 = vld [vmem:[#allocation85_spill] sm:$0xff] }
 0x4e0   : > { %3191 = vmatmul.bf16.gmra.mxu1 %v13748_v17 }
 0x4e1   : > { %v3391_v60 = vpack.c.bf16 %v3328_v58, %v13747_v16  ;;  %3280 = vmatmul.bf16.gmra.mxu2 %v13749_v59 }
 0x4e2   : > { %3369 = vmatmul.bf16.gmra.mxu3 %v13750_v31 }
 0x4e3   : > { %3425 = vst [vmem:[%s11809_s27 + $0x58] sm:$0xff] %v3391_v60 }
 0x4e4   : > { %v3241_v42 = vpop.f32.mrf.mxu2  ;;  %v3065_v62 = vpop.f32.mrf.mxu0 }
 0x4e5   : > { %v3242_v7 = vadd.f32 %v3241_v42, %v3153_v29  ;;  %v3330_v26 = vpop.f32.mrf.mxu3  ;;  %v3154_v19 = vpop.f32.mrf.mxu1  ;;  %v3066_v53 = vadd.f32 %v3065_v62, %v11796_v34 }
 0x4e7   : > { %v3331_v50 = vadd.f32 %v3330_v26, %v3242_v7  ;;  %v3155_v3 = vadd.f32 %v3154_v19, %v3066_v53 }
 0x4e9   : > { %v3392_v56 = vpack.c.bf16 %v3331_v50, %v11703_v2  ;;  %v13751_v2 = vld [vmem:[#allocation93_spill] sm:$0xff] }
 0x4eb   : > { %3426 = vst [vmem:[%s11809_s27 + $0x60] sm:$0xff] %v3392_v56 }
 0x4ec   : > { %v3243_v33 = vpop.f32.mrf.mxu2  ;;  %v3068_v21 = vpop.f32.mrf.mxu0 }
 0x4ed   : > { %v3244_v5 = vadd.f32 %v3243_v33, %v3155_v3  ;;  %v3332_v45 = vpop.f32.mrf.mxu3  ;;  %v3069_v9 = vadd.f32 %v3068_v21, %v11796_v34  ;;  %v3157_v30 = vpop.f32.mrf.mxu1 }
 0x4ef   : > { %v3333_v10 = vadd.f32 %v3332_v45, %v3244_v5  ;;  %3107 = vmatmul.bf16.gmra.mxu0 %v11238_v40  ;;  %v3158_v32 = vadd.f32 %v3157_v30, %v3069_v9 }
 0x4f0   : > { %3196 = vmatmul.bf16.gmra.mxu1 %v11240_v20 }
 0x4f1   : > { %v3393_v22 = vpack.c.bf16 %v3333_v10, %v11706_v39  ;;  %3285 = vmatmul.bf16.gmra.mxu2 %v13751_v2 }
 0x4f2   : > { %3374 = vmatmul.bf16.gmra.mxu3 %v13752_v36 }
 0x4f3   : > { %3427 = vst [vmem:[%s11809_s27 + $0x68] sm:$0xff] %v3393_v22 }
 0x4f4   : > { %v3246_v23 = vpop.f32.mrf.mxu2  ;;  %v3070_v28 = vpop.f32.mrf.mxu0 }
 0x4f5   : > { %v3247_v24 = vadd.f32 %v3246_v23, %v3158_v32  ;;  %v3335_v44 = vpop.f32.mrf.mxu3  ;;  %v3159_v0 = vpop.f32.mrf.mxu1  ;;  %v3071_v49 = vadd.f32 %v3070_v28, %v11796_v34 }
 0x4f7   : > { %v3336_v37 = vadd.f32 %v3335_v44, %v3247_v24  ;;  %v3160_v39 = vadd.f32 %v3159_v0, %v3071_v49 }
 0x4f9   : > { %v3394_v40 = vpack.c.bf16 %v3336_v37, %v11713_v63 }
 0x4fb   : > { %3428 = vst [vmem:[%s11809_s27 + $0x70] sm:$0xff] %v3394_v40 }
 0x4fc   : > { %v3248_v41 = vpop.f32.mrf.mxu2  ;;  %v3073_v13 = vpop.f32.mrf.mxu0 }
 0x4fd   : > { %v3249_v20 = vadd.f32 %v3248_v41, %v3160_v39  ;;  %v3337_v27 = vpop.f32.mrf.mxu3  ;;  %v3074_v14 = vadd.f32 %v3073_v13, %v11796_v34  ;;  %v3162_v4 = vpop.f32.mrf.mxu1 }
 0x4ff   : > { %v3338_v18 = vadd.f32 %v3337_v27, %v3249_v20  ;;  %v3163_v58 = vadd.f32 %v3162_v4, %v3074_v14 }
 0x501   : > { %v3395_v57 = vpack.c.bf16 %v3338_v18, %v13753_v43 }
 0x503   : > { %3429 = vst [vmem:[%s11809_s27 + $0x78] sm:$0xff] %v3395_v57 }
 0x504   : > { %v3251_v61 = vpop.f32.mrf.mxu2  ;;  %v3075_v29 = vpop.f32.mrf.mxu0 }
 0x505   : > { %v3252_v16 = vadd.f32 %v3251_v61, %v3163_v58  ;;  %v3340_v60 = vpop.f32.mrf.mxu3  ;;  %v3164_v63 = vpop.f32.mrf.mxu1  ;;  %v3076_v59 = vadd.f32 %v3075_v29, %v11796_v34 }
 0x507   : > { %v3341_v17 = vadd.f32 %v3340_v60, %v3252_v16  ;;  %v3165_v42 = vadd.f32 %v3164_v63, %v3076_v59 }
 0x509   : > { %v3396_v31 = vpack.c.bf16 %v3341_v17, %v11723_v11 }
 0x50b   : > { %3430 = vst [vmem:[%s11809_s27 + $0x80] sm:$0xff] %v3396_v31 }
 0x50c   : > { %v3253_v7 = vpop.f32.mrf.mxu2  ;;  %v3078_v19 = vpop.f32.mrf.mxu0 }
 0x50d   : > { %v3254_v26 = vadd.f32 %v3253_v7, %v3165_v42  ;;  %v3342_v62 = vpop.f32.mrf.mxu3  ;;  %v3079_v50 = vadd.f32 %v3078_v19, %v11796_v34  ;;  %v3167_v53 = vpop.f32.mrf.mxu1 }
 0x50f   : > { %v3343_v56 = vadd.f32 %v3342_v62, %v3254_v26  ;;  %v3168_v33 = vadd.f32 %v3167_v53, %v3079_v50 }
 0x511   : > { %v3397_v3 = vpack.c.bf16 %v3343_v56, %v11726_v8 }
 0x513   : > { %3431 = vst [vmem:[%s11809_s27 + $0x88] sm:$0xff] %v3397_v3 }
 0x514   : > { %v3256_v5 = vpop.f32.mrf.mxu2  ;;  %v3080_v9 = vpop.f32.mrf.mxu0 }
 0x515   : > { %v3257_v45 = vadd.f32 %v3256_v5, %v3168_v33  ;;  %v3345_v21 = vpop.f32.mrf.mxu3  ;;  %v3169_v11 = vpop.f32.mrf.mxu1  ;;  %v3081_v10 = vadd.f32 %v3080_v9, %v11796_v34 }
 0x517   : > { %v3346_v30 = vadd.f32 %v3345_v21, %v3257_v45  ;;  %v3170_v32 = vadd.f32 %v3169_v11, %v3081_v10 }
 0x519   : > { %v3398_v22 = vpack.c.bf16 %v3346_v30, %v11733_v47 }
 0x51b   : > { %3432 = vst [vmem:[%s11809_s27 + $0x90] sm:$0xff] %v3398_v22 }
 0x51c   : > { %v3258_v2 = vpop.f32.mrf.mxu2  ;;  %v3083_v8 = vpop.f32.mrf.mxu0 }
 0x51d   : > { %v3259_v36 = vadd.f32 %v3258_v2, %v3170_v32  ;;  %v3347_v23 = vpop.f32.mrf.mxu3  ;;  %v3084_v24 = vadd.f32 %v3083_v8, %v11796_v34  ;;  %v3172_v44 = vpop.f32.mrf.mxu1 }
 0x51f   : > { %v3348_v28 = vadd.f32 %v3347_v23, %v3259_v36  ;;  %v3173_v37 = vadd.f32 %v3172_v44, %v3084_v24 }
 0x521   : > { %v3399_v0 = vpack.c.bf16 %v3348_v28, %v11736_v15 }
 0x523   : > { %3433 = vst [vmem:[%s11809_s27 + $0x98] sm:$0xff] %v3399_v0 }
 0x524   : > { %v3261_v49 = vpop.f32.mrf.mxu2  ;;  %v3085_v41 = vpop.f32.mrf.mxu0 }
 0x525   : > { %v3262_v40 = vadd.f32 %v3261_v49, %v3173_v37  ;;  %v3350_v39 = vpop.f32.mrf.mxu3  ;;  %v3174_v47 = vpop.f32.mrf.mxu1  ;;  %v3086_v27 = vadd.f32 %v3085_v41, %v11796_v34 }
 0x527   : > { %v3351_v20 = vadd.f32 %v3350_v39, %v3262_v40  ;;  %v3175_v14 = vadd.f32 %v3174_v47, %v3086_v27 }
 0x529   : > { %v3400_v13 = vpack.c.bf16 %v3351_v20, %v11743_v38 }
 0x52b   : > { %3434 = vst [vmem:[%s11809_s27 + $0xa0] sm:$0xff] %v3400_v13 }
 0x52c   : > { %v3263_v4 = vpop.f32.mrf.mxu2  ;;  %v3088_v15 = vpop.f32.mrf.mxu0 }
 0x52d   : > { %v3264_v18 = vadd.f32 %v3263_v4, %v3175_v14  ;;  %v3352_v43 = vpop.f32.mrf.mxu3  ;;  %v3089_v57 = vadd.f32 %v3088_v15, %v11796_v34  ;;  %v3177_v58 = vpop.f32.mrf.mxu1 }
 0x52f   : > { %v3353_v61 = vadd.f32 %v3352_v43, %v3264_v18  ;;  %v3178_v60 = vadd.f32 %v3177_v58, %v3089_v57 }
 0x531   : > { %v3401_v16 = vpack.c.bf16 %v3353_v61, %v11746_v46 }
 0x533   : > { %3435 = vst [vmem:[%s11809_s27 + $0xa8] sm:$0xff] %v3401_v16 }
 0x534   : > { %v3266_v29 = vpop.f32.mrf.mxu2  ;;  %v3090_v59 = vpop.f32.mrf.mxu0 }
 0x535   : > { %v3267_v63 = vadd.f32 %v3266_v29, %v3178_v60  ;;  %v3355_v17 = vpop.f32.mrf.mxu3  ;;  %v3179_v38 = vpop.f32.mrf.mxu1  ;;  %v3091_v42 = vadd.f32 %v3090_v59, %v11796_v34 }
 0x537   : > { %v3356_v31 = vadd.f32 %v3355_v17, %v3267_v63  ;;  %v3180_v26 = vadd.f32 %v3179_v38, %v3091_v42 }
 0x539   : > { %v3402_v7 = vpack.c.bf16 %v3356_v31, %v11753_v52 }
 0x53b   : > { %3436 = vst [vmem:[%s11809_s27 + $0xb0] sm:$0xff] %v3402_v7 }
 0x53c   : > { %v3268_v62 = vpop.f32.mrf.mxu2  ;;  %v3093_v46 = vpop.f32.mrf.mxu0 }
 0x53d   : > { %v3269_v19 = vadd.f32 %v3268_v62, %v3180_v26  ;;  %v3357_v50 = vpop.f32.mrf.mxu3  ;;  %v3094_v53 = vadd.f32 %v3093_v46, %v11796_v34  ;;  %v3182_v56 = vpop.f32.mrf.mxu1 }
 0x53f   : > { %v3358_v3 = vadd.f32 %v3357_v50, %v3269_v19  ;;  %v3183_v5 = vadd.f32 %v3182_v56, %v3094_v53 }
 0x541   : > { %v3403_v33 = vpack.c.bf16 %v3358_v3, %v11756_v55 }
 0x543   : > { %3437 = vst [vmem:[%s11809_s27 + $0xb8] sm:$0xff] %v3403_v33 }
 0x544   : > { %v3271_v45 = vpop.f32.mrf.mxu2  ;;  %v3095_v11 = vpop.f32.mrf.mxu0 }
 0x545   : > { %v3272_v21 = vadd.f32 %v3271_v45, %v3183_v5  ;;  %v3360_v9 = vpop.f32.mrf.mxu3  ;;  %v3184_v52 = vpop.f32.mrf.mxu1  ;;  %v3096_v10 = vadd.f32 %v3095_v11, %v11796_v34 }
 0x547   : > { %v3361_v30 = vadd.f32 %v3360_v9, %v3272_v21  ;;  %v3185_v32 = vadd.f32 %v3184_v52, %v3096_v10 }
 0x549   : > { %v3404_v22 = vpack.c.bf16 %v3361_v30, %v11763_v54 }
 0x54b   : > { %3438 = vst [vmem:[%s11809_s27 + $0xc0] sm:$0xff] %v3404_v22 }
 0x54c   : > { %v3273_v2 = vpop.f32.mrf.mxu2  ;;  %v3098_v55 = vpop.f32.mrf.mxu0 }
 0x54d   : > { %v3274_v36 = vadd.f32 %v3273_v2, %v3185_v32  ;;  %v3362_v23 = vpop.f32.mrf.mxu3  ;;  %v3099_v8 = vadd.f32 %v3098_v55, %v11796_v34  ;;  %v3187_v24 = vpop.f32.mrf.mxu1 }
 0x54f   : > { %v3363_v44 = vadd.f32 %v3362_v23, %v3274_v36  ;;  %v3188_v0 = vadd.f32 %v3187_v24, %v3099_v8 }
 0x551   : > { %v3405_v28 = vpack.c.bf16 %v3363_v44, %v11766_v48 }
 0x553   : > { %3439 = vst [vmem:[%s11809_s27 + $0xc8] sm:$0xff] %v3405_v28 }
 0x554   : > { %v3276_v37 = vpop.f32.mrf.mxu2  ;;  %v3100_v39 = vpop.f32.mrf.mxu0 }
 0x555   : > { %v3277_v49 = vadd.f32 %v3276_v37, %v3188_v0  ;;  %v3365_v40 = vpop.f32.mrf.mxu3  ;;  %v3189_v54 = vpop.f32.mrf.mxu1  ;;  %v3101_v47 = vadd.f32 %v3100_v39, %v11796_v34 }
 0x557   : > { %v3366_v41 = vadd.f32 %v3365_v40, %v3277_v49  ;;  %v3190_v27 = vadd.f32 %v3189_v54, %v3101_v47 }
 0x559   : > { %v3406_v20 = vpack.c.bf16 %v3366_v41, %v11773_v51 }
 0x55b   : > { %3440 = vst [vmem:[%s11809_s27 + $0xd0] sm:$0xff] %v3406_v20 }
 0x55c   : > { %v3278_v13 = vpop.f32.mrf.mxu2  ;;  %v3103_v48 = vpop.f32.mrf.mxu0 }
 0x55d   : > { %v3279_v14 = vadd.f32 %v3278_v13, %v3190_v27  ;;  %v3367_v4 = vpop.f32.mrf.mxu3  ;;  %v3104_v18 = vadd.f32 %v3103_v48, %v11796_v34  ;;  %v3192_v43 = vpop.f32.mrf.mxu1 }
 0x55f   : > { %v3368_v15 = vadd.f32 %v3367_v4, %v3279_v14  ;;  %v3193_v58 = vadd.f32 %v3192_v43, %v3104_v18 }
 0x561   : > { %v3407_v57 = vpack.c.bf16 %v3368_v15, %v11776_v35 }
 0x563   : > { %3441 = vst [vmem:[%s11809_s27 + $0xd8] sm:$0xff] %v3407_v57 }
 0x564   : > { %v3281_v61 = vpop.f32.mrf.mxu2  ;;  %v3105_v29 = vpop.f32.mrf.mxu0 }
 0x565   : > { %v3282_v16 = vadd.f32 %v3281_v61, %v3193_v58  ;;  %v3370_v60 = vpop.f32.mrf.mxu3  ;;  %v3194_v51 = vpop.f32.mrf.mxu1  ;;  %v3106_v17 = vadd.f32 %v3105_v29, %v11796_v34 }
 0x567   : > { %v3371_v63 = vadd.f32 %v3370_v60, %v3282_v16  ;;  %v3195_v38 = vadd.f32 %v3194_v51, %v3106_v17 }
 0x569   : > { %v3408_v59 = vpack.c.bf16 %v3371_v63, %v11783_v1 }
 0x56b   : > { %3442 = vst [vmem:[%s11809_s27 + $0xe0] sm:$0xff] %v3408_v59 }
 0x56c   : > { %v3283_v31 = vpop.f32.mrf.mxu2  ;;  %v3108_v35 = vpop.f32.mrf.mxu0 }
 0x56d   : > { %v3284_v42 = vadd.f32 %v3283_v31, %v3195_v38  ;;  %v3372_v7 = vpop.f32.mrf.mxu3  ;;  %v3109_v26 = vadd.f32 %v3108_v35, %v11796_v34  ;;  %v3197_v19 = vpop.f32.mrf.mxu1 }
 0x56f   : > { %v3373_v62 = vadd.f32 %v3372_v7, %v3284_v42  ;;  %v3198_v46 = vadd.f32 %v3197_v19, %v3109_v26 }
 0x571   : > { %v3409_v50 = vpack.c.bf16 %v3373_v62, %v11786_v6 }
 0x573   : > { %3443 = vst [vmem:[%s11809_s27 + $0xe8] sm:$0xff] %v3409_v50 }
 0x574   : > { %v3286_v53 = vpop.f32.mrf.mxu2  ;;  %v3110_v1 = vpop.f32.mrf.mxu0 }
 0x575   : > { %v3287_v56 = vadd.f32 %v3286_v53, %v3198_v46  ;;  %v3375_v3 = vpop.f32.mrf.mxu3  ;;  %v3111_v5 = vadd.f32 %v3110_v1, %v11796_v34  ;;  %v3199_v21 = vpop.f32.mrf.mxu1 }
 0x577   : > { %v3376_v33 = vadd.f32 %v3375_v3, %v3287_v56  ;;  %v3200_v9 = vadd.f32 %v3199_v21, %v3111_v5 }
 0x579   : > { %v3410_v45 = vpack.c.bf16 %v3376_v33, %v11793_v12 }
 0x57b   : > { %3444 = vst [vmem:[%s11809_s27 + $0xf0] sm:$0xff] %v3410_v45 }
 0x57c   : > { %v3288_v11 = vpop.f32.mrf.mxu2 }
 0x57d   : > { %v3289_v52 = vadd.f32 %v3288_v11, %v3200_v9  ;;  %v3377_v30 = vpop.f32.mrf.mxu3 }
 0x57f   : > { %v3378_v10 = vadd.f32 %v3377_v30, %v3289_v52 }
 0x581   : > { %v3411_v6 = vpack.c.bf16 %v3378_v10, %v11799_v25 }
 0x583   : > { %3445 = vst [vmem:[%s11809_s27 + $0xf8] sm:$0xff] %v3411_v6 }
 0x584 PF: > { %v8353_v12 = vld [vmem:[%s10644_s21 + $0x70] sm:$0xf]  ;;  %v9322_v34 = vld [vmem:[%s10644_s21 + $0x74] sm:$0xf0]  ;;  %v8345_v44 = vld [vmem:[%s10644_s21 + $0x60] sm:$0xf] }
 0x585   : > { %v8417_v22 = vld [vmem:[%s10644_s21 + $0xf0] sm:$0xf]  ;;  %v8354_v32 = vor.u32 %v9322_v34, %v8353_v12  ;;  %v9338_v2 = vld [vmem:[%s10644_s21 + $0xf4] sm:$0xf0]  ;;  %v9320_v0 = vld [vmem:[%s10644_s21 + $0x64] sm:$0xf0] }
 0x586   : > { %v8481_v25 = vld [vmem:[%s10644_s21 + $0x170] sm:$0xf]  ;;  %v9354_v36 = vld [vmem:[%s10644_s21 + $0x174] sm:$0xf0]  ;;  %v8418_v23 = vor.u32 %v9338_v2, %v8417_v22  ;;  %v8409_v37 = vld [vmem:[%s10644_s21 + $0xe0] sm:$0xf]  ;;  %v8346_v40 = vor.u32 %v9320_v0, %v8345_v44 }
 0x587   : > { %v8482_v55 = vor.u32 %v9354_v36, %v8481_v25  ;;  %v8545_v8 = vld [vmem:[%s10644_s21 + $0x1f0] sm:$0xf]  ;;  %v9370_v24 = vld [vmem:[%s10644_s21 + $0x1f4] sm:$0xf0]  ;;  %4034 = vmatpush.bf16.msra.mxu0 %v8354_v32  ;;  %v9336_v49 = vld [vmem:[%s10644_s21 + $0xe4] sm:$0xf0] }
 0x588   : > { %v8546_v28 = vor.u32 %v9370_v24, %v8545_v8  ;;  %4083 = vmatpush.bf16.msra.mxu1 %v8418_v23  ;;  %v8410_v39 = vor.u32 %v9336_v49, %v8409_v37  ;;  %v8473_v54 = vld [vmem:[%s10644_s21 + $0x160] sm:$0xf]  ;;  %v9352_v41 = vld [vmem:[%s10644_s21 + $0x164] sm:$0xf0]  ;;  %v8337_v13 = vld [vmem:[%s10644_s21 + $0x50] sm:$0xf] }
 0x589   : > { %4132 = vmatpush.bf16.msra.mxu2 %v8482_v55  ;;  %v8537_v47 = vld [vmem:[%s10644_s21 + $0x1e0] sm:$0xf]  ;;  %v8474_v20 = vor.u32 %v9352_v41, %v8473_v54  ;;  %v9368_v27 = vld [vmem:[%s10644_s21 + $0x1e4] sm:$0xf0]  ;;  %v9318_v14 = vld [vmem:[%s10644_s21 + $0x54] sm:$0xf0] }
 0x58a   : > { %4181 = vmatpush.bf16.msra.mxu3 %v8546_v28  ;;  %v8538_v4 = vor.u32 %v9368_v27, %v8537_v47  ;;  %v8401_v48 = vld [vmem:[%s10644_s21 + $0xd0] sm:$0xf]  ;;  %v9334_v18 = vld [vmem:[%s10644_s21 + $0xd4] sm:$0xf0]  ;;  %v8338_v15 = vor.u32 %v9318_v14, %v8337_v13  ;;  %v8329_v29 = vld [vmem:[%s10644_s21 + $0x40] sm:$0xf] }
 0x58b   : > { %v8465_v43 = vld [vmem:[%s10644_s21 + $0x150] sm:$0xf]  ;;  %4035 = vmatpush.bf16.msra.mxu0 %v8346_v40  ;;  %v9350_v57 = vld [vmem:[%s10644_s21 + $0x154] sm:$0xf0]  ;;  %v8402_v16 = vor.u32 %v9334_v18, %v8401_v48  ;;  %v9316_v51 = vld [vmem:[%s10644_s21 + $0x44] sm:$0xf0] }
 0x58c   : > { %v8529_v58 = vld [vmem:[%s10644_s21 + $0x1d0] sm:$0xf]  ;;  %v9366_v61 = vld [vmem:[%s10644_s21 + $0x1d4] sm:$0xf0]  ;;  %4084 = vmatpush.bf16.msra.mxu1 %v8410_v39  ;;  %v8466_v60 = vor.u32 %v9350_v57, %v8465_v43  ;;  %v8393_v63 = vld [vmem:[%s10644_s21 + $0xc0] sm:$0xf]  ;;  %v8330_v35 = vor.u32 %v9316_v51, %v8329_v29 }
 0x58d   : > { %4133 = vmatpush.bf16.msra.mxu2 %v8474_v20  ;;  %v8530_v17 = vor.u32 %v9366_v61, %v8529_v58  ;;  %v9332_v59 = vld [vmem:[%s10644_s21 + $0xc4] sm:$0xf0]  ;;  %v8457_v38 = vld [vmem:[%s10644_s21 + $0x140] sm:$0xf]  ;;  %v8321_v19 = vld [vmem:[%s10644_s21 + $0x30] sm:$0xf] }
 0x58e   : > { %4182 = vmatpush.bf16.msra.mxu3 %v8538_v4  ;;  %v9348_v31 = vld [vmem:[%s10644_s21 + $0x144] sm:$0xf0]  ;;  %v8521_v42 = vld [vmem:[%s10644_s21 + $0x1c0] sm:$0xf]  ;;  %v8394_v26 = vor.u32 %v9332_v59, %v8393_v63  ;;  %v9314_v50 = vld [vmem:[%s10644_s21 + $0x34] sm:$0xf0] }
 0x58f   : > { %v9364_v7 = vld [vmem:[%s10644_s21 + $0x1c4] sm:$0xf0]  ;;  %4036 = vmatpush.bf16.msra.mxu0 %v8338_v15  ;;  %v8458_v62 = vor.u32 %v9348_v31, %v8457_v38  ;;  %v8385_v46 = vld [vmem:[%s10644_s21 + $0xb0] sm:$0xf]  ;;  %v9330_v56 = vld [vmem:[%s10644_s21 + $0xb4] sm:$0xf0]  ;;  %v8322_v45 = vor.u32 %v9314_v50, %v8321_v19 }
 0x590   : > { %4085 = vmatpush.bf16.msra.mxu1 %v8402_v16  ;;  %v8522_v53 = vor.u32 %v9364_v7, %v8521_v42  ;;  %v8449_v3 = vld [vmem:[%s10644_s21 + $0x130] sm:$0xf]  ;;  %v9346_v1 = vld [vmem:[%s10644_s21 + $0x134] sm:$0xf0]  ;;  %v8386_v21 = vor.u32 %v9330_v56, %v8385_v46  ;;  %v8313_v11 = vld [vmem:[%s10644_s21 + $0x20] sm:$0xf] }
 0x591   : > { %4134 = vmatpush.bf16.msra.mxu2 %v8466_v60  ;;  %v8513_v33 = vld [vmem:[%s10644_s21 + $0x1b0] sm:$0xf]  ;;  %v9362_v5 = vld [vmem:[%s10644_s21 + $0x1b4] sm:$0xf0]  ;;  %v8450_v9 = vor.u32 %v9346_v1, %v8449_v3  ;;  %v9312_v52 = vld [vmem:[%s10644_s21 + $0x24] sm:$0xf0] }
 0x592   : > { %4183 = vmatpush.bf16.msra.mxu3 %v8530_v17  ;;  %v8377_v30 = vld [vmem:[%s10644_s21 + $0xa0] sm:$0xf]  ;;  %v8514_v10 = vor.u32 %v9362_v5, %v8513_v33  ;;  %v9328_v6 = vld [vmem:[%s10644_s21 + $0xa4] sm:$0xf0]  ;;  %s13754_s25 = sld [smem:[#allocation32_spill]]  ;;  %v8314_v2 = vor.u32 %v9312_v52, %v8313_v11 }
 0x593   : > { %4037 = vmatpush.bf16.msra.mxu0 %v8330_v35  ;;  %v8441_v12 = vld [vmem:[%s10644_s21 + $0x120] sm:$0xf]  ;;  %v9344_v34 = vld [vmem:[%s10644_s21 + $0x124] sm:$0xf0]  ;;  %v8305_v25 = vld [vmem:[%s10644_s21 + $0x10] sm:$0xf]  ;;  %v8378_v23 = vor.u32 %v9328_v6, %v8377_v30 }
 0x594   : > { %4086 = vmatpush.bf16.msra.mxu1 %v8394_v26  ;;  %v8505_v22 = vld [vmem:[%s10644_s21 + $0x1a0] sm:$0xf]  ;;  %v9360_v32 = vld [vmem:[%s10644_s21 + $0x1a4] sm:$0xf0]  ;;  %v9310_v36 = vld [vmem:[%s10644_s21 + $0x14] sm:$0xf0]  ;;  %v8442_v55 = vor.u32 %v9344_v34, %v8441_v12 }
 0x595   : > { %4135 = vmatpush.bf16.msra.mxu2 %v8458_v62  ;;  %v8369_v8 = vld [vmem:[%s10644_s21 + $0x90] sm:$0xf]  ;;  %v9326_v24 = vld [vmem:[%s10644_s21 + $0x94] sm:$0xf0]  ;;  %v8506_v28 = vor.u32 %v9360_v32, %v8505_v22  ;;  %v8297_v40 = vld [vmem:[%s10644_s21] sm:$0xf]  ;;  %v8306_v39 = vor.u32 %v9310_v36, %v8305_v25 }
 0x596   : > { %4184 = vmatpush.bf16.msra.mxu3 %v8522_v53  ;;  %v8433_v44 = vld [vmem:[%s10644_s21 + $0x110] sm:$0xf]  ;;  %v9342_v0 = vld [vmem:[%s10644_s21 + $0x114] sm:$0xf0]  ;;  %v9308_v54 = vld [vmem:[%s10644_s21 + $0x4] sm:$0xf0]  ;;  %v8370_v47 = vor.u32 %v9326_v24, %v8369_v8 }
 0x597   : > { %4038 = vmatpush.bf16.msra.mxu0 %v8322_v45  ;;  %v8497_v37 = vld [vmem:[%s10644_s21 + $0x190] sm:$0xf]  ;;  %v9358_v49 = vld [vmem:[%s10644_s21 + $0x194] sm:$0xf0]  ;;  %v8361_v41 = vld [vmem:[%s10644_s21 + $0x80] sm:$0xf]  ;;  %v8434_v20 = vor.u32 %v9342_v0, %v8433_v44  ;;  %v8298_v61 = vor.u32 %v9308_v54, %v8297_v40 }
 0x598   : > { %4087 = vmatpush.bf16.msra.mxu1 %v8386_v21  ;;  %s8164_s12 = sshll.u32 %s13754_s25, 7  ;;  %v9324_v27 = vld [vmem:[%s10644_s21 + $0x84] sm:$0xf0]  ;;  %v8425_v13 = vld [vmem:[%s10644_s21 + $0x100] sm:$0xf]  ;;  %v8498_v4 = vor.u32 %v9358_v49, %v8497_v37 }
 0x599   : > { %4136 = vmatpush.bf16.msra.mxu2 %v8450_v9  ;;  %s3447_s7 = sshra.s32 %s8164_s12, 3  ;;  %v9340_v14 = vld [vmem:[%s10644_s21 + $0x104] sm:$0xf0]  ;;  %v8489_v48 = vld [vmem:[%s10644_s21 + $0x180] sm:$0xf]  ;;  %v8362_v17 = vor.u32 %v9324_v27, %v8361_v41 }
 0x59a   : > { %4185 = vmatpush.bf16.msra.mxu3 %v8514_v10  ;;  %s9274_s8 = sshll.u32 %s3447_s7, 4  ;;  %v9356_v18 = vld [vmem:[%s10644_s21 + $0x184] sm:$0xf0]  ;;  %v9353_v43 = vld [vmem:[%s10644_s21 + $0x174] sm:$0xf]  ;;  %v8426_v59 = vor.u32 %v9340_v14, %v8425_v13 }
 0x59b   : > { %4039 = vmatpush.bf16.msra.mxu0 %v8314_v2  ;;  %s11996_s28 = scalar_lea.vmem %s10636_s15, %s9274_s8 [#allocation5]  ;;  %v8483_v15 = vld [vmem:[%s10644_s21 + $0x178] sm:$0xf0]  ;;  %v9369_v57 = vld [vmem:[%s10644_s21 + $0x1f4] sm:$0xf]  ;;  %v8490_v7 = vor.u32 %v9356_v18, %v8489_v48  ;;  %v9351_v56 = vld [vmem:[%s10644_s21 + $0x164] sm:$0xf] }
 0x59c   : > { %4088 = vmatpush.bf16.msra.mxu1 %v8378_v23  ;;  %v8547_v58 = vld [vmem:[%s10644_s21 + $0x1f8] sm:$0xf0]  ;;  %v8169_v16 = vld [vmem:[%s11996_s28] sm:$0xf]  ;;  %v9277_v60 = vld [vmem:[%s11996_s28 + $0xc] sm:$0xf0]  ;;  %v8486_v62 = vor.u32 %v9353_v43, %v8483_v15 }
 0x59d   : > { %4137 = vmatpush.bf16.msra.mxu2 %v8442_v55  ;;  %v9275_v29 = vld [vmem:[%s11996_s28 + $0x4] sm:$0xf]  ;;  %v9321_v51 = vld [vmem:[%s10644_s21 + $0x74] sm:$0xf]  ;;  %v8355_v63 = vld [vmem:[%s10644_s21 + $0x78] sm:$0xf0]  ;;  %v12015_v50 = vor.u32 %v9277_v60, %v8169_v16  ;;  %v8550_v46 = vor.u32 %v9369_v57, %v8547_v58 }
 0x59e   : > { %4186 = vmatpush.bf16.msra.mxu3 %v8506_v28  ;;  %v8171_v38 = vld [vmem:[%s11996_s28 + $0x10] sm:$0xf0]  ;;  %v8177_v31 = vld [vmem:[%s11996_s28 + $0x8] sm:$0xf]  ;;  %v9278_v42 = vld [vmem:[%s11996_s28 + $0x14] sm:$0xf0]  ;;  %v8358_v21 = vor.u32 %v9321_v51, %v8355_v63 }
 0x59f   : > { %4040 = vmatpush.bf16.msra.mxu0 %v8306_v39  ;;  %v9276_v35 = vld [vmem:[%s11996_s28 + $0xc] sm:$0xf]  ;;  %v8179_v26 = vld [vmem:[%s11996_s28 + $0x18] sm:$0xf0]  ;;  %v9337_v19 = vld [vmem:[%s10644_s21 + $0xf4] sm:$0xf]  ;;  %v12020_v1 = vor.u32 %v9275_v29, %v8171_v38  ;;  %v12022_v33 = vor.u32 %v9278_v42, %v8177_v31 }
 0x5a0   : > { %4089 = vmatpush.bf16.msra.mxu1 %v8370_v47  ;;  %v8419_v53 = vld [vmem:[%s10644_s21 + $0xf8] sm:$0xf0]  ;;  %v8475_v3 = vld [vmem:[%s10644_s21 + $0x168] sm:$0xf0]  ;;  %v9367_v5 = vld [vmem:[%s10644_s21 + $0x1e4] sm:$0xf]  ;;  %v12025_v45 = vor.u32 %v9276_v35, %v8179_v26 }
 0x5a1   : > { %4138 = vmatpush.bf16.msra.mxu2 %v8434_v20  ;;  %v8539_v9 = vld [vmem:[%s10644_s21 + $0x1e8] sm:$0xf0]  ;;  %v8422_v11 = vor.u32 %v9337_v19, %v8419_v53  ;;  %v8478_v52 = vor.u32 %v9351_v56, %v8475_v3  ;;  %v9319_v30 = vld [vmem:[%s10644_s21 + $0x64] sm:$0xf]  ;;  %v9349_v32 = vld [vmem:[%s10644_s21 + $0x154] sm:$0xf] }
 0x5a2   : > { %4187 = vmatpush.bf16.msra.mxu3 %v8498_v4  ;;  %v8347_v10 = vld [vmem:[%s10644_s21 + $0x68] sm:$0xf0]  ;;  %v8542_v6 = vor.u32 %v9367_v5, %v8539_v9  ;;  %v9335_v12 = vld [vmem:[%s10644_s21 + $0xe4] sm:$0xf]  ;;  %v8467_v2 = vld [vmem:[%s10644_s21 + $0x158] sm:$0xf0] }
 0x5a3   : > { %4041 = vmatpush.bf16.msra.mxu0 %v8298_v61  ;;  %v8411_v34 = vld [vmem:[%s10644_s21 + $0xe8] sm:$0xf0]  ;;  %v8350_v22 = vor.u32 %v9319_v30, %v8347_v10  ;;  %v9317_v25 = vld [vmem:[%s10644_s21 + $0x54] sm:$0xf]  ;;  %v8470_v23 = vor.u32 %v9349_v32, %v8467_v2  ;;  %v8339_v55 = vld [vmem:[%s10644_s21 + $0x58] sm:$0xf0] }
 0x5a4   : > { %4090 = vmatpush.bf16.msra.mxu1 %v8362_v17  ;;  %v8414_v36 = vor.u32 %v9335_v12, %v8411_v34  ;;  %v9365_v8 = vld [vmem:[%s10644_s21 + $0x1d4] sm:$0xf]  ;;  %v8531_v24 = vld [vmem:[%s10644_s21 + $0x1d8] sm:$0xf0]  ;;  %v8342_v37 = vor.u32 %v9317_v25, %v8339_v55  ;;  %v8185_v40 = vld [vmem:[%s11996_s28 + $0x20] sm:$0xf] }
 0x5a5   : > { %4139 = vmatpush.bf16.msra.mxu2 %v8426_v59  ;;  %v8534_v44 = vor.u32 %v9365_v8, %v8531_v24  ;;  %v9333_v28 = vld [vmem:[%s10644_s21 + $0xd4] sm:$0xf]  ;;  %v8403_v0 = vld [vmem:[%s10644_s21 + $0xd8] sm:$0xf0]  ;;  %v9281_v39 = vld [vmem:[%s11996_s28 + $0x2c] sm:$0xf0] }
 0x5a6   : > { %4188 = vmatpush.bf16.msra.mxu3 %v8490_v7  ;;  %4042 = vmatmul.bf16.vlgmr.msra.gmra.mxu0 %v12015_v50  ;;  %v8406_v49 = vor.u32 %v9333_v28, %v8403_v0  ;;  %v9279_v54 = vld [vmem:[%s11996_s28 + $0x24] sm:$0xf]  ;;  %v8187_v41 = vld [vmem:[%s11996_s28 + $0x30] sm:$0xf0]  ;;  %v8193_v47 = vld [vmem:[%s11996_s28 + $0x28] sm:$0xf]  ;;  %v12052_v14 = vor.u32 %v9281_v39, %v8185_v40 }
 0x5a7   : > { %4091 = vmatmul.bf16.vlgmr.msra.gmra.mxu1 %v12020_v1  ;;  %4230 = vmatpush.bf16.msrb.mxu0 %v8358_v21  ;;  %v9282_v20 = vld [vmem:[%s11996_s28 + $0x34] sm:$0xf0]  ;;  %v9280_v27 = vld [vmem:[%s11996_s28 + $0x2c] sm:$0xf]  ;;  %v8195_v13 = vld [vmem:[%s11996_s28 + $0x38] sm:$0xf0]  ;;  %v12054_v4 = vor.u32 %v9279_v54, %v8187_v41 }
 0x5a8   : > { %4140 = vmatmul.bf16.vlgmr.msra.gmra.mxu2 %v12022_v33  ;;  %4279 = vmatpush.bf16.msrb.mxu1 %v8422_v11  ;;  %v12056_v48 = vor.u32 %v9282_v20, %v8193_v47  ;;  %v12058_v18 = vor.u32 %v9280_v27, %v8195_v13  ;;  %v9347_v43 = vld [vmem:[%s10644_s21 + $0x144] sm:$0xf]  ;;  %v8459_v15 = vld [vmem:[%s10644_s21 + $0x148] sm:$0xf0]  ;;  %v8201_v38 = vld [vmem:[%s11996_s28 + $0x40] sm:$0xf] }
 0x5a9   : > { %4328 = vmatpush.bf16.msrb.mxu2 %v8486_v62  ;;  %4189 = vmatmul.bf16.vlgmr.msra.gmra.mxu3 %v12025_v45  ;;  %v9315_v57 = vld [vmem:[%s10644_s21 + $0x44] sm:$0xf]  ;;  %v8462_v58 = vor.u32 %v9347_v43, %v8459_v15  ;;  %v8331_v61 = vld [vmem:[%s10644_s21 + $0x48] sm:$0xf0]  ;;  %v9285_v31 = vld [vmem:[%s11996_s28 + $0x4c] sm:$0xf0] }
 0x5aa   : > { %4377 = vmatpush.bf16.msrb.mxu3 %v8550_v46  ;;  %v9363_v16 = vld [vmem:[%s10644_s21 + $0x1c4] sm:$0xf]  ;;  %v8523_v60 = vld [vmem:[%s10644_s21 + $0x1c8] sm:$0xf0]  ;;  %v8334_v29 = vor.u32 %v9315_v57, %v8331_v61  ;;  %v8203_v7 = vld [vmem:[%s11996_s28 + $0x50] sm:$0xf0]  ;;  %v12080_v46 = vor.u32 %v9285_v31, %v8201_v38 }
 0x5ab   : > { %4231 = vmatpush.bf16.msrb.mxu0 %v8350_v22  ;;  %v8526_v51 = vor.u32 %v9363_v16, %v8523_v60  ;;  %v9331_v63 = vld [vmem:[%s10644_s21 + $0xc4] sm:$0xf]  ;;  %v8395_v17 = vld [vmem:[%s10644_s21 + $0xc8] sm:$0xf0]  ;;  %v8209_v35 = vld [vmem:[%s11996_s28 + $0x48] sm:$0xf] }
 0x5ac   : > { %4280 = vmatpush.bf16.msrb.mxu1 %v8414_v36  ;;  %v8398_v59 = vor.u32 %v9331_v63, %v8395_v17  ;;  %v9283_v42 = vld [vmem:[%s11996_s28 + $0x44] sm:$0xf]  ;;  %v9286_v26 = vld [vmem:[%s11996_s28 + $0x54] sm:$0xf0]  ;;  %v9284_v62 = vld [vmem:[%s11996_s28 + $0x4c] sm:$0xf] }
 0x5ad   : > { %4329 = vmatpush.bf16.msrb.mxu2 %v8478_v52  ;;  %v8211_v19 = vld [vmem:[%s11996_s28 + $0x58] sm:$0xf0]  ;;  %v12082_v53 = vor.u32 %v9283_v42, %v8203_v7  ;;  %v12084_v56 = vor.u32 %v9286_v26, %v8209_v35  ;;  %v9345_v5 = vld [vmem:[%s10644_s21 + $0x134] sm:$0xf]  ;;  %v8217_v2 = vld [vmem:[%s11996_s28 + $0x60] sm:$0xf] }
 0x5ae   : > { %4378 = vmatpush.bf16.msrb.mxu3 %v8542_v6  ;;  %v12086_v3 = vor.u32 %v9284_v62, %v8211_v19  ;;  %v8451_v21 = vld [vmem:[%s10644_s21 + $0x138] sm:$0xf0]  ;;  %v9313_v9 = vld [vmem:[%s10644_s21 + $0x34] sm:$0xf]  ;;  %v9289_v25 = vld [vmem:[%s11996_s28 + $0x6c] sm:$0xf0] }
 0x5af   : > { %4232 = vmatpush.bf16.msrb.mxu0 %v8342_v37  ;;  %v8454_v11 = vor.u32 %v9345_v5, %v8451_v21  ;;  %v8323_v52 = vld [vmem:[%s10644_s21 + $0x38] sm:$0xf0]  ;;  %v9361_v30 = vld [vmem:[%s10644_s21 + $0x1b4] sm:$0xf]  ;;  %v9287_v36 = vld [vmem:[%s11996_s28 + $0x64] sm:$0xf]  ;;  %v12108_v28 = vor.u32 %v9289_v25, %v8217_v2 }
 0x5b0   : > { %4281 = vmatpush.bf16.msrb.mxu1 %v8406_v49  ;;  %v8515_v10 = vld [vmem:[%s10644_s21 + $0x1b8] sm:$0xf0]  ;;  %v8326_v6 = vor.u32 %v9313_v9, %v8323_v52  ;;  %v9329_v34 = vld [vmem:[%s10644_s21 + $0xb4] sm:$0xf]  ;;  %v8225_v55 = vld [vmem:[%s11996_s28 + $0x68] sm:$0xf] }
 0x5b1   : > { %4330 = vmatpush.bf16.msrb.mxu2 %v8470_v23  ;;  %v8518_v12 = vor.u32 %v9361_v30, %v8515_v10  ;;  %v8387_v22 = vld [vmem:[%s10644_s21 + $0xb8] sm:$0xf0]  ;;  %v8219_v23 = vld [vmem:[%s11996_s28 + $0x70] sm:$0xf0]  ;;  %v9290_v8 = vld [vmem:[%s11996_s28 + $0x74] sm:$0xf0] }
 0x5b2   : > { %4379 = vmatpush.bf16.msrb.mxu3 %v8534_v44  ;;  %v8390_v32 = vor.u32 %v9329_v34, %v8387_v22  ;;  %v9288_v24 = vld [vmem:[%s11996_s28 + $0x6c] sm:$0xf]  ;;  %v8227_v44 = vld [vmem:[%s11996_s28 + $0x78] sm:$0xf0]  ;;  %v12110_v0 = vor.u32 %v9287_v36, %v8219_v23  ;;  %v12112_v37 = vor.u32 %v9290_v8, %v8225_v55  ;;  %v9343_v40 = vld [vmem:[%s10644_s21 + $0x124] sm:$0xf] }
 0x5b3   : > { %4233 = vmatpush.bf16.msrb.mxu0 %v8334_v29  ;;  %v12114_v49 = vor.u32 %v9288_v24, %v8227_v44  ;;  %v8443_v39 = vld [vmem:[%s10644_s21 + $0x128] sm:$0xf0]  ;;  %v9311_v54 = vld [vmem:[%s10644_s21 + $0x24] sm:$0xf]  ;;  %v8233_v61 = vld [vmem:[%s11996_s28 + $0x80] sm:$0xf] }
 0x5b4   : > { %4282 = vmatpush.bf16.msrb.mxu1 %v8398_v59  ;;  %v8446_v41 = vor.u32 %v9343_v40, %v8443_v39  ;;  %v8315_v47 = vld [vmem:[%s10644_s21 + $0x28] sm:$0xf0]  ;;  %v9359_v20 = vld [vmem:[%s10644_s21 + $0x1a4] sm:$0xf]  ;;  %v9293_v16 = vld [vmem:[%s11996_s28 + $0x8c] sm:$0xf0] }
 0x5b5   : > { %4331 = vmatpush.bf16.msrb.mxu2 %v8462_v58  ;;  %v8507_v27 = vld [vmem:[%s10644_s21 + $0x1a8] sm:$0xf0]  ;;  %v8318_v13 = vor.u32 %v9311_v54, %v8315_v47  ;;  %v9327_v15 = vld [vmem:[%s10644_s21 + $0xa4] sm:$0xf]  ;;  %v8235_v29 = vld [vmem:[%s11996_s28 + $0x90] sm:$0xf0]  ;;  %v12136_v38 = vor.u32 %v9293_v16, %v8233_v61 }
 0x5b6   : > { %4047 = vmatmul.bf16.gmra.mxu0 %v12052_v14  ;;  %4380 = vmatpush.bf16.msrb.mxu3 %v8526_v51  ;;  %v8510_v43 = vor.u32 %v9359_v20, %v8507_v27  ;;  %v8379_v57 = vld [vmem:[%s10644_s21 + $0xa8] sm:$0xf0]  ;;  %v9291_v60 = vld [vmem:[%s11996_s28 + $0x84] sm:$0xf]  ;;  %v8241_v51 = vld [vmem:[%s11996_s28 + $0x88] sm:$0xf] }
 0x5b7   : > { %4096 = vmatmul.bf16.gmra.mxu1 %v12054_v4  ;;  %4234 = vmatpush.bf16.msrb.mxu0 %v8326_v6  ;;  %v8382_v58 = vor.u32 %v9327_v15, %v8379_v57  ;;  %v9294_v63 = vld [vmem:[%s11996_s28 + $0x94] sm:$0xf0]  ;;  %v9292_v17 = vld [vmem:[%s11996_s28 + $0x8c] sm:$0xf]  ;;  %v8243_v59 = vld [vmem:[%s11996_s28 + $0x98] sm:$0xf0]  ;;  %v12138_v31 = vor.u32 %v9291_v60, %v8235_v29 }
 0x5b8   : > { %4145 = vmatmul.bf16.gmra.mxu2 %v12056_v48  ;;  %4283 = vmatpush.bf16.msrb.mxu1 %v8390_v32  ;;  %v12140_v42 = vor.u32 %v9294_v63, %v8241_v51  ;;  %v12142_v7 = vor.u32 %v9292_v17, %v8243_v59  ;;  %v9341_v35 = vld [vmem:[%s10644_s21 + $0x114] sm:$0xf]  ;;  %v8435_v26 = vld [vmem:[%s10644_s21 + $0x118] sm:$0xf0]  ;;  %v9297_v34 = vld [vmem:[%s11996_s28 + $0xac] sm:$0xf0] }
 0x5b9   : > { %4194 = vmatmul.bf16.gmra.mxu3 %v12058_v18  ;;  %4332 = vmatpush.bf16.msrb.mxu2 %v8454_v11  ;;  %v9309_v62 = vld [vmem:[%s10644_s21 + $0x14] sm:$0xf]  ;;  %v8438_v19 = vor.u32 %v9341_v35, %v8435_v26  ;;  %v8307_v5 = vld [vmem:[%s10644_s21 + $0x18] sm:$0xf0]  ;;  %v9295_v22 = vld [vmem:[%s11996_s28 + $0xa4] sm:$0xf] }
 0x5ba   : > { %4381 = vmatpush.bf16.msrb.mxu3 %v8518_v12  ;;  %v9357_v21 = vld [vmem:[%s10644_s21 + $0x194] sm:$0xf]  ;;  %v8499_v9 = vld [vmem:[%s10644_s21 + $0x198] sm:$0xf0]  ;;  %v8310_v11 = vor.u32 %v9309_v62, %v8307_v5  ;;  %v8249_v12 = vld [vmem:[%s11996_s28 + $0xa0] sm:$0xf] }
 0x5bb   : > { %4235 = vmatpush.bf16.msrb.mxu0 %v8318_v13  ;;  %v8502_v52 = vor.u32 %v9357_v21, %v8499_v9  ;;  %v9325_v30 = vld [vmem:[%s10644_s21 + $0x94] sm:$0xf]  ;;  %v8371_v10 = vld [vmem:[%s10644_s21 + $0x98] sm:$0xf0]  ;;  %v8257_v2 = vld [vmem:[%s11996_s28 + $0xa8] sm:$0xf]  ;;  %v12164_v55 = vor.u32 %v9297_v34, %v8249_v12 }
 0x5bc   : > { %4284 = vmatpush.bf16.msrb.mxu1 %v8382_v58  ;;  %v8374_v6 = vor.u32 %v9325_v30, %v8371_v10  ;;  %v8251_v32 = vld [vmem:[%s11996_s28 + $0xb0] sm:$0xf0]  ;;  %v9298_v25 = vld [vmem:[%s11996_s28 + $0xb4] sm:$0xf0]  ;;  %v9296_v36 = vld [vmem:[%s11996_s28 + $0xac] sm:$0xf] }
 0x5bd   : > { %4333 = vmatpush.bf16.msrb.mxu2 %v8446_v41  ;;  %v8259_v23 = vld [vmem:[%s11996_s28 + $0xb8] sm:$0xf0]  ;;  %v12166_v8 = vor.u32 %v9295_v22, %v8251_v32  ;;  %v12168_v24 = vor.u32 %v9298_v25, %v8257_v2  ;;  %v9339_v40 = vld [vmem:[%s10644_s21 + $0x104] sm:$0xf]  ;;  %v8427_v39 = vld [vmem:[%s10644_s21 + $0x108] sm:$0xf0] }
 0x5be   : > { %4382 = vmatpush.bf16.msrb.mxu3 %v8510_v43  ;;  %v12170_v44 = vor.u32 %v9296_v36, %v8259_v23  ;;  %v9307_v54 = vld [vmem:[%s10644_s21 + $0x4] sm:$0xf]  ;;  %v8430_v41 = vor.u32 %v9339_v40, %v8427_v39  ;;  %v8299_v47 = vld [vmem:[%s10644_s21 + $0x8] sm:$0xf0]  ;;  %v8265_v61 = vld [vmem:[%s11996_s28 + $0xc0] sm:$0xf] }
 0x5bf   : > { %4236 = vmatpush.bf16.msrb.mxu0 %v8310_v11  ;;  %v9355_v20 = vld [vmem:[%s10644_s21 + $0x184] sm:$0xf]  ;;  %v8491_v27 = vld [vmem:[%s10644_s21 + $0x188] sm:$0xf0]  ;;  %v8302_v13 = vor.u32 %v9307_v54, %v8299_v47  ;;  %v9301_v16 = vld [vmem:[%s11996_s28 + $0xcc] sm:$0xf0] }
 0x5c0   : > { %4285 = vmatpush.bf16.msrb.mxu1 %v8374_v6  ;;  %v8494_v43 = vor.u32 %v9355_v20, %v8491_v27  ;;  %v9323_v15 = vld [vmem:[%s10644_s21 + $0x84] sm:$0xf]  ;;  %v8363_v57 = vld [vmem:[%s10644_s21 + $0x88] sm:$0xf0]  ;;  %v8267_v29 = vld [vmem:[%s11996_s28 + $0xd0] sm:$0xf0]  ;;  %v12192_v35 = vor.u32 %v9301_v16, %v8265_v61 }
 0x5c1   : > { %4334 = vmatpush.bf16.msrb.mxu2 %v8438_v19  ;;  %v8366_v58 = vor.u32 %v9323_v15, %v8363_v57  ;;  %v9299_v60 = vld [vmem:[%s11996_s28 + $0xc4] sm:$0xf]  ;;  %v8273_v51 = vld [vmem:[%s11996_s28 + $0xc8] sm:$0xf]  ;;  %v9302_v63 = vld [vmem:[%s11996_s28 + $0xd4] sm:$0xf0] }
 0x5c2   : > { %4383 = vmatpush.bf16.msrb.mxu3 %v8502_v52  ;;  %v9300_v17 = vld [vmem:[%s11996_s28 + $0xcc] sm:$0xf]  ;;  %v8275_v59 = vld [vmem:[%s11996_s28 + $0xd8] sm:$0xf0]  ;;  %v12194_v26 = vor.u32 %v9299_v60, %v8267_v29  ;;  %v12196_v62 = vor.u32 %v9302_v63, %v8273_v51  ;;  %v8281_v5 = vld [vmem:[%s11996_s28 + $0xe0] sm:$0xf] }
 0x5c3   : > { %4237 = vmatpush.bf16.msrb.mxu0 %v8302_v13  ;;  %v12198_v19 = vor.u32 %v9300_v17, %v8275_v59  ;;  %s13755_s15 = sld [smem:[#allocation31_spill]]  ;;  %v9305_v21 = vld [vmem:[%s11996_s28 + $0xec] sm:$0xf0]  ;;  %v9303_v9 = vld [vmem:[%s11996_s28 + $0xe4] sm:$0xf] }
 0x5c4   : > { %4286 = vmatpush.bf16.msrb.mxu1 %v8366_v58  ;;  %v8283_v11 = vld [vmem:[%s11996_s28 + $0xf0] sm:$0xf0]  ;;  %v8289_v52 = vld [vmem:[%s11996_s28 + $0xe8] sm:$0xf]  ;;  %v9306_v30 = vld [vmem:[%s11996_s28 + $0xf4] sm:$0xf0]  ;;  %v12212_v12 = vor.u32 %v9305_v21, %v8281_v5 }
 0x5c5   : > { %4335 = vmatpush.bf16.msrb.mxu2 %v8430_v41  ;;  %v9304_v10 = vld [vmem:[%s11996_s28 + $0xec] sm:$0xf]  ;;  %v8291_v6 = vld [vmem:[%s11996_s28 + $0xf8] sm:$0xf0]  ;;  %v12214_v34 = vor.u32 %v9303_v9, %v8283_v11  ;;  %v12216_v22 = vor.u32 %v9306_v30, %v8289_v52  ;;  %v12227_v2 = vld [vmem:[%s526_s0] sm:$0x3] }
 0x5c6   : > { %4052 = vmatmul.bf16.gmra.mxu0 %v12080_v46  ;;  %4384 = vmatpush.bf16.msrb.mxu3 %v8494_v43  ;;  %v12218_v32 = vor.u32 %v9304_v10, %v8291_v6  ;;  %v12238_v54 = vperm.slane %v12227_v2, 0 }
 0x5c7   : > { %4101 = vmatmul.bf16.gmra.mxu1 %v12082_v53 }
 0x5c8   : > { %4150 = vmatmul.bf16.gmra.mxu2 %v12084_v56 }
 0x5c9   : > { %4199 = vmatmul.bf16.gmra.mxu3 %v12086_v3  ;;  %s9371_s21 = sshll.u32 %s13755_s15, 8  ;;  %p9066_p10 = scmp.ne.s32.totalorder %s13755_s15, 1 }
 0x5ca   : > { %s12231_s20 = scalar_lea.vmem [#allocation3], %s9371_s21  ;;  %s12467_s30 = scalar_lea.vmem [#allocation4], %s9371_s21 }
 0x5cb   : > { %v8584_v25 = vld [vmem:[%s12231_s20 + $0x70] sm:$0xf]  ;;  %v9387_v36 = vld [vmem:[%s12231_s20 + $0x74] sm:$0xf0]  ;;  %v8580_v51 = vld [vmem:[%s12231_s20 + $0x60] sm:$0xf] }
 0x5cc   : > { %v8616_v23 = vld [vmem:[%s12231_s20 + $0xf0] sm:$0xf]  ;;  %v8585_v40 = vor.u32 %v9387_v36, %v8584_v25  ;;  %v9403_v39 = vld [vmem:[%s12231_s20 + $0xf4] sm:$0xf0]  ;;  %v9385_v63 = vld [vmem:[%s12231_s20 + $0x64] sm:$0xf0] }
 0x5cd   : > { %v8617_v41 = vor.u32 %v9403_v39, %v8616_v23  ;;  %v8581_v17 = vor.u32 %v9385_v63, %v8580_v51  ;;  %v9401_v59 = vld [vmem:[%s12231_s20 + $0xe4] sm:$0xf0] }
 0x5ce   : > { %4655 = vmatpush.bf16.xpose.msra.mxu0 %v8585_v40 }
 0x5cf   : > { %4704 = vmatpush.bf16.xpose.msra.mxu1 %v8617_v41 }
 0x5d6   : > { %4057 = vmatmul.bf16.gmra.mxu0 %v12108_v28 }
 0x5d7   : > { %4106 = vmatmul.bf16.gmra.mxu1 %v12110_v0  ;;  %4656 = vmatpush.bf16.xpose.msra.mxu0 %v8581_v17 }
 0x5d8   : > { %4155 = vmatmul.bf16.gmra.mxu2 %v12112_v37 }
 0x5d9   : > { %4204 = vmatmul.bf16.gmra.mxu3 %v12114_v49 }
 0x5e6   : > { %4062 = vmatmul.bf16.gmra.mxu0 %v12136_v38 }
 0x5e7   : > { %4111 = vmatmul.bf16.gmra.mxu1 %v12138_v31 }
 0x5e8   : > { %4160 = vmatmul.bf16.gmra.mxu2 %v12140_v42 }
 0x5e9   : > { %4209 = vmatmul.bf16.gmra.mxu3 %v12142_v7 }
 0x5f6   : > { %4067 = vmatmul.bf16.gmra.mxu0 %v12164_v55 }
 0x5f7   : > { %4116 = vmatmul.bf16.gmra.mxu1 %v12166_v8 }
 0x5f8   : > { %4165 = vmatmul.bf16.gmra.mxu2 %v12168_v24 }
 0x5f9   : > { %4214 = vmatmul.bf16.gmra.mxu3 %v12170_v44 }
 0x606   : > { %4072 = vmatmul.bf16.gmra.mxu0 %v12192_v35 }
 0x607   : > { %4121 = vmatmul.bf16.gmra.mxu1 %v12194_v26 }
 0x608   : > { %4170 = vmatmul.bf16.gmra.mxu2 %v12196_v62 }
 0x609   : > { %4219 = vmatmul.bf16.gmra.mxu3 %v12198_v19 }
 0x616   : > { %4077 = vmatmul.bf16.gmra.mxu0 %v12212_v12 }
 0x617   : > { %4126 = vmatmul.bf16.gmra.mxu1 %v12214_v34 }
 0x618   : > { %4175 = vmatmul.bf16.gmra.mxu2 %v12216_v22 }
 0x619   : > { %4224 = vmatmul.bf16.gmra.mxu3 %v12218_v32 }
 0x623   : > { %v4043_v47 = vpop.f32.mrf.mxu0 }
 0x624   : > { %v4044_v20 = vadd.f32 %v4043_v47, %v12238_v54  ;;  %v4092_v27 = vpop.f32.mrf.mxu1  ;;  %v8576_v47 = vld [vmem:[%s12231_s20 + $0x50] sm:$0xf] }
 0x626   : > { %v4093_v13 = vadd.f32 %v4092_v27, %v4044_v20  ;;  %4238 = vmatmul.bf16.vlgmr.msrb.gmra.mxu0 %v12015_v50  ;;  %v8612_v50 = vld [vmem:[%s12231_s20 + $0xe0] sm:$0xf]  ;;  %v9383_v20 = vld [vmem:[%s12231_s20 + $0x54] sm:$0xf0] }
 0x627   : > { %4287 = vmatmul.bf16.vlgmr.msrb.gmra.mxu1 %v12020_v1  ;;  %v8613_v1 = vor.u32 %v9401_v59, %v8612_v50  ;;  %v8577_v27 = vor.u32 %v9383_v20, %v8576_v47 }
 0x628   : > { %4336 = vmatmul.bf16.vlgmr.msrb.gmra.mxu2 %v12022_v33 }
 0x629   : > { %4385 = vmatmul.bf16.vlgmr.msrb.gmra.mxu3 %v12025_v45  ;;  %4705 = vmatpush.bf16.xpose.msra.mxu1 %v8613_v1 }
 0x62a   : > { %4657 = vmatpush.bf16.xpose.msra.mxu0 %v8577_v27 }
 0x62b   : > { %v4141_v43 = vpop.f32.mrf.mxu2  ;;  %v4045_v58 = vpop.f32.mrf.mxu0 }
 0x62c   : > { %v4142_v15 = vadd.f32 %v4141_v43, %v4093_v13  ;;  %v4190_v57 = vpop.f32.mrf.mxu3  ;;  %v4046_v61 = vadd.f32 %v4045_v58, %v12238_v54  ;;  %v4094_v16 = vpop.f32.mrf.mxu1  ;;  %v9399_v13 = vld [vmem:[%s12231_s20 + $0xd4] sm:$0xf0] }
 0x62e   : > { %v12246_v60 = vadd.f32 %v4190_v57, %v4142_v15  ;;  %v4095_v29 = vadd.f32 %v4094_v16, %v4046_v61 }
 0x633   : > { %v4143_v33 = vpop.f32.mrf.mxu2  ;;  %v4048_v21 = vpop.f32.mrf.mxu0 }
 0x634   : > { %v4144_v45 = vadd.f32 %v4143_v33, %v4095_v29  ;;  %v4192_v5 = vpop.f32.mrf.mxu3  ;;  %v4049_v9 = vadd.f32 %v4048_v21, %v12238_v54  ;;  %v4097_v11 = vpop.f32.mrf.mxu1 }
 0x636   : > { %v12253_v52 = vadd.f32 %v4192_v5, %v4144_v45  ;;  %v4098_v30 = vadd.f32 %v4097_v11, %v4049_v9  ;;  %4243 = vmatmul.bf16.gmra.mxu0 %v12052_v14  ;;  %v8608_v14 = vld [vmem:[%s12231_s20 + $0xd0] sm:$0xf]  ;;  %v8572_v45 = vld [vmem:[%s12231_s20 + $0x40] sm:$0xf]  ;;  %v9381_v5 = vld [vmem:[%s12231_s20 + $0x44] sm:$0xf0] }
 0x637   : > { %4292 = vmatmul.bf16.gmra.mxu1 %v12054_v4  ;;  %v8609_v4 = vor.u32 %v9399_v13, %v8608_v14  ;;  %v8573_v21 = vor.u32 %v9381_v5, %v8572_v45  ;;  %v9397_v9 = vld [vmem:[%s12231_s20 + $0xc4] sm:$0xf0]  ;;  %v8564_v5 = vld [vmem:[%s12231_s20 + $0x20] sm:$0xf] }
 0x638   : > { %4341 = vmatmul.bf16.gmra.mxu2 %v12056_v48 }
 0x639   : > { %4390 = vmatmul.bf16.gmra.mxu3 %v12058_v18  ;;  %4706 = vmatpush.bf16.xpose.msra.mxu1 %v8609_v4  ;;  %v8568_v4 = vld [vmem:[%s12231_s20 + $0x30] sm:$0xf] }
 0x63a   : > { %4658 = vmatpush.bf16.xpose.msra.mxu0 %v8573_v21  ;;  %v8596_v21 = vld [vmem:[%s12231_s20 + $0xa0] sm:$0xf] }
 0x63b   : > { %v4146_v10 = vpop.f32.mrf.mxu2  ;;  %v4050_v36 = vpop.f32.mrf.mxu0 }
 0x63c   : > { %v4147_v6 = vadd.f32 %v4146_v10, %v4098_v30  ;;  %v4195_v25 = vpop.f32.mrf.mxu3  ;;  %v4051_v23 = vadd.f32 %v4050_v36, %v12238_v54  ;;  %v4099_v40 = vpop.f32.mrf.mxu1 }
 0x63e   : > { %v12260_v39 = vadd.f32 %v4195_v25, %v4147_v6  ;;  %v4100_v41 = vadd.f32 %v4099_v40, %v4051_v23 }
 0x643   : > { %v4148_v48 = vpop.f32.mrf.mxu2  ;;  %v4053_v15 = vpop.f32.mrf.mxu0 }
 0x644   : > { %v4149_v18 = vadd.f32 %v4148_v48, %v4100_v41  ;;  %v4197_v43 = vpop.f32.mrf.mxu3  ;;  %v4054_v57 = vadd.f32 %v4053_v15, %v12238_v54  ;;  %v4102_v58 = vpop.f32.mrf.mxu1  ;;  %v9379_v48 = vld [vmem:[%s12231_s20 + $0x34] sm:$0xf0] }
 0x646   : > { %v12267_v61 = vadd.f32 %v4197_v43, %v4149_v18  ;;  %v4103_v16 = vadd.f32 %v4102_v58, %v4054_v57  ;;  %4248 = vmatmul.bf16.gmra.mxu0 %v12080_v46  ;;  %v8604_v46 = vld [vmem:[%s12231_s20 + $0xc0] sm:$0xf]  ;;  %v8569_v18 = vor.u32 %v9379_v48, %v8568_v4  ;;  %v9395_v43 = vld [vmem:[%s12231_s20 + $0xb4] sm:$0xf0] }
 0x647   : > { %4297 = vmatmul.bf16.gmra.mxu1 %v12082_v53  ;;  %v8605_v53 = vor.u32 %v9397_v9, %v8604_v46  ;;  %v9377_v46 = vld [vmem:[%s12231_s20 + $0x24] sm:$0xf0] }
 0x648   : > { %4346 = vmatmul.bf16.gmra.mxu2 %v12084_v56  ;;  %4659 = vmatpush.bf16.xpose.msra.mxu0 %v8569_v18  ;;  %v8565_v9 = vor.u32 %v9377_v46, %v8564_v5 }
 0x649   : > { %4395 = vmatmul.bf16.gmra.mxu3 %v12086_v3  ;;  %4707 = vmatpush.bf16.xpose.msra.mxu1 %v8605_v53 }
 0x64b   : > { %v4151_v29 = vpop.f32.mrf.mxu2  ;;  %v4055_v50 = vpop.f32.mrf.mxu0 }
 0x64c   : > { %v4152_v51 = vadd.f32 %v4151_v29, %v4103_v16  ;;  %v4200_v63 = vpop.f32.mrf.mxu3  ;;  %v4056_v17 = vadd.f32 %v4055_v50, %v12238_v54  ;;  %v4104_v59 = vpop.f32.mrf.mxu1 }
 0x64e   : > { %v12274_v1 = vadd.f32 %v4200_v63, %v4152_v51  ;;  %v4105_v33 = vadd.f32 %v4104_v59, %v4056_v17 }
 0x650   : > { %4660 = vmatpush.bf16.xpose.msra.mxu0 %v8565_v9 }
 0x653   : > { %v4153_v56 = vpop.f32.mrf.mxu2  ;;  %v4058_v30 = vpop.f32.mrf.mxu0 }
 0x654   : > { %v4154_v3 = vadd.f32 %v4153_v56, %v4105_v33  ;;  %v4202_v11 = vpop.f32.mrf.mxu3  ;;  %v4059_v10 = vadd.f32 %v4058_v30, %v12238_v54  ;;  %v4107_v6 = vpop.f32.mrf.mxu1 }
 0x656   : > { %v12281_v25 = vadd.f32 %v4202_v11, %v4154_v3  ;;  %v4108_v36 = vadd.f32 %v4107_v6, %v4059_v10  ;;  %4253 = vmatmul.bf16.gmra.mxu0 %v12108_v28  ;;  %v8600_v28 = vld [vmem:[%s12231_s20 + $0xb0] sm:$0xf] }
 0x657   : > { %4302 = vmatmul.bf16.gmra.mxu1 %v12110_v0  ;;  %v8601_v0 = vor.u32 %v9395_v43, %v8600_v28 }
 0x658   : > { %4351 = vmatmul.bf16.gmra.mxu2 %v12112_v37 }
 0x659   : > { %4400 = vmatmul.bf16.gmra.mxu3 %v12114_v49  ;;  %4708 = vmatpush.bf16.xpose.msra.mxu1 %v8601_v0 }
 0x65b   : > { %v4156_v23 = vpop.f32.mrf.mxu2  ;;  %v4060_v47 = vpop.f32.mrf.mxu0 }
 0x65c   : > { %v4157_v40 = vadd.f32 %v4156_v23, %v4108_v36  ;;  %v4205_v41 = vpop.f32.mrf.mxu3  ;;  %v4061_v20 = vadd.f32 %v4060_v47, %v12238_v54  ;;  %v4109_v14 = vpop.f32.mrf.mxu1  ;;  %v9375_v47 = vld [vmem:[%s12231_s20 + $0x14] sm:$0xf0] }
 0x65e   : > { %v12288_v27 = vadd.f32 %v4205_v41, %v4157_v40  ;;  %v4110_v13 = vadd.f32 %v4109_v14, %v4061_v20  ;;  %v8560_v41 = vld [vmem:[%s12231_s20 + $0x10] sm:$0xf] }
 0x65f   : > { %v8592_v20 = vld [vmem:[%s12231_s20 + $0x90] sm:$0xf]  ;;  %v8561_v14 = vor.u32 %v9375_v47, %v8560_v41 }
 0x661   : > { %4661 = vmatpush.bf16.xpose.msra.mxu0 %v8561_v14 }
 0x663   : > { %v4158_v37 = vpop.f32.mrf.mxu2  ;;  %v4063_v57 = vpop.f32.mrf.mxu0 }
 0x664   : > { %v4159_v49 = vadd.f32 %v4158_v37, %v4110_v13  ;;  %v4207_v15 = vpop.f32.mrf.mxu3  ;;  %v4064_v58 = vadd.f32 %v4063_v57, %v12238_v54  ;;  %v4112_v16 = vpop.f32.mrf.mxu1  ;;  %v8556_v57 = vld [vmem:[%s12231_s20] sm:$0xf] }
 0x666   : > { %v12295_v29 = vadd.f32 %v4207_v15, %v4159_v49  ;;  %v4113_v51 = vadd.f32 %v4112_v16, %v4064_v58  ;;  %4258 = vmatmul.bf16.gmra.mxu0 %v12136_v38  ;;  %v9393_v38 = vld [vmem:[%s12231_s20 + $0xa4] sm:$0xf0]  ;;  %v8588_v16 = vld [vmem:[%s12231_s20 + $0x80] sm:$0xf] }
 0x667   : > { %4307 = vmatmul.bf16.gmra.mxu1 %v12138_v31  ;;  %v8597_v53 = vor.u32 %v9393_v38, %v8596_v21  ;;  %v9373_v58 = vld [vmem:[%s12231_s20 + $0x4] sm:$0xf0] }
 0x668   : > { %4356 = vmatmul.bf16.gmra.mxu2 %v12140_v42 }
 0x669   : > { %4405 = vmatmul.bf16.gmra.mxu3 %v12142_v7  ;;  %4709 = vmatpush.bf16.xpose.msra.mxu1 %v8597_v53 }
 0x66b   : > { %v4161_v63 = vpop.f32.mrf.mxu2  ;;  %v12301_v59 = vpop.f32.mrf.mxu0 }
 0x66c   : > { %v4162_v50 = vadd.f32 %v4161_v63, %v4113_v51  ;;  %v4210_v17 = vpop.f32.mrf.mxu3  ;;  %v12303_v33 = vpop.f32.mrf.mxu1 }
 0x66e   : > { %v12305_v45 = vadd.f32 %v4210_v17, %v4162_v50 }
 0x673   : > { %v12311_v31 = vpop.f32.mrf.mxu2  ;;  %v4068_v7 = vpop.f32.mrf.mxu0 }
 0x674   : > { %v12313_v42 = vpop.f32.mrf.mxu3  ;;  %v4069_v56 = vadd.f32 %v4068_v7, %v12238_v54  ;;  %v4117_v3 = vpop.f32.mrf.mxu1 }
 0x676   : > { %v4118_v11 = vadd.f32 %v4117_v3, %v4069_v56  ;;  %4263 = vmatmul.bf16.gmra.mxu0 %v12164_v55  ;;  %v9391_v55 = vld [vmem:[%s12231_s20 + $0x94] sm:$0xf0]  ;;  %v12365_v56 = vperm.slane %v12227_v2, 1  ;;  %v8710_v3 = vld [vmem:[%s12231_s20 + $0x78] sm:$0xf0] }
 0x677   : > { %4312 = vmatmul.bf16.gmra.mxu1 %v12166_v8  ;;  %v8593_v13 = vor.u32 %v9391_v55, %v8592_v20 }
 0x678   : > { %4361 = vmatmul.bf16.gmra.mxu2 %v12168_v24 }
 0x679   : > { %4410 = vmatmul.bf16.gmra.mxu3 %v12170_v44  ;;  %4710 = vmatpush.bf16.xpose.msra.mxu1 %v8593_v13 }
 0x67b   : > { %v4166_v30 = vpop.f32.mrf.mxu2  ;;  %v12320_v36 = vpop.f32.mrf.mxu0 }
 0x67c   : > { %v4167_v10 = vadd.f32 %v4166_v30, %v4118_v11  ;;  %v4215_v6 = vpop.f32.mrf.mxu3  ;;  %v12322_v23 = vpop.f32.mrf.mxu1  ;;  %v9402_v11 = vld [vmem:[%s12231_s20 + $0xf4] sm:$0xf]  ;;  %v8742_v30 = vld [vmem:[%s12231_s20 + $0xf8] sm:$0xf0] }
 0x67e   : > { %v12324_v40 = vadd.f32 %v4215_v6, %v4167_v10  ;;  %v8745_v6 = vor.u32 %v9402_v11, %v8742_v30 }
 0x683   : > { %v12330_v8 = vpop.f32.mrf.mxu2  ;;  %v4073_v44 = vpop.f32.mrf.mxu0 }
 0x684   : > { %v12332_v24 = vpop.f32.mrf.mxu3  ;;  %v4074_v4 = vadd.f32 %v4073_v44, %v12238_v54  ;;  %v4122_v48 = vpop.f32.mrf.mxu1 }
 0x686   : > { %v4123_v28 = vadd.f32 %v4122_v48, %v4074_v4  ;;  %4268 = vmatmul.bf16.gmra.mxu0 %v12192_v35  ;;  %v8557_v35 = vor.u32 %v9373_v58, %v8556_v57 }
 0x687   : > { %4317 = vmatmul.bf16.gmra.mxu1 %v12194_v26  ;;  %v9389_v26 = vld [vmem:[%s12231_s20 + $0x84] sm:$0xf0] }
 0x688   : > { %4366 = vmatmul.bf16.gmra.mxu2 %v12196_v62  ;;  %4662 = vmatpush.bf16.xpose.msra.mxu0 %v8557_v35 }
 0x689   : > { %4415 = vmatmul.bf16.gmra.mxu3 %v12198_v19  ;;  %v8589_v19 = vor.u32 %v9389_v26, %v8588_v16  ;;  %v8738_v16 = vld [vmem:[%s12231_s20 + $0xe8] sm:$0xf0] }
 0x68b   : > { %v4171_v18 = vpop.f32.mrf.mxu2  ;;  %v12339_v37 = vpop.f32.mrf.mxu0  ;;  %4711 = vmatpush.bf16.xpose.msra.mxu1 %v8589_v19 }
 0x68c   : > { %v4172_v43 = vadd.f32 %v4171_v18, %v4123_v28  ;;  %v4220_v0 = vpop.f32.mrf.mxu3  ;;  %v12341_v49 = vpop.f32.mrf.mxu1  ;;  %v9384_v18 = vld [vmem:[%s12231_s20 + $0x64] sm:$0xf] }
 0x68e   : > { %v12343_v15 = vadd.f32 %v4220_v0, %v4172_v43  ;;  %v8706_v43 = vld [vmem:[%s12231_s20 + $0x68] sm:$0xf0]  ;;  %v9400_v0 = vld [vmem:[%s12231_s20 + $0xe4] sm:$0xf] }
 0x68f   : > { %v8709_v58 = vor.u32 %v9384_v18, %v8706_v43  ;;  %v8741_v19 = vor.u32 %v9400_v0, %v8738_v16 }
 0x693   : > { %v12348_v51 = vpop.f32.mrf.mxu2  ;;  %v4078_v62 = vpop.f32.mrf.mxu0  ;;  %5348 = vmatpush.bf16.xpose.msrb.mxu1 %v8745_v6 }
 0x694   : > { %v12351_v63 = vpop.f32.mrf.mxu3  ;;  %v4079_v50 = vadd.f32 %v4078_v62, %v12238_v54  ;;  %v4127_v17 = vpop.f32.mrf.mxu1 }
 0x696   : > { %v4128_v5 = vadd.f32 %v4127_v17, %v4079_v50  ;;  %4273 = vmatmul.bf16.gmra.mxu0 %v12212_v12  ;;  %v9386_v12 = vld [vmem:[%s12231_s20 + $0x74] sm:$0xf] }
 0x697   : > { %4322 = vmatmul.bf16.gmra.mxu1 %v12214_v34 }
 0x698   : > { %4371 = vmatmul.bf16.gmra.mxu2 %v12216_v22  ;;  %v8713_v22 = vor.u32 %v9386_v12, %v8710_v3 }
 0x699   : > { %4420 = vmatmul.bf16.gmra.mxu3 %v12218_v32 }
 0x69a   : > { %5299 = vmatpush.bf16.xpose.msrb.mxu0 %v8713_v22 }
 0x69b   : > { %v4176_v46 = vpop.f32.mrf.mxu2  ;;  %v12358_v38 = vpop.f32.mrf.mxu0  ;;  %5349 = vmatpush.bf16.xpose.msrb.mxu1 %v8741_v19 }
 0x69c   : > { %v4177_v21 = vadd.f32 %v4176_v46, %v4128_v5  ;;  %v4225_v9 = vpop.f32.mrf.mxu3  ;;  %v12360_v53 = vpop.f32.mrf.mxu1 }
 0x69e   : > { %v12362_v7 = vadd.f32 %v4225_v9, %v4177_v21 }
 0x6a2   : > { %5300 = vmatpush.bf16.xpose.msrb.mxu0 %v8709_v58 }
 0x6a3   : > { %v12370_v34 = vpop.f32.mrf.mxu2  ;;  %v4239_v10 = vpop.f32.mrf.mxu0 }
 0x6a4   : > { %v12373_v32 = vpop.f32.mrf.mxu3  ;;  %v4240_v41 = vadd.f32 %v4239_v10, %v12365_v56  ;;  %v4288_v47 = vpop.f32.mrf.mxu1 }
 0x6a6   : > { %v4289_v2 = vadd.f32 %v4288_v47, %v4240_v41 }
 0x6ab   : > { %v4337_v20 = vpop.f32.mrf.mxu2  ;;  %v4241_v55 = vpop.f32.mrf.mxu0 }
 0x6ac   : > { %v4386_v14 = vpop.f32.mrf.mxu3  ;;  %v4338_v13 = vadd.f32 %v4337_v20, %v4289_v2  ;;  %v4290_v44 = vpop.f32.mrf.mxu1  ;;  %v4242_v4 = vadd.f32 %v4241_v55, %v12365_v56  ;;  %v9382_v55 = vld [vmem:[%s12231_s20 + $0x54] sm:$0xf] }
 0x6ae   : > { %v4387_v48 = vadd.f32 %v4386_v14, %v4338_v13  ;;  %v4291_v28 = vadd.f32 %v4290_v44, %v4242_v4  ;;  %v8702_v13 = vld [vmem:[%s12231_s20 + $0x58] sm:$0xf0]  ;;  %v9398_v44 = vld [vmem:[%s12231_s20 + $0xd4] sm:$0xf] }
 0x6b0   : > { %v4426_v50 = vpack.c.bf16 %v4387_v48, %v12246_v60  ;;  %v8705_v48 = vor.u32 %v9382_v55, %v8702_v13 }
 0x6b2   : > { %v4527_v9 = vunpack.c.l.b16 %v4426_v50  ;;  %v5203_v12 = vunpack.c.h.b16 %v4426_v50  ;;  %5301 = vmatpush.bf16.xpose.msrb.mxu0 %v8705_v48 }
 0x6b3   : > { %v4339_v57 = vpop.f32.mrf.mxu2  ;;  %v4244_v62 = vpop.f32.mrf.mxu0 }
 0x6b4   : > { %v4340_v35 = vadd.f32 %v4339_v57, %v4291_v28  ;;  %v4388_v26 = vpop.f32.mrf.mxu3  ;;  %v4293_v17 = vpop.f32.mrf.mxu1  ;;  %v4245_v46 = vadd.f32 %v4244_v62, %v12365_v56  ;;  %v8734_v28 = vld [vmem:[%s12231_s20 + $0xd8] sm:$0xf0] }
 0x6b5   : > { %v8737_v57 = vor.u32 %v9398_v44, %v8734_v28 }
 0x6b6   : > { %v4389_v5 = vadd.f32 %v4388_v26, %v4340_v35  ;;  %v4294_v22 = vadd.f32 %v4293_v17, %v4245_v46 }
 0x6b7   : > { %5350 = vmatpush.bf16.xpose.msrb.mxu1 %v8737_v57 }
 0x6b8   : > { %v4427_v21 = vpack.c.bf16 %v4389_v5, %v12253_v52 }
 0x6ba   : > { %v4528_v3 = vunpack.c.l.b16 %v4427_v21  ;;  %v5204_v11 = vunpack.c.h.b16 %v4427_v21 }
 0x6bb   : > { %v4342_v30 = vpop.f32.mrf.mxu2  ;;  %v4246_v41 = vpop.f32.mrf.mxu0 }
 0x6bc   : > { %v4543_v10 = vpack.c.b16 %v4528_v3, %v4527_v9  ;;  %v12384_v60 = vpack.c.b16 %v5204_v11, %v5203_v12  ;;  %v4391_v6 = vpop.f32.mrf.mxu3  ;;  %v4295_v47 = vpop.f32.mrf.mxu1  ;;  %v4343_v2 = vadd.f32 %v4342_v30, %v4294_v22  ;;  %v4247_v20 = vadd.f32 %v4246_v41, %v12365_v56  ;;  %v8698_v41 = vld [vmem:[%s12231_s20 + $0x48] sm:$0xf0] }
 0x6be   : > { %4663 = vmatmul.bf16.vlgmr.msra.gmra.mxu0 %v4543_v10  ;;  %4712 = vmatmul.bf16.vlgmr.msra.gmra.mxu1 %v4543_v10  ;;  %v4392_v52 = vadd.f32 %v4391_v6, %v4343_v2  ;;  %v4296_v14 = vadd.f32 %v4295_v47, %v4247_v20  ;;  %v9380_v6 = vld [vmem:[%s12231_s20 + $0x44] sm:$0xf] }
 0x6bf   : > { %v9396_v47 = vld [vmem:[%s12231_s20 + $0xc4] sm:$0xf]  ;;  %v8701_v20 = vor.u32 %v9380_v6, %v8698_v41 }
 0x6c0   : > { %v4428_v35 = vpack.c.bf16 %v4392_v52, %v12260_v39  ;;  %v8730_v52 = vld [vmem:[%s12231_s20 + $0xc8] sm:$0xf0] }
 0x6c1   : > { %v8733_v44 = vor.u32 %v9396_v47, %v8730_v52  ;;  %5302 = vmatpush.bf16.xpose.msrb.mxu0 %v8701_v20 }
 0x6c2   : > { %v4529_v50 = vunpack.c.l.b16 %v4428_v35  ;;  %v5205_v17 = vunpack.c.h.b16 %v4428_v35 }
 0x6c3   : > { %v4344_v4 = vpop.f32.mrf.mxu2  ;;  %v4249_v0 = vpop.f32.mrf.mxu0  ;;  %5351 = vmatpush.bf16.xpose.msrb.mxu1 %v8733_v44 }
 0x6c4   : > { %v4345_v18 = vadd.f32 %v4344_v4, %v4296_v14  ;;  %v4393_v43 = vpop.f32.mrf.mxu3  ;;  %v4250_v58 = vadd.f32 %v4249_v0, %v12365_v56  ;;  %v4298_v16 = vpop.f32.mrf.mxu1 }
 0x6c6   : > { %v4394_v26 = vadd.f32 %v4393_v43, %v4345_v18  ;;  %v4299_v19 = vadd.f32 %v4298_v16, %v4250_v58 }
 0x6c8   : > { %v4429_v62 = vpack.c.bf16 %v4394_v26, %v12267_v61 }
 0x6ca   : > { %v4530_v5 = vunpack.c.l.b16 %v4429_v62  ;;  %v5206_v46 = vunpack.c.h.b16 %v4429_v62 }
 0x6cb   : > { %v4347_v21 = vpop.f32.mrf.mxu2  ;;  %v4251_v12 = vpop.f32.mrf.mxu0 }
 0x6cc   : > { %v4396_v9 = vpop.f32.mrf.mxu3  ;;  %v4544_v3 = vpack.c.b16 %v4530_v5, %v4529_v50  ;;  %v12394_v11 = vpack.c.b16 %v5206_v46, %v5205_v17  ;;  %v4348_v39 = vadd.f32 %v4347_v21, %v4299_v19  ;;  %v4300_v22 = vpop.f32.mrf.mxu1  ;;  %v4252_v30 = vadd.f32 %v4251_v12, %v12365_v56  ;;  %v8694_v12 = vld [vmem:[%s12231_s20 + $0x38] sm:$0xf0] }
 0x6ce   : > { %4668 = vmatmul.bf16.gmra.mxu0 %v4544_v3  ;;  %4717 = vmatmul.bf16.gmra.mxu1 %v4544_v3  ;;  %v4397_v61 = vadd.f32 %v4396_v9, %v4348_v39  ;;  %v4301_v10 = vadd.f32 %v4300_v22, %v4252_v30  ;;  %v9378_v9 = vld [vmem:[%s12231_s20 + $0x34] sm:$0xf]  ;;  %v8726_v30 = vld [vmem:[%s12231_s20 + $0xb8] sm:$0xf0] }
 0x6cf   : > { %v9394_v3 = vld [vmem:[%s12231_s20 + $0xb4] sm:$0xf]  ;;  %v8697_v22 = vor.u32 %v9378_v9, %v8694_v12 }
 0x6d0   : > { %v4430_v4 = vpack.c.bf16 %v4397_v61, %v12274_v1  ;;  %v8729_v41 = vor.u32 %v9394_v3, %v8726_v30 }
 0x6d1   : > { %5303 = vmatpush.bf16.xpose.msrb.mxu0 %v8697_v22 }
 0x6d2   : > { %v4531_v0 = vunpack.c.l.b16 %v4430_v4  ;;  %v5207_v57 = vunpack.c.h.b16 %v4430_v4  ;;  %5352 = vmatpush.bf16.xpose.msrb.mxu1 %v8729_v41 }
 0x6d3   : > { %v4349_v2 = vpop.f32.mrf.mxu2  ;;  %v4254_v13 = vpop.f32.mrf.mxu0 }
 0x6d4   : > { %v4350_v14 = vadd.f32 %v4349_v2, %v4301_v10  ;;  %v4398_v55 = vpop.f32.mrf.mxu3  ;;  %v4303_v48 = vpop.f32.mrf.mxu1  ;;  %v4255_v18 = vadd.f32 %v4254_v13, %v12365_v56 }
 0x6d6   : > { %v4399_v28 = vadd.f32 %v4398_v55, %v4350_v14  ;;  %v4304_v35 = vadd.f32 %v4303_v48, %v4255_v18  ;;  %v4066_v18 = vadd.f32 %v12301_v59, %v12238_v54  ;;  %v9376_v59 = vld [vmem:[%s12231_s20 + $0x24] sm:$0xf] }
 0x6d8   : > { %v4431_v43 = vpack.c.bf16 %v4399_v28, %v12281_v25 }
 0x6da   : > { %v4532_v58 = vunpack.c.l.b16 %v4431_v43  ;;  %v5208_v16 = vunpack.c.h.b16 %v4431_v43 }
 0x6db   : > { %v4352_v26 = vpop.f32.mrf.mxu2  ;;  %v4256_v1 = vpop.f32.mrf.mxu0 }
 0x6dc   : > { %v4401_v62 = vpop.f32.mrf.mxu3  ;;  %v4545_v19 = vpack.c.b16 %v4532_v58, %v4531_v0  ;;  %v12404_v50 = vpack.c.b16 %v5208_v16, %v5207_v57  ;;  %v4305_v17 = vpop.f32.mrf.mxu1  ;;  %v4353_v5 = vadd.f32 %v4352_v26, %v4304_v35  ;;  %v4257_v46 = vadd.f32 %v4256_v1, %v12365_v56 }
 0x6dd   : > { %v4115_v35 = vadd.f32 %v12303_v33, %v4066_v18 }
 0x6de   : > { %4673 = vmatmul.bf16.gmra.mxu0 %v4545_v19  ;;  %4722 = vmatmul.bf16.gmra.mxu1 %v4545_v19  ;;  %v4402_v25 = vadd.f32 %v4401_v62, %v4353_v5  ;;  %v4306_v21 = vadd.f32 %v4305_v17, %v4257_v46  ;;  %v8690_v19 = vld [vmem:[%s12231_s20 + $0x28] sm:$0xf0]  ;;  %v9392_v17 = vld [vmem:[%s12231_s20 + $0xa4] sm:$0xf] }
 0x6df   : > { %v4164_v62 = vadd.f32 %v12311_v31, %v4115_v35  ;;  %v8693_v46 = vor.u32 %v9376_v59, %v8690_v19 }
 0x6e0   : > { %v4432_v20 = vpack.c.bf16 %v4402_v25, %v12288_v27  ;;  %v8722_v25 = vld [vmem:[%s12231_s20 + $0xa8] sm:$0xf0] }
 0x6e1   : > { %v8725_v3 = vor.u32 %v9392_v17, %v8722_v25  ;;  %5304 = vmatpush.bf16.xpose.msrb.mxu0 %v8693_v46  ;;  %v4213_v33 = vadd.f32 %v12313_v42, %v4164_v62 }
 0x6e2   : > { %v4533_v13 = vunpack.c.l.b16 %v4432_v20  ;;  %v5209_v44 = vunpack.c.h.b16 %v4432_v20 }
 0x6e3   : > { %v4354_v39 = vpop.f32.mrf.mxu2  ;;  %v4259_v6 = vpop.f32.mrf.mxu0  ;;  %5353 = vmatpush.bf16.xpose.msrb.mxu1 %v8725_v3 }
 0x6e4   : > { %v4355_v61 = vadd.f32 %v4354_v39, %v4306_v21  ;;  %v4403_v10 = vpop.f32.mrf.mxu3  ;;  %v4260_v47 = vadd.f32 %v4259_v6, %v12365_v56  ;;  %v4308_v2 = vpop.f32.mrf.mxu1 }
 0x6e6   : > { %v4404_v52 = vadd.f32 %v4403_v10, %v4355_v61  ;;  %v4309_v55 = vadd.f32 %v4308_v2, %v4260_v47 }
 0x6e8   : > { %v4433_v14 = vpack.c.bf16 %v4404_v52, %v12295_v29 }
 0x6ea   : > { %v4534_v4 = vunpack.c.l.b16 %v4433_v14  ;;  %v5210_v48 = vunpack.c.h.b16 %v4433_v14 }
 0x6eb   : > { %v4357_v28 = vpop.f32.mrf.mxu2  ;;  %v4261_v0 = vpop.f32.mrf.mxu0 }
 0x6ec   : > { %v4406_v43 = vpop.f32.mrf.mxu3  ;;  %v4546_v57 = vpack.c.b16 %v4534_v4, %v4533_v13  ;;  %v12416_v27 = vpack.c.b16 %v5210_v48, %v5209_v44  ;;  %v4358_v58 = vadd.f32 %v4357_v28, %v4309_v55  ;;  %v4310_v29 = vpop.f32.mrf.mxu1  ;;  %v4262_v16 = vadd.f32 %v4261_v0, %v12365_v56  ;;  %v8686_v0 = vld [vmem:[%s12231_s20 + $0x18] sm:$0xf0] }
 0x6ee   : > { %4678 = vmatmul.bf16.gmra.mxu0 %v4546_v57  ;;  %4727 = vmatmul.bf16.gmra.mxu1 %v4546_v57  ;;  %v4407_v26 = vadd.f32 %v4406_v43, %v4358_v58  ;;  %v4311_v1 = vadd.f32 %v4310_v29, %v4262_v16  ;;  %v9390_v57 = vld [vmem:[%s12231_s20 + $0x94] sm:$0xf]  ;;  %v8718_v16 = vld [vmem:[%s12231_s20 + $0x98] sm:$0xf0] }
 0x6f0   : > { %v4434_v39 = vpack.c.bf16 %v4407_v26, %v12305_v45  ;;  %v4071_v45 = vadd.f32 %v12320_v36, %v12238_v54  ;;  %v9374_v36 = vld [vmem:[%s12231_s20 + $0x14] sm:$0xf] }
 0x6f1   : > { %v8689_v29 = vor.u32 %v9374_v36, %v8686_v0 }
 0x6f2   : > { %v4535_v10 = vunpack.c.l.b16 %v4434_v39  ;;  %v5211_v6 = vunpack.c.h.b16 %v4434_v39  ;;  %v4120_v48 = vadd.f32 %v12322_v23, %v4071_v45  ;;  %v4076_v39 = vadd.f32 %v12339_v37, %v12238_v54 }
 0x6f3   : > { %v4359_v5 = vpop.f32.mrf.mxu2  ;;  %v4264_v12 = vpop.f32.mrf.mxu0  ;;  %5305 = vmatpush.bf16.xpose.msrb.mxu0 %v8689_v29 }
 0x6f4   : > { %v4360_v21 = vadd.f32 %v4359_v5, %v4311_v1  ;;  %v4408_v9 = vpop.f32.mrf.mxu3  ;;  %v4313_v22 = vpop.f32.mrf.mxu1  ;;  %v4265_v31 = vadd.f32 %v4264_v12, %v12365_v56  ;;  %v4169_v28 = vadd.f32 %v12330_v8, %v4120_v48  ;;  %v8721_v1 = vor.u32 %v9390_v57, %v8718_v16 }
 0x6f6   : > { %v4409_v30 = vadd.f32 %v4408_v9, %v4360_v21  ;;  %v4314_v2 = vadd.f32 %v4313_v22, %v4265_v31  ;;  %v4218_v23 = vadd.f32 %v12332_v24, %v4169_v28  ;;  %5354 = vmatpush.bf16.xpose.msrb.mxu1 %v8721_v1 }
 0x6f8   : > { %v4435_v61 = vpack.c.bf16 %v4409_v30, %v4213_v33 }
 0x6fa   : > { %v4536_v41 = vunpack.c.l.b16 %v4435_v61  ;;  %v5212_v47 = vunpack.c.h.b16 %v4435_v61 }
 0x6fb   : > { %v4362_v20 = vpop.f32.mrf.mxu2  ;;  %v4266_v14 = vpop.f32.mrf.mxu0 }
 0x6fc   : > { %v4411_v52 = vpop.f32.mrf.mxu3  ;;  %v4547_v42 = vpack.c.b16 %v4536_v41, %v4535_v10  ;;  %v12430_v55 = vpack.c.b16 %v5212_v47, %v5211_v6  ;;  %v4315_v13 = vpop.f32.mrf.mxu1  ;;  %v4363_v44 = vadd.f32 %v4362_v20, %v4314_v2  ;;  %v4267_v4 = vadd.f32 %v4266_v14, %v12365_v56  ;;  %v9372_v10 = vld [vmem:[%s12231_s20 + $0x4] sm:$0xf]  ;;  %v8682_v6 = vld [vmem:[%s12231_s20 + $0x8] sm:$0xf0] }
 0x6fd   : > { %v9388_v41 = vld [vmem:[%s12231_s20 + $0x84] sm:$0xf]  ;;  %v8685_v47 = vor.u32 %v9372_v10, %v8682_v6  ;;  %v8714_v2 = vld [vmem:[%s12231_s20 + $0x88] sm:$0xf0]  ;;  %v4125_v20 = vadd.f32 %v12341_v49, %v4076_v39  ;;  %v9436_v39 = vld [vmem:[%s12467_s30 + $0xf4] sm:$0xf0] }
 0x6fe   : > { %4683 = vmatmul.bf16.gmra.mxu0 %v4547_v42  ;;  %4732 = vmatmul.bf16.gmra.mxu1 %v4547_v42  ;;  %v4412_v18 = vadd.f32 %v4411_v52, %v4363_v44  ;;  %v4316_v43 = vadd.f32 %v4315_v13, %v4267_v4  ;;  %v8717_v45 = vor.u32 %v9388_v41, %v8714_v2  ;;  %v9418_v10 = vld [vmem:[%s12467_s30 + $0x64] sm:$0xf0]  ;;  %v8676_v6 = vld [vmem:[%s12467_s30 + $0xe0] sm:$0xf] }
 0x6ff   : > { %5306 = vmatpush.bf16.xpose.msrb.mxu0 %v8685_v47  ;;  %v4174_v52 = vadd.f32 %v12348_v51, %v4125_v20  ;;  %v9434_v47 = vld [vmem:[%s12467_s30 + $0xe4] sm:$0xf0] }
 0x700   : > { %v4436_v8 = vpack.c.bf16 %v4412_v18, %v12324_v40  ;;  %5355 = vmatpush.bf16.xpose.msrb.mxu1 %v8717_v45  ;;  %v8677_v2 = vor.u32 %v9434_v47, %v8676_v6  ;;  %v8656_v6 = vld [vmem:[%s12467_s30 + $0x90] sm:$0xf]  ;;  %v9424_v47 = vld [vmem:[%s12467_s30 + $0x94] sm:$0xf0] }
 0x701   : > { %v4223_v28 = vadd.f32 %v12351_v63, %v4174_v52 }
 0x702   : > { %v4537_v25 = vunpack.c.l.b16 %v4436_v8  ;;  %v5213_v21 = vunpack.c.h.b16 %v4436_v8 }
 0x703   : > { %v4364_v58 = vpop.f32.mrf.mxu2  ;;  %v4269_v62 = vpop.f32.mrf.mxu0 }
 0x704   : > { %v4365_v35 = vadd.f32 %v4364_v58, %v4316_v43  ;;  %v4413_v26 = vpop.f32.mrf.mxu3  ;;  %v4270_v59 = vadd.f32 %v4269_v62, %v12365_v56  ;;  %v4318_v19 = vpop.f32.mrf.mxu1 }
 0x706   : > { %v4414_v17 = vadd.f32 %v4413_v26, %v4365_v35  ;;  %v4319_v46 = vadd.f32 %v4318_v19, %v4270_v59  ;;  %v4081_v35 = vadd.f32 %v12358_v38, %v12238_v54 }
 0x708   : > { %v4437_v5 = vpack.c.bf16 %v4414_v17, %v4218_v23  ;;  %v4130_v19 = vadd.f32 %v12360_v53, %v4081_v35  ;;  %v8648_v53 = vld [vmem:[%s12467_s30 + $0x70] sm:$0xf]  ;;  %v9430_v35 = vld [vmem:[%s12467_s30 + $0xc4] sm:$0xf0] }
 0x70a   : > { %v4538_v9 = vunpack.c.l.b16 %v4437_v5  ;;  %v5214_v12 = vunpack.c.h.b16 %v4437_v5  ;;  %v4179_v8 = vadd.f32 %v12370_v34, %v4130_v19  ;;  %v8680_v34 = vld [vmem:[%s12467_s30 + $0xf0] sm:$0xf] }
 0x70b   : > { %v4367_v3 = vpop.f32.mrf.mxu2  ;;  %v4271_v24 = vpop.f32.mrf.mxu0 }
 0x70c   : > { %v4416_v22 = vpop.f32.mrf.mxu3  ;;  %v4548_v33 = vpack.c.b16 %v4538_v9, %v4537_v25  ;;  %v12444_v40 = vpack.c.b16 %v5214_v12, %v5213_v21  ;;  %v4368_v30 = vadd.f32 %v4367_v3, %v4319_v46  ;;  %v4320_v31 = vpop.f32.mrf.mxu1  ;;  %v4272_v61 = vadd.f32 %v4271_v24, %v12365_v56 }
 0x70d   : > { %v4228_v25 = vadd.f32 %v12373_v32, %v4179_v8  ;;  %v8681_v32 = vor.u32 %v9436_v39, %v8680_v34  ;;  %v9412_v8 = vld [vmem:[%s12467_s30 + $0x34] sm:$0xf0]  ;;  %v9410_v34 = vld [vmem:[%s12467_s30 + $0x24] sm:$0xf0] }
 0x70e   : > { %4688 = vmatmul.bf16.gmra.mxu0 %v4548_v33  ;;  %4737 = vmatmul.bf16.gmra.mxu1 %v4548_v33  ;;  %v4417_v37 = vadd.f32 %v4416_v22, %v4368_v30  ;;  %v4321_v14 = vadd.f32 %v4320_v31, %v4272_v61  ;;  %v8644_v61 = vld [vmem:[%s12467_s30 + $0x60] sm:$0xf]  ;;  %v9426_v39 = vld [vmem:[%s12467_s30 + $0xa4] sm:$0xf0] }
 0x70f   : > { %5122 = vmatpush.bf16.msra.mxu3 %v8681_v32  ;;  %v8645_v41 = vor.u32 %v9418_v10, %v8644_v61  ;;  %v8624_v61 = vld [vmem:[%s12467_s30 + $0x10] sm:$0xf]  ;;  %v9408_v10 = vld [vmem:[%s12467_s30 + $0x14] sm:$0xf0] }
 0x710   : > { %v4438_v48 = vpack.c.bf16 %v4417_v37, %v12343_v15 }
 0x712   : > { %v4539_v0 = vunpack.c.l.b16 %v4438_v48  ;;  %v5215_v57 = vunpack.c.h.b16 %v4438_v48 }
 0x713   : > { %v4369_v42 = vpop.f32.mrf.mxu2  ;;  %v4274_v4 = vpop.f32.mrf.mxu0  ;;  %5123 = vmatpush.bf16.msra.mxu3 %v8677_v2  ;;  %v8657_v2 = vor.u32 %v9424_v47, %v8656_v6 }
 0x714   : > { %v4370_v13 = vadd.f32 %v4369_v42, %v4321_v14  ;;  %v4418_v44 = vpop.f32.mrf.mxu3  ;;  %v4275_v43 = vadd.f32 %v4274_v4, %v12365_v56  ;;  %v4323_v36 = vpop.f32.mrf.mxu1  ;;  %v8672_v4 = vld [vmem:[%s12467_s30 + $0xd0] sm:$0xf] }
 0x716   : > { %v4419_v18 = vadd.f32 %v4418_v44, %v4370_v13  ;;  %v4324_v51 = vadd.f32 %v4323_v36, %v4275_v43  ;;  %v8640_v13 = vld [vmem:[%s12467_s30 + $0x50] sm:$0xf]  ;;  %v9416_v44 = vld [vmem:[%s12467_s30 + $0x54] sm:$0xf0] }
 0x717   : > { %v8641_v48 = vor.u32 %v9416_v44, %v8640_v13 }
 0x718   : > { %v4439_v49 = vpack.c.bf16 %v4419_v18, %v4223_v28  ;;  %v9432_v28 = vld [vmem:[%s12467_s30 + $0xd4] sm:$0xf0] }
 0x719   : > { %v8673_v18 = vor.u32 %v9432_v28, %v8672_v4  ;;  %v9406_v28 = vld [vmem:[%s12467_s30 + $0x4] sm:$0xf0] }
 0x71a   : > { %v4540_v58 = vunpack.c.l.b16 %v4439_v49  ;;  %v5216_v29 = vunpack.c.h.b16 %v4439_v49 }
 0x71b   : > { %v4372_v16 = vpop.f32.mrf.mxu2  ;;  %v4276_v62 = vpop.f32.mrf.mxu0  ;;  %5124 = vmatpush.bf16.msra.mxu3 %v8673_v18  ;;  %v8652_v18 = vld [vmem:[%s12467_s30 + $0x80] sm:$0xf] }
 0x71c   : > { %v4421_v26 = vpop.f32.mrf.mxu3  ;;  %v4549_v1 = vpack.c.b16 %v4540_v58, %v4539_v0  ;;  %v12458_v15 = vpack.c.b16 %v5216_v29, %v5215_v57  ;;  %v4373_v63 = vadd.f32 %v4372_v16, %v4324_v51  ;;  %v4277_v59 = vadd.f32 %v4276_v62, %v12365_v56  ;;  %v4325_v23 = vpop.f32.mrf.mxu1  ;;  %v9420_v56 = vld [vmem:[%s12467_s30 + $0x74] sm:$0xf0]  ;;  %v8636_v58 = vld [vmem:[%s12467_s30 + $0x40] sm:$0xf]  ;;  %v9414_v29 = vld [vmem:[%s12467_s30 + $0x44] sm:$0xf0] }
 0x71d   : > { %v8649_v3 = vor.u32 %v9420_v56, %v8648_v53  ;;  %v8668_v51 = vld [vmem:[%s12467_s30 + $0xc0] sm:$0xf]  ;;  %v8637_v16 = vor.u32 %v9414_v29, %v8636_v58 }
 0x71e   : > { %4693 = vmatmul.bf16.gmra.mxu0 %v4549_v1  ;;  %4742 = vmatmul.bf16.gmra.mxu1 %v4549_v1  ;;  %v4422_v17 = vadd.f32 %v4421_v26, %v4373_v63  ;;  %v4326_v5 = vadd.f32 %v4325_v23, %v4277_v59  ;;  %v8669_v26 = vor.u32 %v9430_v35, %v8668_v51  ;;  %v8632_v23 = vld [vmem:[%s12467_s30 + $0x30] sm:$0xf]  ;;  %v8628_v56 = vld [vmem:[%s12467_s30 + $0x20] sm:$0xf] }
 0x71f   : > { %5073 = vmatpush.bf16.msra.mxu2 %v8649_v3  ;;  %v8629_v3 = vor.u32 %v9410_v34, %v8628_v56 }
 0x720   : > { %v4440_v21 = vpack.c.bf16 %v4422_v17, %v12362_v7  ;;  %5125 = vmatpush.bf16.msra.mxu3 %v8669_v26  ;;  %v8664_v17 = vld [vmem:[%s12467_s30 + $0xb0] sm:$0xf] }
 0x722   : > { %v4541_v7 = vunpack.c.l.b16 %v4440_v21  ;;  %v5217_v22 = vunpack.c.h.b16 %v4440_v21 }
 0x723   : > { %v4374_v46 = vpop.f32.mrf.mxu2  ;;  %5074 = vmatpush.bf16.msra.mxu2 %v8645_v41  ;;  %v8625_v41 = vor.u32 %v9408_v10, %v8624_v61 }
 0x724   : > { %v4375_v54 = vadd.f32 %v4374_v46, %v4326_v5  ;;  %v4423_v38 = vpop.f32.mrf.mxu3  ;;  %v8633_v5 = vor.u32 %v9412_v8, %v8632_v23  ;;  %v9428_v46 = vld [vmem:[%s12467_s30 + $0xb4] sm:$0xf0]  ;;  %v9435_v23 = vld [vmem:[%s12467_s30 + $0xf4] sm:$0xf] }
 0x726   : > { %v4424_v9 = vadd.f32 %v4423_v38, %v4375_v54  ;;  %v8665_v54 = vor.u32 %v9428_v46, %v8664_v17  ;;  %v8806_v17 = vld [vmem:[%s12467_s30 + $0xf8] sm:$0xf0] }
 0x727   : > { %5075 = vmatpush.bf16.msra.mxu2 %v8641_v48  ;;  %v8620_v48 = vld [vmem:[%s12467_s30] sm:$0xf] }
 0x728   : > { %v4441_v12 = vpack.c.bf16 %v4424_v9, %v4228_v25  ;;  %5126 = vmatpush.bf16.msra.mxu3 %v8665_v54  ;;  %v8809_v54 = vor.u32 %v9435_v23, %v8806_v17 }
 0x72a   : > { %v4542_v24 = vunpack.c.l.b16 %v4441_v12  ;;  %v5218_v33 = vunpack.c.h.b16 %v4441_v12  ;;  %v8660_v12 = vld [vmem:[%s12467_s30 + $0xa0] sm:$0xf] }
 0x72b   : > { %5076 = vmatpush.bf16.msra.mxu2 %v8637_v16  ;;  %v8661_v32 = vor.u32 %v9426_v39, %v8660_v12 }
 0x72c   : > { %v4550_v30 = vpack.c.b16 %v4542_v24, %v4541_v7  ;;  %v12473_v31 = vpack.c.b16 %v5218_v33, %v5217_v22 }
 0x72d   : > { %5127 = vmatpush.bf16.msra.mxu3 %v8661_v32 }
 0x72e   : > { %4698 = vmatmul.bf16.gmra.mxu0 %v4550_v30  ;;  %4747 = vmatmul.bf16.gmra.mxu1 %v4550_v30 }
 0x72f   : > { %5077 = vmatpush.bf16.msra.mxu2 %v8633_v5 }
 0x731   : > { %5128 = vmatpush.bf16.msra.mxu3 %v8657_v2 }
 0x733   : > { %5078 = vmatpush.bf16.msra.mxu2 %v8629_v3 }
 0x737   : > { %5079 = vmatpush.bf16.msra.mxu2 %v8625_v41 }
 0x73b   : > { %v12479_v20 = vpop.f32.mrf.mxu0  ;;  %v12481_v45 = vpop.f32.mrf.mxu1 }
 0x73c   : > { %v4753_v37 = vmax.f32 %v12479_v20, %v12481_v45 }
 0x73e   : > { %5307 = vmatmul.bf16.vlgmr.msrb.gmra.mxu0 %v12384_v60  ;;  %5356 = vmatmul.bf16.vlgmr.msrb.gmra.mxu1 %v12384_v60 }
 0x73f   : > { %4754 = vmax.xlane.f32.xlu0 %v4753_v37 }
 0x743   : > { %v12487_v52 = vpop.f32.mrf.mxu0  ;;  %v12489_v14 = vpop.f32.mrf.mxu1 }
 0x744   : > { %v4756_v42 = vmax.f32 %v12487_v52, %v12489_v14 }
 0x747   : > { %4757 = vmax.xlane.f32.xlu0 %v4756_v42 }
 0x74b   : > { %v12497_v60 = vpop.f32.mrf.mxu0  ;;  %v12499_v43 = vpop.f32.mrf.mxu1 }
 0x74c   : > { %v4759_v36 = vmax.f32 %v12497_v60, %v12499_v43 }
 0x74e   : > { %5312 = vmatmul.bf16.gmra.mxu0 %v12394_v11  ;;  %5361 = vmatmul.bf16.gmra.mxu1 %v12394_v11 }
 0x74f   : > { %4760 = vmax.xlane.f32.xlu1 %v4759_v36  ;;  %v8621_v36 = vor.u32 %v9406_v28, %v8620_v48 }
 0x751   : > { %5080 = vmatpush.bf16.msra.mxu2 %v8621_v36 }
 0x753   : > { %v12505_v49 = vpop.f32.mrf.mxu0  ;;  %v12507_v0 = vpop.f32.mrf.mxu1 }
 0x754   : > { %v4762_v57 = vmax.f32 %v12505_v49, %v12507_v0 }
 0x757   : > { %4763 = vmax.xlane.f32.xlu1 %v4762_v57  ;;  %v9422_v57 = vld [vmem:[%s12467_s30 + $0x84] sm:$0xf0] }
 0x758   : > { %v8653_v58 = vor.u32 %v9422_v57, %v8652_v18 }
 0x75a   : > { %5129 = vmatpush.bf16.msra.mxu3 %v8653_v58 }
 0x75b   : > { %v12515_v11 = vpop.f32.mrf.mxu0  ;;  %v12517_v62 = vpop.f32.mrf.mxu1 }
 0x75c   : > { %v4765_v1 = vmax.f32 %v12515_v11, %v12517_v62 }
 0x75e   : > { %5317 = vmatmul.bf16.gmra.mxu0 %v12404_v50  ;;  %5366 = vmatmul.bf16.gmra.mxu1 %v12404_v50 }
 0x75f   : > { %4766 = vmax.xlane.f32.xlu2 %v4765_v1  ;;  %v9419_v1 = vld [vmem:[%s12467_s30 + $0x74] sm:$0xf]  ;;  %5734 = vmatpush.bf16.msrb.mxu3 %v8809_v54 }
 0x760   : > { %v9415_v54 = vld [vmem:[%s12467_s30 + $0x54] sm:$0xf] }
 0x763   : > { %v12523_v63 = vpop.f32.mrf.mxu0  ;;  %v12525_v59 = vpop.f32.mrf.mxu1 }
 0x764   : > { %v4768_v19 = vmax.f32 %v12523_v63, %v12525_v59 }
 0x767   : > { %4769 = vmax.xlane.f32.xlu2 %v4768_v19  ;;  %v8774_v19 = vld [vmem:[%s12467_s30 + $0x78] sm:$0xf0] }
 0x768   : > { %v8777_v8 = vor.u32 %v9419_v1, %v8774_v19 }
 0x76a   : > { %5685 = vmatpush.bf16.msrb.mxu2 %v8777_v8 }
 0x76b   : > { %v12533_v50 = vpop.f32.mrf.mxu0  ;;  %v12535_v38 = vpop.f32.mrf.mxu1 }
 0x76c   : > { %v4771_v25 = vmax.f32 %v12533_v50, %v12535_v38 }
 0x76e   : > { %5322 = vmatmul.bf16.gmra.mxu0 %v12416_v27  ;;  %5371 = vmatmul.bf16.gmra.mxu1 %v12416_v27 }
 0x76f   : > { %4772 = vmax.xlane.f32.xlu0 %v4771_v25 }
 0x773   : > { %v12541_v21 = vpop.f32.mrf.mxu0  ;;  %v12543_v9 = vpop.f32.mrf.mxu1 }
 0x774   : > { %v4774_v53 = vmax.f32 %v12541_v21, %v12543_v9 }
 0x776   : > { %4775 = vmax.xlane.f32.xlu1 %v4774_v53 }
 0x77b   : > { %v12551_v27 = vpop.f32.mrf.mxu0  ;;  %v12553_v7 = vpop.f32.mrf.mxu1 }
 0x77c   : > { %v4777_v22 = vmax.f32 %v12551_v27, %v12553_v7 }
 0x77e   : > { %5327 = vmatmul.bf16.gmra.mxu0 %v12430_v55  ;;  %5376 = vmatmul.bf16.gmra.mxu1 %v12430_v55 }
 0x77f   : > { %4778 = vmax.xlane.f32.xlu2 %v4777_v22  ;;  %v8770_v22 = vld [vmem:[%s12467_s30 + $0x68] sm:$0xf0] }
 0x783   : > { %v12559_v24 = vpop.f32.mrf.mxu0  ;;  %v12561_v33 = vpop.f32.mrf.mxu1 }
 0x784   : > { %v4780_v30 = vmax.f32 %v12559_v24, %v12561_v33 }
 0x786   : > { %4781 = vmax.xlane.f32.xlu0 %v4780_v30  ;;  %v9433_v30 = vld [vmem:[%s12467_s30 + $0xe4] sm:$0xf] }
 0x78b   : > { %v12569_v55 = vpop.f32.mrf.mxu0  ;;  %v12571_v37 = vpop.f32.mrf.mxu1 }
 0x78c   : > { %v4783_v42 = vmax.f32 %v12569_v55, %v12571_v37 }
 0x78e   : > { %5332 = vmatmul.bf16.gmra.mxu0 %v12444_v40  ;;  %5381 = vmatmul.bf16.gmra.mxu1 %v12444_v40 }
 0x78f   : > { %4784 = vmax.xlane.f32.xlu1 %v4783_v42 }
 0x793   : > { %v12577_v13 = vpop.f32.mrf.mxu0  ;;  %v12579_v44 = vpop.f32.mrf.mxu1 }
 0x794   : > { %v4786_v4 = vmax.f32 %v12577_v13, %v12579_v44 }
 0x796   : > { %4787 = vmax.xlane.f32.xlu2 %v4786_v4 }
 0x79b   : > { %v12587_v29 = vpop.f32.mrf.mxu0  ;;  %v12589_v40 = vpop.f32.mrf.mxu1 }
 0x79c   : > { %v4789_v51 = vmax.f32 %v12587_v29, %v12589_v40 }
 0x79e   : > { %5337 = vmatmul.bf16.gmra.mxu0 %v12458_v15  ;;  %5386 = vmatmul.bf16.gmra.mxu1 %v12458_v15 }
 0x79f   : > { %4790 = vmax.xlane.f32.xlu0 %v4789_v51 }
 0x7a3   : > { %v12595_v16 = vpop.f32.mrf.mxu0  ;;  %v12597_v35 = vpop.f32.mrf.mxu1 }
 0x7a4   : > { %v4792_v26 = vmax.f32 %v12595_v16, %v12597_v35 }
 0x7a6   : > { %4793 = vmax.xlane.f32.xlu1 %v4792_v26 }
 0x7ab   : > { %v12605_v5 = vpop.f32.mrf.mxu0  ;;  %v12607_v46 = vpop.f32.mrf.mxu1 }
 0x7ac   : > { %v4795_v15 = vmax.f32 %v12605_v5, %v12607_v46 }
 0x7ae   : > { %5342 = vmatmul.bf16.gmra.mxu0 %v12473_v31  ;;  %5391 = vmatmul.bf16.gmra.mxu1 %v12473_v31  ;;  %v9417_v31 = vld [vmem:[%s12467_s30 + $0x64] sm:$0xf] }
 0x7af   : > { %4796 = vmax.xlane.f32.xlu2 %v4795_v15  ;;  %v8773_v10 = vor.u32 %v9417_v31, %v8770_v22  ;;  %v8766_v15 = vld [vmem:[%s12467_s30 + $0x58] sm:$0xf0] }
 0x7b1   : > { %5686 = vmatpush.bf16.msrb.mxu2 %v8773_v10 }
 0x7b2   : > { %v4755_v25 = vpop.xlane.xlu0 %4754 }
 0x7b3   : > { %v4801_v53 = vsub.f32 %v12479_v20, %v4755_v25  ;;  %v4802_v56 = vsub.f32 %v12481_v45, %v4755_v25  ;;  %v12615_v34 = vpop.f32.mrf.mxu0  ;;  %v12617_v12 = vpop.f32.mrf.mxu1  ;;  %v8802_v20 = vld [vmem:[%s12467_s30 + $0xe8] sm:$0xf0]  ;;  %v9431_v25 = vld [vmem:[%s12467_s30 + $0xd4] sm:$0xf] }
 0x7b4   : > { %v4798_v3 = vmax.f32 %v12615_v34, %v12617_v12  ;;  %v8805_v2 = vor.u32 %v9433_v30, %v8802_v20 }
 0x7b5   : > { %v4833_v39 = vmul.f32 1.442695, %v4801_v53  ;;  %v4835_v32 = vmul.f32 1.442695, %v4802_v56  ;;  %v8769_v56 = vor.u32 %v9415_v54, %v8766_v15 }
 0x7b6   : > { %4799 = vmax.xlane.f32.xlu0 %v4798_v3  ;;  %5735 = vmatpush.bf16.msrb.mxu3 %v8805_v2  ;;  %v8798_v3 = vld [vmem:[%s12467_s30 + $0xd8] sm:$0xf0] }
 0x7b7   : > { %9693 = vpow2.f32 %v4833_v39  ;;  %v8801_v30 = vor.u32 %v9431_v25, %v8798_v3  ;;  %5687 = vmatpush.bf16.msrb.mxu2 %v8769_v56 }
 0x7b8   : > { %9695 = vpow2.f32 %v4835_v32 }
 0x7ba   : > { %v4758_v61 = vpop.xlane.xlu0 %4757  ;;  %5736 = vmatpush.bf16.msrb.mxu3 %v8801_v30 }
 0x7bb   : > { %v4803_v45 = vsub.f32 %v12487_v52, %v4758_v61  ;;  %v4804_v6 = vsub.f32 %v12489_v14, %v4758_v61  ;;  %v12627_v41 = vpop.f32.mrf.mxu0  ;;  %v12629_v47 = vpop.f32.mrf.mxu1 }
 0x7bc   : > { %v5397_v42 = vmax.f32 %v12627_v41, %v12629_v47 }
 0x7bd   : > { %v9694_v4 = vpop.eup %9693  ;;  %v4837_v48 = vmul.f32 1.442695, %v4803_v45  ;;  %v4839_v28 = vmul.f32 1.442695, %v4804_v6 }
 0x7be   : > { %v9696_v18 = vpop.eup %9695  ;;  %5398 = vmax.xlane.f32.xlu1 %v5397_v42 }
 0x7bf   : > { %9697 = vpow2.f32 %v4837_v48  ;;  %v12633_v36 = vadd.f32 %v9696_v18, %v9694_v4 }
 0x7c0   : > { %9699 = vpow2.f32 %v4839_v28 }
 0x7c2   : > { %v4761_v52 = vpop.xlane.xlu1 %4760 }
 0x7c3   : > { %v4805_v14 = vsub.f32 %v12497_v60, %v4761_v52  ;;  %v4806_v57 = vsub.f32 %v12499_v43, %v4761_v52  ;;  %v12637_v58 = vpop.f32.mrf.mxu0  ;;  %v12639_v51 = vpop.f32.mrf.mxu1 }
 0x7c4   : > { %v5400_v26 = vmax.f32 %v12637_v58, %v12639_v51 }
 0x7c5   : > { %v9698_v1 = vpop.eup %9697  ;;  %v4841_v19 = vmul.f32 1.442695, %v4805_v14  ;;  %v4843_v23 = vmul.f32 1.442695, %v4806_v57 }
 0x7c6   : > { %v9700_v8 = vpop.eup %9699  ;;  %v4961_v17 = vpack.c.bf16 %v9698_v1, %v9694_v4  ;;  %5401 = vmax.xlane.f32.xlu2 %v5400_v26 }
 0x7c7   : > { %v4962_v60 = vpack.c.bf16 %v9700_v8, %v9696_v18  ;;  %9701 = vpow2.f32 %v4841_v19  ;;  %v12643_v43 = vadd.f32 %v9700_v8, %v9698_v1  ;;  %v9413_v1 = vld [vmem:[%s12467_s30 + $0x44] sm:$0xf]  ;;  %v8762_v19 = vld [vmem:[%s12467_s30 + $0x48] sm:$0xf0] }
 0x7c8   : > { %9703 = vpow2.f32 %v4843_v23  ;;  %5081 = vmatmul.bf16.vlgmr.msra.gmra.mxu2 %v4961_v17  ;;  %v9429_v23 = vld [vmem:[%s12467_s30 + $0xc4] sm:$0xf]  ;;  %v8765_v17 = vor.u32 %v9413_v1, %v8762_v19 }
 0x7c9   : > { %5130 = vmatmul.bf16.vlgmr.msra.gmra.mxu3 %v4962_v60  ;;  %v8794_v60 = vld [vmem:[%s12467_s30 + $0xc8] sm:$0xf0] }
 0x7ca   : > { %v4764_v53 = vpop.xlane.xlu1 %4763  ;;  %v8797_v56 = vor.u32 %v9429_v23, %v8794_v60  ;;  %5688 = vmatpush.bf16.msrb.mxu2 %v8765_v17 }
 0x7cb   : > { %v4807_v39 = vsub.f32 %v12505_v49, %v4764_v53  ;;  %v4808_v32 = vsub.f32 %v12507_v0, %v4764_v53  ;;  %v12651_v31 = vpop.f32.mrf.mxu0  ;;  %v12653_v22 = vpop.f32.mrf.mxu1 }
 0x7cc   : > { %v5403_v61 = vmax.f32 %v12651_v31, %v12653_v22  ;;  %5737 = vmatpush.bf16.msrb.mxu3 %v8797_v56 }
 0x7cd   : > { %v9702_v10 = vpop.eup %9701  ;;  %v4845_v20 = vmul.f32 1.442695, %v4807_v39  ;;  %v4847_v45 = vmul.f32 1.442695, %v4808_v32 }
 0x7ce   : > { %v9704_v6 = vpop.eup %9703  ;;  %5404 = vmax.xlane.f32.xlu0 %v5403_v61 }
 0x7cf   : > { %9705 = vpow2.f32 %v4845_v20  ;;  %v12657_v2 = vadd.f32 %v9704_v6, %v9702_v10 }
 0x7d0   : > { %9707 = vpow2.f32 %v4847_v45 }
 0x7d2   : > { %v4767_v49 = vpop.xlane.xlu2 %4766 }
 0x7d3   : > { %v4809_v0 = vsub.f32 %v12515_v11, %v4767_v49  ;;  %v4810_v42 = vsub.f32 %v12517_v62, %v4767_v49  ;;  %v12661_v4 = vpop.f32.mrf.mxu0  ;;  %v12663_v48 = vpop.f32.mrf.mxu1 }
 0x7d4   : > { %v5406_v28 = vmax.f32 %v12661_v4, %v12663_v48 }
 0x7d5   : > { %v9706_v18 = vpop.eup %9705  ;;  %v4849_v52 = vmul.f32 1.442695, %v4809_v0  ;;  %v4851_v14 = vmul.f32 1.442695, %v4810_v42 }
 0x7d6   : > { %v9708_v57 = vpop.eup %9707  ;;  %5407 = vmax.xlane.f32.xlu1 %v5406_v28  ;;  %v4963_v26 = vpack.c.bf16 %v9706_v18, %v9702_v10 }
 0x7d7   : > { %9709 = vpow2.f32 %v4849_v52  ;;  %v4964_v11 = vpack.c.bf16 %v9708_v57, %v9704_v6  ;;  %v12667_v62 = vadd.f32 %v9708_v57, %v9706_v18  ;;  %v9411_v57 = vld [vmem:[%s12467_s30 + $0x34] sm:$0xf] }
 0x7d8   : > { %9711 = vpow2.f32 %v4851_v14  ;;  %5086 = vmatmul.bf16.gmra.mxu2 %v4963_v26  ;;  %v8758_v26 = vld [vmem:[%s12467_s30 + $0x38] sm:$0xf0] }
 0x7d9   : > { %5135 = vmatmul.bf16.gmra.mxu3 %v4964_v11  ;;  %v9427_v11 = vld [vmem:[%s12467_s30 + $0xb4] sm:$0xf]  ;;  %v8761_v23 = vor.u32 %v9411_v57, %v8758_v26  ;;  %v9425_v57 = vld [vmem:[%s12467_s30 + $0xa4] sm:$0xf] }
 0x7da   : > { %v4770_v8 = vpop.xlane.xlu2 %4769 }
 0x7db   : > { %v4811_v54 = vsub.f32 %v12523_v63, %v4770_v8  ;;  %v4812_v15 = vsub.f32 %v12525_v59, %v4770_v8  ;;  %v12675_v25 = vpop.f32.mrf.mxu0  ;;  %v12677_v53 = vpop.f32.mrf.mxu1  ;;  %v8790_v8 = vld [vmem:[%s12467_s30 + $0xb8] sm:$0xf0]  ;;  %5689 = vmatpush.bf16.msrb.mxu2 %v8761_v23 }
 0x7dc   : > { %v5409_v3 = vmax.f32 %v12675_v25, %v12677_v53 }
 0x7dd   : > { %v9710_v39 = vpop.eup %9709  ;;  %v4853_v32 = vmul.f32 1.442695, %v4811_v54  ;;  %v4855_v30 = vmul.f32 1.442695, %v4812_v15  ;;  %v8793_v54 = vor.u32 %v9427_v11, %v8790_v8 }
 0x7de   : > { %v9712_v61 = vpop.eup %9711  ;;  %5410 = vmax.xlane.f32.xlu2 %v5409_v3 }
 0x7df   : > { %9713 = vpow2.f32 %v4853_v32  ;;  %v12681_v10 = vadd.f32 %v9712_v61, %v9710_v39  ;;  %5738 = vmatpush.bf16.msrb.mxu3 %v8793_v54 }
 0x7e0   : > { %9715 = vpow2.f32 %v4855_v30 }
 0x7e2   : > { %v4773_v63 = vpop.xlane.xlu0 %4772 }
 0x7e3   : > { %v4813_v59 = vsub.f32 %v12533_v50, %v4773_v63  ;;  %v4814_v20 = vsub.f32 %v12535_v38, %v4773_v63  ;;  %v12685_v45 = vpop.f32.mrf.mxu0  ;;  %v12687_v6 = vpop.f32.mrf.mxu1 }
 0x7e4   : > { %v5412_v49 = vmax.f32 %v12685_v45, %v12687_v6 }
 0x7e5   : > { %v9714_v0 = vpop.eup %9713  ;;  %v4857_v42 = vmul.f32 1.442695, %v4813_v59  ;;  %v4859_v28 = vmul.f32 1.442695, %v4814_v20 }
 0x7e6   : > { %v9716_v18 = vpop.eup %9715  ;;  %5413 = vmax.xlane.f32.xlu0 %v5412_v49  ;;  %v4965_v52 = vpack.c.bf16 %v9714_v0, %v9710_v39 }
 0x7e7   : > { %9717 = vpow2.f32 %v4857_v42  ;;  %v4966_v50 = vpack.c.bf16 %v9716_v18, %v9712_v61  ;;  %v12691_v38 = vadd.f32 %v9716_v18, %v9714_v0 }
 0x7e8   : > { %9719 = vpow2.f32 %v4859_v28  ;;  %5091 = vmatmul.bf16.gmra.mxu2 %v4965_v52 }
 0x7e9   : > { %5140 = vmatmul.bf16.gmra.mxu3 %v4966_v50  ;;  %v4776_v14 = vpop.xlane.xlu1 %4775  ;;  %v9409_v50 = vld [vmem:[%s12467_s30 + $0x24] sm:$0xf] }
 0x7ea   : > { %v4815_v1 = vsub.f32 %v12541_v21, %v4776_v14  ;;  %v4816_v19 = vsub.f32 %v12543_v9, %v4776_v14  ;;  %v8754_v14 = vld [vmem:[%s12467_s30 + $0x28] sm:$0xf0] }
 0x7eb   : > { %v12699_v17 = vpop.f32.mrf.mxu0  ;;  %v12701_v60 = vpop.f32.mrf.mxu1 }
 0x7ec   : > { %v4861_v15 = vmul.f32 1.442695, %v4815_v1  ;;  %v4863_v56 = vmul.f32 1.442695, %v4816_v19  ;;  %v5415_v3 = vmax.f32 %v12699_v17, %v12701_v60  ;;  %v8757_v1 = vor.u32 %v9409_v50, %v8754_v14  ;;  %v8786_v19 = vld [vmem:[%s12467_s30 + $0xa8] sm:$0xf0] }
 0x7ed   : > { %v9718_v39 = vpop.eup %9717  ;;  %v8789_v54 = vor.u32 %v9425_v57, %v8786_v19  ;;  %v9407_v50 = vld [vmem:[%s12467_s30 + $0x14] sm:$0xf]  ;;  %v8750_v14 = vld [vmem:[%s12467_s30 + $0x18] sm:$0xf0] }
 0x7ee   : > { %v9720_v32 = vpop.eup %9719  ;;  %9721 = vpow2.f32 %v4861_v15  ;;  %5416 = vmax.xlane.f32.xlu1 %v5415_v3  ;;  %5690 = vmatpush.bf16.msrb.mxu2 %v8757_v1  ;;  %v9423_v57 = vld [vmem:[%s12467_s30 + $0x94] sm:$0xf]  ;;  %v8753_v1 = vor.u32 %v9407_v50, %v8750_v14  ;;  %v8782_v19 = vld [vmem:[%s12467_s30 + $0x98] sm:$0xf0] }
 0x7ef   : > { %9723 = vpow2.f32 %v4863_v56  ;;  %v12705_v21 = vadd.f32 %v9720_v32, %v9718_v39  ;;  %5739 = vmatpush.bf16.msrb.mxu3 %v8789_v54 }
 0x7f2   : > { %v4779_v9 = vpop.xlane.xlu2 %4778  ;;  %5691 = vmatpush.bf16.msrb.mxu2 %v8753_v1 }
 0x7f3   : > { %v4817_v30 = vsub.f32 %v12551_v27, %v4779_v9  ;;  %v4818_v61 = vsub.f32 %v12553_v7, %v4779_v9  ;;  %v12709_v63 = vpop.f32.mrf.mxu0  ;;  %v12711_v59 = vpop.f32.mrf.mxu1 }
 0x7f4   : > { %v9722_v20 = vpop.eup %9721  ;;  %v5418_v49 = vmax.f32 %v12709_v63, %v12711_v59 }
 0x7f5   : > { %v9724_v0 = vpop.eup %9723  ;;  %v4865_v42 = vmul.f32 1.442695, %v4817_v30  ;;  %v4867_v28 = vmul.f32 1.442695, %v4818_v61  ;;  %v4967_v18 = vpack.c.bf16 %v9722_v20, %v9718_v39 }
 0x7f6   : > { %5419 = vmax.xlane.f32.xlu2 %v5418_v49  ;;  %v4968_v27 = vpack.c.bf16 %v9724_v0, %v9720_v32  ;;  %v12715_v52 = vadd.f32 %v9724_v0, %v9722_v20 }
 0x7f7   : > { %9725 = vpow2.f32 %v4865_v42 }
 0x7f8   : > { %9727 = vpow2.f32 %v4867_v28  ;;  %5096 = vmatmul.bf16.gmra.mxu2 %v4967_v18 }
 0x7f9   : > { %5145 = vmatmul.bf16.gmra.mxu3 %v4968_v27  ;;  %v4782_v7 = vpop.xlane.xlu0 %4781 }
 0x7fa   : > { %v4819_v26 = vsub.f32 %v12559_v24, %v4782_v7  ;;  %v4820_v11 = vsub.f32 %v12561_v33, %v4782_v7 }
 0x7fb   : > { %v12723_v23 = vpop.f32.mrf.mxu0  ;;  %v12725_v8 = vpop.f32.mrf.mxu1 }
 0x7fc   : > { %v4869_v15 = vmul.f32 1.442695, %v4819_v26  ;;  %v4871_v56 = vmul.f32 1.442695, %v4820_v11  ;;  %v5421_v3 = vmax.f32 %v12723_v23, %v12725_v8 }
 0x7fd   : > { %v9726_v39 = vpop.eup %9725 }
 0x7fe   : > { %v9728_v32 = vpop.eup %9727  ;;  %9729 = vpow2.f32 %v4869_v15  ;;  %5422 = vmax.xlane.f32.xlu0 %v5421_v3 }
 0x7ff   : > { %9731 = vpow2.f32 %v4871_v56  ;;  %v12729_v24 = vadd.f32 %v9728_v32, %v9726_v39  ;;  %v8785_v56 = vor.u32 %v9423_v57, %v8782_v19  ;;  %v9405_v57 = vld [vmem:[%s12467_s30 + $0x4] sm:$0xf] }
 0x801   : > { %5740 = vmatpush.bf16.msrb.mxu3 %v8785_v56 }
 0x802   : > { %v4785_v33 = vpop.xlane.xlu1 %4784 }
 0x803   : > { %v4821_v9 = vsub.f32 %v12569_v55, %v4785_v33  ;;  %v4822_v30 = vsub.f32 %v12571_v37, %v4785_v33  ;;  %v12733_v61 = vpop.f32.mrf.mxu0  ;;  %v12735_v20 = vpop.f32.mrf.mxu1 }
 0x804   : > { %v9730_v49 = vpop.eup %9729  ;;  %v5424_v0 = vmax.f32 %v12733_v61, %v12735_v20 }
 0x805   : > { %v9732_v42 = vpop.eup %9731  ;;  %v4873_v28 = vmul.f32 1.442695, %v4821_v9  ;;  %v4875_v18 = vmul.f32 1.442695, %v4822_v30  ;;  %v4969_v27 = vpack.c.bf16 %v9730_v49, %v9726_v39 }
 0x806   : > { %5425 = vmax.xlane.f32.xlu1 %v5424_v0  ;;  %v4970_v55 = vpack.c.bf16 %v9732_v42, %v9728_v32  ;;  %v12739_v7 = vadd.f32 %v9732_v42, %v9730_v49 }
 0x807   : > { %9733 = vpow2.f32 %v4873_v28 }
 0x808   : > { %9735 = vpow2.f32 %v4875_v18  ;;  %5101 = vmatmul.bf16.gmra.mxu2 %v4969_v27 }
 0x809   : > { %5150 = vmatmul.bf16.gmra.mxu3 %v4970_v55  ;;  %v4788_v37 = vpop.xlane.xlu2 %4787 }
 0x80a   : > { %v4823_v26 = vsub.f32 %v12577_v13, %v4788_v37  ;;  %v4824_v11 = vsub.f32 %v12579_v44, %v4788_v37 }
 0x80b   : > { %v12747_v54 = vpop.f32.mrf.mxu0  ;;  %v12749_v15 = vpop.f32.mrf.mxu1 }
 0x80c   : > { %v4877_v3 = vmul.f32 1.442695, %v4823_v26  ;;  %v4879_v39 = vmul.f32 1.442695, %v4824_v11  ;;  %v5427_v32 = vmax.f32 %v12747_v54, %v12749_v15  ;;  %v8746_v26 = vld [vmem:[%s12467_s30 + $0x8] sm:$0xf0] }
 0x80d   : > { %v9734_v33 = vpop.eup %9733  ;;  %v9421_v11 = vld [vmem:[%s12467_s30 + $0x84] sm:$0xf]  ;;  %v8749_v56 = vor.u32 %v9405_v57, %v8746_v26 }
 0x80e   : > { %v9736_v9 = vpop.eup %9735  ;;  %9737 = vpow2.f32 %v4877_v3  ;;  %5428 = vmax.xlane.f32.xlu2 %v5427_v32  ;;  %v8778_v3 = vld [vmem:[%s12467_s30 + $0x88] sm:$0xf0] }
 0x80f   : > { %9739 = vpow2.f32 %v4879_v39  ;;  %v12753_v13 = vadd.f32 %v9736_v9, %v9734_v33  ;;  %5692 = vmatpush.bf16.msrb.mxu2 %v8749_v56 }
 0x812   : > { %v4791_v44 = vpop.xlane.xlu0 %4790 }
 0x813   : > { %v4825_v30 = vsub.f32 %v12587_v29, %v4791_v44  ;;  %v4826_v49 = vsub.f32 %v12589_v40, %v4791_v44  ;;  %v12757_v0 = vpop.f32.mrf.mxu0  ;;  %v12759_v42 = vpop.f32.mrf.mxu1 }
 0x814   : > { %v9738_v28 = vpop.eup %9737  ;;  %v5430_v18 = vmax.f32 %v12757_v0, %v12759_v42 }
 0x815   : > { %v9740_v27 = vpop.eup %9739  ;;  %v4881_v55 = vmul.f32 1.442695, %v4825_v30  ;;  %v4883_v37 = vmul.f32 1.442695, %v4826_v49  ;;  %v4971_v50 = vpack.c.bf16 %v9738_v28, %v9734_v33  ;;  %v8781_v33 = vor.u32 %v9421_v11, %v8778_v3 }
 0x816   : > { %5431 = vmax.xlane.f32.xlu0 %v5430_v18  ;;  %v4972_v29 = vpack.c.bf16 %v9740_v27, %v9736_v9  ;;  %v12763_v14 = vadd.f32 %v9740_v27, %v9738_v28 }
 0x817   : > { %9741 = vpow2.f32 %v4881_v55  ;;  %5741 = vmatpush.bf16.msrb.mxu3 %v8781_v33 }
 0x818   : > { %9743 = vpow2.f32 %v4883_v37  ;;  %5106 = vmatmul.bf16.gmra.mxu2 %v4971_v50 }
 0x819   : > { %5155 = vmatmul.bf16.gmra.mxu3 %v4972_v29  ;;  %v4794_v40 = vpop.xlane.xlu1 %4793 }
 0x81a   : > { %v4827_v1 = vsub.f32 %v12595_v16, %v4794_v40  ;;  %v4828_v19 = vsub.f32 %v12597_v35, %v4794_v40 }
 0x81b   : > { %v12771_v39 = vpop.f32.mrf.mxu0  ;;  %v12773_v32 = vpop.f32.mrf.mxu1 }
 0x81c   : > { %v4885_v9 = vmul.f32 1.442695, %v4827_v1  ;;  %v4887_v44 = vmul.f32 1.442695, %v4828_v19  ;;  %v5433_v30 = vmax.f32 %v12771_v39, %v12773_v32 }
 0x81d   : > { %v9742_v49 = vpop.eup %9741 }
 0x81e   : > { %v9744_v28 = vpop.eup %9743  ;;  %9745 = vpow2.f32 %v4885_v9  ;;  %5434 = vmax.xlane.f32.xlu1 %v5433_v30 }
 0x81f   : > { %9747 = vpow2.f32 %v4887_v44  ;;  %v12777_v16 = vadd.f32 %v9744_v28, %v9742_v49 }
 0x822   : > { %v4797_v35 = vpop.xlane.xlu2 %4796 }
 0x823   : > { %v4829_v18 = vsub.f32 %v12605_v5, %v4797_v35  ;;  %v4830_v27 = vsub.f32 %v12607_v46, %v4797_v35  ;;  %v12781_v55 = vpop.f32.mrf.mxu0  ;;  %v12783_v37 = vpop.f32.mrf.mxu1 }
 0x824   : > { %v9746_v50 = vpop.eup %9745  ;;  %v5436_v29 = vmax.f32 %v12781_v55, %v12783_v37 }
 0x825   : > { %v9748_v40 = vpop.eup %9747  ;;  %v4889_v57 = vmul.f32 1.442695, %v4829_v18  ;;  %v4891_v26 = vmul.f32 1.442695, %v4830_v27  ;;  %v4973_v11 = vpack.c.bf16 %v9746_v50, %v9742_v49 }
 0x826   : > { %5437 = vmax.xlane.f32.xlu2 %v5436_v29  ;;  %v4974_v1 = vpack.c.bf16 %v9748_v40, %v9744_v28  ;;  %v12787_v19 = vadd.f32 %v9748_v40, %v9746_v50 }
 0x827   : > { %9749 = vpow2.f32 %v4889_v57 }
 0x828   : > { %9751 = vpow2.f32 %v4891_v26  ;;  %5111 = vmatmul.bf16.gmra.mxu2 %v4973_v11 }
 0x829   : > { %5160 = vmatmul.bf16.gmra.mxu3 %v4974_v1  ;;  %v4800_v5 = vpop.xlane.xlu0 %4799 }
 0x82a   : > { %v4831_v46 = vsub.f32 %v12615_v34, %v4800_v5  ;;  %v4832_v56 = vsub.f32 %v12617_v12, %v4800_v5 }
 0x82b   : > { %v12791_v3 = vpop.f32.mrf.mxu0  ;;  %v12793_v33 = vpop.f32.mrf.mxu1 }
 0x82c   : > { %v4893_v9 = vmul.f32 1.442695, %v4831_v46  ;;  %v4895_v44 = vmul.f32 1.442695, %v4832_v56  ;;  %v5439_v30 = vmax.f32 %v12791_v3, %v12793_v33 }
 0x82d   : > { %v9750_v49 = vpop.eup %9749 }
 0x82e   : > { %v9752_v28 = vpop.eup %9751  ;;  %9753 = vpow2.f32 %v4893_v9  ;;  %4898 = vadd.xlane.f32.xlu2 %v12633_v36  ;;  %5440 = vmax.xlane.f32.xlu0 %v5439_v30 }
 0x82f   : > { %9755 = vpow2.f32 %v4895_v44  ;;  %v12798_v35 = vadd.f32 %v9752_v28, %v9750_v49 }
 0x831   : > { %v5399_v34 = vpop.xlane.xlu1 %5398 }
 0x832   : > { %v5445_v12 = vsub.f32 %v12627_v41, %v5399_v34  ;;  %v5446_v18 = vsub.f32 %v12629_v47, %v5399_v34  ;;  %v9497_v34 = vld [vmem:[%s10666_s5 + $0x1e4] sm:$0xf] }
 0x833   : > { %v12802_v27 = vpop.f32.mrf.mxu0  ;;  %v12804_v50 = vpop.f32.mrf.mxu1 }
 0x834   : > { %v9754_v29 = vpop.eup %9753  ;;  %v5477_v40 = vmul.f32 1.442695, %v5445_v12  ;;  %v5479_v57 = vmul.f32 1.442695, %v5446_v18  ;;  %v5442_v26 = vmax.f32 %v12802_v27, %v12804_v50  ;;  %v9054_v18 = vld [vmem:[%s10666_s5 + $0x1f0] sm:$0xf0] }
 0x835   : > { %v9756_v36 = vpop.eup %9755  ;;  %v4975_v11 = vpack.c.bf16 %v9754_v29, %v9750_v49  ;;  %v9465_v49 = vld [vmem:[%s10666_s5 + $0xe4] sm:$0xf] }
 0x836   : > { %9757 = vpow2.f32 %v5477_v40  ;;  %5443 = vmax.xlane.f32.xlu1 %v5442_v26  ;;  %4901 = vadd.xlane.f32.xlu0 %v12643_v43  ;;  %v4976_v1 = vpack.c.bf16 %v9756_v36, %v9752_v28  ;;  %v12809_v41 = vadd.f32 %v9756_v36, %v9754_v29  ;;  %v8926_v28 = vld [vmem:[%s10666_s5 + $0xf0] sm:$0xf0] }
 0x837   : > { %9759 = vpow2.f32 %v5479_v57  ;;  %v8929_v12 = vor.u32 %v9465_v49, %v8926_v28 }
 0x838   : > { %5116 = vmatmul.bf16.gmra.mxu2 %v4975_v11 }
 0x839   : > { %5165 = vmatmul.bf16.gmra.mxu3 %v4976_v1  ;;  %v5402_v47 = vpop.xlane.xlu2 %5401  ;;  %6457 = vmatpush.bf16.msra.mxu2 %v8929_v12 }
 0x83a   : > { %v5447_v5 = vsub.f32 %v12637_v58, %v5402_v47  ;;  %v5448_v46 = vsub.f32 %v12639_v51, %v5402_v47  ;;  %v9057_v58 = vor.u32 %v9497_v34, %v9054_v18 }
 0x83c   : > { %v9758_v56 = vpop.eup %9757  ;;  %v5481_v9 = vmul.f32 1.442695, %v5447_v5  ;;  %v5483_v44 = vmul.f32 1.442695, %v5448_v46  ;;  %6506 = vmatpush.bf16.msra.mxu3 %v9057_v58  ;;  %v8924_v5 = vld [vmem:[%s10666_s5 + $0xe0] sm:$0xf] }
 0x83d   : > { %v9760_v30 = vpop.eup %9759  ;;  %v9467_v46 = vld [vmem:[%s10666_s5 + $0xec] sm:$0xf0] }
 0x83e   : > { %9761 = vpow2.f32 %v5481_v9  ;;  %4904 = vadd.xlane.f32.xlu0 %v12657_v2  ;;  %v5541_v43 = vadd.f32 %v9760_v30, %v9758_v56  ;;  %v9052_v9 = vld [vmem:[%s10666_s5 + $0x1e0] sm:$0xf] }
 0x83f   : > { %9763 = vpow2.f32 %v5483_v44 }
 0x840   : > { %5542 = vadd.xlane.f32.xlu1 %v5541_v43 }
 0x841   : > { %v5405_v29 = vpop.xlane.xlu0 %5404 }
 0x842   : > { %v5449_v51 = vsub.f32 %v12651_v31, %v5405_v29  ;;  %v5450_v40 = vsub.f32 %v12653_v22, %v5405_v29  ;;  %v8925_v31 = vor.u32 %v9467_v46, %v8924_v5  ;;  %v9499_v22 = vld [vmem:[%s10666_s5 + $0x1ec] sm:$0xf0] }
 0x843   : > { %v9053_v43 = vor.u32 %v9499_v22, %v9052_v9 }
 0x844   : > { %v9762_v2 = vpop.eup %9761  ;;  %v5485_v57 = vmul.f32 1.442695, %v5449_v51  ;;  %v5487_v26 = vmul.f32 1.442695, %v5450_v40  ;;  %6359 = vmatpush.bf16.msra.mxu0 %v8925_v31  ;;  %v9461_v51 = vld [vmem:[%s10666_s5 + $0xc4] sm:$0xf] }
 0x845   : > { %v9764_v36 = vpop.eup %9763  ;;  %v5605_v11 = vpack.c.bf16 %v9762_v2, %v9758_v56  ;;  %6408 = vmatpush.bf16.msra.mxu1 %v9053_v43  ;;  %v8910_v40 = vld [vmem:[%s10666_s5 + $0xd0] sm:$0xf0]  ;;  %v8908_v43 = vld [vmem:[%s10666_s5 + $0xc0] sm:$0xf] }
 0x846   : > { %v5606_v1 = vpack.c.bf16 %v9764_v36, %v9760_v30  ;;  %9765 = vpow2.f32 %v5485_v57  ;;  %v5544_v47 = vadd.f32 %v9764_v36, %v9762_v2  ;;  %v9038_v2 = vld [vmem:[%s10666_s5 + $0x1d0] sm:$0xf0] }
 0x847   : > { %9767 = vpow2.f32 %v5487_v26 }
 0x848   : > { %5545 = vadd.xlane.f32.xlu2 %v5544_v47  ;;  %4907 = vadd.xlane.f32.xlu1 %v12667_v62 }
 0x849   : > { %5693 = vmatmul.bf16.vlgmr.msrb.gmra.mxu2 %v5605_v11  ;;  %5742 = vmatmul.bf16.vlgmr.msrb.gmra.mxu3 %v5606_v1  ;;  %v5408_v44 = vpop.xlane.xlu1 %5407 }
 0x84a   : > { %v5451_v56 = vsub.f32 %v12661_v4, %v5408_v44  ;;  %v5452_v30 = vsub.f32 %v12663_v48, %v5408_v44  ;;  %v9493_v4 = vld [vmem:[%s10666_s5 + $0x1c4] sm:$0xf]  ;;  %v8913_v48 = vor.u32 %v9461_v51, %v8910_v40 }
 0x84b   : > { %v5082_v49 = vpop.f32.mrf.mxu2  ;;  %v9041_v26 = vor.u32 %v9493_v4, %v9038_v2 }
 0x84c   : > { %v9766_v28 = vpop.eup %9765  ;;  %v5489_v34 = vmul.f32 1.442695, %v5451_v56  ;;  %v5491_v62 = vmul.f32 1.442695, %v5452_v30  ;;  %v5131_v12 = vpop.f32.mrf.mxu3  ;;  %6458 = vmatpush.bf16.msra.mxu2 %v8913_v48  ;;  %v9036_v56 = vld [vmem:[%s10666_s5 + $0x1c0] sm:$0xf] }
 0x84d   : > { %v9768_v18 = vpop.eup %9767  ;;  %v12827_v29 = vadd.f32 %v5131_v12, %v5082_v49  ;;  %6507 = vmatpush.bf16.msra.mxu3 %v9041_v26  ;;  %v9495_v49 = vld [vmem:[%s10666_s5 + $0x1cc] sm:$0xf0]  ;;  %v8894_v26 = vld [vmem:[%s10666_s5 + $0xb0] sm:$0xf0] }
 0x84e   : > { %9769 = vpow2.f32 %v5489_v34  ;;  %v5547_v58 = vadd.f32 %v9768_v18, %v9766_v28 }
 0x84f   : > { %9771 = vpow2.f32 %v5491_v62  ;;  %v9037_v62 = vor.u32 %v9495_v49, %v9036_v56  ;;  %v8892_v56 = vld [vmem:[%s10666_s5 + $0xa0] sm:$0xf] }
 0x850   : > { %4910 = vadd.xlane.f32.xlu1 %v12681_v10  ;;  %5548 = vadd.xlane.f32.xlu2 %v5547_v58 }
 0x851   : > { %v5411_v57 = vpop.xlane.xlu2 %5410  ;;  %6409 = vmatpush.bf16.msra.mxu1 %v9037_v62 }
 0x852   : > { %v5453_v36 = vsub.f32 %v12675_v25, %v5411_v57  ;;  %v5454_v11 = vsub.f32 %v12677_v53, %v5411_v57  ;;  %v9463_v53 = vld [vmem:[%s10666_s5 + $0xcc] sm:$0xf0]  ;;  %v9457_v57 = vld [vmem:[%s10666_s5 + $0xa4] sm:$0xf] }
 0x853   : > { %v5084_v1 = vpop.f32.mrf.mxu2  ;;  %v8909_v30 = vor.u32 %v9463_v53, %v8908_v43 }
 0x854   : > { %v9770_v47 = vpop.eup %9769  ;;  %v5493_v5 = vmul.f32 1.442695, %v5453_v36  ;;  %v5495_v46 = vmul.f32 1.442695, %v5454_v11  ;;  %v5133_v10 = vpop.f32.mrf.mxu3  ;;  %v9022_v36 = vld [vmem:[%s10666_s5 + $0x1b0] sm:$0xf0] }
 0x855   : > { %v9772_v9 = vpop.eup %9771  ;;  %v12836_v31 = vadd.f32 %v5133_v10, %v5084_v1  ;;  %v5607_v22 = vpack.c.bf16 %v9770_v47, %v9766_v28  ;;  %6360 = vmatpush.bf16.msra.mxu0 %v8909_v30  ;;  %v9020_v30 = vld [vmem:[%s10666_s5 + $0x1a0] sm:$0xf] }
 0x856   : > { %9773 = vpow2.f32 %v5493_v5  ;;  %v5550_v44 = vadd.f32 %v9772_v9, %v9770_v47  ;;  %v5608_v25 = vpack.c.bf16 %v9772_v9, %v9768_v18 }
 0x857   : > { %9775 = vpow2.f32 %v5495_v46 }
 0x858   : > { %5551 = vadd.xlane.f32.xlu0 %v5550_v44  ;;  %4913 = vadd.xlane.f32.xlu2 %v12691_v38 }
 0x859   : > { %5698 = vmatmul.bf16.gmra.mxu2 %v5607_v22  ;;  %5747 = vmatmul.bf16.gmra.mxu3 %v5608_v25  ;;  %v5414_v34 = vpop.xlane.xlu0 %5413 }
 0x85a   : > { %v5455_v28 = vsub.f32 %v12685_v45, %v5414_v34  ;;  %v5456_v12 = vsub.f32 %v12687_v6, %v5414_v34  ;;  %v9489_v45 = vld [vmem:[%s10666_s5 + $0x1a4] sm:$0xf]  ;;  %v8897_v6 = vor.u32 %v9457_v57, %v8894_v26  ;;  %v9491_v34 = vld [vmem:[%s10666_s5 + $0x1ac] sm:$0xf0] }
 0x85b   : > { %v5087_v18 = vpop.f32.mrf.mxu2  ;;  %v9025_v1 = vor.u32 %v9489_v45, %v9022_v36  ;;  %v9453_v26 = vld [vmem:[%s10666_s5 + $0x84] sm:$0xf]  ;;  %v8878_v45 = vld [vmem:[%s10666_s5 + $0x90] sm:$0xf0] }
 0x85c   : > { %v9774_v58 = vpop.eup %9773  ;;  %v5497_v51 = vmul.f32 1.442695, %v5455_v28  ;;  %v5499_v38 = vmul.f32 1.442695, %v5456_v12  ;;  %v5136_v40 = vpop.f32.mrf.mxu3  ;;  %6459 = vmatpush.bf16.msra.mxu2 %v8897_v6  ;;  %v9021_v28 = vor.u32 %v9491_v34, %v9020_v30  ;;  %v9006_v6 = vld [vmem:[%s10666_s5 + $0x190] sm:$0xf0] }
 0x85d   : > { %v9776_v4 = vpop.eup %9775  ;;  %v12845_v48 = vadd.f32 %v5136_v40, %v5087_v18  ;;  %6508 = vmatpush.bf16.msra.mxu3 %v9025_v1 }
 0x85e   : > { %9777 = vpow2.f32 %v5497_v51  ;;  %v5553_v2 = vadd.f32 %v9776_v4, %v9774_v58  ;;  %6410 = vmatpush.bf16.msra.mxu1 %v9021_v28 }
 0x85f   : > { %9779 = vpow2.f32 %v5499_v38 }
 0x860   : > { %5554 = vadd.xlane.f32.xlu0 %v5553_v2  ;;  %4916 = vadd.xlane.f32.xlu2 %v12705_v21 }
 0x861   : > { %v5417_v11 = vpop.xlane.xlu1 %5416 }
 0x862   : > { %v5457_v47 = vsub.f32 %v12699_v17, %v5417_v11  ;;  %v5458_v5 = vsub.f32 %v12701_v60, %v5417_v11  ;;  %v9459_v60 = vld [vmem:[%s10666_s5 + $0xac] sm:$0xf0] }
 0x863   : > { %v5089_v46 = vpop.f32.mrf.mxu2  ;;  %v8893_v49 = vor.u32 %v9459_v60, %v8892_v56  ;;  %v9487_v60 = vld [vmem:[%s10666_s5 + $0x18c] sm:$0xf0] }
 0x864   : > { %v9778_v10 = vpop.eup %9777  ;;  %v5501_v9 = vmul.f32 1.442695, %v5457_v47  ;;  %v5503_v22 = vmul.f32 1.442695, %v5458_v5  ;;  %v5138_v44 = vpop.f32.mrf.mxu3 }
 0x865   : > { %v9780_v21 = vpop.eup %9779  ;;  %v12854_v25 = vadd.f32 %v5138_v44, %v5089_v46  ;;  %v5609_v43 = vpack.c.bf16 %v9778_v10, %v9774_v58  ;;  %6361 = vmatpush.bf16.msra.mxu0 %v8893_v49 }
 0x866   : > { %9781 = vpow2.f32 %v5501_v9  ;;  %v5610_v53 = vpack.c.bf16 %v9780_v21, %v9776_v4  ;;  %v5556_v17 = vadd.f32 %v9780_v21, %v9778_v10 }
 0x867   : > { %9783 = vpow2.f32 %v5503_v22 }
 0x868   : > { %4919 = vadd.xlane.f32.xlu0 %v12715_v52  ;;  %5557 = vadd.xlane.f32.xlu1 %v5556_v17  ;;  %v9004_v17 = vld [vmem:[%s10666_s5 + $0x180] sm:$0xf] }
 0x869   : > { %5703 = vmatmul.bf16.gmra.mxu2 %v5609_v43  ;;  %5752 = vmatmul.bf16.gmra.mxu3 %v5610_v53  ;;  %v5420_v62 = vpop.xlane.xlu2 %5419  ;;  %v8876_v53 = vld [vmem:[%s10666_s5 + $0x80] sm:$0xf]  ;;  %v9005_v49 = vor.u32 %v9487_v60, %v9004_v17 }
 0x86a   : > { %v5459_v12 = vsub.f32 %v12709_v63, %v5420_v62  ;;  %v5460_v18 = vsub.f32 %v12711_v59, %v5420_v62  ;;  %v9485_v63 = vld [vmem:[%s10666_s5 + $0x184] sm:$0xf]  ;;  %v8881_v59 = vor.u32 %v9453_v26, %v8878_v45 }
 0x86b   : > { %v5092_v58 = vpop.f32.mrf.mxu2  ;;  %v9009_v11 = vor.u32 %v9485_v63, %v9006_v6  ;;  %6411 = vmatpush.bf16.msra.mxu1 %v9005_v49  ;;  %v9483_v49 = vld [vmem:[%s10666_s5 + $0x16c] sm:$0xf0] }
 0x86c   : > { %v9782_v51 = vpop.eup %9781  ;;  %v5505_v52 = vmul.f32 1.442695, %v5459_v12  ;;  %v5507_v38 = vmul.f32 1.442695, %v5460_v18  ;;  %v5141_v40 = vpop.f32.mrf.mxu3  ;;  %6460 = vmatpush.bf16.msra.mxu2 %v8881_v59 }
 0x86d   : > { %v9784_v4 = vpop.eup %9783  ;;  %v12863_v2 = vadd.f32 %v5141_v40, %v5092_v58  ;;  %6509 = vmatpush.bf16.msra.mxu3 %v9009_v11  ;;  %v9449_v40 = vld [vmem:[%s10666_s5 + $0x64] sm:$0xf] }
 0x86e   : > { %9785 = vpow2.f32 %v5505_v52  ;;  %v5559_v57 = vadd.f32 %v9784_v4, %v9782_v51 }
 0x86f   : > { %9787 = vpow2.f32 %v5507_v38 }
 0x870   : > { %4922 = vadd.xlane.f32.xlu0 %v12729_v24  ;;  %5560 = vadd.xlane.f32.xlu1 %v5559_v57  ;;  %v8990_v57 = vld [vmem:[%s10666_s5 + $0x170] sm:$0xf0] }
 0x871   : > { %v5423_v36 = vpop.xlane.xlu0 %5422 }
 0x872   : > { %v5461_v1 = vsub.f32 %v12723_v23, %v5423_v36  ;;  %v5462_v47 = vsub.f32 %v12725_v8, %v5423_v36  ;;  %v9455_v8 = vld [vmem:[%s10666_s5 + $0x8c] sm:$0xf0] }
 0x873   : > { %v5094_v5 = vpop.f32.mrf.mxu2  ;;  %v8877_v56 = vor.u32 %v9455_v8, %v8876_v53 }
 0x874   : > { %v9786_v46 = vpop.eup %9785  ;;  %v5509_v10 = vmul.f32 1.442695, %v5461_v1  ;;  %v5511_v9 = vmul.f32 1.442695, %v5462_v47  ;;  %v5143_v24 = vpop.f32.mrf.mxu3 }
 0x875   : > { %v9788_v22 = vpop.eup %9787  ;;  %v12872_v44 = vadd.f32 %v5143_v24, %v5094_v5  ;;  %v5611_v21 = vpack.c.bf16 %v9786_v46, %v9782_v51  ;;  %6362 = vmatpush.bf16.msra.mxu0 %v8877_v56  ;;  %v9451_v24 = vld [vmem:[%s10666_s5 + $0x6c] sm:$0xf0] }
 0x876   : > { %9789 = vpow2.f32 %v5509_v10  ;;  %v5562_v43 = vadd.f32 %v9788_v22, %v9786_v46  ;;  %v5612_v23 = vpack.c.bf16 %v9788_v22, %v9784_v4  ;;  %v8862_v4 = vld [vmem:[%s10666_s5 + $0x70] sm:$0xf0] }
 0x877   : > { %9791 = vpow2.f32 %v5511_v9 }
 0x878   : > { %5563 = vadd.xlane.f32.xlu2 %v5562_v43  ;;  %4925 = vadd.xlane.f32.xlu1 %v12739_v7 }
 0x879   : > { %5708 = vmatmul.bf16.gmra.mxu2 %v5611_v21  ;;  %5757 = vmatmul.bf16.gmra.mxu3 %v5612_v23  ;;  %v5426_v30 = vpop.xlane.xlu1 %5425 }
 0x87a   : > { %v5463_v34 = vsub.f32 %v12733_v61, %v5426_v30  ;;  %v5464_v62 = vsub.f32 %v12735_v20, %v5426_v30  ;;  %v9481_v61 = vld [vmem:[%s10666_s5 + $0x164] sm:$0xf]  ;;  %v8865_v20 = vor.u32 %v9449_v40, %v8862_v4  ;;  %v8988_v30 = vld [vmem:[%s10666_s5 + $0x160] sm:$0xf] }
 0x87b   : > { %v5097_v28 = vpop.f32.mrf.mxu2  ;;  %v8993_v45 = vor.u32 %v9481_v61, %v8990_v57 }
 0x87c   : > { %v9790_v12 = vpop.eup %9789  ;;  %v5513_v18 = vmul.f32 1.442695, %v5463_v34  ;;  %v5515_v7 = vmul.f32 1.442695, %v5464_v62  ;;  %v5146_v58 = vpop.f32.mrf.mxu3  ;;  %6461 = vmatpush.bf16.msra.mxu2 %v8865_v20  ;;  %v8844_v34 = vld [vmem:[%s10666_s5 + $0x40] sm:$0xf]  ;;  %v8989_v62 = vor.u32 %v9483_v49, %v8988_v30 }
 0x87d   : > { %v9792_v51 = vpop.eup %9791  ;;  %v12881_v52 = vadd.f32 %v5146_v58, %v5097_v28  ;;  %6510 = vmatpush.bf16.msra.mxu3 %v8993_v45  ;;  %v8812_v45 = vld [vmem:[%s10666_s5] sm:$0xf] }
 0x87e   : > { %9793 = vpow2.f32 %v5513_v18  ;;  %v5565_v38 = vadd.f32 %v9792_v51, %v9790_v12  ;;  %6412 = vmatpush.bf16.msra.mxu1 %v8989_v62  ;;  %v8828_v18 = vld [vmem:[%s10666_s5 + $0x20] sm:$0xf]  ;;  %v9437_v62 = vld [vmem:[%s10666_s5 + $0x4] sm:$0xf] }
 0x87f   : > { %9795 = vpow2.f32 %v5515_v7  ;;  %v9443_v7 = vld [vmem:[%s10666_s5 + $0x2c] sm:$0xf0] }
 0x880   : > { %4928 = vadd.xlane.f32.xlu1 %v12753_v13  ;;  %5566 = vadd.xlane.f32.xlu2 %v5565_v38  ;;  %v8829_v38 = vor.u32 %v9443_v7, %v8828_v18 }
 0x881   : > { %v5429_v26 = vpop.xlane.xlu2 %5428 }
 0x882   : > { %v5465_v63 = vsub.f32 %v12747_v54, %v5429_v26  ;;  %v5466_v59 = vsub.f32 %v12749_v15, %v5429_v26  ;;  %v8860_v15 = vld [vmem:[%s10666_s5 + $0x60] sm:$0xf] }
 0x883   : > { %v5099_v6 = vpop.f32.mrf.mxu2  ;;  %v8861_v43 = vor.u32 %v9451_v24, %v8860_v15 }
 0x884   : > { %v9794_v36 = vpop.eup %9793  ;;  %v5517_v11 = vmul.f32 1.442695, %v5465_v63  ;;  %v5519_v1 = vmul.f32 1.442695, %v5466_v59  ;;  %v5148_v47 = vpop.f32.mrf.mxu3  ;;  %v9439_v63 = vld [vmem:[%s10666_s5 + $0xc] sm:$0xf0] }
 0x885   : > { %v9796_v5 = vpop.eup %9795  ;;  %v12890_v13 = vadd.f32 %v5148_v47, %v5099_v6  ;;  %v5613_v46 = vpack.c.bf16 %v9794_v36, %v9790_v12  ;;  %6363 = vmatpush.bf16.msra.mxu0 %v8861_v43  ;;  %v8813_v59 = vor.u32 %v9439_v63, %v8812_v45  ;;  %v9445_v6 = vld [vmem:[%s10666_s5 + $0x44] sm:$0xf]  ;;  %v8974_v47 = vld [vmem:[%s10666_s5 + $0x150] sm:$0xf0] }
 0x886   : > { %9797 = vpow2.f32 %v5517_v11  ;;  %v5568_v10 = vadd.f32 %v9796_v5, %v9794_v36  ;;  %v5614_v9 = vpack.c.bf16 %v9796_v5, %v9792_v51  ;;  %v8846_v36 = vld [vmem:[%s10666_s5 + $0x50] sm:$0xf0]  ;;  %v9477_v11 = vld [vmem:[%s10666_s5 + $0x144] sm:$0xf] }
 0x887   : > { %9799 = vpow2.f32 %v5519_v1  ;;  %v8849_v1 = vor.u32 %v9445_v6, %v8846_v36 }
 0x888   : > { %5569 = vadd.xlane.f32.xlu0 %v5568_v10  ;;  %4931 = vadd.xlane.f32.xlu2 %v12763_v14 }
 0x889   : > { %5713 = vmatmul.bf16.gmra.mxu2 %v5613_v46  ;;  %5762 = vmatmul.bf16.gmra.mxu3 %v5614_v9  ;;  %v5432_v54 = vpop.xlane.xlu0 %5431  ;;  %v8977_v46 = vor.u32 %v9477_v11, %v8974_v47 }
 0x88a   : > { %v5467_v22 = vsub.f32 %v12757_v0, %v5432_v54  ;;  %v5468_v21 = vsub.f32 %v12759_v42, %v5432_v54  ;;  %v9447_v42 = vld [vmem:[%s10666_s5 + $0x4c] sm:$0xf0]  ;;  %6462 = vmatpush.bf16.msra.mxu2 %v8849_v1 }
 0x88b   : > { %v5102_v23 = vpop.f32.mrf.mxu2  ;;  %v8845_v28 = vor.u32 %v9447_v42, %v8844_v34  ;;  %6511 = vmatpush.bf16.msra.mxu3 %v8977_v46  ;;  %v8814_v42 = vld [vmem:[%s10666_s5 + $0x10] sm:$0xf0] }
 0x88c   : > { %v9798_v53 = vpop.eup %9797  ;;  %v5521_v8 = vmul.f32 1.442695, %v5467_v22  ;;  %v5523_v17 = vmul.f32 1.442695, %v5468_v21  ;;  %v5151_v56 = vpop.f32.mrf.mxu3  ;;  %v8817_v7 = vor.u32 %v9437_v62, %v8814_v42 }
 0x88d   : > { %v9800_v14 = vpop.eup %9799  ;;  %v12897_v60 = vadd.f32 %v5151_v56, %v5102_v23  ;;  %6364 = vmatpush.bf16.msra.mxu0 %v8845_v28  ;;  %v8972_v23 = vld [vmem:[%s10666_s5 + $0x140] sm:$0xf] }
 0x88e   : > { %9801 = vpow2.f32 %v5521_v8  ;;  %v5571_v0 = vadd.f32 %v9800_v14, %v9798_v53  ;;  %v9441_v8 = vld [vmem:[%s10666_s5 + $0x24] sm:$0xf] }
 0x88f   : > { %9803 = vpow2.f32 %v5523_v17  ;;  %v8830_v17 = vld [vmem:[%s10666_s5 + $0x30] sm:$0xf0] }
 0x890   : > { %5572 = vadd.xlane.f32.xlu0 %v5571_v0  ;;  %4934 = vadd.xlane.f32.xlu2 %v12777_v16  ;;  %v8833_v56 = vor.u32 %v9441_v8, %v8830_v17  ;;  %v9469_v17 = vld [vmem:[%s10666_s5 + $0x104] sm:$0xf] }
 0x891   : > { %v5435_v12 = vpop.xlane.xlu1 %5434  ;;  %6365 = vmatpush.bf16.msra.mxu0 %v8829_v38 }
 0x892   : > { %v5469_v58 = vsub.f32 %v12771_v39, %v5435_v12  ;;  %v5470_v51 = vsub.f32 %v12773_v32, %v5435_v12  ;;  %6463 = vmatpush.bf16.msra.mxu2 %v8833_v56  ;;  %v8942_v56 = vld [vmem:[%s10666_s5 + $0x110] sm:$0xf0] }
 0x893   : > { %v12908_v40 = vpop.f32.mrf.mxu2 }
 0x894   : > { %v9802_v4 = vpop.eup %9801  ;;  %v5525_v61 = vmul.f32 1.442695, %v5469_v58  ;;  %v5527_v16 = vmul.f32 1.442695, %v5470_v51  ;;  %v12910_v20 = vpop.f32.mrf.mxu3 }
 0x895   : > { %v9804_v57 = vpop.eup %9803  ;;  %v5615_v26 = vpack.c.bf16 %v9802_v4, %v9798_v53  ;;  %6366 = vmatpush.bf16.msra.mxu0 %v8813_v59  ;;  %v9479_v53 = vld [vmem:[%s10666_s5 + $0x14c] sm:$0xf0] }
 0x896   : > { %9805 = vpow2.f32 %v5525_v61  ;;  %v5616_v39 = vpack.c.bf16 %v9804_v57, %v9800_v14  ;;  %v5574_v32 = vadd.f32 %v9804_v57, %v9802_v4  ;;  %6464 = vmatpush.bf16.msra.mxu2 %v8817_v7  ;;  %v8958_v4 = vld [vmem:[%s10666_s5 + $0x130] sm:$0xf0] }
 0x897   : > { %9807 = vpow2.f32 %v5527_v16 }
 0x898   : > { %4937 = vadd.xlane.f32.xlu0 %v12787_v19  ;;  %5575 = vadd.xlane.f32.xlu1 %v5574_v32 }
 0x899   : > { %5718 = vmatmul.bf16.gmra.mxu2 %v5615_v26  ;;  %5767 = vmatmul.bf16.gmra.mxu3 %v5616_v39  ;;  %v5438_v5 = vpop.xlane.xlu2 %5437 }
 0x89a   : > { %v5471_v10 = vsub.f32 %v12781_v55, %v5438_v5  ;;  %v5472_v9 = vsub.f32 %v12783_v37, %v5438_v5  ;;  %v8973_v37 = vor.u32 %v9479_v53, %v8972_v23  ;;  %v8956_v5 = vld [vmem:[%s10666_s5 + $0x120] sm:$0xf] }
 0x89b   : > { %v5107_v54 = vpop.f32.mrf.mxu2 }
 0x89c   : > { %v9806_v19 = vpop.eup %9805  ;;  %v5529_v15 = vmul.f32 1.442695, %v5471_v10  ;;  %v5531_v24 = vmul.f32 1.442695, %v5472_v9  ;;  %v5156_v22 = vpop.f32.mrf.mxu3  ;;  %6413 = vmatpush.bf16.msra.mxu1 %v8973_v37 }
 0x89d   : > { %v9808_v21 = vpop.eup %9807  ;;  %v12921_v43 = vadd.f32 %v5156_v22, %v5107_v54 }
 0x89e   : > { %9809 = vpow2.f32 %v5529_v15  ;;  %v5577_v55 = vadd.f32 %v9808_v21, %v9806_v19 }
 0x89f   : > { %9811 = vpow2.f32 %v5531_v24 }
 0x8a0   : > { %4940 = vadd.xlane.f32.xlu0 %v12798_v35  ;;  %5578 = vadd.xlane.f32.xlu1 %v5577_v55 }
 0x8a1   : > { %v4899_v14 = vpop.xlane.xlu2 %4898  ;;  %v5441_v30 = vpop.xlane.xlu0 %5440 }
 0x8a2   : > { %v5473_v49 = vsub.f32 %v12791_v3, %v5441_v30  ;;  %v5474_v34 = vsub.f32 %v12793_v33, %v5441_v30  ;;  %9813 = vrcp.f32 %v4899_v14  ;;  %v9473_v33 = vld [vmem:[%s10666_s5 + $0x124] sm:$0xf]  ;;  %v8945_v14 = vor.u32 %v9469_v17, %v8942_v56  ;;  %v8940_v30 = vld [vmem:[%s10666_s5 + $0x100] sm:$0xf] }
 0x8a3   : > { %v12930_v0 = vpop.f32.mrf.mxu2  ;;  %v8961_v57 = vor.u32 %v9473_v33, %v8958_v4 }
 0x8a4   : > { %v9810_v28 = vpop.eup %9809  ;;  %v5533_v12 = vmul.f32 1.442695, %v5473_v49  ;;  %v5535_v35 = vmul.f32 1.442695, %v5474_v34  ;;  %v12934_v18 = vpop.f32.mrf.mxu3  ;;  %v9471_v49 = vld [vmem:[%s10666_s5 + $0x10c] sm:$0xf0] }
 0x8a5   : > { %v9812_v58 = vpop.eup %9811  ;;  %v5617_v51 = vpack.c.bf16 %v9810_v28, %v9806_v19  ;;  %6512 = vmatpush.bf16.msra.mxu3 %v8961_v57  ;;  %v8941_v34 = vor.u32 %v9471_v49, %v8940_v30 }
 0x8a6   : > { %9815 = vpow2.f32 %v5533_v12  ;;  %v5580_v3 = vadd.f32 %v9812_v58, %v9810_v28  ;;  %v5618_v38 = vpack.c.bf16 %v9812_v58, %v9808_v21 }
 0x8a7   : > { %9817 = vpow2.f32 %v5535_v35 }
 0x8a8   : > { %5581 = vadd.xlane.f32.xlu2 %v5580_v3  ;;  %4943 = vadd.xlane.f32.xlu1 %v12809_v41  ;;  %v9814_v26 = vpop.eup %9813 }
 0x8a9   : > { %5723 = vmatmul.bf16.gmra.mxu2 %v5617_v51  ;;  %5772 = vmatmul.bf16.gmra.mxu3 %v5618_v38  ;;  %v5444_v61 = vpop.xlane.xlu1 %5443  ;;  %v4902_v16 = vpop.xlane.xlu0 %4901  ;;  %v5171_v11 = vmul.f32 %v9814_v26, %v12827_v29 }
 0x8aa   : > { %v5475_v45 = vsub.f32 %v12802_v27, %v5444_v61  ;;  %v5476_v63 = vsub.f32 %v12804_v50, %v5444_v61  ;;  %9819 = vrcp.f32 %v4902_v16  ;;  %v9475_v27 = vld [vmem:[%s10666_s5 + $0x12c] sm:$0xf0]  ;;  %6513 = vmatpush.bf16.msra.mxu3 %v8945_v14 }
 0x8ab   : > { %v5112_v39 = vpop.f32.mrf.mxu2  ;;  %v8957_v50 = vor.u32 %v9475_v27, %v8956_v5  ;;  %v5187_v10 = vpack.c.bf16 %v5171_v11, %v5171_v11 }
 0x8ac   : > { %v9816_v32 = vpop.eup %9815  ;;  %v5537_v59 = vmul.f32 1.442695, %v5475_v45  ;;  %v5539_v41 = vmul.f32 1.442695, %v5476_v63  ;;  %v5161_v6 = vpop.f32.mrf.mxu3  ;;  %v9466_v63 = vld [vmem:[%s10666_s5 + $0xec] sm:$0xf] }
 0x8ad   : > { %v9818_v36 = vpop.eup %9817  ;;  %v12942_v1 = vadd.f32 %v5161_v6, %v5112_v39  ;;  %6414 = vmatpush.bf16.msra.mxu1 %v8957_v50  ;;  %v5831_v23 = vunpack.c.l.b16 %v5187_v10  ;;  %v8934_v39 = vld [vmem:[%s10666_s5 + $0xf8] sm:$0xf0]  ;;  %v8932_v50 = vld [vmem:[%s10666_s5 + $0xe8] sm:$0xf]  ;;  %v9468_v10 = vld [vmem:[%s10666_s5 + $0xf4] sm:$0xf0] }
 0x8ae   : > { %9821 = vpow2.f32 %v5537_v59  ;;  %v5583_v47 = vadd.f32 %v9818_v36, %v9816_v32  ;;  %v9062_v59 = vld [vmem:[%s10666_s5 + $0x1f8] sm:$0xf0] }
 0x8af   : > { %9823 = vpow2.f32 %v5539_v41 }
 0x8b0   : > { %v9820_v46 = vpop.eup %9819  ;;  %5584 = vadd.xlane.f32.xlu2 %v5583_v47 }
 0x8b1   : > { %v5172_v9 = vmul.f32 %v9820_v46, %v12836_v31  ;;  %v4905_v24 = vpop.xlane.xlu0 %4904  ;;  %6415 = vmatpush.bf16.msra.mxu1 %v8941_v34 }
 0x8b2   : > { %9825 = vrcp.f32 %v4905_v24 }
 0x8b3   : > { %v5188_v54 = vpack.c.bf16 %v5172_v9, %v5172_v9  ;;  %v12947_v19 = vpop.f32.mrf.mxu2  ;;  %v5543_v29 = vpop.xlane.xlu1 %5542  ;;  %v9060_v9 = vld [vmem:[%s10666_s5 + $0x1e8] sm:$0xf] }
 0x8b4   : > { %v9822_v15 = vpop.eup %9821  ;;  %v12949_v22 = vpop.f32.mrf.mxu3 }
 0x8b5   : > { %v9824_v21 = vpop.eup %9823  ;;  %v5832_v53 = vunpack.c.l.b16 %v5188_v54  ;;  %v5619_v55 = vpack.c.bf16 %v9822_v15, %v9816_v32  ;;  %v9498_v32 = vld [vmem:[%s10666_s5 + $0x1ec] sm:$0xf] }
 0x8b6   : > { %v5586_v37 = vadd.f32 %v9824_v21, %v9822_v15  ;;  %v5620_v8 = vpack.c.bf16 %v9824_v21, %v9818_v36  ;;  %v8933_v15 = vor.u32 %v9468_v10, %v8932_v50 }
 0x8b7   : > { %v12951_v31 = vpack.c.b16 %v5832_v53, %v5831_v23 }
 0x8b8   : > { %5587 = vadd.xlane.f32.xlu0 %v5586_v37  ;;  %v9826_v35 = vpop.eup %9825  ;;  %6555 = vmatpush.bf16.msrb.mxu0 %v8933_v15 }
 0x8b9   : > { %5728 = vmatmul.bf16.gmra.mxu2 %v5619_v55  ;;  %5777 = vmatmul.bf16.gmra.mxu3 %v5620_v8  ;;  %v5173_v58 = vmul.f32 %v9826_v35, %v12845_v48  ;;  %v8937_v48 = vor.u32 %v9466_v63, %v8934_v39 }
 0x8ba   : > { %6367 = vmatmul.bf16.vlgmr.msra.gmra.mxu0 %v12951_v31 }
 0x8bb   : > { %v5546_v62 = vpop.xlane.xlu2 %5545  ;;  %v4908_v42 = vpop.xlane.xlu1 %4907  ;;  %v5189_v33 = vpack.c.bf16 %v5173_v58, %v5173_v58  ;;  %6653 = vmatpush.bf16.msrb.mxu2 %v8937_v48 }
 0x8bc   : > { %v5117_v28 = vpop.f32.mrf.mxu2  ;;  %v5166_v12 = vpop.f32.mrf.mxu3  ;;  %9827 = vrcp.f32 %v4908_v42 }
 0x8bd   : > { %v12958_v7 = vadd.f32 %v5166_v12, %v5117_v28  ;;  %v5833_v26 = vunpack.c.l.b16 %v5189_v33  ;;  %v9462_v28 = vld [vmem:[%s10666_s5 + $0xcc] sm:$0xf] }
 0x8be   : > { %v9494_v12 = vld [vmem:[%s10666_s5 + $0x1cc] sm:$0xf] }
 0x8c2   : > { %v9828_v51 = vpop.eup %9827 }
 0x8c3   : > { %v4911_v3 = vpop.xlane.xlu1 %4910  ;;  %v12961_v38 = vpop.xlane.xlu2 %5548  ;;  %v5174_v4 = vmul.f32 %v9828_v51, %v12854_v25  ;;  %v9065_v25 = vor.u32 %v9498_v32, %v9062_v59 }
 0x8c4   : > { %v12964_v61 = vpop.f32.mrf.mxu2  ;;  %v12966_v16 = vpop.f32.mrf.mxu3  ;;  %9829 = vrcp.f32 %v4911_v3  ;;  %v9046_v3 = vld [vmem:[%s10666_s5 + $0x1d8] sm:$0xf0] }
 0x8c5   : > { %v5190_v57 = vpack.c.bf16 %v5174_v4, %v5174_v4  ;;  %9831 = vrcp.f32 %v5543_v29  ;;  %6702 = vmatpush.bf16.msrb.mxu3 %v9065_v25  ;;  %v9500_v29 = vld [vmem:[%s10666_s5 + $0x1f4] sm:$0xf0]  ;;  %v9049_v33 = vor.u32 %v9494_v12, %v9046_v3  ;;  %v8916_v25 = vld [vmem:[%s10666_s5 + $0xc8] sm:$0xf] }
 0x8c6   : > { %v9061_v23 = vor.u32 %v9500_v29, %v9060_v9 }
 0x8c7   : > { %v5834_v45 = vunpack.c.l.b16 %v5190_v57 }
 0x8c8   : > { %6604 = vmatpush.bf16.msrb.mxu1 %v9061_v23 }
 0x8c9   : > { %6465 = vmatmul.bf16.vlgmr.msra.gmra.mxu2 %v12951_v31  ;;  %v12973_v41 = vpack.c.b16 %v5834_v45, %v5833_v26  ;;  %6703 = vmatpush.bf16.msrb.mxu3 %v9049_v33 }
 0x8ca   : > { %v9830_v6 = vpop.eup %9829 }
 0x8cb   : > { %v4914_v36 = vpop.xlane.xlu2 %4913  ;;  %v5552_v11 = vpop.xlane.xlu0 %5551  ;;  %6372 = vmatmul.bf16.gmra.mxu0 %v12973_v41  ;;  %v5175_v27 = vmul.f32 %v9830_v6, %v12863_v2  ;;  %v9464_v6 = vld [vmem:[%s10666_s5 + $0xd4] sm:$0xf0] }
 0x8cc   : > { %v5694_v47 = vpop.f32.mrf.mxu2  ;;  %v5743_v5 = vpop.f32.mrf.mxu3  ;;  %9833 = vrcp.f32 %v4914_v36  ;;  %v9044_v36 = vld [vmem:[%s10666_s5 + $0x1c8] sm:$0xf] }
 0x8cd   : > { %v5744_v46 = vadd.f32 %v5743_v5, %v5694_v47  ;;  %9835 = vrcp.f32 %v5546_v62  ;;  %v9832_v54 = vpop.eup %9831  ;;  %v5191_v21 = vpack.c.bf16 %v5175_v27, %v5175_v27  ;;  %v8917_v47 = vor.u32 %v9464_v6, %v8916_v25  ;;  %v9496_v5 = vld [vmem:[%s10666_s5 + $0x1d4] sm:$0xf0] }
 0x8ce   : > { %v9045_v27 = vor.u32 %v9496_v5, %v9044_v36  ;;  %v5154_v6 = vadd.f32 %v12910_v20, %v12908_v40 }
 0x8cf   : > { %v5783_v53 = vmul.f32 %v9832_v54, %v5744_v46  ;;  %v5835_v49 = vunpack.c.l.b16 %v5191_v21  ;;  %6556 = vmatpush.bf16.msrb.mxu0 %v8917_v47 }
 0x8d0   : > { %6605 = vmatpush.bf16.msrb.mxu1 %v9045_v27 }
 0x8d1   : > { %v5799_v34 = vpack.c.bf16 %v5783_v53, %v5783_v53 }
 0x8d2   : > { %v9834_v24 = vpop.eup %9833 }
 0x8d3   : > { %v5176_v55 = vmul.f32 %v9834_v24, %v12872_v44  ;;  %v4917_v37 = vpop.xlane.xlu2 %4916  ;;  %v12982_v8 = vpop.xlane.xlu0 %5554  ;;  %v8918_v44 = vld [vmem:[%s10666_s5 + $0xd8] sm:$0xf0]  ;;  %v5879_v4 = vunpack.c.l.b16 %v5799_v34 }
 0x8d4   : > { %v5696_v2 = vpop.f32.mrf.mxu2  ;;  %v5745_v17 = vpop.f32.mrf.mxu3  ;;  %9837 = vrcp.f32 %v4917_v37  ;;  %v8921_v51 = vor.u32 %v9462_v28, %v8918_v44  ;;  %v9458_v37 = vld [vmem:[%s10666_s5 + $0xac] sm:$0xf] }
 0x8d5   : > { %v5192_v56 = vpack.c.bf16 %v5176_v55, %v5176_v55  ;;  %v5746_v14 = vadd.f32 %v5745_v17, %v5696_v2  ;;  %v9836_v30 = vpop.eup %9835  ;;  %9839 = vrcp.f32 %v12961_v38  ;;  %v8902_v2 = vld [vmem:[%s10666_s5 + $0xb8] sm:$0xf0]  ;;  %v9490_v17 = vld [vmem:[%s10666_s5 + $0x1ac] sm:$0xf] }
 0x8d6   : > { %6654 = vmatpush.bf16.msrb.mxu2 %v8921_v51 }
 0x8d7   : > { %v5836_v62 = vunpack.c.l.b16 %v5192_v56  ;;  %v5784_v42 = vmul.f32 %v9836_v30, %v5746_v14  ;;  %v8905_v30 = vor.u32 %v9458_v37, %v8902_v2 }
 0x8d9   : > { %v5800_v35 = vpack.c.bf16 %v5784_v42, %v5784_v42  ;;  %6470 = vmatmul.bf16.gmra.mxu2 %v12973_v41  ;;  %v12988_v58 = vpack.c.b16 %v5836_v62, %v5835_v49  ;;  %v9030_v49 = vld [vmem:[%s10666_s5 + $0x1b8] sm:$0xf0] }
 0x8da   : > { %v9838_v32 = vpop.eup %9837  ;;  %v9033_v62 = vor.u32 %v9490_v17, %v9030_v49  ;;  %6655 = vmatpush.bf16.msrb.mxu2 %v8905_v30 }
 0x8db   : > { %v5880_v57 = vunpack.c.l.b16 %v5800_v35  ;;  %v12991_v26 = vpop.xlane.xlu1 %5557  ;;  %v4920_v45 = vpop.xlane.xlu0 %4919  ;;  %6377 = vmatmul.bf16.gmra.mxu0 %v12988_v58  ;;  %v5177_v38 = vmul.f32 %v9838_v32, %v12881_v52  ;;  %v9492_v32 = vld [vmem:[%s10666_s5 + $0x1b4] sm:$0xf0] }
 0x8dc   : > { %v5699_v63 = vpop.f32.mrf.mxu2  ;;  %v5748_v39 = vpop.f32.mrf.mxu3  ;;  %9841 = vrcp.f32 %v4920_v45  ;;  %6704 = vmatpush.bf16.msrb.mxu3 %v9033_v62  ;;  %v9460_v45 = vld [vmem:[%s10666_s5 + $0xb4] sm:$0xf0] }
 0x8dd   : > { %v12995_v48 = vpack.c.b16 %v5880_v57, %v5879_v4  ;;  %v5749_v59 = vadd.f32 %v5748_v39, %v5699_v63  ;;  %9843 = vrcp.f32 %v5552_v11  ;;  %v9840_v46 = vpop.eup %9839  ;;  %v5193_v15 = vpack.c.bf16 %v5177_v38, %v5177_v38  ;;  %v8900_v57 = vld [vmem:[%s10666_s5 + $0xa8] sm:$0xf] }
 0x8de   : > { %v9028_v63 = vld [vmem:[%s10666_s5 + $0x1a8] sm:$0xf]  ;;  %v8901_v39 = vor.u32 %v9460_v45, %v8900_v57  ;;  %v9488_v57 = vld [vmem:[%s10666_s5 + $0x194] sm:$0xf0] }
 0x8df   : > { %6416 = vmatmul.bf16.vlgmr.msra.gmra.mxu1 %v12995_v48  ;;  %6514 = vmatmul.bf16.vlgmr.msra.gmra.mxu3 %v12995_v48  ;;  %v5785_v10 = vmul.f32 %v9840_v46, %v5749_v59  ;;  %v5837_v56 = vunpack.c.l.b16 %v5193_v15  ;;  %v9029_v59 = vor.u32 %v9492_v32, %v9028_v63 }
 0x8e0   : > { %6557 = vmatpush.bf16.msrb.mxu0 %v8901_v39 }
 0x8e1   : > { %v5801_v53 = vpack.c.bf16 %v5785_v10, %v5785_v10  ;;  %6606 = vmatpush.bf16.msrb.mxu1 %v9029_v59 }
 0x8e2   : > { %v9842_v50 = vpop.eup %9841 }
 0x8e3   : > { %v13004_v9 = vpop.xlane.xlu1 %5560  ;;  %v4923_v54 = vpop.xlane.xlu0 %4922  ;;  %v5178_v11 = vmul.f32 %v9842_v50, %v12890_v13  ;;  %v5881_v42 = vunpack.c.l.b16 %v5801_v53  ;;  %v9014_v53 = vld [vmem:[%s10666_s5 + $0x198] sm:$0xf0] }
 0x8e4   : > { %v5701_v29 = vpop.f32.mrf.mxu2  ;;  %v5750_v52 = vpop.f32.mrf.mxu3  ;;  %9845 = vrcp.f32 %v4923_v54 }
 0x8e5   : > { %v5751_v24 = vadd.f32 %v5750_v52, %v5701_v29  ;;  %v9844_v21 = vpop.eup %9843  ;;  %v5194_v23 = vpack.c.bf16 %v5178_v11, %v5178_v11  ;;  %9847 = vrcp.f32 %v12982_v8  ;;  %v9454_v29 = vld [vmem:[%s10666_s5 + $0x8c] sm:$0xf]  ;;  %v8886_v52 = vld [vmem:[%s10666_s5 + $0x98] sm:$0xf0] }
 0x8e7   : > { %v5786_v55 = vmul.f32 %v9844_v21, %v5751_v24  ;;  %v5838_v14 = vunpack.c.l.b16 %v5194_v23  ;;  %v9486_v24 = vld [vmem:[%s10666_s5 + $0x18c] sm:$0xf]  ;;  %v8889_v23 = vor.u32 %v9454_v29, %v8886_v52 }
 0x8e8   : > { %v9017_v37 = vor.u32 %v9486_v24, %v9014_v53 }
 0x8e9   : > { %v5802_v34 = vpack.c.bf16 %v5786_v55, %v5786_v55  ;;  %6475 = vmatmul.bf16.gmra.mxu2 %v12988_v58  ;;  %v13012_v13 = vpack.c.b16 %v5838_v14, %v5837_v56 }
 0x8ea   : > { %v9846_v3 = vpop.eup %9845  ;;  %6656 = vmatpush.bf16.msrb.mxu2 %v8889_v23  ;;  %6705 = vmatpush.bf16.msrb.mxu3 %v9017_v37 }
 0x8eb   : > { %v5882_v28 = vunpack.c.l.b16 %v5802_v34  ;;  %v13014_v44 = vpop.xlane.xlu2 %5563  ;;  %v4926_v12 = vpop.xlane.xlu1 %4925  ;;  %6382 = vmatmul.bf16.gmra.mxu0 %v13012_v13  ;;  %v5179_v8 = vmul.f32 %v9846_v3, %v12897_v60  ;;  %v5159_v3 = vadd.f32 %v12934_v18, %v12930_v0 }
 0x8ec   : > { %v5704_v35 = vpop.f32.mrf.mxu2  ;;  %v5753_v51 = vpop.f32.mrf.mxu3  ;;  %9849 = vrcp.f32 %v4926_v12  ;;  %v9456_v12 = vld [vmem:[%s10666_s5 + $0x94] sm:$0xf0] }
 0x8ed   : > { %v13018_v33 = vpack.c.b16 %v5882_v28, %v5881_v42  ;;  %v5754_v4 = vadd.f32 %v5753_v51, %v5704_v35  ;;  %9851 = vrcp.f32 %v12991_v26  ;;  %v9848_v25 = vpop.eup %9847  ;;  %v5195_v26 = vpack.c.bf16 %v5179_v8, %v5179_v8  ;;  %v8884_v28 = vld [vmem:[%s10666_s5 + $0x88] sm:$0xf] }
 0x8ee   : > { %v9012_v35 = vld [vmem:[%s10666_s5 + $0x188] sm:$0xf] }
 0x8ef   : > { %6421 = vmatmul.bf16.gmra.mxu1 %v13018_v33  ;;  %6519 = vmatmul.bf16.gmra.mxu3 %v13018_v33  ;;  %v5787_v38 = vmul.f32 %v9848_v25, %v5754_v4  ;;  %v5839_v15 = vunpack.c.l.b16 %v5195_v26  ;;  %v8885_v4 = vor.u32 %v9456_v12, %v8884_v28  ;;  %v9013_v8 = vor.u32 %v9488_v57, %v9012_v35 }
 0x8f0   : > { %v5164_v35 = vadd.f32 %v12949_v22, %v12947_v19  ;;  %v8982_v19 = vld [vmem:[%s10666_s5 + $0x158] sm:$0xf0] }
 0x8f1   : > { %v5803_v40 = vpack.c.bf16 %v5787_v38, %v5787_v38  ;;  %6558 = vmatpush.bf16.msrb.mxu0 %v8885_v4  ;;  %6607 = vmatpush.bf16.msrb.mxu1 %v9013_v8  ;;  %v9446_v8 = vld [vmem:[%s10666_s5 + $0x4c] sm:$0xf] }
 0x8f2   : > { %v9850_v36 = vpop.eup %9849 }
 0x8f3   : > { %v4929_v47 = vpop.xlane.xlu1 %4928  ;;  %v13030_v5 = vpop.xlane.xlu2 %5566  ;;  %v5180_v27 = vmul.f32 %v9850_v36, %v5154_v6  ;;  %v5883_v17 = vunpack.c.l.b16 %v5803_v40  ;;  %v8998_v40 = vld [vmem:[%s10666_s5 + $0x178] sm:$0xf0] }
 0x8f4   : > { %v5706_v60 = vpop.f32.mrf.mxu2  ;;  %v5755_v46 = vpop.f32.mrf.mxu3  ;;  %9853 = vrcp.f32 %v4929_v47 }
 0x8f5   : > { %v5756_v50 = vadd.f32 %v5755_v46, %v5706_v60  ;;  %v9852_v10 = vpop.eup %9851  ;;  %v5196_v54 = vpack.c.bf16 %v5180_v27, %v5180_v27  ;;  %9855 = vrcp.f32 %v13004_v9  ;;  %v9450_v27 = vld [vmem:[%s10666_s5 + $0x6c] sm:$0xf]  ;;  %v8870_v60 = vld [vmem:[%s10666_s5 + $0x78] sm:$0xf0] }
 0x8f6   : > { %v9482_v46 = vld [vmem:[%s10666_s5 + $0x16c] sm:$0xf] }
 0x8f7   : > { %v5788_v20 = vmul.f32 %v9852_v10, %v5756_v50  ;;  %v5840_v11 = vunpack.c.l.b16 %v5196_v54  ;;  %v8873_v54 = vor.u32 %v9450_v27, %v8870_v60 }
 0x8f9   : > { %v5804_v21 = vpack.c.bf16 %v5788_v20, %v5788_v20  ;;  %6480 = vmatmul.bf16.gmra.mxu2 %v13012_v13  ;;  %v13037_v55 = vpack.c.b16 %v5840_v11, %v5839_v15  ;;  %v9001_v20 = vor.u32 %v9482_v46, %v8998_v40  ;;  %v8868_v15 = vld [vmem:[%s10666_s5 + $0x68] sm:$0xf]  ;;  %v9452_v11 = vld [vmem:[%s10666_s5 + $0x74] sm:$0xf0] }
 0x8fa   : > { %v9854_v2 = vpop.eup %9853  ;;  %6657 = vmatpush.bf16.msrb.mxu2 %v8873_v54  ;;  %v8869_v23 = vor.u32 %v9452_v11, %v8868_v15 }
 0x8fb   : > { %v5884_v56 = vunpack.c.l.b16 %v5804_v21  ;;  %v4932_v14 = vpop.xlane.xlu2 %4931  ;;  %v13040_v30 = vpop.xlane.xlu0 %5569  ;;  %6387 = vmatmul.bf16.gmra.mxu0 %v13037_v55  ;;  %v5181_v9 = vmul.f32 %v9854_v2, %v12921_v43  ;;  %6706 = vmatpush.bf16.msrb.mxu3 %v9001_v20 }
 0x8fc   : > { %v5709_v49 = vpop.f32.mrf.mxu2  ;;  %v5758_v34 = vpop.f32.mrf.mxu3  ;;  %9857 = vrcp.f32 %v4932_v14  ;;  %6559 = vmatpush.bf16.msrb.mxu0 %v8869_v23  ;;  %v9484_v14 = vld [vmem:[%s10666_s5 + $0x174] sm:$0xf0] }
 0x8fd   : > { %v13043_v62 = vpack.c.b16 %v5884_v56, %v5883_v17  ;;  %v5759_v42 = vadd.f32 %v5758_v34, %v5709_v49  ;;  %9859 = vrcp.f32 %v13014_v44  ;;  %v9856_v51 = vpop.eup %9855  ;;  %v5197_v63 = vpack.c.bf16 %v5181_v9, %v5181_v9  ;;  %v8996_v56 = vld [vmem:[%s10666_s5 + $0x168] sm:$0xf]  ;;  %v9448_v9 = vld [vmem:[%s10666_s5 + $0x54] sm:$0xf0] }
 0x8fe   : > { %v8997_v49 = vor.u32 %v9484_v14, %v8996_v56  ;;  %v8852_v34 = vld [vmem:[%s10666_s5 + $0x48] sm:$0xf]  ;;  %v8838_v14 = vld [vmem:[%s10666_s5 + $0x38] sm:$0xf0] }
 0x8ff   : > { %6426 = vmatmul.bf16.gmra.mxu1 %v13043_v62  ;;  %6524 = vmatmul.bf16.gmra.mxu3 %v13043_v62  ;;  %v5789_v43 = vmul.f32 %v9856_v51, %v5759_v42  ;;  %v5841_v36 = vunpack.c.l.b16 %v5197_v63  ;;  %v8836_v51 = vld [vmem:[%s10666_s5 + $0x28] sm:$0xf] }
 0x900   : > { %6608 = vmatpush.bf16.msrb.mxu1 %v8997_v49 }
 0x901   : > { %v5805_v38 = vpack.c.bf16 %v5789_v43, %v5789_v43  ;;  %v8854_v43 = vld [vmem:[%s10666_s5 + $0x58] sm:$0xf0] }
 0x902   : > { %v9858_v45 = vpop.eup %9857 }
 0x903   : > { %v5182_v39 = vmul.f32 %v9858_v45, %v5159_v3  ;;  %v4935_v32 = vpop.xlane.xlu2 %4934  ;;  %v13055_v59 = vpop.xlane.xlu0 %5572  ;;  %v5885_v29 = vunpack.c.l.b16 %v5805_v38  ;;  %v9444_v3 = vld [vmem:[%s10666_s5 + $0x34] sm:$0xf0]  ;;  %v8820_v38 = vld [vmem:[%s10666_s5 + $0x8] sm:$0xf] }
 0x904   : > { %v5711_v44 = vpop.f32.mrf.mxu2  ;;  %v5760_v25 = vpop.f32.mrf.mxu3  ;;  %9861 = vrcp.f32 %v4935_v32 }
 0x905   : > { %v5198_v6 = vpack.c.bf16 %v5182_v39, %v5182_v39  ;;  %v5761_v0 = vadd.f32 %v5760_v25, %v5711_v44  ;;  %v9860_v18 = vpop.eup %9859  ;;  %9863 = vrcp.f32 %v13030_v5  ;;  %v8853_v5 = vor.u32 %v9448_v9, %v8852_v34 }
 0x907   : > { %v5842_v47 = vunpack.c.l.b16 %v5198_v6  ;;  %v5790_v26 = vmul.f32 %v9860_v18, %v5761_v0  ;;  %6560 = vmatpush.bf16.msrb.mxu0 %v8853_v5  ;;  %v8857_v6 = vor.u32 %v9446_v8, %v8854_v43  ;;  %v8822_v8 = vld [vmem:[%s10666_s5 + $0x18] sm:$0xf0] }
 0x909   : > { %v5806_v50 = vpack.c.bf16 %v5790_v26, %v5790_v26  ;;  %6485 = vmatmul.bf16.gmra.mxu2 %v13037_v55  ;;  %v13061_v10 = vpack.c.b16 %v5842_v47, %v5841_v36  ;;  %v9440_v47 = vld [vmem:[%s10666_s5 + $0x14] sm:$0xf0] }
 0x90a   : > { %v9862_v2 = vpop.eup %9861  ;;  %6658 = vmatpush.bf16.msrb.mxu2 %v8857_v6  ;;  %v8821_v60 = vor.u32 %v9440_v47, %v8820_v38  ;;  %v8964_v38 = vld [vmem:[%s10666_s5 + $0x128] sm:$0xf]  ;;  %v9476_v47 = vld [vmem:[%s10666_s5 + $0x134] sm:$0xf0] }
 0x90b   : > { %v5886_v52 = vunpack.c.l.b16 %v5806_v50  ;;  %v13066_v24 = vpop.xlane.xlu1 %5575  ;;  %v4938_v21 = vpop.xlane.xlu0 %4937  ;;  %6392 = vmatmul.bf16.gmra.mxu0 %v13061_v10  ;;  %v5183_v28 = vmul.f32 %v9862_v2, %v12942_v1  ;;  %v8837_v1 = vor.u32 %v9444_v3, %v8836_v51  ;;  %v9438_v51 = vld [vmem:[%s10666_s5 + $0xc] sm:$0xf] }
 0x90c   : > { %v5714_v53 = vpop.f32.mrf.mxu2  ;;  %v5763_v37 = vpop.f32.mrf.mxu3  ;;  %9865 = vrcp.f32 %v4938_v21  ;;  %v8825_v43 = vor.u32 %v9438_v51, %v8822_v8 }
 0x90d   : > { %v13070_v17 = vpack.c.b16 %v5886_v52, %v5885_v29  ;;  %v5764_v42 = vadd.f32 %v5763_v37, %v5714_v53  ;;  %9867 = vrcp.f32 %v13040_v30  ;;  %v9864_v12 = vpop.eup %9863  ;;  %v9478_v30 = vld [vmem:[%s10666_s5 + $0x14c] sm:$0xf]  ;;  %v5199_v39 = vpack.c.bf16 %v5183_v28, %v5183_v28  ;;  %6561 = vmatpush.bf16.msrb.mxu0 %v8837_v1  ;;  %v8980_v53 = vld [vmem:[%s10666_s5 + $0x148] sm:$0xf]  ;;  %v9480_v37 = vld [vmem:[%s10666_s5 + $0x154] sm:$0xf0] }
 0x90e   : > { %v8985_v0 = vor.u32 %v9478_v30, %v8982_v19  ;;  %v8981_v2 = vor.u32 %v9480_v37, %v8980_v53 }
 0x90f   : > { %6431 = vmatmul.bf16.gmra.mxu1 %v13070_v17  ;;  %6529 = vmatmul.bf16.gmra.mxu3 %v13070_v17  ;;  %v5791_v57 = vmul.f32 %v9864_v12, %v5764_v42  ;;  %v5843_v46 = vunpack.c.l.b16 %v5199_v39  ;;  %v5169_v42 = vadd.f32 %v12966_v16, %v12964_v61  ;;  %v9474_v12 = vld [vmem:[%s10666_s5 + $0x12c] sm:$0xf] }
 0x910   : > { %6707 = vmatpush.bf16.msrb.mxu3 %v8985_v0  ;;  %6609 = vmatpush.bf16.msrb.mxu1 %v8981_v2 }
 0x911   : > { %v5807_v26 = vpack.c.bf16 %v5791_v57, %v5791_v57  ;;  %6562 = vmatpush.bf16.msrb.mxu0 %v8821_v60  ;;  %v9470_v60 = vld [vmem:[%s10666_s5 + $0x10c] sm:$0xf] }
 0x912   : > { %v9866_v4 = vpop.eup %9865 }
 0x913   : > { %v13084_v45 = vpop.xlane.xlu1 %5578  ;;  %v4941_v63 = vpop.xlane.xlu0 %4940  ;;  %v5184_v32 = vmul.f32 %v9866_v4, %v5164_v35  ;;  %v5887_v20 = vunpack.c.l.b16 %v5807_v26  ;;  %v8966_v35 = vld [vmem:[%s10666_s5 + $0x138] sm:$0xf0]  ;;  %v8965_v26 = vor.u32 %v9476_v47, %v8964_v38  ;;  %v5912_v47 = vld [vmem:[#allocation2 + $0x1b0] sm:$0xff] }
 0x914   : > { %v5716_v44 = vpop.f32.mrf.mxu2  ;;  %v5765_v25 = vpop.f32.mrf.mxu3  ;;  %9869 = vrcp.f32 %v4941_v63 }
 0x915   : > { %v5766_v22 = vadd.f32 %v5765_v25, %v5716_v44  ;;  %v9868_v18 = vpop.eup %9867  ;;  %v5200_v36 = vpack.c.bf16 %v5184_v32, %v5184_v32  ;;  %9871 = vrcp.f32 %v13055_v59  ;;  %v9442_v59 = vld [vmem:[%s10666_s5 + $0x2c] sm:$0xf]  ;;  %6610 = vmatpush.bf16.msrb.mxu1 %v8965_v26 }
 0x916   : > { %v8841_v34 = vor.u32 %v9442_v59, %v8838_v14 }
 0x917   : > { %v5792_v27 = vmul.f32 %v9868_v18, %v5766_v22  ;;  %v5844_v50 = vunpack.c.l.b16 %v5200_v36 }
 0x918   : > { %6659 = vmatpush.bf16.msrb.mxu2 %v8841_v34 }
 0x919   : > { %v5808_v54 = vpack.c.bf16 %v5792_v27, %v5792_v27  ;;  %6490 = vmatmul.bf16.gmra.mxu2 %v13061_v10  ;;  %v13093_v40 = vpack.c.b16 %v5844_v50, %v5843_v46  ;;  %v8950_v46 = vld [vmem:[%s10666_s5 + $0x118] sm:$0xf0] }
 0x91a   : > { %v9870_v21 = vpop.eup %9869 }
 0x91b   : > { %v5888_v15 = vunpack.c.l.b16 %v5808_v54  ;;  %v4944_v11 = vpop.xlane.xlu1 %4943  ;;  %6397 = vmatmul.bf16.gmra.mxu0 %v13093_v40  ;;  %v5185_v49 = vmul.f32 %v9870_v21, %v12958_v7  ;;  %v9872_v9 = vpop.eup %9871 }
 0x91c   : > { %v5719_v29 = vpop.f32.mrf.mxu2  ;;  %v5768_v52 = vpop.f32.mrf.mxu3  ;;  %9873 = vrcp.f32 %v4944_v11  ;;  %6660 = vmatpush.bf16.msrb.mxu2 %v8825_v43  ;;  %v8948_v11 = vld [vmem:[%s10666_s5 + $0x108] sm:$0xf] }
 0x91d   : > { %v13097_v23 = vpack.c.b16 %v5888_v15, %v5887_v20  ;;  %v5769_v56 = vadd.f32 %v5768_v52, %v5719_v29  ;;  %9875 = vrcp.f32 %v13066_v24  ;;  %v5201_v3 = vpack.c.bf16 %v5185_v49, %v5185_v49  ;;  %v5582_v18 = vpop.xlane.xlu2 %5581  ;;  %v9472_v29 = vld [vmem:[%s10666_s5 + $0x114] sm:$0xf0] }
 0x91e   : > { %v8969_v24 = vor.u32 %v9474_v12, %v8966_v35  ;;  %9877 = vrcp.f32 %v13084_v45  ;;  %v8953_v45 = vor.u32 %v9470_v60, %v8950_v46  ;;  %v8949_v21 = vor.u32 %v9472_v29, %v8948_v11  ;;  %v5915_v60 = vld [vmem:[#allocation2 + $0x50] sm:$0xff]  ;;  %v5919_v29 = vld [vmem:[#allocation2 + $0x180] sm:$0xff] }
 0x91f   : > { %6436 = vmatmul.bf16.gmra.mxu1 %v13097_v23  ;;  %6534 = vmatmul.bf16.gmra.mxu3 %v13097_v23  ;;  %v5793_v28 = vmul.f32 %v9872_v9, %v5769_v56  ;;  %v5845_v16 = vunpack.c.l.b16 %v5201_v3  ;;  %9879 = vrcp.f32 %v5582_v18 }
 0x920   : > { %6708 = vmatpush.bf16.msrb.mxu3 %v8969_v24  ;;  %6611 = vmatpush.bf16.msrb.mxu1 %v8949_v21 }
 0x921   : > { %v5809_v39 = vpack.c.bf16 %v5793_v28, %v5793_v28 }
 0x922   : > { %v9874_v5 = vpop.eup %9873 }
 0x923   : > { %v5186_v4 = vmul.f32 %v9874_v5, %v5169_v42  ;;  %v9876_v30 = vpop.eup %9875  ;;  %v5889_v6 = vunpack.c.l.b16 %v5809_v39 }
 0x924   : > { %v5721_v57 = vpop.f32.mrf.mxu2  ;;  %v5770_v63 = vpop.f32.mrf.mxu3  ;;  %6709 = vmatpush.bf16.msrb.mxu3 %v8953_v45 }
 0x925   : > { %v5771_v7 = vadd.f32 %v5770_v63, %v5721_v57  ;;  %v5202_v1 = vpack.c.bf16 %v5186_v4, %v5186_v4  ;;  %v9878_v50 = vpop.eup %9877  ;;  %v5585_v59 = vpop.xlane.xlu2 %5584 }
 0x926   : > { %v9880_v53 = vpop.eup %9879  ;;  %9881 = vrcp.f32 %v5585_v59 }
 0x927   : > { %v5794_v61 = vmul.f32 %v9876_v30, %v5771_v7  ;;  %v5846_v32 = vunpack.c.l.b16 %v5202_v1 }
 0x929   : > { %v5810_v44 = vpack.c.bf16 %v5794_v61, %v5794_v61  ;;  %6495 = vmatmul.bf16.gmra.mxu2 %v13093_v40  ;;  %v13114_v25 = vpack.c.b16 %v5846_v32, %v5845_v16 }
 0x92b   : > { %v5890_v19 = vunpack.c.l.b16 %v5810_v44  ;;  %6402 = vmatmul.bf16.gmra.mxu0 %v13114_v25  ;;  %v5588_v5 = vpop.xlane.xlu0 %5587 }
 0x92c   : > { %v5724_v22 = vpop.f32.mrf.mxu2  ;;  %v5773_v0 = vpop.f32.mrf.mxu3  ;;  %9883 = vrcp.f32 %v5588_v5 }
 0x92d   : > { %v13118_v36 = vpack.c.b16 %v5890_v19, %v5889_v6  ;;  %v5774_v27 = vadd.f32 %v5773_v0, %v5724_v22  ;;  %v9882_v51 = vpop.eup %9881  ;;  %v5911_v19 = vld [vmem:[#allocation2 + $0xb0] sm:$0xff] }
 0x92f   : > { %6441 = vmatmul.bf16.gmra.mxu1 %v13118_v36  ;;  %6539 = vmatmul.bf16.gmra.mxu3 %v13118_v36  ;;  %v5795_v54 = vmul.f32 %v9878_v50, %v5774_v27 }
 0x931   : > { %v5811_v37 = vpack.c.bf16 %v5795_v54, %v5795_v54 }
 0x932   : > { %v9884_v24 = vpop.eup %9883 }
 0x933   : > { %v5891_v49 = vunpack.c.l.b16 %v5811_v37 }
 0x934   : > { %v5726_v20 = vpop.f32.mrf.mxu2  ;;  %v5775_v15 = vpop.f32.mrf.mxu3 }
 0x935   : > { %v5776_v52 = vadd.f32 %v5775_v15, %v5726_v20  ;;  %v5916_v15 = vld [vmem:[#allocation2 + $0x168] sm:$0xff] }
 0x937   : > { %v5796_v2 = vmul.f32 %v9880_v53, %v5776_v52  ;;  %v6368_v56 = vpop.f32.mrf.mxu0 }
 0x939   : > { %v5812_v14 = vpack.c.bf16 %v5796_v2, %v5796_v2  ;;  %6500 = vmatmul.bf16.gmra.mxu2 %v13114_v25 }
 0x93b   : > { %v5892_v34 = vunpack.c.l.b16 %v5812_v14  ;;  %6563 = vmatmul.bf16.vlgmr.msrb.gmra.mxu0 %v12951_v31 }
 0x93c   : > { %v5729_v9 = vpop.f32.mrf.mxu2  ;;  %v5778_v42 = vpop.f32.mrf.mxu3 }
 0x93d   : > { %v13130_v28 = vpack.c.b16 %v5892_v34, %v5891_v49  ;;  %v5779_v12 = vadd.f32 %v5778_v42, %v5729_v9  ;;  %v5923_v49 = vld [vmem:[#allocation2 + $0x120] sm:$0xff] }
 0x93f   : > { %6446 = vmatmul.bf16.gmra.mxu1 %v13130_v28  ;;  %6544 = vmatmul.bf16.gmra.mxu3 %v13130_v28  ;;  %v6370_v35 = vpop.f32.mrf.mxu0  ;;  %v5797_v3 = vmul.f32 %v9882_v51, %v5779_v12  ;;  %v5924_v51 = vld [vmem:[#allocation2 + $0x150] sm:$0xff] }
 0x941   : > { %v5813_v8 = vpack.c.bf16 %v5797_v3, %v5797_v3 }
 0x943   : > { %v5893_v1 = vunpack.c.l.b16 %v5813_v8 }
 0x944   : > { %v5731_v4 = vpop.f32.mrf.mxu2  ;;  %v5780_v57 = vpop.f32.mrf.mxu3 }
 0x945   : > { %v5781_v63 = vadd.f32 %v5780_v57, %v5731_v4  ;;  %v5927_v4 = vld [vmem:[#allocation2 + $0xe0] sm:$0xff] }
 0x947   : > { %v5798_v7 = vmul.f32 %v9884_v24, %v5781_v63 }
 0x948   : > { %v6373_v30 = vpop.f32.mrf.mxu0 }
 0x949   : > { %v5814_v43 = vpack.c.bf16 %v5798_v7, %v5798_v7  ;;  %6661 = vmatmul.bf16.vlgmr.msrb.gmra.mxu2 %v12951_v31 }
 0x94b   : > { %v5894_v39 = vunpack.c.l.b16 %v5814_v43  ;;  %6568 = vmatmul.bf16.gmra.mxu0 %v12973_v41 }
 0x94c   : > { %v6466_v61 = vpop.f32.mrf.mxu2 }
 0x94d   : > { %v13136_v16 = vpack.c.b16 %v5894_v39, %v5893_v1  ;;  %v5931_v39 = vld [vmem:[#allocation2 + $0x80] sm:$0xff] }
 0x94f   : > { %6451 = vmatmul.bf16.gmra.mxu1 %v13136_v16  ;;  %6549 = vmatmul.bf16.gmra.mxu3 %v13136_v16 }
 0x950   : > { %v6375_v32 = vpop.f32.mrf.mxu0 }
 0x954   : > { %v6468_v44 = vpop.f32.mrf.mxu2 }
 0x958   : > { %v6378_v6 = vpop.f32.mrf.mxu0 }
 0x959   : > { %6666 = vmatmul.bf16.gmra.mxu2 %v12973_v41 }
 0x95b   : > { %6573 = vmatmul.bf16.gmra.mxu0 %v12988_v58 }
 0x95c   : > { %v6417_v22 = vpop.f32.mrf.mxu1  ;;  %v6471_v0 = vpop.f32.mrf.mxu2 }
 0x95d   : > { %v6418_v31 = vadd.f32 %v6417_v22, %v6368_v56 }
 0x95f   : > { %v6751_v18 = vadd.f32 %v6418_v31, %v5911_v19  ;;  %6612 = vmatmul.bf16.vlgmr.msrb.gmra.mxu1 %v12995_v48  ;;  %6710 = vmatmul.bf16.vlgmr.msrb.gmra.mxu3 %v12995_v48 }
 0x960   : > { %v13144_v38 = vpop.f32.mrf.mxu0 }
 0x961   : > { %6815 = vst [vmem:[#allocation2 + $0xb0] sm:$0xff] %v6751_v18  ;;  %v5935_v18 = vld [vmem:[#allocation2 + $0x1e8] sm:$0xff] }
 0x962   : > { %v6515_v26 = vpop.f32.mrf.mxu3 }
 0x963   : > { %v6516_v27 = vadd.f32 %v6515_v26, %v6466_v61 }
 0x964   : > { %v6419_v46 = vpop.f32.mrf.mxu1  ;;  %v6473_v41 = vpop.f32.mrf.mxu2 }
 0x965   : > { %v6752_v45 = vadd.f32 %v6516_v27, %v5912_v47  ;;  %v6420_v50 = vadd.f32 %v6419_v46, %v6370_v35 }
 0x967   : > { %6816 = vst [vmem:[#allocation2 + $0x1b0] sm:$0xff] %v6752_v45  ;;  %v6755_v54 = vadd.f32 %v6420_v50, %v5915_v60  ;;  %v5939_v50 = vld [vmem:[#allocation2 + $0x1e0] sm:$0xff] }
 0x968   : > { %v13146_v20 = vpop.f32.mrf.mxu0 }
 0x969   : > { %6819 = vst [vmem:[#allocation2 + $0x50] sm:$0xff] %v6755_v54  ;;  %6671 = vmatmul.bf16.gmra.mxu2 %v12988_v58  ;;  %v5920_v58 = vld [vmem:[#allocation2 + $0x110] sm:$0xff] }
 0x96a   : > { %v6517_v48 = vpop.f32.mrf.mxu3 }
 0x96b   : > { %v6518_v11 = vadd.f32 %v6517_v48, %v6468_v44  ;;  %6578 = vmatmul.bf16.gmra.mxu0 %v13012_v13 }
 0x96c   : > { %v6422_v52 = vpop.f32.mrf.mxu1  ;;  %v6476_v21 = vpop.f32.mrf.mxu2 }
 0x96d   : > { %v6756_v53 = vadd.f32 %v6518_v11, %v5916_v15  ;;  %v6423_v37 = vadd.f32 %v6422_v52, %v6373_v30 }
 0x96f   : > { %6820 = vst [vmem:[#allocation2 + $0x168] sm:$0xff] %v6756_v53  ;;  %v6759_v2 = vadd.f32 %v6423_v37, %v5919_v29  ;;  %6617 = vmatmul.bf16.gmra.mxu1 %v13018_v33  ;;  %6715 = vmatmul.bf16.gmra.mxu3 %v13018_v33  ;;  %v5943_v53 = vld [vmem:[#allocation2 + $0x148] sm:$0xff] }
 0x970   : > { %v13152_v56 = vpop.f32.mrf.mxu0 }
 0x971   : > { %6823 = vst [vmem:[#allocation2 + $0x180] sm:$0xff] %v6759_v2 }
 0x972   : > { %v6520_v59 = vpop.f32.mrf.mxu3 }
 0x973   : > { %v6521_v14 = vadd.f32 %v6520_v59, %v6471_v0 }
 0x974   : > { %v6424_v34 = vpop.f32.mrf.mxu1  ;;  %v6478_v9 = vpop.f32.mrf.mxu2 }
 0x975   : > { %v6760_v42 = vadd.f32 %v6521_v14, %v5920_v58  ;;  %v6425_v5 = vadd.f32 %v6424_v34, %v6375_v32 }
 0x977   : > { %6824 = vst [vmem:[#allocation2 + $0x110] sm:$0xff] %v6760_v42  ;;  %v6763_v12 = vadd.f32 %v6425_v5, %v5923_v49 }
 0x978   : > { %v13154_v35 = vpop.f32.mrf.mxu0 }
 0x979   : > { %6827 = vst [vmem:[#allocation2 + $0x120] sm:$0xff] %v6763_v12  ;;  %6676 = vmatmul.bf16.gmra.mxu2 %v13012_v13  ;;  %v5928_v13 = vld [vmem:[#allocation2 + $0x188] sm:$0xff] }
 0x97a   : > { %v6522_v33 = vpop.f32.mrf.mxu3 }
 0x97b   : > { %v6523_v3 = vadd.f32 %v6522_v33, %v6473_v41  ;;  %6583 = vmatmul.bf16.gmra.mxu0 %v13037_v55 }
 0x97c   : > { %v6427_v57 = vpop.f32.mrf.mxu1  ;;  %v6481_v63 = vpop.f32.mrf.mxu2 }
 0x97d   : > { %v6764_v24 = vadd.f32 %v6523_v3, %v5924_v51  ;;  %v6428_v8 = vadd.f32 %v6427_v57, %v6378_v6  ;;  %v5948_v3 = vld [vmem:[#allocation2 + $0x1f8] sm:$0xff]  ;;  %v5951_v57 = vld [vmem:[#allocation2 + $0x1a0] sm:$0xff] }
 0x97f   : > { %6828 = vst [vmem:[#allocation2 + $0x150] sm:$0xff] %v6764_v24  ;;  %v6767_v7 = vadd.f32 %v6428_v8, %v5927_v4  ;;  %6622 = vmatmul.bf16.gmra.mxu1 %v13043_v62  ;;  %6720 = vmatmul.bf16.gmra.mxu3 %v13043_v62  ;;  %v5932_v62 = vld [vmem:[#allocation2 + $0x1a8] sm:$0xff] }
 0x980   : > { %v13160_v43 = vpop.f32.mrf.mxu0 }
 0x981   : > { %6831 = vst [vmem:[#allocation2 + $0xe0] sm:$0xff] %v6767_v7 }
 0x982   : > { %v6525_v30 = vpop.f32.mrf.mxu3 }
 0x983   : > { %v6526_v1 = vadd.f32 %v6525_v30, %v6476_v21 }
 0x984   : > { %v6429_v61 = vpop.f32.mrf.mxu1  ;;  %v6483_v32 = vpop.f32.mrf.mxu2 }
 0x985   : > { %v6768_v44 = vadd.f32 %v6526_v1, %v5928_v13  ;;  %v6430_v19 = vadd.f32 %v6429_v61, %v13144_v38 }
 0x987   : > { %6832 = vst [vmem:[#allocation2 + $0x188] sm:$0xff] %v6768_v44  ;;  %v6771_v6 = vadd.f32 %v6430_v19, %v5931_v39  ;;  %v5955_v39 = vld [vmem:[#allocation2 + $0x70] sm:$0xff] }
 0x988   : > { %v13163_v22 = vpop.f32.mrf.mxu0 }
 0x989   : > { %6835 = vst [vmem:[#allocation2 + $0x80] sm:$0xff] %v6771_v6  ;;  %6681 = vmatmul.bf16.gmra.mxu2 %v13037_v55  ;;  %v5936_v55 = vld [vmem:[#allocation2 + $0xf8] sm:$0xff] }
 0x98a   : > { %v6527_v0 = vpop.f32.mrf.mxu3 }
 0x98b   : > { %v6528_v31 = vadd.f32 %v6527_v0, %v6478_v9  ;;  %6588 = vmatmul.bf16.gmra.mxu0 %v13061_v10  ;;  %v5947_v9 = vld [vmem:[#allocation2 + $0x40] sm:$0xff] }
 0x98c   : > { %v6432_v47 = vpop.f32.mrf.mxu1  ;;  %v6486_v26 = vpop.f32.mrf.mxu2 }
 0x98d   : > { %v6772_v27 = vadd.f32 %v6528_v31, %v5932_v62  ;;  %v6433_v60 = vadd.f32 %v6432_v47, %v13146_v20 }
 0x98f   : > { %6836 = vst [vmem:[#allocation2 + $0x1a8] sm:$0xff] %v6772_v27  ;;  %v6775_v38 = vadd.f32 %v6433_v60, %v5935_v18  ;;  %6627 = vmatmul.bf16.gmra.mxu1 %v13070_v17  ;;  %6725 = vmatmul.bf16.gmra.mxu3 %v13070_v17  ;;  %v5940_v17 = vld [vmem:[#allocation2] sm:$0xff] }
 0x990   : > { %v13170_v46 = vpop.f32.mrf.mxu0 }
 0x991   : > { %6839 = vst [vmem:[#allocation2 + $0x1e8] sm:$0xff] %v6775_v38  ;;  %v5960_v38 = vld [vmem:[#allocation2 + $0x88] sm:$0xff] }
 0x992   : > { %v6530_v41 = vpop.f32.mrf.mxu3 }
 0x993   : > { %v6531_v45 = vadd.f32 %v6530_v41, %v6481_v63 }
 0x994   : > { %v6434_v54 = vpop.f32.mrf.mxu1  ;;  %v6488_v15 = vpop.f32.mrf.mxu2 }
 0x995   : > { %v6776_v48 = vadd.f32 %v6531_v45, %v5936_v55  ;;  %v6435_v11 = vadd.f32 %v6434_v54, %v13152_v56  ;;  %v5963_v55 = vld [vmem:[#allocation2 + $0x170] sm:$0xff] }
 0x997   : > { %6840 = vst [vmem:[#allocation2 + $0xf8] sm:$0xff] %v6776_v48  ;;  %v6779_v20 = vadd.f32 %v6435_v11, %v5939_v50  ;;  %v5964_v11 = vld [vmem:[#allocation2 + $0x178] sm:$0xff] }
 0x998   : > { %v13173_v29 = vpop.f32.mrf.mxu0 }
 0x999   : > { %6843 = vst [vmem:[#allocation2 + $0x1e0] sm:$0xff] %v6779_v20  ;;  %6686 = vmatmul.bf16.gmra.mxu2 %v13061_v10  ;;  %v5944_v10 = vld [vmem:[#allocation2 + $0x1d0] sm:$0xff] }
 0x99a   : > { %v6532_v52 = vpop.f32.mrf.mxu3 }
 0x99b   : > { %v6533_v21 = vadd.f32 %v6532_v52, %v6483_v32  ;;  %6593 = vmatmul.bf16.gmra.mxu0 %v13093_v40 }
 0x99c   : > { %v6437_v37 = vpop.f32.mrf.mxu1  ;;  %v6491_v2 = vpop.f32.mrf.mxu2 }
 0x99d   : > { %v6780_v58 = vadd.f32 %v6533_v21, %v5940_v17  ;;  %v6438_v59 = vadd.f32 %v6437_v37, %v13154_v35  ;;  %v5967_v17 = vld [vmem:[#allocation2 + $0x198] sm:$0xff] }
 0x99f   : > { %6844 = vst [vmem:[#allocation2] sm:$0xff] %v6780_v58  ;;  %v6783_v56 = vadd.f32 %v6438_v59, %v5943_v53  ;;  %6632 = vmatmul.bf16.gmra.mxu1 %v13097_v23  ;;  %6730 = vmatmul.bf16.gmra.mxu3 %v13097_v23  ;;  %v5968_v58 = vld [vmem:[#allocation2 + $0x38] sm:$0xff] }
 0x9a0   : > { %v6400_v14 = vpop.f32.mrf.mxu0 }
 0x9a1   : > { %6847 = vst [vmem:[#allocation2 + $0x148] sm:$0xff] %v6783_v56 }
 0x9a2   : > { %v6535_v49 = vpop.f32.mrf.mxu3 }
 0x9a3   : > { %v6536_v34 = vadd.f32 %v6535_v49, %v6486_v26 }
 0x9a4   : > { %v6439_v42 = vpop.f32.mrf.mxu1  ;;  %v6493_v5 = vpop.f32.mrf.mxu2 }
 0x9a5   : > { %v6784_v12 = vadd.f32 %v6536_v34, %v5944_v10  ;;  %v6440_v51 = vadd.f32 %v6439_v42, %v13160_v43  ;;  %v5952_v43 = vld [vmem:[#allocation2 + $0x1f0] sm:$0xff] }
 0x9a7   : > { %6848 = vst [vmem:[#allocation2 + $0x1d0] sm:$0xff] %v6784_v12  ;;  %v6787_v33 = vadd.f32 %v6440_v51, %v5947_v9 }
 0x9a8   : > { %v6403_v35 = vpop.f32.mrf.mxu0 }
 0x9a9   : > { %6851 = vst [vmem:[#allocation2 + $0x40] sm:$0xff] %v6787_v33  ;;  %6691 = vmatmul.bf16.gmra.mxu2 %v13093_v40 }
 0x9aa   : > { %v6537_v4 = vpop.f32.mrf.mxu3 }
 0x9ab   : > { %v6538_v23 = vadd.f32 %v6537_v4, %v6488_v15  ;;  %6598 = vmatmul.bf16.gmra.mxu0 %v13114_v25 }
 0x9ac   : > { %v6442_v63 = vpop.f32.mrf.mxu1  ;;  %v6496_v24 = vpop.f32.mrf.mxu2 }
 0x9ad   : > { %v6788_v8 = vadd.f32 %v6538_v23, %v5948_v3  ;;  %v6443_v7 = vadd.f32 %v6442_v63, %v13163_v22  ;;  %v5956_v22 = vld [vmem:[#allocation2 + $0x90] sm:$0xff]  ;;  %v5914_v63 = vld [vmem:[#allocation2 + $0x18] sm:$0xff] }
 0x9af   : > { %6852 = vst [vmem:[#allocation2 + $0x1f8] sm:$0xff] %v6788_v8  ;;  %v6791_v13 = vadd.f32 %v6443_v7, %v5951_v57  ;;  %6637 = vmatmul.bf16.gmra.mxu1 %v13118_v36  ;;  %6735 = vmatmul.bf16.gmra.mxu3 %v13118_v36  ;;  %v5959_v36 = vld [vmem:[#allocation2 + $0xb8] sm:$0xff]  ;;  %v5917_v7 = vld [vmem:[#allocation2 + $0x130] sm:$0xff] }
 0x9b0   : > { %v6405_v30 = vpop.f32.mrf.mxu0 }
 0x9b1   : > { %6855 = vst [vmem:[#allocation2 + $0x1a0] sm:$0xff] %v6791_v13 }
 0x9b2   : > { %v6540_v40 = vpop.f32.mrf.mxu3 }
 0x9b3   : > { %v6541_v1 = vadd.f32 %v6540_v40, %v6491_v2 }
 0x9b4   : > { %v6444_v61 = vpop.f32.mrf.mxu1  ;;  %v6498_v32 = vpop.f32.mrf.mxu2 }
 0x9b5   : > { %v6792_v44 = vadd.f32 %v6541_v1, %v5952_v43  ;;  %v6445_v19 = vadd.f32 %v6444_v61, %v13170_v46  ;;  %v5918_v61 = vld [vmem:[#allocation2 + $0x48] sm:$0xff] }
 0x9b7   : > { %6856 = vst [vmem:[#allocation2 + $0x1f0] sm:$0xff] %v6792_v44  ;;  %v6795_v6 = vadd.f32 %v6445_v19, %v5955_v39  ;;  %v5921_v19 = vld [vmem:[#allocation2 + $0x118] sm:$0xff] }
 0x9b8   : > { %v6564_v47 = vpop.f32.mrf.mxu0 }
 0x9b9   : > { %6859 = vst [vmem:[#allocation2 + $0x70] sm:$0xff] %v6795_v6  ;;  %6696 = vmatmul.bf16.gmra.mxu2 %v13114_v25 }
 0x9ba   : > { %v6542_v62 = vpop.f32.mrf.mxu3 }
 0x9bb   : > { %v6543_v0 = vadd.f32 %v6542_v62, %v6493_v5  ;;  %v5972_v5 = vld [vmem:[#allocation2 + $0x10] sm:$0xff] }
 0x9bc   : > { %v6447_v31 = vpop.f32.mrf.mxu1  ;;  %v6501_v18 = vpop.f32.mrf.mxu2 }
 0x9bd   : > { %v6796_v26 = vadd.f32 %v6543_v0, %v5956_v22  ;;  %v6448_v27 = vadd.f32 %v6447_v31, %v13173_v29 }
 0x9bf   : > { %6860 = vst [vmem:[#allocation2 + $0x90] sm:$0xff] %v6796_v26  ;;  %v6799_v60 = vadd.f32 %v6448_v27, %v5959_v36  ;;  %6642 = vmatmul.bf16.gmra.mxu1 %v13130_v28  ;;  %6740 = vmatmul.bf16.gmra.mxu3 %v13130_v28  ;;  %v5925_v27 = vld [vmem:[#allocation2 + $0x108] sm:$0xff] }
 0x9c0   : > { %v6566_v15 = vpop.f32.mrf.mxu0 }
 0x9c1   : > { %6863 = vst [vmem:[#allocation2 + $0xb8] sm:$0xff] %v6799_v60 }
 0x9c2   : > { %v6545_v46 = vpop.f32.mrf.mxu3 }
 0x9c3   : > { %v6546_v25 = vadd.f32 %v6545_v46, %v6496_v24 }
 0x9c4   : > { %v6449_v41 = vpop.f32.mrf.mxu1  ;;  %v6503_v45 = vpop.f32.mrf.mxu2 }
 0x9c5   : > { %v6800_v50 = vadd.f32 %v6546_v25, %v5960_v38  ;;  %v6450_v54 = vadd.f32 %v6449_v41, %v6400_v14  ;;  %v5971_v14 = vld [vmem:[#allocation2 + $0x158] sm:$0xff] }
 0x9c7   : > { %6864 = vst [vmem:[#allocation2 + $0x88] sm:$0xff] %v6800_v50  ;;  %v6803_v48 = vadd.f32 %v6450_v54, %v5963_v55 }
 0x9c8   : > { %v6569_v2 = vpop.f32.mrf.mxu0 }
 0x9c9   : > { %6867 = vst [vmem:[#allocation2 + $0x170] sm:$0xff] %v6803_v48 }
 0x9ca   : > { %v6547_v20 = vpop.f32.mrf.mxu3 }
 0x9cb   : > { %v6548_v29 = vadd.f32 %v6547_v20, %v6498_v32 }
 0x9cc   : > { %v6452_v52 = vpop.f32.mrf.mxu1  ;;  %v6662_v21 = vpop.f32.mrf.mxu2 }
 0x9cd   : > { %v6804_v28 = vadd.f32 %v6548_v29, %v5964_v11  ;;  %v6453_v53 = vadd.f32 %v6452_v52, %v6403_v35  ;;  %v5913_v35 = vld [vmem:[#allocation2 + $0xd8] sm:$0xff]  ;;  %v5930_v52 = vld [vmem:[#allocation2 + $0x140] sm:$0xff] }
 0x9cf   : > { %6868 = vst [vmem:[#allocation2 + $0x178] sm:$0xff] %v6804_v28  ;;  %v6807_v37 = vadd.f32 %v6453_v53, %v5967_v17  ;;  %6647 = vmatmul.bf16.gmra.mxu1 %v13136_v16  ;;  %6745 = vmatmul.bf16.gmra.mxu3 %v13136_v16 }
 0x9d0   : > { %v6571_v51 = vpop.f32.mrf.mxu0 }
 0x9d1   : > { %6871 = vst [vmem:[#allocation2 + $0x198] sm:$0xff] %v6807_v37  ;;  %v5933_v37 = vld [vmem:[#allocation2 + $0x1b8] sm:$0xff] }
 0x9d2   : > { %v6550_v59 = vpop.f32.mrf.mxu3 }
 0x9d3   : > { %v6551_v56 = vadd.f32 %v6550_v59, %v6501_v18  ;;  %v5922_v18 = vld [vmem:[#allocation2 + $0x98] sm:$0xff] }
 0x9d4   : > { %v6454_v10 = vpop.f32.mrf.mxu1  ;;  %v6664_v49 = vpop.f32.mrf.mxu2 }
 0x9d5   : > { %v6808_v34 = vadd.f32 %v6551_v56, %v5968_v58  ;;  %v6455_v9 = vadd.f32 %v6454_v10, %v6405_v30  ;;  %v5934_v10 = vld [vmem:[#allocation2 + $0x28] sm:$0xff] }
 0x9d7   : > { %6872 = vst [vmem:[#allocation2 + $0x38] sm:$0xff] %v6808_v34  ;;  %v6811_v42 = vadd.f32 %v6455_v9, %v5971_v14  ;;  %v5937_v9 = vld [vmem:[#allocation2 + $0x160] sm:$0xff] }
 0x9d8   : > { %v6574_v1 = vpop.f32.mrf.mxu0 }
 0x9d9   : > { %6875 = vst [vmem:[#allocation2 + $0x158] sm:$0xff] %v6811_v42 }
 0x9da   : > { %v6552_v12 = vpop.f32.mrf.mxu3 }
 0x9db   : > { %v6553_v33 = vadd.f32 %v6552_v12, %v6503_v45  ;;  %v5926_v45 = vld [vmem:[#allocation2 + $0x60] sm:$0xff] }
 0x9dc   : > { %v6613_v3 = vpop.f32.mrf.mxu1  ;;  %v6667_v16 = vpop.f32.mrf.mxu2 }
 0x9dd   : > { %v6812_v4 = vadd.f32 %v6553_v33, %v5972_v5  ;;  %v6614_v23 = vadd.f32 %v6613_v3, %v6564_v47 }
 0x9df   : > { %6876 = vst [vmem:[#allocation2 + $0x10] sm:$0xff] %v6812_v4  ;;  %v6753_v57 = vadd.f32 %v6614_v23, %v5913_v35  ;;  %v5938_v35 = vld [vmem:[#allocation2 + $0x30] sm:$0xff] }
 0x9e0   : > { %v6576_v31 = vpop.f32.mrf.mxu0  ;;  %v5941_v23 = vld [vmem:[#allocation2 + $0xf0] sm:$0xff] }
 0x9e1   : > { %6817 = vst [vmem:[#allocation2 + $0xd8] sm:$0xff] %v6753_v57 }
 0x9e2   : > { %v6711_v24 = vpop.f32.mrf.mxu3 }
 0x9e3   : > { %v6712_v8 = vadd.f32 %v6711_v24, %v6662_v21 }
 0x9e4   : > { %v6615_v13 = vpop.f32.mrf.mxu1  ;;  %v6669_v43 = vpop.f32.mrf.mxu2 }
 0x9e5   : > { %v6754_v40 = vadd.f32 %v6712_v8, %v5914_v63  ;;  %v6616_v30 = vadd.f32 %v6615_v13, %v6566_v15  ;;  %v5929_v15 = vld [vmem:[#allocation2 + $0x138] sm:$0xff]  ;;  %v5942_v13 = vld [vmem:[#allocation2 + $0x8] sm:$0xff] }
 0x9e7   : > { %6818 = vst [vmem:[#allocation2 + $0x18] sm:$0xff] %v6754_v40  ;;  %v6757_v39 = vadd.f32 %v6616_v30, %v5917_v7  ;;  %v5945_v30 = vld [vmem:[#allocation2 + $0x100] sm:$0xff] }
 0x9e8   : > { %v6579_v41 = vpop.f32.mrf.mxu0 }
 0x9e9   : > { %6821 = vst [vmem:[#allocation2 + $0x130] sm:$0xff] %v6757_v39 }
 0x9ea   : > { %v6713_v32 = vpop.f32.mrf.mxu3 }
 0x9eb   : > { %v6714_v44 = vadd.f32 %v6713_v32, %v6664_v49 }
 0x9ec   : > { %v6618_v6 = vpop.f32.mrf.mxu1  ;;  %v6672_v22 = vpop.f32.mrf.mxu2 }
 0x9ed   : > { %v6758_v62 = vadd.f32 %v6714_v44, %v5918_v61  ;;  %v6619_v0 = vadd.f32 %v6618_v6, %v6569_v2  ;;  %v5946_v6 = vld [vmem:[#allocation2 + $0xc8] sm:$0xff] }
 0x9ef   : > { %6822 = vst [vmem:[#allocation2 + $0x48] sm:$0xff] %v6758_v62  ;;  %v6761_v36 = vadd.f32 %v6619_v0, %v5921_v19  ;;  %v5949_v0 = vld [vmem:[#allocation2 + $0x20] sm:$0xff] }
 0x9f0   : > { %v6581_v53 = vpop.f32.mrf.mxu0 }
 0x9f1   : > { %6825 = vst [vmem:[#allocation2 + $0x118] sm:$0xff] %v6761_v36 }
 0x9f2   : > { %v6716_v47 = vpop.f32.mrf.mxu3 }
 0x9f3   : > { %v6717_v26 = vadd.f32 %v6716_v47, %v6667_v16 }
 0x9f4   : > { %v6620_v60 = vpop.f32.mrf.mxu1  ;;  %v6674_v25 = vpop.f32.mrf.mxu2 }
 0x9f5   : > { %v6762_v38 = vadd.f32 %v6717_v26, %v5922_v18  ;;  %v6621_v46 = vadd.f32 %v6620_v60, %v6571_v51 }
 0x9f7   : > { %6826 = vst [vmem:[#allocation2 + $0x98] sm:$0xff] %v6762_v38  ;;  %v6765_v55 = vadd.f32 %v6621_v46, %v5925_v27  ;;  %v5950_v27 = vld [vmem:[#allocation2 + $0x128] sm:$0xff] }
 0x9f8   : > { %v6584_v51 = vpop.f32.mrf.mxu0 }
 0x9f9   : > { %6829 = vst [vmem:[#allocation2 + $0x108] sm:$0xff] %v6765_v55 }
 0x9fa   : > { %v6718_v50 = vpop.f32.mrf.mxu3 }
 0x9fb   : > { %v6719_v54 = vadd.f32 %v6718_v50, %v6669_v43 }
 0x9fc   : > { %v6623_v48 = vpop.f32.mrf.mxu1  ;;  %v6677_v17 = vpop.f32.mrf.mxu2 }
 0x9fd   : > { %v6766_v11 = vadd.f32 %v6719_v54, %v5926_v45  ;;  %v6624_v20 = vadd.f32 %v6623_v48, %v6574_v1 }
 0x9ff   : > { %6830 = vst [vmem:[#allocation2 + $0x60] sm:$0xff] %v6766_v11  ;;  %v6769_v29 = vadd.f32 %v6624_v20, %v5929_v15  ;;  %v5954_v15 = vld [vmem:[#allocation2 + $0x78] sm:$0xff] }
 0xa00   : > { %v6586_v7 = vpop.f32.mrf.mxu0  ;;  %v5957_v20 = vld [vmem:[#allocation2 + $0x1d8] sm:$0xff] }
 0xa01   : > { %6833 = vst [vmem:[#allocation2 + $0x138] sm:$0xff] %v6769_v29 }
 0xa02   : > { %v6721_v21 = vpop.f32.mrf.mxu3 }
 0xa03   : > { %v6722_v28 = vadd.f32 %v6721_v21, %v6672_v22 }
 0xa04   : > { %v6625_v2 = vpop.f32.mrf.mxu1  ;;  %v6679_v14 = vpop.f32.mrf.mxu2 }
 0xa05   : > { %v6770_v58 = vadd.f32 %v6722_v28, %v5930_v52  ;;  %v6626_v59 = vadd.f32 %v6625_v2, %v6576_v31 }
 0xa07   : > { %6834 = vst [vmem:[#allocation2 + $0x140] sm:$0xff] %v6770_v58  ;;  %v6773_v56 = vadd.f32 %v6626_v59, %v5933_v37  ;;  %v5961_v59 = vld [vmem:[#allocation2 + $0xa8] sm:$0xff] }
 0xa08   : > { %v6589_v19 = vpop.f32.mrf.mxu0 }
 0xa09   : > { %6837 = vst [vmem:[#allocation2 + $0x1b8] sm:$0xff] %v6773_v56 }
 0xa0a   : > { %v6723_v49 = vpop.f32.mrf.mxu3 }
 0xa0b   : > { %v6724_v34 = vadd.f32 %v6723_v49, %v6674_v25  ;;  %v5953_v25 = vld [vmem:[#allocation2 + $0xe8] sm:$0xff] }
 0xa0c   : > { %v6628_v42 = vpop.f32.mrf.mxu1  ;;  %v6682_v4 = vpop.f32.mrf.mxu2 }
 0xa0d   : > { %v6774_v5 = vadd.f32 %v6724_v34, %v5934_v10  ;;  %v6629_v12 = vadd.f32 %v6628_v42, %v6579_v41 }
 0xa0f   : > { %6838 = vst [vmem:[#allocation2 + $0x28] sm:$0xff] %v6774_v5  ;;  %v6777_v33 = vadd.f32 %v6629_v12, %v5937_v9  ;;  %v5962_v9 = vld [vmem:[#allocation2 + $0x1c8] sm:$0xff] }
 0xa10   : > { %v6591_v46 = vpop.f32.mrf.mxu0  ;;  %v5965_v12 = vld [vmem:[#allocation2 + $0x68] sm:$0xff] }
 0xa11   : > { %6841 = vst [vmem:[#allocation2 + $0x160] sm:$0xff] %v6777_v33 }
 0xa12   : > { %v6726_v3 = vpop.f32.mrf.mxu3 }
 0xa13   : > { %v6727_v16 = vadd.f32 %v6726_v3, %v6677_v17 }
 0xa14   : > { %v6630_v57 = vpop.f32.mrf.mxu1  ;;  %v6684_v32 = vpop.f32.mrf.mxu2 }
 0xa15   : > { %v6778_v63 = vadd.f32 %v6727_v16, %v5938_v35  ;;  %v6631_v24 = vadd.f32 %v6630_v57, %v6581_v53  ;;  %v5958_v53 = vld [vmem:[#allocation2 + $0xd0] sm:$0xff] }
 0xa17   : > { %6842 = vst [vmem:[#allocation2 + $0x30] sm:$0xff] %v6778_v63  ;;  %v6781_v8 = vadd.f32 %v6631_v24, %v5941_v23  ;;  %v5966_v23 = vld [vmem:[#allocation2 + $0x190] sm:$0xff]  ;;  %v5969_v24 = vld [vmem:[#allocation2 + $0xc0] sm:$0xff] }
 0xa18   : > { %v6594_v21 = vpop.f32.mrf.mxu0 }
 0xa19   : > { %6845 = vst [vmem:[#allocation2 + $0xf0] sm:$0xff] %v6781_v8 }
 0xa1a   : > { %v6728_v43 = vpop.f32.mrf.mxu3 }
 0xa1b   : > { %v6729_v40 = vadd.f32 %v6728_v43, %v6679_v14 }
 0xa1c   : > { %v6633_v1 = vpop.f32.mrf.mxu1  ;;  %v6687_v26 = vpop.f32.mrf.mxu2 }
 0xa1d   : > { %v6782_v39 = vadd.f32 %v6729_v40, %v5942_v13  ;;  %v6634_v61 = vadd.f32 %v6633_v1, %v6584_v51 }
 0xa1f   : > { %6846 = vst [vmem:[#allocation2 + $0x8] sm:$0xff] %v6782_v39  ;;  %v6785_v44 = vadd.f32 %v6634_v61, %v5945_v30  ;;  %v5970_v30 = vld [vmem:[#allocation2 + $0x1c0] sm:$0xff] }
 0xa20   : > { %v6596_v34 = vpop.f32.mrf.mxu0 }
 0xa21   : > { %6849 = vst [vmem:[#allocation2 + $0x100] sm:$0xff] %v6785_v44 }
 0xa22   : > { %v6731_v22 = vpop.f32.mrf.mxu3 }
 0xa23   : > { %v6732_v62 = vadd.f32 %v6731_v22, %v6682_v4 }
 0xa24   : > { %v6635_v36 = vpop.f32.mrf.mxu1  ;;  %v6689_v54 = vpop.f32.mrf.mxu2 }
 0xa25   : > { %v6786_v31 = vadd.f32 %v6732_v62, %v5946_v6  ;;  %v6636_v18 = vadd.f32 %v6635_v36, %v6586_v7 }
 0xa27   : > { %6850 = vst [vmem:[#allocation2 + $0xc8] sm:$0xff] %v6786_v31  ;;  %v6789_v47 = vadd.f32 %v6636_v18, %v5949_v0  ;;  %v5974_v0 = vld [vmem:[#allocation2 + $0xa0] sm:$0xff] }
 0xa28   : > { %v6599_v4 = vpop.f32.mrf.mxu0 }
 0xa29   : > { %6853 = vst [vmem:[#allocation2 + $0x20] sm:$0xff] %v6789_v47 }
 0xa2a   : > { %v6733_v60 = vpop.f32.mrf.mxu3 }
 0xa2b   : > { %v6734_v38 = vadd.f32 %v6733_v60, %v6684_v32  ;;  %v5973_v32 = vld [vmem:[#allocation2 + $0x58] sm:$0xff] }
 0xa2c   : > { %v6638_v55 = vpop.f32.mrf.mxu1  ;;  %v6692_v58 = vpop.f32.mrf.mxu2 }
 0xa2d   : > { %v6790_v41 = vadd.f32 %v6734_v38, %v5950_v27  ;;  %v6639_v45 = vadd.f32 %v6638_v55, %v6589_v19 }
 0xa2f   : > { %6854 = vst [vmem:[#allocation2 + $0x128] sm:$0xff] %v6790_v41  ;;  %v6793_v50 = vadd.f32 %v6639_v45, %v5953_v25 }
 0xa30   : > { %v6601_v61 = vpop.f32.mrf.mxu0 }
 0xa31   : > { %6857 = vst [vmem:[#allocation2 + $0xe8] sm:$0xff] %v6793_v50 }
 0xa32   : > { %v6736_v48 = vpop.f32.mrf.mxu3 }
 0xa33   : > { %v6737_v11 = vadd.f32 %v6736_v48, %v6687_v26 }
 0xa34   : > { %v6640_v29 = vpop.f32.mrf.mxu1  ;;  %v6694_v3 = vpop.f32.mrf.mxu2 }
 0xa35   : > { %v6794_v17 = vadd.f32 %v6737_v11, %v5954_v15  ;;  %v6641_v52 = vadd.f32 %v6640_v29, %v6591_v46 }
 0xa37   : > { %6858 = vst [vmem:[#allocation2 + $0x78] sm:$0xff] %v6794_v17  ;;  %v6797_v28 = vadd.f32 %v6641_v52, %v5957_v20 }
 0xa39   : > { %6861 = vst [vmem:[#allocation2 + $0x1d8] sm:$0xff] %v6797_v28 }
 0xa3a   : > { %v6738_v37 = vpop.f32.mrf.mxu3 }
 0xa3b   : > { %v6739_v2 = vadd.f32 %v6738_v37, %v6689_v54 }
 0xa3c   : > { %v6643_v56 = vpop.f32.mrf.mxu1  ;;  %v6697_v40 = vpop.f32.mrf.mxu2 }
 0xa3d   : > { %v6798_v14 = vadd.f32 %v6739_v2, %v5958_v53  ;;  %v6644_v10 = vadd.f32 %v6643_v56, %v6594_v21 }
 0xa3f   : > { %6862 = vst [vmem:[#allocation2 + $0xd0] sm:$0xff] %v6798_v14  ;;  %v6801_v49 = vadd.f32 %v6644_v10, %v5961_v59 }
 0xa41   : > { %6865 = vst [vmem:[#allocation2 + $0xa8] sm:$0xff] %v6801_v49 }
 0xa42   : > { %v6741_v42 = vpop.f32.mrf.mxu3 }
 0xa43   : > { %v6742_v5 = vadd.f32 %v6741_v42, %v6692_v58 }
 0xa44   : > { %v6645_v51 = vpop.f32.mrf.mxu1  ;;  %v6699_v62 = vpop.f32.mrf.mxu2 }
 0xa45   : > { %v6802_v33 = vadd.f32 %v6742_v5, %v5962_v9  ;;  %v6646_v35 = vadd.f32 %v6645_v51, %v6596_v34 }
 0xa47   : > { %6866 = vst [vmem:[#allocation2 + $0x1c8] sm:$0xff] %v6802_v33  ;;  %v6805_v16 = vadd.f32 %v6646_v35, %v5965_v12 }
 0xa49   : > { %6869 = vst [vmem:[#allocation2 + $0x68] sm:$0xff] %v6805_v16 }
 0xa4a   : > { %v6743_v57 = vpop.f32.mrf.mxu3 }
 0xa4b   : > { %v6744_v63 = vadd.f32 %v6743_v57, %v6694_v3 }
 0xa4c   : > { %v6648_v8 = vpop.f32.mrf.mxu1 }
 0xa4d   : > { %v6806_v7 = vadd.f32 %v6744_v63, %v5966_v23  ;;  %v6649_v13 = vadd.f32 %v6648_v8, %v6599_v4 }
 0xa4f   : > { %6870 = vst [vmem:[#allocation2 + $0x190] sm:$0xff] %v6806_v7  ;;  %v6809_v43 = vadd.f32 %v6649_v13, %v5969_v24 }
 0xa51   : > { %6873 = vst [vmem:[#allocation2 + $0xc0] sm:$0xff] %v6809_v43 }
 0xa52   : > { %v6746_v1 = vpop.f32.mrf.mxu3 }
 0xa53   : > { %v6747_v39 = vadd.f32 %v6746_v1, %v6697_v40 }
 0xa54   : > { %v6650_v44 = vpop.f32.mrf.mxu1 }
 0xa55   : > { %v6810_v19 = vadd.f32 %v6747_v39, %v5970_v30  ;;  %v6651_v6 = vadd.f32 %v6650_v44, %v6601_v61 }
 0xa57   : > { %6874 = vst [vmem:[#allocation2 + $0x1c0] sm:$0xff] %v6810_v19  ;;  %v6813_v22 = vadd.f32 %v6651_v6, %v5973_v32 }
 0xa59   : > { %6877 = vst [vmem:[#allocation2 + $0x58] sm:$0xff] %v6813_v22 }
 0xa5a   : > { %v6748_v36 = vpop.f32.mrf.mxu3 }
 0xa5b   : > { %v6749_v31 = vadd.f32 %v6748_v36, %v6699_v62  ;;  %6882 = sbr.rel (%p9066_p10) target bundleno = 2725 (0xaa5), region = 100 }
 0xa5d   : > { %v6814_v18 = vadd.f32 %v6749_v31, %v5974_v0 }
 0xa5f   : > { %6878 = vst [vmem:[#allocation2 + $0xa0] sm:$0xff] %v6814_v18 }
 0xa60   : > { %v6883_v47 = vld [vmem:[#allocation2 + $0xb0] sm:$0xff]  ;;  %v6947_v26 = vld [vmem:[#allocation17] sm:$0xf]  ;;  %v6885_v46 = vld [vmem:[#allocation2 + $0xd8] sm:$0xff] }
 0xa61   : > { %v6884_v27 = vld [vmem:[#allocation2 + $0x1b0] sm:$0xff]  ;;  %v13194_v60 = vperm.slane %v6947_v26, 0  ;;  %v13196_v38 = vperm.slane %v6947_v26, 1  ;;  %v13198_v25 = vperm.slane %v6947_v26, 2  ;;  %v6886_v55 = vld [vmem:[#allocation2 + $0x18] sm:$0xff]  ;;  %v13200_v41 = vperm.slane %v6947_v26, 3 }
 0xa62   : > { %v6887_v45 = vld [vmem:[#allocation2 + $0x50] sm:$0xff]  ;;  %v6888_v48 = vld [vmem:[#allocation2 + $0x168] sm:$0xff]  ;;  %v6891_v21 = vld [vmem:[#allocation2 + $0x180] sm:$0xff] }
 0xa63   : > { %v6957_v50 = vadd.f32 %v13194_v60, %v6883_v47  ;;  %v6958_v54 = vadd.f32 %v13196_v38, %v6884_v27  ;;  %v6959_v15 = vadd.f32 %v13198_v25, %v6885_v46  ;;  %v6960_v11 = vadd.f32 %v13200_v41, %v6886_v55  ;;  %v6889_v20 = vld [vmem:[#allocation2 + $0x130] sm:$0xff]  ;;  %v6890_v17 = vld [vmem:[#allocation2 + $0x48] sm:$0xff]  ;;  %v6893_v2 = vld [vmem:[#allocation2 + $0x118] sm:$0xff] }
 0xa64   : > { %v6961_v29 = vadd.f32 %v13194_v60, %v6887_v45  ;;  %v6962_v52 = vadd.f32 %v13196_v38, %v6888_v48  ;;  %v6963_v28 = vadd.f32 %v13198_v25, %v6889_v20  ;;  %v6892_v53 = vld [vmem:[#allocation2 + $0x110] sm:$0xff]  ;;  %v6964_v37 = vadd.f32 %v13200_v41, %v6890_v17  ;;  %v6894_v59 = vld [vmem:[#allocation2 + $0x98] sm:$0xff]  ;;  %v6895_v14 = vld [vmem:[#allocation2 + $0x120] sm:$0xff] }
 0xa65   : > { %7021 = vst [vmem:[%s10682_s4] sm:$0xff] %v6957_v50  ;;  %v6965_v58 = vadd.f32 %v13194_v60, %v6891_v21  ;;  %v6966_v56 = vadd.f32 %v13196_v38, %v6892_v53  ;;  %v6967_v10 = vadd.f32 %v13198_v25, %v6893_v2  ;;  %v6896_v49 = vld [vmem:[#allocation2 + $0x150] sm:$0xff]  ;;  %v6968_v34 = vadd.f32 %v13200_v41, %v6894_v59  ;;  %v6897_v9 = vld [vmem:[#allocation2 + $0x108] sm:$0xff]  ;;  %v6898_v5 = vld [vmem:[#allocation2 + $0x60] sm:$0xff] }
 0xa66   : > { %7022 = vst [vmem:[%s10682_s4 + $0x8] sm:$0xff] %v6958_v54  ;;  %v6969_v42 = vadd.f32 %v13194_v60, %v6895_v14  ;;  %v6970_v12 = vadd.f32 %v13196_v38, %v6896_v49  ;;  %v6899_v51 = vld [vmem:[#allocation2 + $0xe0] sm:$0xff]  ;;  %v6971_v33 = vadd.f32 %v13198_v25, %v6897_v9  ;;  %v6900_v35 = vld [vmem:[#allocation2 + $0x188] sm:$0xff]  ;;  %v6972_v3 = vadd.f32 %v13200_v41, %v6898_v5  ;;  %v6901_v16 = vld [vmem:[#allocation2 + $0x138] sm:$0xff] }
 0xa67   : > { %7023 = vst [vmem:[%s10682_s4 + $0x10] sm:$0xff] %v6959_v15  ;;  %v6973_v4 = vadd.f32 %v13194_v60, %v6899_v51  ;;  %v6902_v23 = vld [vmem:[#allocation2 + $0x140] sm:$0xff]  ;;  %v6974_v57 = vadd.f32 %v13196_v38, %v6900_v35  ;;  %v6975_v24 = vadd.f32 %v13198_v25, %v6901_v16  ;;  %v6904_v8 = vld [vmem:[#allocation2 + $0x1a8] sm:$0xff]  ;;  %v6905_v13 = vld [vmem:[#allocation2 + $0x1b8] sm:$0xff] }
 0xa68   : > { %7024 = vst [vmem:[%s10682_s4 + $0x18] sm:$0xff] %v6960_v11  ;;  %v6903_v63 = vld [vmem:[#allocation2 + $0x80] sm:$0xff]  ;;  %v6976_v7 = vadd.f32 %v13200_v41, %v6902_v23  ;;  %v6906_v40 = vld [vmem:[#allocation2 + $0x28] sm:$0xff]  ;;  %v6978_v30 = vadd.f32 %v13196_v38, %v6904_v8  ;;  %v6979_v39 = vadd.f32 %v13198_v25, %v6905_v13  ;;  %v6908_v61 = vld [vmem:[#allocation2 + $0xf8] sm:$0xff] }
 0xa69   : > { %7025 = vst [vmem:[%s10682_s4 + $0x20] sm:$0xff] %v6961_v29  ;;  %v6977_v43 = vadd.f32 %v13194_v60, %v6903_v63  ;;  %v6907_v1 = vld [vmem:[#allocation2 + $0x1e8] sm:$0xff]  ;;  %v6980_v32 = vadd.f32 %v13200_v41, %v6906_v40  ;;  %v6909_v44 = vld [vmem:[#allocation2 + $0x160] sm:$0xff]  ;;  %v6910_v6 = vld [vmem:[#allocation2 + $0x30] sm:$0xff]  ;;  %v6982_v22 = vadd.f32 %v13196_v38, %v6908_v61 }
 0xa6a   : > { %7026 = vst [vmem:[%s10682_s4 + $0x28] sm:$0xff] %v6962_v52  ;;  %v6981_v19 = vadd.f32 %v13194_v60, %v6907_v1  ;;  %v6911_v62 = vld [vmem:[#allocation2 + $0x1e0] sm:$0xff]  ;;  %v6983_v0 = vadd.f32 %v13198_v25, %v6909_v44  ;;  %v6984_v31 = vadd.f32 %v13200_v41, %v6910_v6  ;;  %v6913_v18 = vld [vmem:[#allocation2 + $0xf0] sm:$0xff]  ;;  %v6914_v26 = vld [vmem:[#allocation2 + $0x8] sm:$0xff] }
 0xa6b   : > { %7027 = vst [vmem:[%s10682_s4 + $0x30] sm:$0xff] %v6963_v28  ;;  %v6912_v36 = vld [vmem:[#allocation2] sm:$0xff]  ;;  %v6985_v47 = vadd.f32 %v13194_v60, %v6911_v62  ;;  %v6915_v46 = vld [vmem:[#allocation2 + $0x148] sm:$0xff]  ;;  %v6987_v55 = vadd.f32 %v13198_v25, %v6913_v18  ;;  %v6916_v45 = vld [vmem:[#allocation2 + $0x1d0] sm:$0xff]  ;;  %v6988_v50 = vadd.f32 %v13200_v41, %v6914_v26 }
 0xa6c   : > { %7028 = vst [vmem:[%s10682_s4 + $0x38] sm:$0xff] %v6964_v37  ;;  %v6986_v27 = vadd.f32 %v13196_v38, %v6912_v36  ;;  %v6917_v54 = vld [vmem:[#allocation2 + $0x100] sm:$0xff]  ;;  %v6989_v15 = vadd.f32 %v13194_v60, %v6915_v46  ;;  %v6918_v48 = vld [vmem:[#allocation2 + $0xc8] sm:$0xff]  ;;  %v6990_v11 = vadd.f32 %v13196_v38, %v6916_v45  ;;  %v6920_v17 = vld [vmem:[#allocation2 + $0x1f8] sm:$0xff] }
 0xa6d   : > { %7029 = vst [vmem:[%s10682_s4 + $0x40] sm:$0xff] %v6965_v58  ;;  %v6919_v20 = vld [vmem:[#allocation2 + $0x40] sm:$0xff]  ;;  %v6991_v29 = vadd.f32 %v13198_v25, %v6917_v54  ;;  %v6992_v52 = vadd.f32 %v13200_v41, %v6918_v48  ;;  %v6922_v53 = vld [vmem:[#allocation2 + $0x128] sm:$0xff]  ;;  %v6994_v37 = vadd.f32 %v13196_v38, %v6920_v17  ;;  %v6924_v59 = vld [vmem:[#allocation2 + $0x1f0] sm:$0xff] }
 0xa6e   : > { %7030 = vst [vmem:[%s10682_s4 + $0x48] sm:$0xff] %v6966_v56  ;;  %v6921_v21 = vld [vmem:[#allocation2 + $0x20] sm:$0xff]  ;;  %v6993_v28 = vadd.f32 %v13194_v60, %v6919_v20  ;;  %v6996_v56 = vadd.f32 %v13200_v41, %v6922_v53  ;;  %v6925_v14 = vld [vmem:[#allocation2 + $0xe8] sm:$0xff]  ;;  %v6926_v49 = vld [vmem:[#allocation2 + $0x78] sm:$0xff] }
 0xa6f   : > { %7031 = vst [vmem:[%s10682_s4 + $0x50] sm:$0xff] %v6967_v10  ;;  %v6923_v2 = vld [vmem:[#allocation2 + $0x1a0] sm:$0xff]  ;;  %v6995_v58 = vadd.f32 %v13198_v25, %v6921_v21  ;;  %v6927_v9 = vld [vmem:[#allocation2 + $0x70] sm:$0xff]  ;;  %v6929_v51 = vld [vmem:[#allocation2 + $0x1d8] sm:$0xff] }
 0xa70   : > { %7032 = vst [vmem:[%s10682_s4 + $0x58] sm:$0xff] %v6968_v34  ;;  %v6997_v10 = vadd.f32 %v13194_v60, %v6923_v2  ;;  %v6998_v34 = vadd.f32 %v13196_v38, %v6924_v59  ;;  %v6928_v5 = vld [vmem:[#allocation2 + $0x90] sm:$0xff]  ;;  %v6931_v16 = vld [vmem:[#allocation2 + $0xb8] sm:$0xff]  ;;  %v6932_v23 = vld [vmem:[#allocation2 + $0x88] sm:$0xff] }
 0xa71   : > { %7033 = vst [vmem:[%s10682_s4 + $0x60] sm:$0xff] %v6969_v42  ;;  %v6999_v42 = vadd.f32 %v13198_v25, %v6925_v14  ;;  %v6930_v35 = vld [vmem:[#allocation2 + $0xd0] sm:$0xff]  ;;  %v6933_v63 = vld [vmem:[#allocation2 + $0xa8] sm:$0xff]  ;;  %v6936_v40 = vld [vmem:[#allocation2 + $0x178] sm:$0xff] }
 0xa72   : > { %7034 = vst [vmem:[%s10682_s4 + $0x68] sm:$0xff] %v6970_v12  ;;  %v7000_v12 = vadd.f32 %v13200_v41, %v6926_v49  ;;  %v6934_v8 = vld [vmem:[#allocation2 + $0x1c8] sm:$0xff]  ;;  %v6935_v13 = vld [vmem:[#allocation2 + $0x170] sm:$0xff]  ;;  %v6939_v44 = vld [vmem:[#allocation2 + $0x198] sm:$0xff] }
 0xa73   : > { %7035 = vst [vmem:[%s10682_s4 + $0x70] sm:$0xff] %v6971_v33  ;;  %v7001_v33 = vadd.f32 %v13194_v60, %v6927_v9  ;;  %v6937_v1 = vld [vmem:[#allocation2 + $0x68] sm:$0xff]  ;;  %v6938_v61 = vld [vmem:[#allocation2 + $0x190] sm:$0xff]  ;;  %v6940_v6 = vld [vmem:[#allocation2 + $0x38] sm:$0xff] }
 0xa74   : > { %7036 = vst [vmem:[%s10682_s4 + $0x78] sm:$0xff] %v6972_v3  ;;  %v7002_v3 = vadd.f32 %v13196_v38, %v6928_v5  ;;  %v6941_v62 = vld [vmem:[#allocation2 + $0xc0] sm:$0xff]  ;;  %v6943_v18 = vld [vmem:[#allocation2 + $0x158] sm:$0xff]  ;;  %v6944_v26 = vld [vmem:[#allocation2 + $0x10] sm:$0xff] }
 0xa75   : > { %7037 = vst [vmem:[%s10682_s4 + $0x80] sm:$0xff] %v6973_v4  ;;  %v7003_v4 = vadd.f32 %v13198_v25, %v6929_v51  ;;  %v6942_v36 = vld [vmem:[#allocation2 + $0x1c0] sm:$0xff]  ;;  %v6945_v46 = vld [vmem:[#allocation2 + $0x58] sm:$0xff] }
 0xa76   : > { %7038 = vst [vmem:[%s10682_s4 + $0x88] sm:$0xff] %v6974_v57  ;;  %v7004_v57 = vadd.f32 %v13200_v41, %v6930_v35  ;;  %v6946_v45 = vld [vmem:[#allocation2 + $0xa0] sm:$0xff]  ;;  %v7019_v54 = vadd.f32 %v13198_v25, %v6945_v46 }
 0xa77   : > { %7039 = vst [vmem:[%s10682_s4 + $0x90] sm:$0xff] %v6975_v24  ;;  %v7005_v24 = vadd.f32 %v13194_v60, %v6931_v16 }
 0xa78   : > { %7040 = vst [vmem:[%s10682_s4 + $0x98] sm:$0xff] %v6976_v7  ;;  %v7006_v7 = vadd.f32 %v13196_v38, %v6932_v23 }
 0xa79   : > { %7041 = vst [vmem:[%s10682_s4 + $0xa0] sm:$0xff] %v6977_v43  ;;  %v7007_v43 = vadd.f32 %v13198_v25, %v6933_v63 }
 0xa7a   : > { %7042 = vst [vmem:[%s10682_s4 + $0xa8] sm:$0xff] %v6978_v30  ;;  %v7008_v30 = vadd.f32 %v13200_v41, %v6934_v8 }
 0xa7b   : > { %7043 = vst [vmem:[%s10682_s4 + $0xb0] sm:$0xff] %v6979_v39  ;;  %v7009_v39 = vadd.f32 %v13194_v60, %v6935_v13 }
 0xa7c   : > { %7044 = vst [vmem:[%s10682_s4 + $0xb8] sm:$0xff] %v6980_v32  ;;  %v7010_v32 = vadd.f32 %v13196_v38, %v6936_v40 }
 0xa7d   : > { %7045 = vst [vmem:[%s10682_s4 + $0xc0] sm:$0xff] %v6981_v19  ;;  %v7011_v19 = vadd.f32 %v13198_v25, %v6937_v1 }
 0xa7e   : > { %7046 = vst [vmem:[%s10682_s4 + $0xc8] sm:$0xff] %v6982_v22  ;;  %v7012_v22 = vadd.f32 %v13200_v41, %v6938_v61 }
 0xa7f   : > { %7047 = vst [vmem:[%s10682_s4 + $0xd0] sm:$0xff] %v6983_v0  ;;  %v7013_v0 = vadd.f32 %v13194_v60, %v6939_v44 }
 0xa80   : > { %7048 = vst [vmem:[%s10682_s4 + $0xd8] sm:$0xff] %v6984_v31  ;;  %v7014_v31 = vadd.f32 %v13196_v38, %v6940_v6 }
 0xa81   : > { %7049 = vst [vmem:[%s10682_s4 + $0xe0] sm:$0xff] %v6985_v47  ;;  %v7015_v47 = vadd.f32 %v13198_v25, %v6941_v62 }
 0xa82   : > { %7050 = vst [vmem:[%s10682_s4 + $0xe8] sm:$0xff] %v6986_v27  ;;  %v7016_v27 = vadd.f32 %v13200_v41, %v6942_v36 }
 0xa83   : > { %7051 = vst [vmem:[%s10682_s4 + $0xf0] sm:$0xff] %v6987_v55  ;;  %v7017_v55 = vadd.f32 %v13194_v60, %v6943_v18 }
 0xa84   : > { %7052 = vst [vmem:[%s10682_s4 + $0xf8] sm:$0xff] %v6988_v50  ;;  %v7018_v50 = vadd.f32 %v13196_v38, %v6944_v26 }
 0xa85   : > { %7053 = vst [vmem:[%s10682_s4 + $0x100] sm:$0xff] %v6989_v15  ;;  %v7020_v15 = vadd.f32 %v13200_v41, %v6946_v45 }
 0xa86   : > { %7054 = vst [vmem:[%s10682_s4 + $0x108] sm:$0xff] %v6990_v11 }
 0xa87   : > { %7055 = vst [vmem:[%s10682_s4 + $0x110] sm:$0xff] %v6991_v29 }
 0xa88   : > { %7056 = vst [vmem:[%s10682_s4 + $0x118] sm:$0xff] %v6992_v52 }
 0xa89   : > { %7057 = vst [vmem:[%s10682_s4 + $0x120] sm:$0xff] %v6993_v28 }
 0xa8a   : > { %7058 = vst [vmem:[%s10682_s4 + $0x128] sm:$0xff] %v6994_v37 }
 0xa8b   : > { %7059 = vst [vmem:[%s10682_s4 + $0x130] sm:$0xff] %v6995_v58 }
 0xa8c   : > { %7060 = vst [vmem:[%s10682_s4 + $0x138] sm:$0xff] %v6996_v56 }
 0xa8d   : > { %7061 = vst [vmem:[%s10682_s4 + $0x140] sm:$0xff] %v6997_v10 }
 0xa8e   : > { %7062 = vst [vmem:[%s10682_s4 + $0x148] sm:$0xff] %v6998_v34 }
 0xa8f   : > { %7063 = vst [vmem:[%s10682_s4 + $0x150] sm:$0xff] %v6999_v42 }
 0xa90   : > { %7064 = vst [vmem:[%s10682_s4 + $0x158] sm:$0xff] %v7000_v12 }
 0xa91   : > { %7065 = vst [vmem:[%s10682_s4 + $0x160] sm:$0xff] %v7001_v33 }
 0xa92   : > { %7066 = vst [vmem:[%s10682_s4 + $0x168] sm:$0xff] %v7002_v3 }
 0xa93   : > { %7067 = vst [vmem:[%s10682_s4 + $0x170] sm:$0xff] %v7003_v4 }
 0xa94   : > { %7068 = vst [vmem:[%s10682_s4 + $0x178] sm:$0xff] %v7004_v57 }
 0xa95   : > { %7069 = vst [vmem:[%s10682_s4 + $0x180] sm:$0xff] %v7005_v24 }
 0xa96   : > { %7070 = vst [vmem:[%s10682_s4 + $0x188] sm:$0xff] %v7006_v7 }
 0xa97   : > { %7071 = vst [vmem:[%s10682_s4 + $0x190] sm:$0xff] %v7007_v43 }
 0xa98   : > { %7072 = vst [vmem:[%s10682_s4 + $0x198] sm:$0xff] %v7008_v30 }
 0xa99   : > { %7073 = vst [vmem:[%s10682_s4 + $0x1a0] sm:$0xff] %v7009_v39 }
 0xa9a   : > { %7074 = vst [vmem:[%s10682_s4 + $0x1a8] sm:$0xff] %v7010_v32 }
 0xa9b   : > { %7075 = vst [vmem:[%s10682_s4 + $0x1b0] sm:$0xff] %v7011_v19 }
 0xa9c   : > { %7076 = vst [vmem:[%s10682_s4 + $0x1b8] sm:$0xff] %v7012_v22 }
 0xa9d   : > { %7077 = vst [vmem:[%s10682_s4 + $0x1c0] sm:$0xff] %v7013_v0 }
 0xa9e   : > { %7078 = vst [vmem:[%s10682_s4 + $0x1c8] sm:$0xff] %v7014_v31 }
 0xa9f   : > { %7079 = vst [vmem:[%s10682_s4 + $0x1d0] sm:$0xff] %v7015_v47 }
 0xaa0   : > { %7080 = vst [vmem:[%s10682_s4 + $0x1d8] sm:$0xff] %v7016_v27 }
 0xaa1   : > { %7081 = vst [vmem:[%s10682_s4 + $0x1e0] sm:$0xff] %v7017_v55 }
 0xaa2   : > { %7082 = vst [vmem:[%s10682_s4 + $0x1e8] sm:$0xff] %v7018_v50 }
 0xaa3   : > { %7083 = vst [vmem:[%s10682_s4 + $0x1f0] sm:$0xff] %v7019_v54 }
 0xaa4   : > { %7084 = vst [vmem:[%s10682_s4 + $0x1f8] sm:$0xff] %v7020_v15 }
 0xaa5 PF: > { %s13756_s0 = sld [smem:[#allocation32_spill]]  ;;  %s7101_s2 = sshll.u32 %s10682_s4, 4  ;;  %s7102_s2 = int_to_ptr.vmem [resolvable:$true] %s7101_s2 }
 0xaa6   : > { %s13757_s5 = sld [smem:[#allocation33_spill]]  ;;  %s7086_s9 = scalar_lea.sflag [#allocation7], %s638_s18 }
 0xaa7   : > { %s13760_s17 = sld [smem:[#allocation109_spill]] }
 0xaab   : > { %s9501_s10 = sshll.u32 %s13756_s0, 6 }
 0xaac   : > { %s9070_s29 = sshll.u32 %s13757_s5, 7 }
 0xaad   : > { %s7098_s1 = sadd.s32 %s9501_s10, %s9070_s29  ;;  %s13761_s6 = smov %s13760_s17 }
 0xaae   : > { %s9071_s26 = sshll.u32 %s7098_s1, 3  ;;  %s10145_s12 = scalar_lea.hbm %s13761_s6, 2048 }
 0xaaf   : > { %s7100_s19 = scalar_lea.hbm %s13760_s17, %s9071_s26 }
 0xab0   : > { %s7103_s11 = sshll.u32 %s7100_s19, 4  ;;  %s7104_s11 = int_to_ptr.hbm [resolvable:$true] %s7103_s11 }
 0xab1   : > { %s10139_s24 = sshra.s32 %s7104_s11, 4  ;;  %s10140_s24 = int_to_ptr.hbm [resolvable:$true] %s10139_s24 }
 0xab2   : > { %s10141_s27 = scalar_lea.hbm %s10140_s24, 512  ;;  %p10146_p1 = scmp.lt.s32.totalorder %s10140_s24, %s13761_s6 }
 0xab3   : > { %p10142_p12 = scmp.ne.s32.totalorder %s10140_s24, %s10141_s27  ;;  %p10147_p11 = scmp.lt.s32.totalorder %s10145_s12, %s10141_s27 }
 0xab5   : > { %p10143_p7 = pnand %p10142_p12, %p10542_p5  ;;  %p10148_p13 = por %p10147_p11, %p10146_p1 }
 0xab7   : > { %p10144_p9 = pneg %p10143_p7 }
 0xab9   : > { %p10149_p2 = pnand %p10148_p13, %p10144_p9 }
 0xabb   : > { %10152 = shalt.err (!%p10149_p2)
}
 0xabc   : > { %s10311_s18 = smov 512   ;;  %s10312_s28 = smov 32  }
 0xabd   : > { %9520 = dma.vmem_to_hbm [thread:$0]  (%p10542_p5), %s7102_s2, 8192, %s7104_s11, %s7086_s9, %s10311_s18, %s10311_s18, %s10312_s28  }
 0xabe PF: > { %s13762_s15 = sld [smem:[#allocation37_spill]] }
 0xabf   : > { %s13763_s21 = sld [smem:[#allocation26_spill]] }
 0xac4   : > { %p9555_p3 = scmp.ge.s32.totalorder %s13762_s15, 2 }
 0xac5   : > { %s7118_s30 = sand.u32 1, %s13763_s21  }
 0xac6   : > { %p9549_p0 = pnand %p9555_p3, %p10547_p4  ;;  %s7119_s0 = scalar_lea.sflag [#allocation7], %s7118_s30 }
 0xac8   : > { %p9550_p6 = pneg %p9549_p0 }
 0xaca   : > { %10238 = dma.done.wait (%p9550_p6), %s7119_s0, 8192  }
 0xacb   : > { %10240 = vsyncadd (%p9550_p6), %s7119_s0, 4294959104  ;;  %s35_s24 = sadd.s32 1, %s13762_s15   ;;  %s13766_s30 = sld [smem:[#allocation27_spill]] }
 0xacc   : > { %p13353_p8 = scmp.ge.s32.totalorder %s35_s24, 10   ;;  %s13767_s10 = sld [smem:[#allocation28_spill]] }
 0xacd   : > { %s13768_s11 = sld [smem:[#allocation46_spill]]  ;;  %s13779_s12 = smov %s10259_s13 }
 0xace   : > { %s13769_s3 = sld [smem:[#allocation29_spill]]  ;;  %s13781_s15 = smov %s10271_s16 }
 0xacf   : > { %s13770_s14 = sld [smem:[#allocation39_spill]] }
 0xad0   : > { %s13771_s22 = sld [smem:[#allocation30_spill]] }
 0xad1   : > { %s13772_s17 = sld [smem:[#allocation45_spill]] }
 0xad2   : > { %s13773_s18 = sld [smem:[#allocation34_spill]] }
 0xad3   : > { %s13774_s19 = sld [smem:[#allocation35_spill]] }
 0xad4   : > { %s13775_s20 = sld [smem:[#allocation36_spill]]  ;;  %s13780_s13 = smov %s13769_s3 }
 0xad5   : > { %s13776_s21 = sld [smem:[#allocation38_spill]] }
 0xad6   : > { %s13777_s29 = sld [smem:[#allocation43_spill]]  ;;  %s13782_s16 = smov %s13771_s22 }
 0xad7   : > { %s13778_s23 = sld [smem:[#allocation44_spill]] }
 0xad8   :  { %34 = sbr.rel (!%p13353_p8) target bundleno = 29 (0x1d), region = 197 }
 0xadc   : > { %s13783_s22 = smov %s13777_s29 }
 0xadd   :  { %7125 = vsyncpa [#allocation6], 1 }
 0xade   :  { %7127 = vsyncpa [#allocation6 + $0x1], 1 }
 0xadf   :  { %7128 = vsyncpa [#allocation9], 1 }
 0xae0   :  { %7130 = vsyncpa [#allocation9 + $0x1], 1 }
 0xae1   :  { %7131 = vsyncpa [#allocation12], 1 }
 0xae2   :  { %7133 = vsyncpa [#allocation12 + $0x1], 1 }
 0xae3   :  { %7134 = vsyncpa [#allocation15], 1 }
 0xae4   :  { %7136 = vsyncpa [#allocation15 + $0x1], 1 }
 0xae5   :  { %7137 = vsyncpa [#allocation18], 1 }
 0xae6   :  { %7138 = vsyncpa [#allocation7], 1 }
 0xae7   :  { %7140 = vsyncpa [#allocation7 + $0x1], 1 }

</bundles_post_ra>
